<compile_context>
chip_gen: v7x
topology: tpu7x:2x2x1
jax: 0.10.0
libtpu: 0.0.40
codegen_flags: <defaults>
</compile_context>

<pallas_src>
import numpy as np

import jax
import jax.numpy as jnp
from jax import lax
from jax.experimental import pallas as pl
from jax.experimental.pallas import tpu as pltpu


# --------------------------- host-side weight prep ---------------------------

def _band_matrices(w_hwio, w_in, *, w_pad=0, out_block_col=None, out_cols=None):
    """Banded matrices M[di] with (x[di:di+Hout] @ M[di]) summed over di == conv."""
    w = np.asarray(w_hwio, np.float32)
    kh, kw, cin, cout = w.shape
    w_out = w_in + 2 * w_pad - (kw - 1)
    if out_block_col is None:
        out_block_col = [wo * cout for wo in range(w_out)]
    if out_cols is None:
        out_cols = w_out * cout
    M = np.zeros((kh, w_in * cin, out_cols), np.float32)
    for di in range(kh):
        for wo in range(w_out):
            for dj in range(kw):
                wi = wo + dj - w_pad
                if 0 <= wi < w_in:
                    c0 = out_block_col[wo]
                    M[di, wi * cin:(wi + 1) * cin, c0:c0 + cout] = w[di, dj]
    return M


def _row_select(h_in):
    """S (h_in//2, h_in-1) with S[i, 2i] = 1: exact even-row selection matmul."""
    S = np.zeros((h_in // 2, h_in - 1), np.float32)
    for i in range(h_in // 2):
        S[i, 2 * i] = 1.0
    return S


def prepare_params(params, input_hw):
    """One-time host-side reshaping of the PyTorch-style params for the kernel."""
    H, W = input_hw
    w1 = np.asarray(params['w1'], np.float32)
    w2 = np.asarray(params['w2'], np.float32)
    w3 = np.asarray(params['w3'], np.float32)
    w4 = np.asarray(params['w4'], np.float32)
    b1 = np.asarray(params['b1'], np.float32)
    b2 = np.asarray(params['b2'], np.float32)
    b3 = np.asarray(params['b3'], np.float32)
    b4 = np.asarray(params['b4'], np.float32)
    wf1 = np.asarray(params['w_fc1'], np.float32)
    bf1 = np.asarray(params['b_fc1'], np.float32)
    wf2 = np.asarray(params['w_fc2'], np.float32)
    bf2 = np.asarray(params['b_fc2'], np.float32)

    C1, C2, C3, C4 = w1.shape[3], w2.shape[3], w3.shape[3], w4.shape[3]
    W1, H1 = W - 2, H - 2
    W2, H2 = W1 - 2, H1 - 2
    assert H2 % 2 == 0 and W2 % 2 == 0, "pool1 needs even spatial dims"
    Wp1, Hp1 = W2 // 2, H2 // 2
    W3_, H3 = Wp1 - 2, Hp1 - 2
    W4_, H4 = W3_, H3            # conv4 has padding=1
    assert H4 % 2 == 0 and W4_ == 2, "layout assumes conv4 output width == 2"
    Wp2, Hp2 = W4_ // 2, H4 // 2
    assert wf1.shape[0] == C4 * Hp2 * Wp2
    mid = wf1.shape[1]

    # conv1 / conv3: natural output column order.
    M1 = _band_matrices(w1, W)
    M3 = _band_matrices(w3, Wp1)
    # conv2: de-interleave output columns so the two 2x2-pool partners (w, w+1)
    # sit exactly one 128-aligned half apart.
    half = W2 // 2
    deint = [(wo // 2) * C2 if wo % 2 == 0 else (half + wo // 2) * C2
             for wo in range(W2)]
    M2 = _band_matrices(w2, W1, out_block_col=deint, out_cols=W2 * C2)
    # conv4: padding=1 in W folded into the band matrix; output blocks padded
    # to 128 lanes each so the pool split stays 128-aligned.
    M4 = _band_matrices(w4, W3_, w_pad=1,
                        out_block_col=[wo * 2 * C4 for wo in range(W4_)],
                        out_cols=2 * W4_ * C4)

    b1row = np.tile(b1, W1)[None, :]
    b2row = np.tile(b2, W2)[None, :]
    b3row = np.tile(b3, W3_)[None, :]
    b4row = np.zeros((1, 2 * W4_ * C4), np.float32)
    for wo in range(W4_):
        b4row[0, wo * 2 * C4: wo * 2 * C4 + C4] = b4

    # fc1: PyTorch flattens NCHW (index c*Hp2*Wp2 + h); re-order to (h, c),
    # zero-pad channels to 2*C4 lanes to match the pooled activation layout,
    # then flatten to a single (Hp2*Wp2*2*C4, mid) matrix so fc1 is one matmul.
    wf1r = wf1.reshape(C4, Hp2 * Wp2, mid).transpose(1, 0, 2)   # (Hp2*Wp2, C4, mid)
    wf1p = np.zeros((Hp2 * Wp2, 2 * C4, mid), np.float32)
    wf1p[:, :C4, :] = wf1r
    wf1_flat = wf1p.reshape(Hp2 * Wp2 * 2 * C4, mid)

    return {
        'M1': jnp.asarray(M1), 'b1row': jnp.asarray(b1row),
        'M2': jnp.asarray(M2), 'b2row': jnp.asarray(b2row),
        'M3': jnp.asarray(M3), 'b3row': jnp.asarray(b3row),
        'M4': jnp.asarray(M4), 'b4row': jnp.asarray(b4row),
        'S1': jnp.asarray(_row_select(H2)),
        'S2': jnp.asarray(_row_select(H4)),
        'wfc1': jnp.asarray(wf1_flat), 'bfc1row': jnp.asarray(bf1[None, :]),
        'wfc2': jnp.asarray(wf2), 'bfc2row': jnp.asarray(bf2[None, :]),
    }


# --------------------------------- kernel ------------------------------------

def _sad_cnn_kernel(x_ref, m1_ref, b1_ref, m2_ref, b2_ref, m3_ref, b3_ref,
                    m4_ref, b4_ref, s1_ref, s2_ref, wfc1_ref, bfc1_ref,
                    wfc2_ref, bfc2_ref, o_ref,
                    a1_ref, c2_ref, p1_ref, a3p_ref, c4_ref, p2f_ref):
    f32 = jnp.float32
    B = x_ref.shape[0]
    H1 = a1_ref.shape[1]            # conv1 out rows
    H2 = c2_ref.shape[1]            # conv2 out rows
    H3 = a3p_ref.shape[1] - 2       # conv3 out rows (buffer has 1-row halo)
    H4 = c4_ref.shape[1]            # conv4 out rows
    half2 = c2_ref.shape[2] // 2    # 128-aligned pool split (conv2)
    half4 = c4_ref.shape[2] // 2    # 128-aligned pool split (conv4)
    n_p2 = s2_ref.shape[0]          # pooled rows feeding fc1 (Wp2 == 1)

    def conv(rows, m_ref, b_ref):
        acc = jnp.dot(rows(0), m_ref[0], preferred_element_type=f32)
        acc = acc + jnp.dot(rows(1), m_ref[1], preferred_element_type=f32)
        acc = acc + jnp.dot(rows(2), m_ref[2], preferred_element_type=f32)
        return acc + b_ref[...]

    for b in range(B):                                   # static (B is tiny)
        # conv1 + relu
        acc1 = conv(lambda di, b=b: x_ref[b, di:di + H1, :], m1_ref, b1_ref)
        a1_ref[b, :, :] = jnp.maximum(acc1, 0.0)
        # conv2 (+bias); output columns pre-de-interleaved for the pool split
        c2_ref[b, :, :] = conv(lambda di, b=b: a1_ref[b, di:di + H2, :],
                               m2_ref, b2_ref)
        # 2x2 maxpool + relu (row-pair max, column-half max, even-row select)
        rmax = jnp.maximum(c2_ref[b, 0:H2 - 1, :], c2_ref[b, 1:H2, :])
        wmax = jnp.maximum(rmax[:, :half2], rmax[:, half2:])
        p1_ref[b, :, :] = jnp.maximum(
            jnp.dot(s1_ref[...], wmax, preferred_element_type=f32), 0.0)
        # conv3 + relu, written into the zero-bordered buffer for conv4's pad=1
        acc3 = conv(lambda di, b=b: p1_ref[b, di:di + H3, :], m3_ref, b3_ref)
        zrow = jnp.zeros((1, a3p_ref.shape[2]), f32)
        a3p_ref[b, 0:1, :] = zrow
        a3p_ref[b, H3 + 1:H3 + 2, :] = zrow
        a3p_ref[b, 1:H3 + 1, :] = jnp.maximum(acc3, 0.0)
        # conv4 (+bias); W-halo already folded into the band matrix
        c4_ref[b, :, :] = conv(lambda di, b=b: a3p_ref[b, di:di + H4, :],
                               m4_ref, b4_ref)
        # 2x2 maxpool + relu, flattened row-major into the fc1 input slab
        rmax4 = jnp.maximum(c4_ref[b, 0:H4 - 1, :], c4_ref[b, 1:H4, :])
        wmax4 = jnp.maximum(rmax4[:, :half4], rmax4[:, half4:])
        pooled = jnp.maximum(
            jnp.dot(s2_ref[...], wmax4, preferred_element_type=f32), 0.0)
        for h in range(n_p2):
            p2f_ref[b:b + 1, h * half4:(h + 1) * half4] = pooled[h:h + 1, :]

    # fully-connected head, batched over all images: one matmul per layer.
    # (channel padding in p2f multiplies zero-padded fc1 weight rows -> inert)
    acc5 = jnp.dot(p2f_ref[...], wfc1_ref[...],
                   preferred_element_type=f32) + bfc1_ref[...]
    out5 = jnp.maximum(acc5, 0.0)
    o_ref[...] = jnp.dot(out5, wfc2_ref[...],
                         preferred_element_type=f32) + bfc2_ref[...]


# -------------------------------- wrapper ------------------------------------

def _full_spec(arr):
    shape = tuple(arr.shape)
    nd = len(shape)
    return pl.BlockSpec(shape, lambda i, _nd=nd: (0,) * _nd)


def sad_cnn_forward(x_nchw, prep):
    """Single fused Pallas kernel for SAD_CNN_Net.forward."""
    B, Cin, H, W = x_nchw.shape
    x2 = jnp.transpose(x_nchw, (0, 2, 3, 1)).reshape(B, H, W * Cin)

    args = (x2, prep['M1'], prep['b1row'], prep['M2'], prep['b2row'],
            prep['M3'], prep['b3row'], prep['M4'], prep['b4row'],
            prep['S1'], prep['S2'], prep['wfc1'], prep['bfc1row'],
            prep['wfc2'], prep['bfc2row'])

    H1, H2 = H - 2, H - 4
    Hp1 = H2 // 2
    H3 = Hp1 - 2
    H4 = H3
    out_dim = prep['wfc2'].shape[1]

    scratch_shapes = [
        pltpu.VMEM((B, H1, prep['M1'].shape[2]), jnp.float32),      # conv1 out
        pltpu.VMEM((B, H2, prep['M2'].shape[2]), jnp.float32),      # conv2 out
        pltpu.VMEM((B, Hp1, prep['M3'].shape[1]), jnp.float32),     # pooled1
        pltpu.VMEM((B, H3 + 2, prep['M4'].shape[1]), jnp.float32),  # conv3 out (+halo)
        pltpu.VMEM((B, H4, prep['M4'].shape[2]), jnp.float32),      # conv4 out
        pltpu.VMEM((B, prep['wfc1'].shape[0]), jnp.float32),        # pooled2 (flat)
    ]

    return pl.pallas_call(
        _sad_cnn_kernel,
        out_shape=jax.ShapeDtypeStruct((B, out_dim), jnp.float32),
        grid=(1,),
        in_specs=[_full_spec(a) for a in args],
        out_specs=pl.BlockSpec((B, out_dim), lambda i: (0, 0)),
        scratch_shapes=scratch_shapes,
        compiler_params=pltpu.CompilerParams(
            dimension_semantics=("arbitrary",)),
    )(*args)


# ---------------------------- pure-JAX reference -----------------------------

def ref_forward(x_nchw, params):
    x = jnp.transpose(x_nchw, (0, 2, 3, 1))
    dn = ('NHWC', 'HWIO', 'NHWC')

    def conv(x, w, b, pad):
        y = lax.conv_general_dilated(x, w, (1, 1), [(pad, pad), (pad, pad)],
                                     dimension_numbers=dn)
        return y + b

    def mp(x):
        return lax.reduce_window(x, -jnp.inf, lax.max,
                                 (1, 2, 2, 1), (1, 2, 2, 1), 'VALID')

    out1 = jax.nn.relu(conv(x, params['w1'], params['b1'], 0))
    out2 = jax.nn.relu(mp(conv(out1, params['w2'], params['b2'], 0)))
    out3 = jax.nn.relu(conv(out2, params['w3'], params['b3'], 0))
    out4 = jax.nn.relu(mp(conv(out3, params['w4'], params['b4'], 1)))
    B = out4.shape[0]
    flat = jnp.transpose(out4, (0, 3, 1, 2)).reshape(B, -1)
    out5 = jax.nn.relu(flat @ params['w_fc1'] + params['b_fc1'])
    return out5 @ params['w_fc2'] + params['b_fc2']


# ---------------------------------- main --------------------------------------

if __name__ == "__main__":
    key = jax.random.PRNGKey(0)
    # H=24, W=12 makes the final feature map 64 x 4 x 1 = 256 = fc1 in_features.
    B, Cin, H, W = 2, 1, 24, 12
    mid, out_dim = 32, 8

    keys = jax.random.split(key, 13)

    def init(k, shape, fan_in):
        return jax.random.normal(k, shape, jnp.float32) / jnp.sqrt(float(fan_in))

    params = {
        'w1': init(keys[0], (3, 3, Cin, 32), 9 * Cin),
        'b1': init(keys[1], (32,), 9 * Cin),
        'w2': init(keys[2], (3, 3, 32, 64), 9 * 32),
        'b2': init(keys[3], (64,), 9 * 32),
        'w3': init(keys[4], (3, 3, 64, 64), 9 * 64),
        'b3': init(keys[5], (64,), 9 * 64),
        'w4': init(keys[6], (3, 3, 64, 64), 9 * 64),
        'b4': init(keys[7], (64,), 9 * 64),
        'w_fc1': init(keys[8], (64 * 4 * 1, mid), 64 * 4 * 1),
        'b_fc1': init(keys[9], (mid,), 64 * 4 * 1),
        'w_fc2': init(keys[10], (mid, out_dim), mid),
        'b_fc2': init(keys[11], (out_dim,), mid),
    }

    x = jax.random.normal(keys[12], (B, Cin, H, W), jnp.float32)

    prep = prepare_params(params, (H, W))          # one-time host-side prep

    fwd = jax.jit(sad_cnn_forward)
    out = fwd(x, prep)
    jax.block_until_ready(out)

    ref = ref_forward(x, params)
    assert out.shape == (B, out_dim)
    if not jnp.allclose(out, ref, atol=1e-3, rtol=1e-3):
        raise AssertionError("Pallas output mismatches pure-JAX reference")

    print("KERNEL_OK")
</pallas_src>

<mosaic_0001>
module attributes {stable_mosaic.version = 11 : i64} {
  func.func @_sad_cnn_kernel(%arg0: i32, %arg1: memref<2x24x12xf32, #tpu.memory_space<vmem>>, %arg2: memref<3x12x320xf32, #tpu.memory_space<vmem>>, %arg3: memref<1x320xf32, #tpu.memory_space<vmem>>, %arg4: memref<3x320x512xf32, #tpu.memory_space<vmem>>, %arg5: memref<1x512xf32, #tpu.memory_space<vmem>>, %arg6: memref<3x256x128xf32, #tpu.memory_space<vmem>>, %arg7: memref<1x128xf32, #tpu.memory_space<vmem>>, %arg8: memref<3x128x256xf32, #tpu.memory_space<vmem>>, %arg9: memref<1x256xf32, #tpu.memory_space<vmem>>, %arg10: memref<10x19xf32, #tpu.memory_space<vmem>>, %arg11: memref<4x7xf32, #tpu.memory_space<vmem>>, %arg12: memref<512x32xf32, #tpu.memory_space<vmem>>, %arg13: memref<1x32xf32, #tpu.memory_space<vmem>>, %arg14: memref<32x8xf32, #tpu.memory_space<vmem>>, %arg15: memref<1x8xf32, #tpu.memory_space<vmem>>, %arg16: memref<2x8xf32, #tpu.memory_space<vmem>>, %arg17: memref<2x22x320xf32, #tpu.memory_space<vmem>>, %arg18: memref<2x20x512xf32, #tpu.memory_space<vmem>>, %arg19: memref<2x10x256xf32, #tpu.memory_space<vmem>>, %arg20: memref<2x10x128xf32, #tpu.memory_space<vmem>>, %arg21: memref<2x8x256xf32, #tpu.memory_space<vmem>>, %arg22: memref<2x512xf32, #tpu.memory_space<vmem>>) attributes {dimension_semantics = [#tpu.dimension_semantics<arbitrary>], iteration_bounds = array<i64: 1>, scalar_prefetch = 0 : i64, scratch_operands = 6 : i64, tpu.core_type = #tpu.core_type<tc>, window_params = [{pipeline_mode = #tpu.pipeline_mode<synchronous>, transform_indices = @transform_0, window_bounds = array<i64: 2, 24, 12>}, {pipeline_mode = #tpu.pipeline_mode<synchronous>, transform_indices = @transform_1, window_bounds = array<i64: 3, 12, 320>}, {pipeline_mode = #tpu.pipeline_mode<synchronous>, transform_indices = @transform_2, window_bounds = array<i64: 1, 320>}, {pipeline_mode = #tpu.pipeline_mode<synchronous>, transform_indices = @transform_3, window_bounds = array<i64: 3, 320, 512>}, {pipeline_mode = #tpu.pipeline_mode<synchronous>, transform_indices = @transform_4, window_bounds = array<i64: 1, 512>}, {pipeline_mode = #tpu.pipeline_mode<synchronous>, transform_indices = @transform_5, window_bounds = array<i64: 3, 256, 128>}, {pipeline_mode = #tpu.pipeline_mode<synchronous>, transform_indices = @transform_6, window_bounds = array<i64: 1, 128>}, {pipeline_mode = #tpu.pipeline_mode<synchronous>, transform_indices = @transform_7, window_bounds = array<i64: 3, 128, 256>}, {pipeline_mode = #tpu.pipeline_mode<synchronous>, transform_indices = @transform_8, window_bounds = array<i64: 1, 256>}, {pipeline_mode = #tpu.pipeline_mode<synchronous>, transform_indices = @transform_9, window_bounds = array<i64: 10, 19>}, {pipeline_mode = #tpu.pipeline_mode<synchronous>, transform_indices = @transform_10, window_bounds = array<i64: 4, 7>}, {pipeline_mode = #tpu.pipeline_mode<synchronous>, transform_indices = @transform_11, window_bounds = array<i64: 512, 32>}, {pipeline_mode = #tpu.pipeline_mode<synchronous>, transform_indices = @transform_12, window_bounds = array<i64: 1, 32>}, {pipeline_mode = #tpu.pipeline_mode<synchronous>, transform_indices = @transform_13, window_bounds = array<i64: 32, 8>}, {pipeline_mode = #tpu.pipeline_mode<synchronous>, transform_indices = @transform_14, window_bounds = array<i64: 1, 8>}, {pipeline_mode = #tpu.pipeline_mode<synchronous>, transform_indices = @transform_15, window_bounds = array<i64: 2, 8>}]} {
    %c0 = arith.constant 0 : index
    %c0_0 = arith.constant 0 : index
    %c0_1 = arith.constant 0 : index
    %0 = vector.load %arg1[%c0, %c0_0, %c0_1] : memref<2x24x12xf32, #tpu.memory_space<vmem>>, vector<1x22x12xf32>
    %1 = vector.shape_cast %0 : vector<1x22x12xf32> to vector<22x12xf32>
    %c0_2 = arith.constant 0 : index
    %c0_3 = arith.constant 0 : index
    %c0_4 = arith.constant 0 : index
    %2 = vector.load %arg2[%c0_2, %c0_3, %c0_4] : memref<3x12x320xf32, #tpu.memory_space<vmem>>, vector<1x12x320xf32>
    %3 = vector.shape_cast %2 : vector<1x12x320xf32> to vector<12x320xf32>
    %cst = arith.constant dense<0.000000e+00> : vector<22x320xf32>
    %4 = tpu.matmul %1, %3, %cst {dimension_numbers = #tpu.dot_dimension_numbers<[1], [0], [0], [1], [0, 0, 1, 1], [], []>} : vector<22x12xf32>, vector<12x320xf32>, vector<22x320xf32> -> vector<22x320xf32>
    %c0_5 = arith.constant 0 : index
    %c1 = arith.constant 1 : index
    %c0_6 = arith.constant 0 : index
    %5 = vector.load %arg1[%c0_5, %c1, %c0_6] : memref<2x24x12xf32, #tpu.memory_space<vmem>>, vector<1x22x12xf32>
    %6 = vector.shape_cast %5 : vector<1x22x12xf32> to vector<22x12xf32>
    %c1_7 = arith.constant 1 : index
    %c0_8 = arith.constant 0 : index
    %c0_9 = arith.constant 0 : index
    %7 = vector.load %arg2[%c1_7, %c0_8, %c0_9] : memref<3x12x320xf32, #tpu.memory_space<vmem>>, vector<1x12x320xf32>
    %8 = vector.shape_cast %7 : vector<1x12x320xf32> to vector<12x320xf32>
    %cst_10 = arith.constant dense<0.000000e+00> : vector<22x320xf32>
    %9 = tpu.matmul %6, %8, %cst_10 {dimension_numbers = #tpu.dot_dimension_numbers<[1], [0], [0], [1], [0, 0, 1, 1], [], []>} : vector<22x12xf32>, vector<12x320xf32>, vector<22x320xf32> -> vector<22x320xf32>
    %10 = arith.addf %4, %9 : vector<22x320xf32>
    %c0_11 = arith.constant 0 : index
    %c2 = arith.constant 2 : index
    %c0_12 = arith.constant 0 : index
    %11 = vector.load %arg1[%c0_11, %c2, %c0_12] : memref<2x24x12xf32, #tpu.memory_space<vmem>>, vector<1x22x12xf32>
    %12 = vector.shape_cast %11 : vector<1x22x12xf32> to vector<22x12xf32>
    %c2_13 = arith.constant 2 : index
    %c0_14 = arith.constant 0 : index
    %c0_15 = arith.constant 0 : index
    %13 = vector.load %arg2[%c2_13, %c0_14, %c0_15] : memref<3x12x320xf32, #tpu.memory_space<vmem>>, vector<1x12x320xf32>
    %14 = vector.shape_cast %13 : vector<1x12x320xf32> to vector<12x320xf32>
    %cst_16 = arith.constant dense<0.000000e+00> : vector<22x320xf32>
    %15 = tpu.matmul %12, %14, %cst_16 {dimension_numbers = #tpu.dot_dimension_numbers<[1], [0], [0], [1], [0, 0, 1, 1], [], []>} : vector<22x12xf32>, vector<12x320xf32>, vector<22x320xf32> -> vector<22x320xf32>
    %16 = arith.addf %10, %15 : vector<22x320xf32>
    %c0_17 = arith.constant 0 : index
    %c0_18 = arith.constant 0 : index
    %17 = vector.load %arg3[%c0_17, %c0_18] : memref<1x320xf32, #tpu.memory_space<vmem>>, vector<1x320xf32>
    %18 = vector.broadcast %17 : vector<1x320xf32> to vector<22x320xf32>
    %19 = arith.addf %16, %18 : vector<22x320xf32>
    %cst_19 = arith.constant 0.000000e+00 : f32
    %20 = vector.broadcast %cst_19 : f32 to vector<22x320xf32>
    %21 = arith.maximumf %19, %20 : vector<22x320xf32>
    %c0_20 = arith.constant 0 : index
    %c0_21 = arith.constant 0 : index
    %c0_22 = arith.constant 0 : index
    %22 = vector.load %arg17[%c0_20, %c0_21, %c0_22] : memref<2x22x320xf32, #tpu.memory_space<vmem>>, vector<1x22x320xf32>
    %23 = vector.shape_cast %22 : vector<1x22x320xf32> to vector<22x320xf32>
    %24 = vector.shape_cast %21 : vector<22x320xf32> to vector<1x22x320xf32>
    tpu.vector_store %arg17[%c0_20, %c0_21, %c0_22], %24 {strides = array<i32>} : memref<2x22x320xf32, #tpu.memory_space<vmem>>, vector<1x22x320xf32>,
    %c0_23 = arith.constant 0 : index
    %c0_24 = arith.constant 0 : index
    %c0_25 = arith.constant 0 : index
    %25 = vector.load %arg17[%c0_23, %c0_24, %c0_25] : memref<2x22x320xf32, #tpu.memory_space<vmem>>, vector<1x20x320xf32>
    %26 = vector.shape_cast %25 : vector<1x20x320xf32> to vector<20x320xf32>
    %c0_26 = arith.constant 0 : index
    %c0_27 = arith.constant 0 : index
    %c0_28 = arith.constant 0 : index
    %27 = vector.load %arg4[%c0_26, %c0_27, %c0_28] : memref<3x320x512xf32, #tpu.memory_space<vmem>>, vector<1x320x512xf32>
    %28 = vector.shape_cast %27 : vector<1x320x512xf32> to vector<320x512xf32>
    %cst_29 = arith.constant dense<0.000000e+00> : vector<20x512xf32>
    %29 = tpu.matmul %26, %28, %cst_29 {dimension_numbers = #tpu.dot_dimension_numbers<[1], [0], [0], [1], [0, 0, 1, 1], [], []>} : vector<20x320xf32>, vector<320x512xf32>, vector<20x512xf32> -> vector<20x512xf32>
    %c0_30 = arith.constant 0 : index
    %c1_31 = arith.constant 1 : index
    %c0_32 = arith.constant 0 : index
    %30 = vector.load %arg17[%c0_30, %c1_31, %c0_32] : memref<2x22x320xf32, #tpu.memory_space<vmem>>, vector<1x20x320xf32>
    %31 = vector.shape_cast %30 : vector<1x20x320xf32> to vector<20x320xf32>
    %c1_33 = arith.constant 1 : index
    %c0_34 = arith.constant 0 : index
    %c0_35 = arith.constant 0 : index
    %32 = vector.load %arg4[%c1_33, %c0_34, %c0_35] : memref<3x320x512xf32, #tpu.memory_space<vmem>>, vector<1x320x512xf32>
    %33 = vector.shape_cast %32 : vector<1x320x512xf32> to vector<320x512xf32>
    %cst_36 = arith.constant dense<0.000000e+00> : vector<20x512xf32>
    %34 = tpu.matmul %31, %33, %cst_36 {dimension_numbers = #tpu.dot_dimension_numbers<[1], [0], [0], [1], [0, 0, 1, 1], [], []>} : vector<20x320xf32>, vector<320x512xf32>, vector<20x512xf32> -> vector<20x512xf32>
    %35 = arith.addf %29, %34 : vector<20x512xf32>
    %c0_37 = arith.constant 0 : index
    %c2_38 = arith.constant 2 : index
    %c0_39 = arith.constant 0 : index
    %36 = vector.load %arg17[%c0_37, %c2_38, %c0_39] : memref<2x22x320xf32, #tpu.memory_space<vmem>>, vector<1x20x320xf32>
    %37 = vector.shape_cast %36 : vector<1x20x320xf32> to vector<20x320xf32>
    %c2_40 = arith.constant 2 : index
    %c0_41 = arith.constant 0 : index
    %c0_42 = arith.constant 0 : index
    %38 = vector.load %arg4[%c2_40, %c0_41, %c0_42] : memref<3x320x512xf32, #tpu.memory_space<vmem>>, vector<1x320x512xf32>
    %39 = vector.shape_cast %38 : vector<1x320x512xf32> to vector<320x512xf32>
    %cst_43 = arith.constant dense<0.000000e+00> : vector<20x512xf32>
    %40 = tpu.matmul %37, %39, %cst_43 {dimension_numbers = #tpu.dot_dimension_numbers<[1], [0], [0], [1], [0, 0, 1, 1], [], []>} : vector<20x320xf32>, vector<320x512xf32>, vector<20x512xf32> -> vector<20x512xf32>
    %41 = arith.addf %35, %40 : vector<20x512xf32>
    %c0_44 = arith.constant 0 : index
    %c0_45 = arith.constant 0 : index
    %42 = vector.load %arg5[%c0_44, %c0_45] : memref<1x512xf32, #tpu.memory_space<vmem>>, vector<1x512xf32>
    %43 = vector.broadcast %42 : vector<1x512xf32> to vector<20x512xf32>
    %44 = arith.addf %41, %43 : vector<20x512xf32>
    %c0_46 = arith.constant 0 : index
    %c0_47 = arith.constant 0 : index
    %c0_48 = arith.constant 0 : index
    %45 = vector.load %arg18[%c0_46, %c0_47, %c0_48] : memref<2x20x512xf32, #tpu.memory_space<vmem>>, vector<1x20x512xf32>
    %46 = vector.shape_cast %45 : vector<1x20x512xf32> to vector<20x512xf32>
    %47 = vector.shape_cast %44 : vector<20x512xf32> to vector<1x20x512xf32>
    tpu.vector_store %arg18[%c0_46, %c0_47, %c0_48], %47 {strides = array<i32>} : memref<2x20x512xf32, #tpu.memory_space<vmem>>, vector<1x20x512xf32>,
    %c0_49 = arith.constant 0 : index
    %c0_50 = arith.constant 0 : index
    %c0_51 = arith.constant 0 : index
    %48 = vector.load %arg18[%c0_49, %c0_50, %c0_51] : memref<2x20x512xf32, #tpu.memory_space<vmem>>, vector<1x19x512xf32>
    %49 = vector.shape_cast %48 : vector<1x19x512xf32> to vector<19x512xf32>
    %c0_52 = arith.constant 0 : index
    %c1_53 = arith.constant 1 : index
    %c0_54 = arith.constant 0 : index
    %50 = vector.load %arg18[%c0_52, %c1_53, %c0_54] : memref<2x20x512xf32, #tpu.memory_space<vmem>>, vector<1x19x512xf32>
    %51 = vector.shape_cast %50 : vector<1x19x512xf32> to vector<19x512xf32>
    %52 = arith.maximumf %49, %51 : vector<19x512xf32>
    %53 = vector.extract_strided_slice %52 {offsets = [0, 0], sizes = [19, 256], strides = [1, 1]} : vector<19x512xf32> to vector<19x256xf32>
    %54 = vector.extract_strided_slice %52 {offsets = [0, 256], sizes = [19, 256], strides = [1, 1]} : vector<19x512xf32> to vector<19x256xf32>
    %55 = arith.maximumf %53, %54 : vector<19x256xf32>
    %c0_55 = arith.constant 0 : index
    %c0_56 = arith.constant 0 : index
    %56 = vector.load %arg10[%c0_55, %c0_56] : memref<10x19xf32, #tpu.memory_space<vmem>>, vector<10x19xf32>
    %cst_57 = arith.constant dense<0.000000e+00> : vector<10x256xf32>
    %57 = tpu.matmul %56, %55, %cst_57 {dimension_numbers = #tpu.dot_dimension_numbers<[1], [0], [0], [1], [0, 0, 1, 1], [], []>} : vector<10x19xf32>, vector<19x256xf32>, vector<10x256xf32> -> vector<10x256xf32>
    %cst_58 = arith.constant 0.000000e+00 : f32
    %58 = vector.broadcast %cst_58 : f32 to vector<10x256xf32>
    %59 = arith.maximumf %57, %58 : vector<10x256xf32>
    %c0_59 = arith.constant 0 : index
    %c0_60 = arith.constant 0 : index
    %c0_61 = arith.constant 0 : index
    %60 = vector.load %arg19[%c0_59, %c0_60, %c0_61] : memref<2x10x256xf32, #tpu.memory_space<vmem>>, vector<1x10x256xf32>
    %61 = vector.shape_cast %60 : vector<1x10x256xf32> to vector<10x256xf32>
    %62 = vector.shape_cast %59 : vector<10x256xf32> to vector<1x10x256xf32>
    tpu.vector_store %arg19[%c0_59, %c0_60, %c0_61], %62 {strides = array<i32>} : memref<2x10x256xf32, #tpu.memory_space<vmem>>, vector<1x10x256xf32>,
    %c0_62 = arith.constant 0 : index
    %c0_63 = arith.constant 0 : index
    %c0_64 = arith.constant 0 : index
    %63 = vector.load %arg19[%c0_62, %c0_63, %c0_64] : memref<2x10x256xf32, #tpu.memory_space<vmem>>, vector<1x8x256xf32>
    %64 = vector.shape_cast %63 : vector<1x8x256xf32> to vector<8x256xf32>
    %c0_65 = arith.constant 0 : index
    %c0_66 = arith.constant 0 : index
    %c0_67 = arith.constant 0 : index
    %65 = vector.load %arg6[%c0_65, %c0_66, %c0_67] : memref<3x256x128xf32, #tpu.memory_space<vmem>>, vector<1x256x128xf32>
    %66 = vector.shape_cast %65 : vector<1x256x128xf32> to vector<256x128xf32>
    %cst_68 = arith.constant dense<0.000000e+00> : vector<8x128xf32>
    %67 = tpu.matmul %64, %66, %cst_68 {dimension_numbers = #tpu.dot_dimension_numbers<[1], [0], [0], [1], [0, 0, 1, 1], [], []>} : vector<8x256xf32>, vector<256x128xf32>, vector<8x128xf32> -> vector<8x128xf32>
    %c0_69 = arith.constant 0 : index
    %c1_70 = arith.constant 1 : index
    %c0_71 = arith.constant 0 : index
    %68 = vector.load %arg19[%c0_69, %c1_70, %c0_71] : memref<2x10x256xf32, #tpu.memory_space<vmem>>, vector<1x8x256xf32>
    %69 = vector.shape_cast %68 : vector<1x8x256xf32> to vector<8x256xf32>
    %c1_72 = arith.constant 1 : index
    %c0_73 = arith.constant 0 : index
    %c0_74 = arith.constant 0 : index
    %70 = vector.load %arg6[%c1_72, %c0_73, %c0_74] : memref<3x256x128xf32, #tpu.memory_space<vmem>>, vector<1x256x128xf32>
    %71 = vector.shape_cast %70 : vector<1x256x128xf32> to vector<256x128xf32>
    %cst_75 = arith.constant dense<0.000000e+00> : vector<8x128xf32>
    %72 = tpu.matmul %69, %71, %cst_75 {dimension_numbers = #tpu.dot_dimension_numbers<[1], [0], [0], [1], [0, 0, 1, 1], [], []>} : vector<8x256xf32>, vector<256x128xf32>, vector<8x128xf32> -> vector<8x128xf32>
    %73 = arith.addf %67, %72 : vector<8x128xf32>
    %c0_76 = arith.constant 0 : index
    %c2_77 = arith.constant 2 : index
    %c0_78 = arith.constant 0 : index
    %74 = vector.load %arg19[%c0_76, %c2_77, %c0_78] : memref<2x10x256xf32, #tpu.memory_space<vmem>>, vector<1x8x256xf32>
    %75 = vector.shape_cast %74 : vector<1x8x256xf32> to vector<8x256xf32>
    %c2_79 = arith.constant 2 : index
    %c0_80 = arith.constant 0 : index
    %c0_81 = arith.constant 0 : index
    %76 = vector.load %arg6[%c2_79, %c0_80, %c0_81] : memref<3x256x128xf32, #tpu.memory_space<vmem>>, vector<1x256x128xf32>
    %77 = vector.shape_cast %76 : vector<1x256x128xf32> to vector<256x128xf32>
    %cst_82 = arith.constant dense<0.000000e+00> : vector<8x128xf32>
    %78 = tpu.matmul %75, %77, %cst_82 {dimension_numbers = #tpu.dot_dimension_numbers<[1], [0], [0], [1], [0, 0, 1, 1], [], []>} : vector<8x256xf32>, vector<256x128xf32>, vector<8x128xf32> -> vector<8x128xf32>
    %79 = arith.addf %73, %78 : vector<8x128xf32>
    %c0_83 = arith.constant 0 : index
    %c0_84 = arith.constant 0 : index
    %80 = vector.load %arg7[%c0_83, %c0_84] : memref<1x128xf32, #tpu.memory_space<vmem>>, vector<1x128xf32>
    %81 = vector.broadcast %80 : vector<1x128xf32> to vector<8x128xf32>
    %82 = arith.addf %79, %81 : vector<8x128xf32>
    %cst_85 = arith.constant 0.000000e+00 : f32
    %83 = vector.broadcast %cst_85 : f32 to vector<1x128xf32>
    %c0_86 = arith.constant 0 : index
    %c0_87 = arith.constant 0 : index
    %c0_88 = arith.constant 0 : index
    %84 = vector.load %arg20[%c0_86, %c0_87, %c0_88] : memref<2x10x128xf32, #tpu.memory_space<vmem>>, vector<1x1x128xf32>
    %85 = vector.shape_cast %84 : vector<1x1x128xf32> to vector<1x128xf32>
    %86 = vector.shape_cast %83 : vector<1x128xf32> to vector<1x1x128xf32>
    tpu.vector_store %arg20[%c0_86, %c0_87, %c0_88], %86 {strides = array<i32>} : memref<2x10x128xf32, #tpu.memory_space<vmem>>, vector<1x1x128xf32>,
    %c0_89 = arith.constant 0 : index
    %c9 = arith.constant 9 : index
    %c0_90 = arith.constant 0 : index
    %87 = vector.load %arg20[%c0_89, %c9, %c0_90] : memref<2x10x128xf32, #tpu.memory_space<vmem>>, vector<1x1x128xf32>
    %88 = vector.shape_cast %87 : vector<1x1x128xf32> to vector<1x128xf32>
    %89 = vector.shape_cast %83 : vector<1x128xf32> to vector<1x1x128xf32>
    tpu.vector_store %arg20[%c0_89, %c9, %c0_90], %89 {strides = array<i32>} : memref<2x10x128xf32, #tpu.memory_space<vmem>>, vector<1x1x128xf32>,
    %cst_91 = arith.constant 0.000000e+00 : f32
    %90 = vector.broadcast %cst_91 : f32 to vector<8x128xf32>
    %91 = arith.maximumf %82, %90 : vector<8x128xf32>
    %c0_92 = arith.constant 0 : index
    %c1_93 = arith.constant 1 : index
    %c0_94 = arith.constant 0 : index
    %92 = vector.load %arg20[%c0_92, %c1_93, %c0_94] : memref<2x10x128xf32, #tpu.memory_space<vmem>>, vector<1x8x128xf32>
    %93 = vector.shape_cast %92 : vector<1x8x128xf32> to vector<8x128xf32>
    %94 = vector.shape_cast %91 : vector<8x128xf32> to vector<1x8x128xf32>
    tpu.vector_store %arg20[%c0_92, %c1_93, %c0_94], %94 {strides = array<i32>} : memref<2x10x128xf32, #tpu.memory_space<vmem>>, vector<1x8x128xf32>,
    %c0_95 = arith.constant 0 : index
    %c0_96 = arith.constant 0 : index
    %c0_97 = arith.constant 0 : index
    %95 = vector.load %arg20[%c0_95, %c0_96, %c0_97] : memref<2x10x128xf32, #tpu.memory_space<vmem>>, vector<1x8x128xf32>
    %96 = vector.shape_cast %95 : vector<1x8x128xf32> to vector<8x128xf32>
    %c0_98 = arith.constant 0 : index
    %c0_99 = arith.constant 0 : index
    %c0_100 = arith.constant 0 : index
    %97 = vector.load %arg8[%c0_98, %c0_99, %c0_100] : memref<3x128x256xf32, #tpu.memory_space<vmem>>, vector<1x128x256xf32>
    %98 = vector.shape_cast %97 : vector<1x128x256xf32> to vector<128x256xf32>
    %cst_101 = arith.constant dense<0.000000e+00> : vector<8x256xf32>
    %99 = tpu.matmul %96, %98, %cst_101 {dimension_numbers = #tpu.dot_dimension_numbers<[1], [0], [0], [1], [0, 0, 1, 1], [], []>} : vector<8x128xf32>, vector<128x256xf32>, vector<8x256xf32> -> vector<8x256xf32>
    %c0_102 = arith.constant 0 : index
    %c1_103 = arith.constant 1 : index
    %c0_104 = arith.constant 0 : index
    %100 = vector.load %arg20[%c0_102, %c1_103, %c0_104] : memref<2x10x128xf32, #tpu.memory_space<vmem>>, vector<1x8x128xf32>
    %101 = vector.shape_cast %100 : vector<1x8x128xf32> to vector<8x128xf32>
    %c1_105 = arith.constant 1 : index
    %c0_106 = arith.constant 0 : index
    %c0_107 = arith.constant 0 : index
    %102 = vector.load %arg8[%c1_105, %c0_106, %c0_107] : memref<3x128x256xf32, #tpu.memory_space<vmem>>, vector<1x128x256xf32>
    %103 = vector.shape_cast %102 : vector<1x128x256xf32> to vector<128x256xf32>
    %cst_108 = arith.constant dense<0.000000e+00> : vector<8x256xf32>
    %104 = tpu.matmul %101, %103, %cst_108 {dimension_numbers = #tpu.dot_dimension_numbers<[1], [0], [0], [1], [0, 0, 1, 1], [], []>} : vector<8x128xf32>, vector<128x256xf32>, vector<8x256xf32> -> vector<8x256xf32>
    %105 = arith.addf %99, %104 : vector<8x256xf32>
    %c0_109 = arith.constant 0 : index
    %c2_110 = arith.constant 2 : index
    %c0_111 = arith.constant 0 : index
    %106 = vector.load %arg20[%c0_109, %c2_110, %c0_111] : memref<2x10x128xf32, #tpu.memory_space<vmem>>, vector<1x8x128xf32>
    %107 = vector.shape_cast %106 : vector<1x8x128xf32> to vector<8x128xf32>
    %c2_112 = arith.constant 2 : index
    %c0_113 = arith.constant 0 : index
    %c0_114 = arith.constant 0 : index
    %108 = vector.load %arg8[%c2_112, %c0_113, %c0_114] : memref<3x128x256xf32, #tpu.memory_space<vmem>>, vector<1x128x256xf32>
    %109 = vector.shape_cast %108 : vector<1x128x256xf32> to vector<128x256xf32>
    %cst_115 = arith.constant dense<0.000000e+00> : vector<8x256xf32>
    %110 = tpu.matmul %107, %109, %cst_115 {dimension_numbers = #tpu.dot_dimension_numbers<[1], [0], [0], [1], [0, 0, 1, 1], [], []>} : vector<8x128xf32>, vector<128x256xf32>, vector<8x256xf32> -> vector<8x256xf32>
    %111 = arith.addf %105, %110 : vector<8x256xf32>
    %c0_116 = arith.constant 0 : index
    %c0_117 = arith.constant 0 : index
    %112 = vector.load %arg9[%c0_116, %c0_117] : memref<1x256xf32, #tpu.memory_space<vmem>>, vector<1x256xf32>
    %113 = vector.broadcast %112 : vector<1x256xf32> to vector<8x256xf32>
    %114 = arith.addf %111, %113 : vector<8x256xf32>
    %c0_118 = arith.constant 0 : index
    %c0_119 = arith.constant 0 : index
    %c0_120 = arith.constant 0 : index
    %115 = vector.load %arg21[%c0_118, %c0_119, %c0_120] : memref<2x8x256xf32, #tpu.memory_space<vmem>>, vector<1x8x256xf32>
    %116 = vector.shape_cast %115 : vector<1x8x256xf32> to vector<8x256xf32>
    %117 = vector.shape_cast %114 : vector<8x256xf32> to vector<1x8x256xf32>
    tpu.vector_store %arg21[%c0_118, %c0_119, %c0_120], %117 {strides = array<i32>} : memref<2x8x256xf32, #tpu.memory_space<vmem>>, vector<1x8x256xf32>,
    %c0_121 = arith.constant 0 : index
    %c0_122 = arith.constant 0 : index
    %c0_123 = arith.constant 0 : index
    %118 = vector.load %arg21[%c0_121, %c0_122, %c0_123] : memref<2x8x256xf32, #tpu.memory_space<vmem>>, vector<1x7x256xf32>
    %119 = vector.shape_cast %118 : vector<1x7x256xf32> to vector<7x256xf32>
    %c0_124 = arith.constant 0 : index
    %c1_125 = arith.constant 1 : index
    %c0_126 = arith.constant 0 : index
    %120 = vector.load %arg21[%c0_124, %c1_125, %c0_126] : memref<2x8x256xf32, #tpu.memory_space<vmem>>, vector<1x7x256xf32>
    %121 = vector.shape_cast %120 : vector<1x7x256xf32> to vector<7x256xf32>
    %122 = arith.maximumf %119, %121 : vector<7x256xf32>
    %123 = vector.extract_strided_slice %122 {offsets = [0, 0], sizes = [7, 128], strides = [1, 1]} : vector<7x256xf32> to vector<7x128xf32>
    %124 = vector.extract_strided_slice %122 {offsets = [0, 128], sizes = [7, 128], strides = [1, 1]} : vector<7x256xf32> to vector<7x128xf32>
    %125 = arith.maximumf %123, %124 : vector<7x128xf32>
    %c0_127 = arith.constant 0 : index
    %c0_128 = arith.constant 0 : index
    %126 = vector.load %arg11[%c0_127, %c0_128] : memref<4x7xf32, #tpu.memory_space<vmem>>, vector<4x7xf32>
    %cst_129 = arith.constant dense<0.000000e+00> : vector<4x128xf32>
    %127 = tpu.matmul %126, %125, %cst_129 {dimension_numbers = #tpu.dot_dimension_numbers<[1], [0], [0], [1], [0, 0, 1, 1], [], []>} : vector<4x7xf32>, vector<7x128xf32>, vector<4x128xf32> -> vector<4x128xf32>
    %cst_130 = arith.constant 0.000000e+00 : f32
    %128 = vector.broadcast %cst_130 : f32 to vector<4x128xf32>
    %129 = arith.maximumf %127, %128 : vector<4x128xf32>
    %130 = vector.extract_strided_slice %129 {offsets = [0, 0], sizes = [1, 128], strides = [1, 1]} : vector<4x128xf32> to vector<1x128xf32>
    %c0_131 = arith.constant 0 : index
    %c0_132 = arith.constant 0 : index
    %131 = vector.load %arg22[%c0_131, %c0_132] : memref<2x512xf32, #tpu.memory_space<vmem>>, vector<1x128xf32>
    tpu.vector_store %arg22[%c0_131, %c0_132], %130 {strides = array<i32>} : memref<2x512xf32, #tpu.memory_space<vmem>>, vector<1x128xf32>,
    %132 = vector.extract_strided_slice %129 {offsets = [1, 0], sizes = [1, 128], strides = [1, 1]} : vector<4x128xf32> to vector<1x128xf32>
    %c0_133 = arith.constant 0 : index
    %c128 = arith.constant 128 : index
    %133 = vector.load %arg22[%c0_133, %c128] : memref<2x512xf32, #tpu.memory_space<vmem>>, vector<1x128xf32>
    tpu.vector_store %arg22[%c0_133, %c128], %132 {strides = array<i32>} : memref<2x512xf32, #tpu.memory_space<vmem>>, vector<1x128xf32>,
    %134 = vector.extract_strided_slice %129 {offsets = [2, 0], sizes = [1, 128], strides = [1, 1]} : vector<4x128xf32> to vector<1x128xf32>
    %c0_134 = arith.constant 0 : index
    %c256 = arith.constant 256 : index
    %135 = vector.load %arg22[%c0_134, %c256] : memref<2x512xf32, #tpu.memory_space<vmem>>, vector<1x128xf32>
    tpu.vector_store %arg22[%c0_134, %c256], %134 {strides = array<i32>} : memref<2x512xf32, #tpu.memory_space<vmem>>, vector<1x128xf32>,
    %136 = vector.extract_strided_slice %129 {offsets = [3, 0], sizes = [1, 128], strides = [1, 1]} : vector<4x128xf32> to vector<1x128xf32>
    %c0_135 = arith.constant 0 : index
    %c384 = arith.constant 384 : index
    %137 = vector.load %arg22[%c0_135, %c384] : memref<2x512xf32, #tpu.memory_space<vmem>>, vector<1x128xf32>
    tpu.vector_store %arg22[%c0_135, %c384], %136 {strides = array<i32>} : memref<2x512xf32, #tpu.memory_space<vmem>>, vector<1x128xf32>,
    %c1_136 = arith.constant 1 : index
    %c0_137 = arith.constant 0 : index
    %c0_138 = arith.constant 0 : index
    %138 = vector.load %arg1[%c1_136, %c0_137, %c0_138] : memref<2x24x12xf32, #tpu.memory_space<vmem>>, vector<1x22x12xf32>
    %139 = vector.shape_cast %138 : vector<1x22x12xf32> to vector<22x12xf32>
    %c0_139 = arith.constant 0 : index
    %c0_140 = arith.constant 0 : index
    %c0_141 = arith.constant 0 : index
    %140 = vector.load %arg2[%c0_139, %c0_140, %c0_141] : memref<3x12x320xf32, #tpu.memory_space<vmem>>, vector<1x12x320xf32>
    %141 = vector.shape_cast %140 : vector<1x12x320xf32> to vector<12x320xf32>
    %cst_142 = arith.constant dense<0.000000e+00> : vector<22x320xf32>
    %142 = tpu.matmul %139, %141, %cst_142 {dimension_numbers = #tpu.dot_dimension_numbers<[1], [0], [0], [1], [0, 0, 1, 1], [], []>} : vector<22x12xf32>, vector<12x320xf32>, vector<22x320xf32> -> vector<22x320xf32>
    %c1_143 = arith.constant 1 : index
    %c1_144 = arith.constant 1 : index
    %c0_145 = arith.constant 0 : index
    %143 = vector.load %arg1[%c1_143, %c1_144, %c0_145] : memref<2x24x12xf32, #tpu.memory_space<vmem>>, vector<1x22x12xf32>
    %144 = vector.shape_cast %143 : vector<1x22x12xf32> to vector<22x12xf32>
    %c1_146 = arith.constant 1 : index
    %c0_147 = arith.constant 0 : index
    %c0_148 = arith.constant 0 : index
    %145 = vector.load %arg2[%c1_146, %c0_147, %c0_148] : memref<3x12x320xf32, #tpu.memory_space<vmem>>, vector<1x12x320xf32>
    %146 = vector.shape_cast %145 : vector<1x12x320xf32> to vector<12x320xf32>
    %cst_149 = arith.constant dense<0.000000e+00> : vector<22x320xf32>
    %147 = tpu.matmul %144, %146, %cst_149 {dimension_numbers = #tpu.dot_dimension_numbers<[1], [0], [0], [1], [0, 0, 1, 1], [], []>} : vector<22x12xf32>, vector<12x320xf32>, vector<22x320xf32> -> vector<22x320xf32>
    %148 = arith.addf %142, %147 : vector<22x320xf32>
    %c1_150 = arith.constant 1 : index
    %c2_151 = arith.constant 2 : index
    %c0_152 = arith.constant 0 : index
    %149 = vector.load %arg1[%c1_150, %c2_151, %c0_152] : memref<2x24x12xf32, #tpu.memory_space<vmem>>, vector<1x22x12xf32>
    %150 = vector.shape_cast %149 : vector<1x22x12xf32> to vector<22x12xf32>
    %c2_153 = arith.constant 2 : index
    %c0_154 = arith.constant 0 : index
    %c0_155 = arith.constant 0 : index
    %151 = vector.load %arg2[%c2_153, %c0_154, %c0_155] : memref<3x12x320xf32, #tpu.memory_space<vmem>>, vector<1x12x320xf32>
    %152 = vector.shape_cast %151 : vector<1x12x320xf32> to vector<12x320xf32>
    %cst_156 = arith.constant dense<0.000000e+00> : vector<22x320xf32>
    %153 = tpu.matmul %150, %152, %cst_156 {dimension_numbers = #tpu.dot_dimension_numbers<[1], [0], [0], [1], [0, 0, 1, 1], [], []>} : vector<22x12xf32>, vector<12x320xf32>, vector<22x320xf32> -> vector<22x320xf32>
    %154 = arith.addf %148, %153 : vector<22x320xf32>
    %c0_157 = arith.constant 0 : index
    %c0_158 = arith.constant 0 : index
    %155 = vector.load %arg3[%c0_157, %c0_158] : memref<1x320xf32, #tpu.memory_space<vmem>>, vector<1x320xf32>
    %156 = vector.broadcast %155 : vector<1x320xf32> to vector<22x320xf32>
    %157 = arith.addf %154, %156 : vector<22x320xf32>
    %cst_159 = arith.constant 0.000000e+00 : f32
    %158 = vector.broadcast %cst_159 : f32 to vector<22x320xf32>
    %159 = arith.maximumf %157, %158 : vector<22x320xf32>
    %c1_160 = arith.constant 1 : index
    %c0_161 = arith.constant 0 : index
    %c0_162 = arith.constant 0 : index
    %160 = vector.load %arg17[%c1_160, %c0_161, %c0_162] : memref<2x22x320xf32, #tpu.memory_space<vmem>>, vector<1x22x320xf32>
    %161 = vector.shape_cast %160 : vector<1x22x320xf32> to vector<22x320xf32>
    %162 = vector.shape_cast %159 : vector<22x320xf32> to vector<1x22x320xf32>
    tpu.vector_store %arg17[%c1_160, %c0_161, %c0_162], %162 {strides = array<i32>} : memref<2x22x320xf32, #tpu.memory_space<vmem>>, vector<1x22x320xf32>,
    %c1_163 = arith.constant 1 : index
    %c0_164 = arith.constant 0 : index
    %c0_165 = arith.constant 0 : index
    %163 = vector.load %arg17[%c1_163, %c0_164, %c0_165] : memref<2x22x320xf32, #tpu.memory_space<vmem>>, vector<1x20x320xf32>
    %164 = vector.shape_cast %163 : vector<1x20x320xf32> to vector<20x320xf32>
    %c0_166 = arith.constant 0 : index
    %c0_167 = arith.constant 0 : index
    %c0_168 = arith.constant 0 : index
    %165 = vector.load %arg4[%c0_166, %c0_167, %c0_168] : memref<3x320x512xf32, #tpu.memory_space<vmem>>, vector<1x320x512xf32>
    %166 = vector.shape_cast %165 : vector<1x320x512xf32> to vector<320x512xf32>
    %cst_169 = arith.constant dense<0.000000e+00> : vector<20x512xf32>
    %167 = tpu.matmul %164, %166, %cst_169 {dimension_numbers = #tpu.dot_dimension_numbers<[1], [0], [0], [1], [0, 0, 1, 1], [], []>} : vector<20x320xf32>, vector<320x512xf32>, vector<20x512xf32> -> vector<20x512xf32>
    %c1_170 = arith.constant 1 : index
    %c1_171 = arith.constant 1 : index
    %c0_172 = arith.constant 0 : index
    %168 = vector.load %arg17[%c1_170, %c1_171, %c0_172] : memref<2x22x320xf32, #tpu.memory_space<vmem>>, vector<1x20x320xf32>
    %169 = vector.shape_cast %168 : vector<1x20x320xf32> to vector<20x320xf32>
    %c1_173 = arith.constant 1 : index
    %c0_174 = arith.constant 0 : index
    %c0_175 = arith.constant 0 : index
    %170 = vector.load %arg4[%c1_173, %c0_174, %c0_175] : memref<3x320x512xf32, #tpu.memory_space<vmem>>, vector<1x320x512xf32>
    %171 = vector.shape_cast %170 : vector<1x320x512xf32> to vector<320x512xf32>
    %cst_176 = arith.constant dense<0.000000e+00> : vector<20x512xf32>
    %172 = tpu.matmul %169, %171, %cst_176 {dimension_numbers = #tpu.dot_dimension_numbers<[1], [0], [0], [1], [0, 0, 1, 1], [], []>} : vector<20x320xf32>, vector<320x512xf32>, vector<20x512xf32> -> vector<20x512xf32>
    %173 = arith.addf %167, %172 : vector<20x512xf32>
    %c1_177 = arith.constant 1 : index
    %c2_178 = arith.constant 2 : index
    %c0_179 = arith.constant 0 : index
    %174 = vector.load %arg17[%c1_177, %c2_178, %c0_179] : memref<2x22x320xf32, #tpu.memory_space<vmem>>, vector<1x20x320xf32>
    %175 = vector.shape_cast %174 : vector<1x20x320xf32> to vector<20x320xf32>
    %c2_180 = arith.constant 2 : index
    %c0_181 = arith.constant 0 : index
    %c0_182 = arith.constant 0 : index
    %176 = vector.load %arg4[%c2_180, %c0_181, %c0_182] : memref<3x320x512xf32, #tpu.memory_space<vmem>>, vector<1x320x512xf32>
    %177 = vector.shape_cast %176 : vector<1x320x512xf32> to vector<320x512xf32>
    %cst_183 = arith.constant dense<0.000000e+00> : vector<20x512xf32>
    %178 = tpu.matmul %175, %177, %cst_183 {dimension_numbers = #tpu.dot_dimension_numbers<[1], [0], [0], [1], [0, 0, 1, 1], [], []>} : vector<20x320xf32>, vector<320x512xf32>, vector<20x512xf32> -> vector<20x512xf32>
    %179 = arith.addf %173, %178 : vector<20x512xf32>
    %c0_184 = arith.constant 0 : index
    %c0_185 = arith.constant 0 : index
    %180 = vector.load %arg5[%c0_184, %c0_185] : memref<1x512xf32, #tpu.memory_space<vmem>>, vector<1x512xf32>
    %181 = vector.broadcast %180 : vector<1x512xf32> to vector<20x512xf32>
    %182 = arith.addf %179, %181 : vector<20x512xf32>
    %c1_186 = arith.constant 1 : index
    %c0_187 = arith.constant 0 : index
    %c0_188 = arith.constant 0 : index
    %183 = vector.load %arg18[%c1_186, %c0_187, %c0_188] : memref<2x20x512xf32, #tpu.memory_space<vmem>>, vector<1x20x512xf32>
    %184 = vector.shape_cast %183 : vector<1x20x512xf32> to vector<20x512xf32>
    %185 = vector.shape_cast %182 : vector<20x512xf32> to vector<1x20x512xf32>
    tpu.vector_store %arg18[%c1_186, %c0_187, %c0_188], %185 {strides = array<i32>} : memref<2x20x512xf32, #tpu.memory_space<vmem>>, vector<1x20x512xf32>,
    %c1_189 = arith.constant 1 : index
    %c0_190 = arith.constant 0 : index
    %c0_191 = arith.constant 0 : index
    %186 = vector.load %arg18[%c1_189, %c0_190, %c0_191] : memref<2x20x512xf32, #tpu.memory_space<vmem>>, vector<1x19x512xf32>
    %187 = vector.shape_cast %186 : vector<1x19x512xf32> to vector<19x512xf32>
    %c1_192 = arith.constant 1 : index
    %c1_193 = arith.constant 1 : index
    %c0_194 = arith.constant 0 : index
    %188 = vector.load %arg18[%c1_192, %c1_193, %c0_194] : memref<2x20x512xf32, #tpu.memory_space<vmem>>, vector<1x19x512xf32>
    %189 = vector.shape_cast %188 : vector<1x19x512xf32> to vector<19x512xf32>
    %190 = arith.maximumf %187, %189 : vector<19x512xf32>
    %191 = vector.extract_strided_slice %190 {offsets = [0, 0], sizes = [19, 256], strides = [1, 1]} : vector<19x512xf32> to vector<19x256xf32>
    %192 = vector.extract_strided_slice %190 {offsets = [0, 256], sizes = [19, 256], strides = [1, 1]} : vector<19x512xf32> to vector<19x256xf32>
    %193 = arith.maximumf %191, %192 : vector<19x256xf32>
    %c0_195 = arith.constant 0 : index
    %c0_196 = arith.constant 0 : index
    %194 = vector.load %arg10[%c0_195, %c0_196] : memref<10x19xf32, #tpu.memory_space<vmem>>, vector<10x19xf32>
    %cst_197 = arith.constant dense<0.000000e+00> : vector<10x256xf32>
    %195 = tpu.matmul %194, %193, %cst_197 {dimension_numbers = #tpu.dot_dimension_numbers<[1], [0], [0], [1], [0, 0, 1, 1], [], []>} : vector<10x19xf32>, vector<19x256xf32>, vector<10x256xf32> -> vector<10x256xf32>
    %cst_198 = arith.constant 0.000000e+00 : f32
    %196 = vector.broadcast %cst_198 : f32 to vector<10x256xf32>
    %197 = arith.maximumf %195, %196 : vector<10x256xf32>
    %c1_199 = arith.constant 1 : index
    %c0_200 = arith.constant 0 : index
    %c0_201 = arith.constant 0 : index
    %198 = vector.load %arg19[%c1_199, %c0_200, %c0_201] : memref<2x10x256xf32, #tpu.memory_space<vmem>>, vector<1x10x256xf32>
    %199 = vector.shape_cast %198 : vector<1x10x256xf32> to vector<10x256xf32>
    %200 = vector.shape_cast %197 : vector<10x256xf32> to vector<1x10x256xf32>
    tpu.vector_store %arg19[%c1_199, %c0_200, %c0_201], %200 {strides = array<i32>} : memref<2x10x256xf32, #tpu.memory_space<vmem>>, vector<1x10x256xf32>,
    %c1_202 = arith.constant 1 : index
    %c0_203 = arith.constant 0 : index
    %c0_204 = arith.constant 0 : index
    %201 = vector.load %arg19[%c1_202, %c0_203, %c0_204] : memref<2x10x256xf32, #tpu.memory_space<vmem>>, vector<1x8x256xf32>
    %202 = vector.shape_cast %201 : vector<1x8x256xf32> to vector<8x256xf32>
    %c0_205 = arith.constant 0 : index
    %c0_206 = arith.constant 0 : index
    %c0_207 = arith.constant 0 : index
    %203 = vector.load %arg6[%c0_205, %c0_206, %c0_207] : memref<3x256x128xf32, #tpu.memory_space<vmem>>, vector<1x256x128xf32>
    %204 = vector.shape_cast %203 : vector<1x256x128xf32> to vector<256x128xf32>
    %cst_208 = arith.constant dense<0.000000e+00> : vector<8x128xf32>
    %205 = tpu.matmul %202, %204, %cst_208 {dimension_numbers = #tpu.dot_dimension_numbers<[1], [0], [0], [1], [0, 0, 1, 1], [], []>} : vector<8x256xf32>, vector<256x128xf32>, vector<8x128xf32> -> vector<8x128xf32>
    %c1_209 = arith.constant 1 : index
    %c1_210 = arith.constant 1 : index
    %c0_211 = arith.constant 0 : index
    %206 = vector.load %arg19[%c1_209, %c1_210, %c0_211] : memref<2x10x256xf32, #tpu.memory_space<vmem>>, vector<1x8x256xf32>
    %207 = vector.shape_cast %206 : vector<1x8x256xf32> to vector<8x256xf32>
    %c1_212 = arith.constant 1 : index
    %c0_213 = arith.constant 0 : index
    %c0_214 = arith.constant 0 : index
    %208 = vector.load %arg6[%c1_212, %c0_213, %c0_214] : memref<3x256x128xf32, #tpu.memory_space<vmem>>, vector<1x256x128xf32>
    %209 = vector.shape_cast %208 : vector<1x256x128xf32> to vector<256x128xf32>
    %cst_215 = arith.constant dense<0.000000e+00> : vector<8x128xf32>
    %210 = tpu.matmul %207, %209, %cst_215 {dimension_numbers = #tpu.dot_dimension_numbers<[1], [0], [0], [1], [0, 0, 1, 1], [], []>} : vector<8x256xf32>, vector<256x128xf32>, vector<8x128xf32> -> vector<8x128xf32>
    %211 = arith.addf %205, %210 : vector<8x128xf32>
    %c1_216 = arith.constant 1 : index
    %c2_217 = arith.constant 2 : index
    %c0_218 = arith.constant 0 : index
    %212 = vector.load %arg19[%c1_216, %c2_217, %c0_218] : memref<2x10x256xf32, #tpu.memory_space<vmem>>, vector<1x8x256xf32>
    %213 = vector.shape_cast %212 : vector<1x8x256xf32> to vector<8x256xf32>
    %c2_219 = arith.constant 2 : index
    %c0_220 = arith.constant 0 : index
    %c0_221 = arith.constant 0 : index
    %214 = vector.load %arg6[%c2_219, %c0_220, %c0_221] : memref<3x256x128xf32, #tpu.memory_space<vmem>>, vector<1x256x128xf32>
    %215 = vector.shape_cast %214 : vector<1x256x128xf32> to vector<256x128xf32>
    %cst_222 = arith.constant dense<0.000000e+00> : vector<8x128xf32>
    %216 = tpu.matmul %213, %215, %cst_222 {dimension_numbers = #tpu.dot_dimension_numbers<[1], [0], [0], [1], [0, 0, 1, 1], [], []>} : vector<8x256xf32>, vector<256x128xf32>, vector<8x128xf32> -> vector<8x128xf32>
    %217 = arith.addf %211, %216 : vector<8x128xf32>
    %c0_223 = arith.constant 0 : index
    %c0_224 = arith.constant 0 : index
    %218 = vector.load %arg7[%c0_223, %c0_224] : memref<1x128xf32, #tpu.memory_space<vmem>>, vector<1x128xf32>
    %219 = vector.broadcast %218 : vector<1x128xf32> to vector<8x128xf32>
    %220 = arith.addf %217, %219 : vector<8x128xf32>
    %cst_225 = arith.constant 0.000000e+00 : f32
    %221 = vector.broadcast %cst_225 : f32 to vector<1x128xf32>
    %c1_226 = arith.constant 1 : index
    %c0_227 = arith.constant 0 : index
    %c0_228 = arith.constant 0 : index
    %222 = vector.load %arg20[%c1_226, %c0_227, %c0_228] : memref<2x10x128xf32, #tpu.memory_space<vmem>>, vector<1x1x128xf32>
    %223 = vector.shape_cast %222 : vector<1x1x128xf32> to vector<1x128xf32>
    %224 = vector.shape_cast %221 : vector<1x128xf32> to vector<1x1x128xf32>
    tpu.vector_store %arg20[%c1_226, %c0_227, %c0_228], %224 {strides = array<i32>} : memref<2x10x128xf32, #tpu.memory_space<vmem>>, vector<1x1x128xf32>,
    %c1_229 = arith.constant 1 : index
    %c9_230 = arith.constant 9 : index
    %c0_231 = arith.constant 0 : index
    %225 = vector.load %arg20[%c1_229, %c9_230, %c0_231] : memref<2x10x128xf32, #tpu.memory_space<vmem>>, vector<1x1x128xf32>
    %226 = vector.shape_cast %225 : vector<1x1x128xf32> to vector<1x128xf32>
    %227 = vector.shape_cast %221 : vector<1x128xf32> to vector<1x1x128xf32>
    tpu.vector_store %arg20[%c1_229, %c9_230, %c0_231], %227 {strides = array<i32>} : memref<2x10x128xf32, #tpu.memory_space<vmem>>, vector<1x1x128xf32>,
    %cst_232 = arith.constant 0.000000e+00 : f32
    %228 = vector.broadcast %cst_232 : f32 to vector<8x128xf32>
    %229 = arith.maximumf %220, %228 : vector<8x128xf32>
    %c1_233 = arith.constant 1 : index
    %c1_234 = arith.constant 1 : index
    %c0_235 = arith.constant 0 : index
    %230 = vector.load %arg20[%c1_233, %c1_234, %c0_235] : memref<2x10x128xf32, #tpu.memory_space<vmem>>, vector<1x8x128xf32>
    %231 = vector.shape_cast %230 : vector<1x8x128xf32> to vector<8x128xf32>
    %232 = vector.shape_cast %229 : vector<8x128xf32> to vector<1x8x128xf32>
    tpu.vector_store %arg20[%c1_233, %c1_234, %c0_235], %232 {strides = array<i32>} : memref<2x10x128xf32, #tpu.memory_space<vmem>>, vector<1x8x128xf32>,
    %c1_236 = arith.constant 1 : index
    %c0_237 = arith.constant 0 : index
    %c0_238 = arith.constant 0 : index
    %233 = vector.load %arg20[%c1_236, %c0_237, %c0_238] : memref<2x10x128xf32, #tpu.memory_space<vmem>>, vector<1x8x128xf32>
    %234 = vector.shape_cast %233 : vector<1x8x128xf32> to vector<8x128xf32>
    %c0_239 = arith.constant 0 : index
    %c0_240 = arith.constant 0 : index
    %c0_241 = arith.constant 0 : index
    %235 = vector.load %arg8[%c0_239, %c0_240, %c0_241] : memref<3x128x256xf32, #tpu.memory_space<vmem>>, vector<1x128x256xf32>
    %236 = vector.shape_cast %235 : vector<1x128x256xf32> to vector<128x256xf32>
    %cst_242 = arith.constant dense<0.000000e+00> : vector<8x256xf32>
    %237 = tpu.matmul %234, %236, %cst_242 {dimension_numbers = #tpu.dot_dimension_numbers<[1], [0], [0], [1], [0, 0, 1, 1], [], []>} : vector<8x128xf32>, vector<128x256xf32>, vector<8x256xf32> -> vector<8x256xf32>
    %c1_243 = arith.constant 1 : index
    %c1_244 = arith.constant 1 : index
    %c0_245 = arith.constant 0 : index
    %238 = vector.load %arg20[%c1_243, %c1_244, %c0_245] : memref<2x10x128xf32, #tpu.memory_space<vmem>>, vector<1x8x128xf32>
    %239 = vector.shape_cast %238 : vector<1x8x128xf32> to vector<8x128xf32>
    %c1_246 = arith.constant 1 : index
    %c0_247 = arith.constant 0 : index
    %c0_248 = arith.constant 0 : index
    %240 = vector.load %arg8[%c1_246, %c0_247, %c0_248] : memref<3x128x256xf32, #tpu.memory_space<vmem>>, vector<1x128x256xf32>
    %241 = vector.shape_cast %240 : vector<1x128x256xf32> to vector<128x256xf32>
    %cst_249 = arith.constant dense<0.000000e+00> : vector<8x256xf32>
    %242 = tpu.matmul %239, %241, %cst_249 {dimension_numbers = #tpu.dot_dimension_numbers<[1], [0], [0], [1], [0, 0, 1, 1], [], []>} : vector<8x128xf32>, vector<128x256xf32>, vector<8x256xf32> -> vector<8x256xf32>
    %243 = arith.addf %237, %242 : vector<8x256xf32>
    %c1_250 = arith.constant 1 : index
    %c2_251 = arith.constant 2 : index
    %c0_252 = arith.constant 0 : index
    %244 = vector.load %arg20[%c1_250, %c2_251, %c0_252] : memref<2x10x128xf32, #tpu.memory_space<vmem>>, vector<1x8x128xf32>
    %245 = vector.shape_cast %244 : vector<1x8x128xf32> to vector<8x128xf32>
    %c2_253 = arith.constant 2 : index
    %c0_254 = arith.constant 0 : index
    %c0_255 = arith.constant 0 : index
    %246 = vector.load %arg8[%c2_253, %c0_254, %c0_255] : memref<3x128x256xf32, #tpu.memory_space<vmem>>, vector<1x128x256xf32>
    %247 = vector.shape_cast %246 : vector<1x128x256xf32> to vector<128x256xf32>
    %cst_256 = arith.constant dense<0.000000e+00> : vector<8x256xf32>
    %248 = tpu.matmul %245, %247, %cst_256 {dimension_numbers = #tpu.dot_dimension_numbers<[1], [0], [0], [1], [0, 0, 1, 1], [], []>} : vector<8x128xf32>, vector<128x256xf32>, vector<8x256xf32> -> vector<8x256xf32>
    %249 = arith.addf %243, %248 : vector<8x256xf32>
    %c0_257 = arith.constant 0 : index
    %c0_258 = arith.constant 0 : index
    %250 = vector.load %arg9[%c0_257, %c0_258] : memref<1x256xf32, #tpu.memory_space<vmem>>, vector<1x256xf32>
    %251 = vector.broadcast %250 : vector<1x256xf32> to vector<8x256xf32>
    %252 = arith.addf %249, %251 : vector<8x256xf32>
    %c1_259 = arith.constant 1 : index
    %c0_260 = arith.constant 0 : index
    %c0_261 = arith.constant 0 : index
    %253 = vector.load %arg21[%c1_259, %c0_260, %c0_261] : memref<2x8x256xf32, #tpu.memory_space<vmem>>, vector<1x8x256xf32>
    %254 = vector.shape_cast %253 : vector<1x8x256xf32> to vector<8x256xf32>
    %255 = vector.shape_cast %252 : vector<8x256xf32> to vector<1x8x256xf32>
    tpu.vector_store %arg21[%c1_259, %c0_260, %c0_261], %255 {strides = array<i32>} : memref<2x8x256xf32, #tpu.memory_space<vmem>>, vector<1x8x256xf32>,
    %c1_262 = arith.constant 1 : index
    %c0_263 = arith.constant 0 : index
    %c0_264 = arith.constant 0 : index
    %256 = vector.load %arg21[%c1_262, %c0_263, %c0_264] : memref<2x8x256xf32, #tpu.memory_space<vmem>>, vector<1x7x256xf32>
    %257 = vector.shape_cast %256 : vector<1x7x256xf32> to vector<7x256xf32>
    %c1_265 = arith.constant 1 : index
    %c1_266 = arith.constant 1 : index
    %c0_267 = arith.constant 0 : index
    %258 = vector.load %arg21[%c1_265, %c1_266, %c0_267] : memref<2x8x256xf32, #tpu.memory_space<vmem>>, vector<1x7x256xf32>
    %259 = vector.shape_cast %258 : vector<1x7x256xf32> to vector<7x256xf32>
    %260 = arith.maximumf %257, %259 : vector<7x256xf32>
    %261 = vector.extract_strided_slice %260 {offsets = [0, 0], sizes = [7, 128], strides = [1, 1]} : vector<7x256xf32> to vector<7x128xf32>
    %262 = vector.extract_strided_slice %260 {offsets = [0, 128], sizes = [7, 128], strides = [1, 1]} : vector<7x256xf32> to vector<7x128xf32>
    %263 = arith.maximumf %261, %262 : vector<7x128xf32>
    %c0_268 = arith.constant 0 : index
    %c0_269 = arith.constant 0 : index
    %264 = vector.load %arg11[%c0_268, %c0_269] : memref<4x7xf32, #tpu.memory_space<vmem>>, vector<4x7xf32>
    %cst_270 = arith.constant dense<0.000000e+00> : vector<4x128xf32>
    %265 = tpu.matmul %264, %263, %cst_270 {dimension_numbers = #tpu.dot_dimension_numbers<[1], [0], [0], [1], [0, 0, 1, 1], [], []>} : vector<4x7xf32>, vector<7x128xf32>, vector<4x128xf32> -> vector<4x128xf32>
    %cst_271 = arith.constant 0.000000e+00 : f32
    %266 = vector.broadcast %cst_271 : f32 to vector<4x128xf32>
    %267 = arith.maximumf %265, %266 : vector<4x128xf32>
    %268 = vector.extract_strided_slice %267 {offsets = [0, 0], sizes = [1, 128], strides = [1, 1]} : vector<4x128xf32> to vector<1x128xf32>
    %c1_272 = arith.constant 1 : index
    %c0_273 = arith.constant 0 : index
    %269 = vector.load %arg22[%c1_272, %c0_273] : memref<2x512xf32, #tpu.memory_space<vmem>>, vector<1x128xf32>
    tpu.vector_store %arg22[%c1_272, %c0_273], %268 {strides = array<i32>} : memref<2x512xf32, #tpu.memory_space<vmem>>, vector<1x128xf32>,
    %270 = vector.extract_strided_slice %267 {offsets = [1, 0], sizes = [1, 128], strides = [1, 1]} : vector<4x128xf32> to vector<1x128xf32>
    %c1_274 = arith.constant 1 : index
    %c128_275 = arith.constant 128 : index
    %271 = vector.load %arg22[%c1_274, %c128_275] : memref<2x512xf32, #tpu.memory_space<vmem>>, vector<1x128xf32>
    tpu.vector_store %arg22[%c1_274, %c128_275], %270 {strides = array<i32>} : memref<2x512xf32, #tpu.memory_space<vmem>>, vector<1x128xf32>,
    %272 = vector.extract_strided_slice %267 {offsets = [2, 0], sizes = [1, 128], strides = [1, 1]} : vector<4x128xf32> to vector<1x128xf32>
    %c1_276 = arith.constant 1 : index
    %c256_277 = arith.constant 256 : index
    %273 = vector.load %arg22[%c1_276, %c256_277] : memref<2x512xf32, #tpu.memory_space<vmem>>, vector<1x128xf32>
    tpu.vector_store %arg22[%c1_276, %c256_277], %272 {strides = array<i32>} : memref<2x512xf32, #tpu.memory_space<vmem>>, vector<1x128xf32>,
    %274 = vector.extract_strided_slice %267 {offsets = [3, 0], sizes = [1, 128], strides = [1, 1]} : vector<4x128xf32> to vector<1x128xf32>
    %c1_278 = arith.constant 1 : index
    %c384_279 = arith.constant 384 : index
    %275 = vector.load %arg22[%c1_278, %c384_279] : memref<2x512xf32, #tpu.memory_space<vmem>>, vector<1x128xf32>
    tpu.vector_store %arg22[%c1_278, %c384_279], %274 {strides = array<i32>} : memref<2x512xf32, #tpu.memory_space<vmem>>, vector<1x128xf32>,
    %c0_280 = arith.constant 0 : index
    %c0_281 = arith.constant 0 : index
    %276 = vector.load %arg22[%c0_280, %c0_281] : memref<2x512xf32, #tpu.memory_space<vmem>>, vector<2x512xf32>
    %c0_282 = arith.constant 0 : index
    %c0_283 = arith.constant 0 : index
    %277 = vector.load %arg12[%c0_282, %c0_283] : memref<512x32xf32, #tpu.memory_space<vmem>>, vector<512x32xf32>
    %cst_284 = arith.constant dense<0.000000e+00> : vector<2x32xf32>
    %278 = tpu.matmul %276, %277, %cst_284 {dimension_numbers = #tpu.dot_dimension_numbers<[1], [0], [0], [1], [0, 0, 1, 1], [], []>} : vector<2x512xf32>, vector<512x32xf32>, vector<2x32xf32> -> vector<2x32xf32>
    %c0_285 = arith.constant 0 : index
    %c0_286 = arith.constant 0 : index
    %279 = vector.load %arg13[%c0_285, %c0_286] : memref<1x32xf32, #tpu.memory_space<vmem>>, vector<1x32xf32>
    %280 = vector.broadcast %279 : vector<1x32xf32> to vector<2x32xf32>
    %281 = arith.addf %278, %280 : vector<2x32xf32>
    %cst_287 = arith.constant 0.000000e+00 : f32
    %282 = vector.broadcast %cst_287 : f32 to vector<2x32xf32>
    %283 = arith.maximumf %281, %282 : vector<2x32xf32>
    %c0_288 = arith.constant 0 : index
    %c0_289 = arith.constant 0 : index
    %284 = vector.load %arg14[%c0_288, %c0_289] : memref<32x8xf32, #tpu.memory_space<vmem>>, vector<32x8xf32>
    %cst_290 = arith.constant dense<0.000000e+00> : vector<2x8xf32>
    %285 = tpu.matmul %283, %284, %cst_290 {dimension_numbers = #tpu.dot_dimension_numbers<[1], [0], [0], [1], [0, 0, 1, 1], [], []>} : vector<2x32xf32>, vector<32x8xf32>, vector<2x8xf32> -> vector<2x8xf32>
    %c0_291 = arith.constant 0 : index
    %c0_292 = arith.constant 0 : index
    %286 = vector.load %arg15[%c0_291, %c0_292] : memref<1x8xf32, #tpu.memory_space<vmem>>, vector<1x8xf32>
    %287 = vector.broadcast %286 : vector<1x8xf32> to vector<2x8xf32>
    %288 = arith.addf %285, %287 : vector<2x8xf32>
    %c0_293 = arith.constant 0 : index
    %c0_294 = arith.constant 0 : index
    %289 = vector.load %arg16[%c0_293, %c0_294] : memref<2x8xf32, #tpu.memory_space<vmem>>, vector<2x8xf32>
    tpu.vector_store %arg16[%c0_293, %c0_294], %288 {strides = array<i32>} : memref<2x8xf32, #tpu.memory_space<vmem>>, vector<2x8xf32>,
    return
  }
  func.func @transform_0(%arg0: i32) -> (i32, i32, i32) {
    %c0_i32 = arith.constant 0 : i32
    %c0_i32_0 = arith.constant 0 : i32
    %c0_i32_1 = arith.constant 0 : i32
    %c0_i32_2 = arith.constant 0 : i32
    return %c0_i32, %c0_i32_0, %c0_i32_1 : i32, i32, i32
  }
  func.func @transform_1(%arg0: i32) -> (i32, i32, i32) {
    %c0_i32 = arith.constant 0 : i32
    %c0_i32_0 = arith.constant 0 : i32
    %c0_i32_1 = arith.constant 0 : i32
    %c0_i32_2 = arith.constant 0 : i32
    return %c0_i32, %c0_i32_0, %c0_i32_1 : i32, i32, i32
  }
  func.func @transform_2(%arg0: i32) -> (i32, i32) {
    %c0_i32 = arith.constant 0 : i32
    %c0_i32_0 = arith.constant 0 : i32
    %c0_i32_1 = arith.constant 0 : i32
    return %c0_i32, %c0_i32_0 : i32, i32
  }
  func.func @transform_3(%arg0: i32) -> (i32, i32, i32) {
    %c0_i32 = arith.constant 0 : i32
    %c0_i32_0 = arith.constant 0 : i32
    %c0_i32_1 = arith.constant 0 : i32
    %c0_i32_2 = arith.constant 0 : i32
    return %c0_i32, %c0_i32_0, %c0_i32_1 : i32, i32, i32
  }
  func.func @transform_4(%arg0: i32) -> (i32, i32) {
    %c0_i32 = arith.constant 0 : i32
    %c0_i32_0 = arith.constant 0 : i32
    %c0_i32_1 = arith.constant 0 : i32
    return %c0_i32, %c0_i32_0 : i32, i32
  }
  func.func @transform_5(%arg0: i32) -> (i32, i32, i32) {
    %c0_i32 = arith.constant 0 : i32
    %c0_i32_0 = arith.constant 0 : i32
    %c0_i32_1 = arith.constant 0 : i32
    %c0_i32_2 = arith.constant 0 : i32
    return %c0_i32, %c0_i32_0, %c0_i32_1 : i32, i32, i32
  }
  func.func @transform_6(%arg0: i32) -> (i32, i32) {
    %c0_i32 = arith.constant 0 : i32
    %c0_i32_0 = arith.constant 0 : i32
    %c0_i32_1 = arith.constant 0 : i32
    return %c0_i32, %c0_i32_0 : i32, i32
  }
  func.func @transform_7(%arg0: i32) -> (i32, i32, i32) {
    %c0_i32 = arith.constant 0 : i32
    %c0_i32_0 = arith.constant 0 : i32
    %c0_i32_1 = arith.constant 0 : i32
    %c0_i32_2 = arith.constant 0 : i32
    return %c0_i32, %c0_i32_0, %c0_i32_1 : i32, i32, i32
  }
  func.func @transform_8(%arg0: i32) -> (i32, i32) {
    %c0_i32 = arith.constant 0 : i32
    %c0_i32_0 = arith.constant 0 : i32
    %c0_i32_1 = arith.constant 0 : i32
    return %c0_i32, %c0_i32_0 : i32, i32
  }
  func.func @transform_9(%arg0: i32) -> (i32, i32) {
    %c0_i32 = arith.constant 0 : i32
    %c0_i32_0 = arith.constant 0 : i32
    %c0_i32_1 = arith.constant 0 : i32
    return %c0_i32, %c0_i32_0 : i32, i32
  }
  func.func @transform_10(%arg0: i32) -> (i32, i32) {
    %c0_i32 = arith.constant 0 : i32
    %c0_i32_0 = arith.constant 0 : i32
    %c0_i32_1 = arith.constant 0 : i32
    return %c0_i32, %c0_i32_0 : i32, i32
  }
  func.func @transform_11(%arg0: i32) -> (i32, i32) {
    %c0_i32 = arith.constant 0 : i32
    %c0_i32_0 = arith.constant 0 : i32
    %c0_i32_1 = arith.constant 0 : i32
    return %c0_i32, %c0_i32_0 : i32, i32
  }
  func.func @transform_12(%arg0: i32) -> (i32, i32) {
    %c0_i32 = arith.constant 0 : i32
    %c0_i32_0 = arith.constant 0 : i32
    %c0_i32_1 = arith.constant 0 : i32
    return %c0_i32, %c0_i32_0 : i32, i32
  }
  func.func @transform_13(%arg0: i32) -> (i32, i32) {
    %c0_i32 = arith.constant 0 : i32
    %c0_i32_0 = arith.constant 0 : i32
    %c0_i32_1 = arith.constant 0 : i32
    return %c0_i32, %c0_i32_0 : i32, i32
  }
  func.func @transform_14(%arg0: i32) -> (i32, i32) {
    %c0_i32 = arith.constant 0 : i32
    %c0_i32_0 = arith.constant 0 : i32
    %c0_i32_1 = arith.constant 0 : i32
    return %c0_i32, %c0_i32_0 : i32, i32
  }
  func.func @transform_15(%arg0: i32) -> (i32, i32) {
    %c0_i32 = arith.constant 0 : i32
    %c0_i32_0 = arith.constant 0 : i32
    %c0_i32_1 = arith.constant 0 : i32
    return %c0_i32, %c0_i32_0 : i32, i32
  }
}

</mosaic_0001>

<bundles_post_ra>
// kernel: sad_cnn_forward.1
= control target key start
LH: loop header
LB: loop body
LE: loop exit
PB: predicated region body
PF: predicated region fallthrough
CT: control target
= control target key end

     0   :  { %20 = vsyncpa [#allocation9], 0  ;;  %s10497_s0 = inlined_call_operand.vmem [shape: f32[2,24,12], index: 0, kind: input, shape index: {}]   ;;  %s10498_s1 = inlined_call_operand.hbm [shape: f32[3,12,320], index: 1, kind: input, shape index: {}]   ;;  %s10499_s2 = inlined_call_operand.hbm [shape: f32[1,320], index: 2, kind: input, shape index: {}]   ;;  %s10500_s3 = inlined_call_operand.hbm [shape: f32[3,320,512], index: 3, kind: input, shape index: {}]   ;;  %s10501_s4 = inlined_call_operand.hbm [shape: f32[1,512], index: 4, kind: input, shape index: {}]   ;;  %s10502_s5 = inlined_call_operand.hbm [shape: f32[3,256,128], index: 5, kind: input, shape index: {}]   ;;  %s10503_s6 = inlined_call_operand.hbm [shape: f32[1,128], index: 6, kind: input, shape index: {}]   ;;  %s10504_s7 = inlined_call_operand.hbm [shape: f32[3,128,256], index: 7, kind: input, shape index: {}]   ;;  %s10505_s8 = inlined_call_operand.hbm [shape: f32[1,256], index: 8, kind: input, shape index: {}]   ;;  %s10506_s9 = inlined_call_operand.hbm [shape: f32[10,19], index: 9, kind: input, shape index: {}]   ;;  %s10507_s10 = inlined_call_operand.hbm [shape: f32[4,7], index: 10, kind: input, shape index: {}]   ;;  %s10508_s11 = inlined_call_operand.vmem [shape: f32[512,32], index: 11, kind: input, shape index: {}]   ;;  %s10509_s12 = inlined_call_operand.hbm [shape: f32[1,32], index: 12, kind: input, shape index: {}]   ;;  %s10510_s13 = inlined_call_operand.vmem [shape: f32[32,8], index: 13, kind: input, shape index: {}]   ;;  %s10511_s14 = inlined_call_operand.hbm [shape: f32[1,8], index: 14, kind: input, shape index: {}]   ;;  %s10512_s15 = inlined_call_operand.hbm [shape: f32[2,8], index: 15, kind: output, shape index: {}]  }
   0x1   :  { %21 = vsyncpa [#allocation12], 0 }
   0x2   :  { %22 = vsyncpa [#allocation15], 0 }
   0x3   :  { %23 = vsyncpa [#allocation18], 0 }
   0x4   :  { %24 = vsyncpa [#allocation21], 0 }
   0x5   :  { %25 = vsyncpa [#allocation24], 0 }
   0x6   :  { %26 = vsyncpa [#allocation27], 0 }
   0x7   :  { %27 = vsyncpa [#allocation10], 0  ;;  %s9535_s18 = smov [#allocation11]   ;;  %s9536_s20 = smov [#allocation14]  }
   0x8   :  { %s48_s19 = sshll.u32 %s9535_s18, 4  ;;  %s70_s21 = sshll.u32 %s9536_s20, 4  ;;  %s49_s19 = int_to_ptr.vmem [resolvable:$true] %s48_s19  ;;  %s71_s21 = int_to_ptr.vmem [resolvable:$true] %s70_s21 }
   0x9   :  { %s9233_s24 = scalar_lea.hbm %s10499_s2, 48 }
   0xa   :  { %p9234_p0 = scmp.ne.s32.totalorder %s10499_s2, %s9233_s24  ;;  %p9237_p1 = scmp.lt.u32.totalorder %s9233_s24, %s10499_s2 }
   0xc   :  { %p9239_p2 = pnand %p9237_p1, %p9234_p0 }
   0xe   :  { %9242 = shalt.err (!%p9239_p2)
}
   0xf   :  { %s9243_s29 = scalar_lea.vmem %s49_s19, 48  ;;  %s9247_s30 = scalar_lea.vmem %s49_s19, 64 }
  0x10   :  { %p9244_p3 = scmp.ne.s32.totalorder %s49_s19, %s9243_s29  ;;  %p9248_p4 = scmp.lt.s32.totalorder %s49_s19, %s49_s19 }
  0x11   :  { %p9249_p5 = scmp.lt.s32.totalorder %s9247_s30, %s9243_s29 }
  0x13   :  { %p9250_p6 = por %p9249_p5, %p9248_p4 }
  0x15   :  { %p9251_p7 = pnand %p9250_p6, %p9244_p3 }
  0x17   :  { %9254 = shalt.err (!%p9251_p7)
}
  0x18   :  { %51 = dma.hbm_to_vmem [thread:$0]  %s10499_s2, 48, %s49_s19, [#allocation12]  }
  0x19   :  { %s9255_s22 = scalar_lea.hbm %s10501_s4, 64 }
  0x1a   :  { %p9256_p8 = scmp.ne.s32.totalorder %s10501_s4, %s9255_s22  ;;  %p9259_p9 = scmp.lt.u32.totalorder %s9255_s22, %s10501_s4 }
  0x1c   :  { %p9261_p10 = pnand %p9259_p9, %p9256_p8 }
  0x1e   :  { %9264 = shalt.err (!%p9261_p10)
}
  0x1f   :  { %s9265_s27 = scalar_lea.vmem %s71_s21, 64  ;;  %p9270_p12 = scmp.lt.s32.totalorder %s71_s21, %s71_s21 }
  0x20   :  { %p9266_p11 = scmp.ne.s32.totalorder %s71_s21, %s9265_s27  ;;  %p9271_p13 = scmp.lt.s32.totalorder %s9265_s27, %s9265_s27 }
  0x22   :  { %p9272_p0 = por %p9271_p13, %p9270_p12 }
  0x24   :  { %p9273_p1 = pnand %p9272_p0, %p9266_p11 }
  0x26   :  { %9276 = shalt.err (!%p9273_p1)
}
  0x27   :  { %73 = dma.hbm_to_vmem [thread:$0]  %s10501_s4, 64, %s71_s21, [#allocation15]  }
  0x28   :  { %s9537_s28 = smov [#allocation17]   ;;  %s9538_s30 = smov [#allocation20]  }
  0x29   :  { %s92_s29 = sshll.u32 %s9537_s28, 4  ;;  %s114_s16 = sshll.u32 %s9538_s30, 4  ;;  %s93_s29 = int_to_ptr.vmem [resolvable:$true] %s92_s29  ;;  %s115_s16 = int_to_ptr.vmem [resolvable:$true] %s114_s16 }
  0x2a   :  { %s9277_s20 = scalar_lea.hbm %s10503_s6, 16 }
  0x2b   :  { %p9278_p2 = scmp.ne.s32.totalorder %s10503_s6, %s9277_s20  ;;  %p9281_p3 = scmp.lt.u32.totalorder %s9277_s20, %s10503_s6 }
  0x2d   :  { %p9283_p4 = pnand %p9281_p3, %p9278_p2 }
  0x2f   :  { %9286 = shalt.err (!%p9283_p4)
}
  0x30   :  { %s9287_s4 = scalar_lea.vmem %s93_s29, 16  ;;  %s9291_s21 = scalar_lea.vmem %s93_s29, 32 }
  0x31   :  { %p9288_p5 = scmp.ne.s32.totalorder %s93_s29, %s9287_s4  ;;  %p9292_p6 = scmp.lt.s32.totalorder %s93_s29, %s93_s29 }
  0x32   :  { %p9293_p7 = scmp.lt.s32.totalorder %s9291_s21, %s9287_s4 }
  0x34   :  { %p9294_p8 = por %p9293_p7, %p9292_p6 }
  0x36   :  { %p9295_p9 = pnand %p9294_p8, %p9288_p5 }
  0x38   :  { %9298 = shalt.err (!%p9295_p9)
}
  0x39   :  { %95 = dma.hbm_to_vmem [thread:$0]  %s10503_s6, 16, %s93_s29, [#allocation18]  }
  0x3a   :  { %s9299_s28 = scalar_lea.hbm %s10505_s8, 32 }
  0x3b   :  { %p9300_p10 = scmp.ne.s32.totalorder %s10505_s8, %s9299_s28  ;;  %p9303_p11 = scmp.lt.u32.totalorder %s9299_s28, %s10505_s8 }
  0x3d   :  { %p9305_p12 = pnand %p9303_p11, %p9300_p10 }
  0x3f   :  { %9308 = shalt.err (!%p9305_p12)
}
  0x40   :  { %s9309_s22 = scalar_lea.vmem %s115_s16, 32  ;;  %p9314_p0 = scmp.lt.s32.totalorder %s115_s16, %s115_s16 }
  0x41   :  { %p9310_p13 = scmp.ne.s32.totalorder %s115_s16, %s9309_s22  ;;  %p9315_p1 = scmp.lt.s32.totalorder %s9309_s22, %s9309_s22 }
  0x43   :  { %p9316_p2 = por %p9315_p1, %p9314_p0 }
  0x45   :  { %p9317_p3 = pnand %p9316_p2, %p9310_p13 }
  0x47   :  { %9320 = shalt.err (!%p9317_p3)
}
  0x48   :  { %117 = dma.hbm_to_vmem [thread:$0]  %s10505_s8, 32, %s115_s16, [#allocation21]  }
  0x49   :  { %s9539_s23 = smov [#allocation23]   ;;  %s9540_s25 = smov [#allocation8]  }
  0x4a   :  { %s136_s24 = sshll.u32 %s9539_s23, 4  ;;  %s35_s4 = sshll.u32 %s9540_s25, 4  ;;  %s137_s24 = int_to_ptr.vmem [resolvable:$true] %s136_s24  ;;  %s9689_s4 = int_to_ptr.vmem [resolvable:$true] %s35_s4 }
  0x4b   :  { %s9321_s27 = scalar_lea.hbm %s10507_s10, 64 }
  0x4c   :  { %p9322_p4 = scmp.ne.s32.totalorder %s10507_s10, %s9321_s27  ;;  %p9325_p5 = scmp.lt.u32.totalorder %s9321_s27, %s10507_s10 }
  0x4e   :  { %p9327_p6 = pnand %p9325_p5, %p9322_p4 }
  0x50   :  { %9330 = shalt.err (!%p9327_p6)
}
  0x51   :  { %s9331_s8 = scalar_lea.vmem %s137_s24, 64  ;;  %p9336_p8 = scmp.lt.s32.totalorder %s137_s24, %s137_s24 }
  0x52   :  { %p9332_p7 = scmp.ne.s32.totalorder %s137_s24, %s9331_s8  ;;  %p9337_p9 = scmp.lt.s32.totalorder %s9331_s8, %s9331_s8 }
  0x54   :  { %p9338_p10 = por %p9337_p9, %p9336_p8 }
  0x56   :  { %p9339_p11 = pnand %p9338_p10, %p9332_p7 }
  0x58   :  { %9342 = shalt.err (!%p9339_p11)
}
  0x59   :  { %139 = dma.hbm_to_vmem [thread:$0]  %s10507_s10, 64, %s137_s24, [#allocation24]  }
  0x5a   :  { %s9343_s22 = scalar_lea.hbm %s10498_s1, 2304 }
  0x5b   :  { %p9344_p12 = scmp.ne.s32.totalorder %s10498_s1, %s9343_s22  ;;  %p9347_p13 = scmp.lt.u32.totalorder %s9343_s22, %s10498_s1 }
  0x5d   :  { %p9349_p0 = pnand %p9347_p13, %p9344_p12 }
  0x5f   :  { %9352 = shalt.err (!%p9349_p0)
}
  0x60   :  { %s9353_s21 = scalar_lea.vmem %s9689_s4, 2304  ;;  %p9358_p2 = scmp.lt.s32.totalorder %s9689_s4, %s9689_s4 }
  0x61   :  { %p9354_p1 = scmp.ne.s32.totalorder %s9689_s4, %s9353_s21  ;;  %p9359_p3 = scmp.lt.s32.totalorder %s9353_s21, %s9353_s21 }
  0x63   :  { %p9360_p4 = por %p9359_p3, %p9358_p2 }
  0x65   :  { %p9361_p5 = pnand %p9360_p4, %p9354_p1 }
  0x67   :  { %9364 = shalt.err (!%p9361_p5)
}
  0x68   :  { %s9541_s10 = smov 384   ;;  %s9542_s24 = smov 24  }
  0x69   :  { %41 = dma.hbm_to_vmem [thread:$0]  %s10498_s1, 2304, %s9689_s4, [#allocation9], %s9541_s10, %s9541_s10, %s9542_s24  }
  0x6a   :  { %s9543_s2 = smov [#allocation13]   ;;  %s9365_s8 = scalar_lea.hbm %s10500_s3, 61440 }
  0x6b   :  { %s57_s19 = sshll.u32 %s9543_s2, 4  ;;  %p9366_p6 = scmp.ne.s32.totalorder %s10500_s3, %s9365_s8  ;;  %s58_s19 = int_to_ptr.vmem [resolvable:$true] %s57_s19 }
  0x6c   :  { %p9369_p7 = scmp.lt.u32.totalorder %s9365_s8, %s10500_s3 }
  0x6e   :  { %p9371_p8 = pnand %p9369_p7, %p9366_p6 }
  0x70   :  { %9374 = shalt.err (!%p9371_p8)
}
  0x71   :  { %s9375_s22 = scalar_lea.vmem %s58_s19, 61440  ;;  %p9380_p10 = scmp.lt.s32.totalorder %s58_s19, %s58_s19 }
  0x72   :  { %p9376_p9 = scmp.ne.s32.totalorder %s58_s19, %s9375_s22  ;;  %p9381_p11 = scmp.lt.s32.totalorder %s9375_s22, %s9375_s22 }
  0x74   :  { %p9382_p12 = por %p9381_p11, %p9380_p10 }
  0x76   :  { %p9383_p13 = pnand %p9382_p12, %p9376_p9 }
  0x78   :  { %9386 = shalt.err (!%p9383_p13)
}
  0x79   :  { %s9544_s1 = smov 512   ;;  %s9545_s4 = smov 32  }
  0x7a   :  { %63 = dma.hbm_to_vmem [thread:$0]  %s10500_s3, 61440, %s58_s19, [#allocation12], %s9544_s1, %s9544_s1, %s9545_s4  }
  0x7b   :  { %s9546_s23 = smov [#allocation16]   ;;  %s9387_s24 = scalar_lea.hbm %s10502_s5, 12288 }
  0x7c   :  { %s79_s25 = sshll.u32 %s9546_s23, 4  ;;  %p9388_p0 = scmp.ne.s32.totalorder %s10502_s5, %s9387_s24  ;;  %s80_s25 = int_to_ptr.vmem [resolvable:$true] %s79_s25 }
  0x7d   :  { %p9391_p1 = scmp.lt.u32.totalorder %s9387_s24, %s10502_s5 }
  0x7f   :  { %p9393_p2 = pnand %p9391_p1, %p9388_p0 }
  0x81   :  { %9396 = shalt.err (!%p9393_p2)
}
  0x82   :  { %s9397_s30 = scalar_lea.vmem %s80_s25, 12288  ;;  %p9402_p4 = scmp.lt.s32.totalorder %s80_s25, %s80_s25 }
  0x83   :  { %p9398_p3 = scmp.ne.s32.totalorder %s80_s25, %s9397_s30  ;;  %p9403_p5 = scmp.lt.s32.totalorder %s9397_s30, %s9397_s30 }
  0x85   :  { %p9404_p6 = por %p9403_p5, %p9402_p4 }
  0x87   :  { %p9405_p7 = pnand %p9404_p6, %p9398_p3 }
  0x89   :  { %9408 = shalt.err (!%p9405_p7)
}
  0x8a   :  { %s9547_s3 = smov 128   ;;  %s9548_s19 = smov 8  }
  0x8b   :  { %85 = dma.hbm_to_vmem [thread:$0]  %s10502_s5, 12288, %s80_s25, [#allocation15], %s9547_s3, %s9547_s3, %s9548_s19  }
  0x8c   :  { %s9549_s17 = smov [#allocation19]   ;;  %s9409_s1 = scalar_lea.hbm %s10504_s7, 12288 }
  0x8d   :  { %s101_s18 = sshll.u32 %s9549_s17, 4  ;;  %p9410_p8 = scmp.ne.s32.totalorder %s10504_s7, %s9409_s1  ;;  %s102_s18 = int_to_ptr.vmem [resolvable:$true] %s101_s18 }
  0x8e   :  { %p9413_p9 = scmp.lt.u32.totalorder %s9409_s1, %s10504_s7 }
  0x90   :  { %p9415_p10 = pnand %p9413_p9, %p9410_p8 }
  0x92   :  { %9418 = shalt.err (!%p9415_p10)
}
  0x93   :  { %s9419_s21 = scalar_lea.vmem %s102_s18, 12288  ;;  %p9424_p12 = scmp.lt.s32.totalorder %s102_s18, %s102_s18 }
  0x94   :  { %p9420_p11 = scmp.ne.s32.totalorder %s102_s18, %s9419_s21  ;;  %p9425_p13 = scmp.lt.s32.totalorder %s9419_s21, %s9419_s21 }
  0x96   :  { %p9426_p0 = por %p9425_p13, %p9424_p12 }
  0x98   :  { %p9427_p1 = pnand %p9426_p0, %p9420_p11 }
  0x9a   :  { %9430 = shalt.err (!%p9427_p1)
}
  0x9b   :  { %s9550_s5 = smov 256   ;;  %s9551_s25 = smov 16  }
  0x9c   :  { %107 = dma.hbm_to_vmem [thread:$0]  %s10504_s7, 12288, %s102_s18, [#allocation18], %s9550_s5, %s9550_s5, %s9551_s25  }
  0x9d   :  { %s9552_s26 = smov [#allocation22]   ;;  %s9553_s2 = smov [#allocation25]  }
  0x9e   :  { %s123_s27 = sshll.u32 %s9552_s26, 4  ;;  %s148_s28 = sshll.u32 %s9553_s2, 4  ;;  %s124_s27 = int_to_ptr.vmem [resolvable:$true] %s123_s27  ;;  %s149_s28 = int_to_ptr.vmem [resolvable:$true] %s148_s28 }
  0x9f   :  { %s9431_s16 = scalar_lea.hbm %s10506_s9, 256 }
  0xa0   :  { %p9432_p2 = scmp.ne.s32.totalorder %s10506_s9, %s9431_s16  ;;  %p9435_p3 = scmp.lt.u32.totalorder %s9431_s16, %s10506_s9 }
  0xa2   :  { %p9437_p4 = pnand %p9435_p3, %p9432_p2 }
  0xa4   :  { %9440 = shalt.err (!%p9437_p4)
}
  0xa5   :  { %s9441_s7 = scalar_lea.vmem %s124_s27, 256  ;;  %p9446_p6 = scmp.lt.s32.totalorder %s124_s27, %s124_s27 }
  0xa6   :  { %p9442_p5 = scmp.ne.s32.totalorder %s124_s27, %s9441_s7  ;;  %p9447_p7 = scmp.lt.s32.totalorder %s9441_s7, %s9441_s7 }
  0xa8   :  { %p9448_p8 = por %p9447_p7, %p9446_p6 }
  0xaa   :  { %p9449_p9 = pnand %p9448_p8, %p9442_p5 }
  0xac   :  { %9452 = shalt.err (!%p9449_p9)
}
  0xad   :  { %129 = dma.hbm_to_vmem [thread:$0]  %s10506_s9, 256, %s124_s27, [#allocation21], %s9547_s3, %s9547_s3, %s9548_s19  }
  0xae   :  { %s9453_s23 = scalar_lea.hbm %s10509_s12, 16 }
  0xaf   :  { %p9454_p10 = scmp.ne.s32.totalorder %s10509_s12, %s9453_s23  ;;  %p9457_p11 = scmp.lt.u32.totalorder %s9453_s23, %s10509_s12 }
  0xb1   :  { %p9459_p12 = pnand %p9457_p11, %p9454_p10 }
  0xb3   :  { %9462 = shalt.err (!%p9459_p12)
}
  0xb4   :  { %s9463_s24 = scalar_lea.vmem %s149_s28, 16  ;;  %s9467_s26 = scalar_lea.vmem %s149_s28, 32 }
  0xb5   :  { %p9464_p13 = scmp.ne.s32.totalorder %s149_s28, %s9463_s24  ;;  %p9468_p0 = scmp.lt.s32.totalorder %s149_s28, %s149_s28 }
  0xb6   :  { %p9469_p1 = scmp.lt.s32.totalorder %s9467_s26, %s9463_s24 }
  0xb8   :  { %p9470_p2 = por %p9469_p1, %p9468_p0 }
  0xba   :  { %p9471_p3 = pnand %p9470_p2, %p9464_p13 }
  0xbc   :  { %9474 = shalt.err (!%p9471_p3)
}
  0xbd   :  { %151 = dma.hbm_to_vmem [thread:$0]  %s10509_s12, 16, %s149_s28, [#allocation24]  }
  0xbe   :  { %s9554_s19 = smov [#allocation26]   ;;  %s9475_s8 = scalar_lea.hbm %s10511_s14, 16 }
  0xbf   :  { %s160_s27 = sshll.u32 %s9554_s19, 4  ;;  %p9476_p4 = scmp.ne.s32.totalorder %s10511_s14, %s9475_s8  ;;  %s161_s27 = int_to_ptr.vmem [resolvable:$true] %s160_s27 }
  0xc0   :  { %p9479_p5 = scmp.lt.u32.totalorder %s9475_s8, %s10511_s14 }
  0xc2   :  { %p9481_p6 = pnand %p9479_p5, %p9476_p4 }
  0xc4   :  { %9484 = shalt.err (!%p9481_p6)
}
  0xc5   :  { %s9485_s1 = scalar_lea.vmem %s161_s27, 16  ;;  %s9489_s12 = scalar_lea.vmem %s161_s27, 32 }
  0xc6   :  { %p9486_p7 = scmp.ne.s32.totalorder %s161_s27, %s9485_s1  ;;  %p9490_p8 = scmp.lt.s32.totalorder %s161_s27, %s161_s27 }
  0xc7   :  { %p9491_p9 = scmp.lt.s32.totalorder %s9489_s12, %s9485_s1 }
  0xc9   :  { %p9492_p10 = por %p9491_p9, %p9490_p8 }
  0xcb   :  { %p9493_p11 = pnand %p9492_p10, %p9486_p7 }
  0xcd   :  { %9496 = shalt.err (!%p9493_p11)
}
  0xce   :  { %163 = dma.hbm_to_vmem [thread:$0]  %s10511_s14, 16, %s161_s27, [#allocation27]  }
  0xcf   :  { %9519 = dma.done.wait [#allocation9], 2304  }
  0xd0   :  { %9520 = vsyncadd [#allocation9], 4294964992 }
  0xd1   :  { %9521 = dma.done.wait [#allocation12], 61488  }
  0xd2   :  { %9522 = vsyncadd [#allocation12], 4294905808 }
  0xd3   :  { %9523 = dma.done.wait [#allocation15], 12352  }
  0xd4   :  { %9524 = vsyncadd [#allocation15], 4294954944 }
  0xd5   :  { %9525 = dma.done.wait [#allocation18], 12304  }
  0xd6   :  { %9526 = vsyncadd [#allocation18], 4294954992 }
  0xd7   :  { %9527 = dma.done.wait [#allocation21], 288  }
  0xd8   :  { %9528 = vsyncadd [#allocation21], 4294967008 }
  0xd9   :  { %9529 = dma.done.wait [#allocation24], 80  }
  0xda   :  { %9530 = vsyncadd [#allocation24], 4294967216 }
  0xdb   :  { %9531 = dma.done.wait [#allocation27], 16  }
  0xdc   :  { %9532 = vsyncadd [#allocation27], 4294967280  ;;  %v9555_v0 = vmov 0.0   ;;  %vm229_vm0 = vcmask 1043456   ;;  %vm9556_vm1 = vmmov 1   ;;  %v214_v2 = vld [vmem:[#allocation8 + $0x38] sm:$0xff] }
  0xdd   :  { %303 = vmatprep.mubr.f32.mxu0 %v9555_v0  ;;  %2999 = vst [vmem:[#allocation5] sm:$0x1] %v9555_v0  ;;  %3000 = vst [vmem:[#allocation5 + $0x9] sm:$0x1] %v9555_v0  ;;  %315 = vmatprep.mubr.f32.mxu1 %v9555_v0  ;;  %v217_v3 = vld [vmem:[#allocation8 + $0x50] sm:$0xf] }
  0xde   :  { %6237 = vst [vmem:[#allocation5 + $0x10] sm:$0x1] %v9555_v0  ;;  %6238 = vst [vmem:[#allocation5 + $0x19] sm:$0x1] %v9555_v0  ;;  %v213_v4 = vld [vmem:[#allocation8 + $0x30] sm:$0xff]  ;;  %v7564_v5 = vpack.c.bf16 %v217_v3, %v214_v2  ;;  %v215_v8 = vld [vmem:[#allocation8 + $0x40] sm:$0xff] }
  0xdf   :  { %vm9804_vm2 = vmpackc.low %vm229_vm0, %vm9556_vm1  ;;  %v216_v6 = vld [vmem:[#allocation8 + $0x48] sm:$0xf]  ;;  %v218_v9 = vld [vmem:[#allocation8 + $0x58] sm:$0xf]  ;;  %vm219_vm3 = vcmask 97280   ;;  %v9557_v18 = vmov 0.0|0.0  }
  0xe0   :  { %v7567_v7 = vpack.c.bf16 %v216_v6, %v213_v4  ;;  %7566 = vmatprep.subr.msk.bf16.mxu0 %vm9804_vm2, %v7564_v5  ;;  %9046 = vmatprep.subr.msk.bf16.mxu1 %vm9804_vm2, %v7564_v5  ;;  %v204_v10 = vld [vmem:[#allocation8 + $0x8] sm:$0xff]  ;;  %v207_v11 = vld [vmem:[#allocation8 + $0x20] sm:$0xf]  ;;  %v211_v14 = vld [vmem:[%s10497_s0 + $0x11] sm:$0x3f]  ;;  %v7571_v15 = vpack.c.bf16 %v218_v9, %v215_v8  ;;  %vm9558_vm4 = vmmov 0  }
  0xe1   :  { %v203_v12 = vld [vmem:[#allocation8] sm:$0xff]  ;;  %v209_v13 = vld [vmem:[%s10497_s0 + $0x1] sm:$0xff]  ;;  %v7574_v16 = vpack.c.bf16 %v207_v11, %v204_v10  ;;  %v206_v17 = vld [vmem:[#allocation8 + $0x18] sm:$0xf]  ;;  %vm820_vm5 = vcmask 523264   ;;  %vm1174_vm6 = vcmask 1046528  }
  0xe2   :  { %7569 = vmatpush1.bf16.msk.msra.mxu0 %vm9804_vm2, %v7567_v7  ;;  %9047 = vmatpush1.bf16.msk.msra.mxu1 %vm9804_vm2, %v7567_v7  ;;  %v7577_v19 = vpack.c.bf16 %v206_v17, %v203_v12  ;;  %v588_v20 = vld [vmem:[#allocation8 + $0x68] sm:$0xff]  ;;  %v205_v21 = vld [vmem:[#allocation8 + $0x10] sm:$0xff]  ;;  %v591_v23 = vld [vmem:[#allocation8 + $0x80] sm:$0xf]  ;;  %vm827_vm7 = vcmask 521216   ;;  %vm2047_vm8 = vcmask 1045504  }
  0xe3   :  { %7570 = vmatprep.subr.bf16.mxu1 %v9557_v18  ;;  %7576 = vmatprep.subr.msk.bf16.mxu0 %vm9804_vm2, %v7574_v16  ;;  %v208_v22 = vld [vmem:[#allocation8 + $0x28] sm:$0xf]  ;;  %v7584_v24 = vpack.c.bf16 %v591_v23, %v588_v20  ;;  %v210_v25 = vld [vmem:[%s10497_s0 + $0x9] sm:$0xff]  ;;  %v587_v27 = vld [vmem:[#allocation8 + $0x60] sm:$0xff]  ;;  %vm2556_vm9 = vcmask 1042432   ;;  %vm2549_vm10 = vcmask 154624  }
  0xe4   :  { %v7581_v26 = vpack.c.bf16 %v208_v22, %v205_v21  ;;  %v590_v28 = vld [vmem:[#allocation8 + $0x78] sm:$0xf]  ;;  %v1006_v29 = vld [vmem:[#allocation13 + $0x508] sm:$0xff]  ;;  %v200_v31 = vld [vmem:[%s10497_s0] sm:$0xff]  ;;  %vm3349_vm11 = vcmask 56320   ;;  %vm6929_vm12 = vcmask 261120  }
  0xe5   :  { %7028 = vmatmul.mubr.msk.f32.vlgmr.msra.gmra.mrb[0].mxu0 %vm219_vm3, %v209_v13  ;;  %7030 = vmatmul.mubr.msk.f32.vlgmr.msra.gmra.mrb[0].mxu1 %vm219_vm3, %v211_v14  ;;  %v1010_v30 = vld [vmem:[#allocation13 + $0x528] sm:$0xff]  ;;  %v7587_v32 = vpack.c.bf16 %v590_v28, %v587_v27  ;;  %v201_v34 = vld [vmem:[%s10497_s0 + $0x8] sm:$0xff]  ;;  %v592_v36 = vld [vmem:[#allocation8 + $0x88] sm:$0xf]  ;;  %s9560_s29 = smov [#allocation28]   ;;  %vm7003_vm13 = vcmask 58368  }
  0xe6   :  { %7573 = vmatpush3.bf16.msk.msra.mxu1 %vm9804_vm2, %v7571_v15  ;;  %309 = vmatprep.mubr.f32.mxu0 %v9555_v0  ;;  %v7594_v33 = vpack.c.bf16 %v1010_v30, %v1006_v29  ;;  %v589_v35 = vld [vmem:[#allocation8 + $0x70] sm:$0xff]  ;;  %v202_v39 = vld [vmem:[%s10497_s0 + $0x10] sm:$0x3f]  ;;  %v1007_v54 = vld [vmem:[#allocation13 + $0x510] sm:$0xff]  ;;  %s7011_s23 = sshll.u32 %s9560_s29, 4  ;;  %s7012_s23 = int_to_ptr.vmem [resolvable:$true] %s7011_s23 }
  0xe7   :  { %7469 = vmatprep.mubr.msk.f32.mxu1 %vm9558_vm4, %v9555_v0  ;;  %7579 = vmatpush1.bf16.msk.msra.mxu0 %vm9804_vm2, %v7577_v19  ;;  %v1008_v37 = vld [vmem:[#allocation13 + $0x518] sm:$0xff]  ;;  %v7591_v40 = vpack.c.bf16 %v592_v36, %v589_v35  ;;  %v1005_v42 = vld [vmem:[#allocation13 + $0x500] sm:$0xff]  ;;  %v1014_v44 = vld [vmem:[#allocation13 + $0x548] sm:$0xff]  ;;  %p9502_p13 = scmp.lt.s32.totalorder %s7012_s23, %s7012_s23 }
  0xe8   :  { %7580 = vmatprep.subr.bf16.mxu1 %v9557_v18  ;;  %7586 = vmatprep.subr.msk.bf16.mxu0 %vm9804_vm2, %v7584_v24  ;;  %v1012_v38 = vld [vmem:[#allocation13 + $0x538] sm:$0xff]  ;;  %v1009_v43 = vld [vmem:[#allocation13 + $0x520] sm:$0xff]  ;;  %v1018_v45 = vld [vmem:[#allocation13 + $0x568] sm:$0xff] }
  0xe9   :  { %7029 = vmatmul.mubr.msk.f32.gmra.mrb[2].mxu0 %vm219_vm3, %v210_v25  ;;  %7470 = vmatmul.mubr.msk.f32.vlgmr.msra.gmra.mrb[2].mxu1 %vm219_vm3, %v209_v13  ;;  %v7674_v41 = vpack.c.bf16 %v1012_v38, %v1008_v37  ;;  %v583_v46 = vld [vmem:[%s10497_s0 + $0x2] sm:$0xff]  ;;  %v7596_v47 = vpack.c.bf16 %v1009_v43, %v1005_v42  ;;  %v7598_v48 = vpack.c.bf16 %v1018_v45, %v1014_v44  ;;  %v1013_v49 = vld [vmem:[#allocation13 + $0x540] sm:$0xff]  ;;  %v1022_v51 = vld [vmem:[#allocation13 + $0x588] sm:$0xff] }
  0xea   :  { %7472 = vmatprep.mubr.msk.f32.mxu1 %vm9558_vm4, %v9555_v0  ;;  %484 = vmatprep.mubr.f32.mxu0 %v9555_v0  ;;  %v1017_v50 = vld [vmem:[#allocation13 + $0x560] sm:$0xff]  ;;  %v1026_v52 = vld [vmem:[#allocation13 + $0x5a8] sm:$0xff]  ;;  %v1011_v55 = vld [vmem:[#allocation13 + $0x530] sm:$0xff] }
  0xeb   :  { %7583 = vmatpush3.bf16.msk.msra.mxu1 %vm9804_vm2, %v7581_v26  ;;  %v584_v53 = vld [vmem:[%s10497_s0 + $0xa] sm:$0xff]  ;;  %v7600_v57 = vpack.c.bf16 %v1017_v50, %v1013_v49  ;;  %v7602_v59 = vpack.c.bf16 %v1026_v52, %v1022_v51  ;;  %v1030_v62 = vld [vmem:[#allocation13 + $0x5c8] sm:$0xff]  ;;  %v7676_v3 = vpack.c.bf16 %v1011_v55, %v1007_v54  ;;  %v1015_v5 = vld [vmem:[#allocation13 + $0x550] sm:$0xff] }
  0xec   :  { %7590 = vmatprep.subr.bf16.mxu1 %v9557_v18  ;;  %v1016_v56 = vld [vmem:[#allocation13 + $0x558] sm:$0xff]  ;;  %v1021_v60 = vld [vmem:[#allocation13 + $0x580] sm:$0xff]  ;;  %v1034_v63 = vld [vmem:[#allocation13 + $0x5e8] sm:$0xff] }
  0xed   :  { %7473 = vmatmul.mubr.msk.f32.gmra.mrb[4].mxu1 %vm219_vm3, %v210_v25  ;;  %7037 = vmatmul.mubr.msk.f32.vlgmr.msra.gmra.mrb[0].mxu0 %vm219_vm3, %v200_v31  ;;  %v1020_v58 = vld [vmem:[#allocation13 + $0x578] sm:$0xff]  ;;  %v1025_v61 = vld [vmem:[#allocation13 + $0x5a0] sm:$0xff]  ;;  %v1019_v6 = vld [vmem:[#allocation13 + $0x570] sm:$0xff]  ;;  %v7606_v10 = vpack.c.bf16 %v1034_v63, %v1030_v62 }
  0xee   :  { %7475 = vmatprep.mubr.msk.f32.mxu1 %vm9558_vm4, %v9555_v0  ;;  %490 = vmatprep.mubr.f32.mxu0 %v9555_v0  ;;  %v585_v2 = vld [vmem:[%s10497_s0 + $0x12] sm:$0x3f]  ;;  %v7678_v4 = vpack.c.bf16 %v1020_v58, %v1016_v56  ;;  %v1024_v7 = vld [vmem:[#allocation13 + $0x598] sm:$0xff]  ;;  %v7604_v8 = vpack.c.bf16 %v1025_v61, %v1021_v60  ;;  %v7680_v15 = vpack.c.bf16 %v1019_v6, %v1015_v5  ;;  %v1023_v17 = vld [vmem:[#allocation13 + $0x590] sm:$0xff] }
  0xef   :  { %7589 = vmatpush1.bf16.msk.msra.mxu0 %vm9804_vm2, %v7587_v32  ;;  %v1028_v9 = vld [vmem:[#allocation13 + $0x5b8] sm:$0xff]  ;;  %v1029_v11 = vld [vmem:[#allocation13 + $0x5c0] sm:$0xff]  ;;  %v1038_v13 = vld [vmem:[#allocation13 + $0x608] sm:$0xff] }
  0xf0   :  { %7595 = vmatprep.subr.bf16.mxu0 %v7594_v33  ;;  %v1033_v12 = vld [vmem:[#allocation13 + $0x5e0] sm:$0xff]  ;;  %v7682_v16 = vpack.c.bf16 %v1028_v9, %v1024_v7  ;;  %v1027_v19 = vld [vmem:[#allocation13 + $0x5b0] sm:$0xff]  ;;  %v1032_v20 = vld [vmem:[#allocation13 + $0x5d8] sm:$0xff] }
  0xf1   :  { %7476 = vmatmul.mubr.msk.f32.gmra.mrb[6].mxu1 %vm219_vm3, %v211_v14  ;;  %7038 = vmatmul.mubr.msk.f32.gmra.mrb[2].mxu0 %vm219_vm3, %v201_v34  ;;  %v1042_v14 = vld [vmem:[#allocation13 + $0x628] sm:$0xff]  ;;  %v7608_v21 = vpack.c.bf16 %v1033_v12, %v1029_v11  ;;  %v1036_v22 = vld [vmem:[#allocation13 + $0x5f8] sm:$0xff]  ;;  %v1037_v24 = vld [vmem:[#allocation13 + $0x600] sm:$0xff]  ;;  %v7684_v28 = vpack.c.bf16 %v1027_v19, %v1023_v17 }
  0xf2   :  { %496 = vmatprep.mubr.f32.mxu0 %v9555_v0  ;;  %7482 = vmatprep.mubr.msk.f32.mxu1 %vm9558_vm4, %v9555_v0  ;;  %v7610_v23 = vpack.c.bf16 %v1042_v14, %v1038_v13  ;;  %v1041_v25 = vld [vmem:[#allocation13 + $0x620] sm:$0xff]  ;;  %v1046_v26 = vld [vmem:[#allocation13 + $0x648] sm:$0xff]  ;;  %v7686_v29 = vpack.c.bf16 %v1036_v22, %v1032_v20  ;;  %v1031_v30 = vld [vmem:[#allocation13 + $0x5d0] sm:$0xff] }
  0xf3   :  { %v1050_v27 = vld [vmem:[#allocation13 + $0x668] sm:$0xff]  ;;  %v1040_v32 = vld [vmem:[#allocation13 + $0x618] sm:$0xff]  ;;  %v7612_v33 = vpack.c.bf16 %v1041_v25, %v1037_v24  ;;  %v1045_v36 = vld [vmem:[#allocation13 + $0x640] sm:$0xff] }
  0xf4   :  { %v7614_v35 = vpack.c.bf16 %v1050_v27, %v1046_v26  ;;  %v1049_v37 = vld [vmem:[#allocation13 + $0x660] sm:$0xff]  ;;  %v1054_v38 = vld [vmem:[#allocation13 + $0x688] sm:$0xff]  ;;  %v1039_v42 = vld [vmem:[#allocation13 + $0x610] sm:$0xff] }
  0xf5   :  { %7039 = vmatmul.mubr.msk.f32.gmra.mrb[4].mxu0 %vm219_vm3, %v202_v39  ;;  %7483 = vmatmul.mubr.msk.f32.vlgmr.msra.gmra.mrb[8].mxu1 %vm219_vm3, %v200_v31  ;;  %v1035_v31 = vld [vmem:[#allocation13 + $0x5f0] sm:$0xff]  ;;  %v1048_v44 = vld [vmem:[#allocation13 + $0x658] sm:$0xff]  ;;  %v7616_v45 = vpack.c.bf16 %v1049_v37, %v1045_v36  ;;  %v1057_v49 = vld [vmem:[#allocation13 + $0x6a0] sm:$0xff] }
  0xf6   :  { %7485 = vmatprep.mubr.msk.f32.mxu1 %vm9558_vm4, %v9555_v0  ;;  %675 = vmatprep.mubr.f32.mxu0 %v9555_v0  ;;  %v1043_v43 = vld [vmem:[#allocation13 + $0x630] sm:$0xff]  ;;  %v1062_v50 = vld [vmem:[#allocation13 + $0x6c8] sm:$0xff]  ;;  %v1056_v56 = vld [vmem:[#allocation13 + $0x698] sm:$0xff] }
  0xf7   :  { %7593 = vmatpush3.bf16.msk.msra.mxu1 %vm9804_vm2, %v7591_v40  ;;  %v7688_v40 = vpack.c.bf16 %v1035_v31, %v1031_v30  ;;  %v1066_v51 = vld [vmem:[#allocation13 + $0x6e8] sm:$0xff]  ;;  %v7692_v52 = vpack.c.bf16 %v1043_v43, %v1039_v42  ;;  %v1047_v54 = vld [vmem:[#allocation13 + $0x650] sm:$0xff]  ;;  %v1060_v58 = vld [vmem:[#allocation13 + $0x6b8] sm:$0xff] }
  0xf8   :  { %7675 = vmatprep.subr.bf16.mxu1 %v7674_v41  ;;  %v1051_v55 = vld [vmem:[#allocation13 + $0x670] sm:$0xff]  ;;  %v1061_v60 = vld [vmem:[#allocation13 + $0x6c0] sm:$0xff]  ;;  %v7698_v63 = vpack.c.bf16 %v1060_v58, %v1056_v56  ;;  %v1064_v5 = vld [vmem:[#allocation13 + $0x6d8] sm:$0xff] }
  0xf9   :  { %7486 = vmatmul.mubr.msk.f32.gmra.mrb[10].mxu1 %vm219_vm3, %v201_v34  ;;  %7046 = vmatmul.mubr.msk.f32.vlgmr.msra.gmra.mrb[0].mxu0 %vm219_vm3, %v583_v46  ;;  %v1044_v34 = vld [vmem:[#allocation13 + $0x638] sm:$0xff]  ;;  %v1065_v61 = vld [vmem:[#allocation13 + $0x6e0] sm:$0xff]  ;;  %v7696_v62 = vpack.c.bf16 %v1051_v55, %v1047_v54  ;;  %v1063_v9 = vld [vmem:[#allocation13 + $0x6d0] sm:$0xff] }
  0xfa   :  { %7488 = vmatprep.mubr.msk.f32.mxu1 %vm9558_vm4, %v9555_v0  ;;  %681 = vmatprep.mubr.f32.mxu0 %v9555_v0  ;;  %v7690_v41 = vpack.c.bf16 %v1044_v34, %v1040_v32  ;;  %v1068_v6 = vld [vmem:[#allocation13 + $0x6f8] sm:$0xff]  ;;  %v1070_v12 = vld [vmem:[#allocation13 + $0x708] sm:$0xff]  ;;  %v1069_v19 = vld [vmem:[#allocation13 + $0x700] sm:$0xff] }
  0xfb   :  { %7597 = vmatpush1.bf16.msra.mxu0 %v7596_v47  ;;  %v1074_v13 = vld [vmem:[#allocation13 + $0x728] sm:$0xff]  ;;  %v1072_v14 = vld [vmem:[#allocation13 + $0x718] sm:$0xff]  ;;  %v1073_v20 = vld [vmem:[#allocation13 + $0x720] sm:$0xff] }
  0xfc   :  { %7599 = vmatprep.subr.bf16.mxu0 %v7598_v48  ;;  %v1053_v48 = vld [vmem:[#allocation13 + $0x680] sm:$0xff]  ;;  %v7628_v22 = vpack.c.bf16 %v1073_v20, %v1069_v19  ;;  %v1078_v25 = vld [vmem:[#allocation13 + $0x748] sm:$0xff]  ;;  %v1080_v27 = vld [vmem:[#allocation13 + $0x758] sm:$0xff] }
  0xfd   :  { %7489 = vmatmul.mubr.msk.f32.gmra.mrb[12].mxu1 %vm219_vm3, %v202_v39  ;;  %7047 = vmatmul.mubr.msk.f32.gmra.mrb[2].mxu0 %vm219_vm3, %v584_v53  ;;  %v1058_v39 = vld [vmem:[#allocation13 + $0x6a8] sm:$0xff]  ;;  %v1077_v30 = vld [vmem:[#allocation13 + $0x740] sm:$0xff]  ;;  %v1079_v34 = vld [vmem:[#allocation13 + $0x750] sm:$0xff] }
  0xfe   :  { %687 = vmatprep.mubr.f32.mxu0 %v9555_v0  ;;  %7495 = vmatprep.mubr.msk.f32.mxu1 %vm9558_vm4, %v9555_v0  ;;  %v7618_v47 = vpack.c.bf16 %v1058_v39, %v1054_v38  ;;  %v1082_v26 = vld [vmem:[#allocation13 + $0x768] sm:$0xff]  ;;  %v1081_v31 = vld [vmem:[#allocation13 + $0x760] sm:$0xff]  ;;  %v1088_v39 = vld [vmem:[#allocation13 + $0x798] sm:$0xff] }
  0xff   :  { %7601 = vmatpush1.bf16.msra.mxu0 %v7600_v57  ;;  %v7620_v57 = vpack.c.bf16 %v1057_v49, %v1053_v48  ;;  %v1086_v37 = vld [vmem:[#allocation13 + $0x788] sm:$0xff]  ;;  %v1085_v42 = vld [vmem:[#allocation13 + $0x780] sm:$0xff]  ;;  %v1095_v58 = vld [vmem:[#allocation13 + $0x7d0] sm:$0xff] }
 0x100   :  { %7603 = vmatprep.subr.bf16.mxu0 %v7602_v59  ;;  %v7622_v59 = vpack.c.bf16 %v1066_v51, %v1062_v50  ;;  %v1090_v38 = vld [vmem:[#allocation13 + $0x7a8] sm:$0xff]  ;;  %v1089_v43 = vld [vmem:[#allocation13 + $0x7a0] sm:$0xff]  ;;  %v1096_v51 = vld [vmem:[#allocation13 + $0x7d8] sm:$0xff] }
 0x101   :  { %7048 = vmatmul.mubr.msk.f32.gmra.mrb[4].mxu0 %vm219_vm3, %v585_v2  ;;  %7496 = vmatmul.mubr.msk.f32.vlgmr.msra.gmra.mrb[14].mxu1 %vm219_vm3, %v583_v46  ;;  %v1052_v46 = vld [vmem:[#allocation13 + $0x678] sm:$0xff]  ;;  %v1094_v49 = vld [vmem:[#allocation13 + $0x7c8] sm:$0xff]  ;;  %v1093_v54 = vld [vmem:[#allocation13 + $0x7c0] sm:$0xff] }
 0x102   :  { %7498 = vmatprep.mubr.msk.f32.mxu1 %vm9558_vm4, %v9555_v0  ;;  %7677 = vmatpush1.bf16.msra.mxu1 %v7676_v3  ;;  %v1059_v3 = vld [vmem:[#allocation13 + $0x6b0] sm:$0xff]  ;;  %v1098_v50 = vld [vmem:[#allocation13 + $0x7e8] sm:$0xff]  ;;  %v1097_v55 = vld [vmem:[#allocation13 + $0x7e0] sm:$0xff] }
 0x103   :  { %7679 = vmatprep.subr.bf16.mxu1 %v7678_v4  ;;  %7605 = vmatpush1.bf16.msra.mxu0 %v7604_v8  ;;  %v7624_v4 = vpack.c.bf16 %v1065_v61, %v1061_v60  ;;  %v7702_v8 = vpack.c.bf16 %v1068_v6, %v1064_v5  ;;  %v1102_v61 = vld [vmem:[#allocation13 + $0x808] sm:$0xff]  ;;  %v1105_v5 = vld [vmem:[#allocation13 + $0x820] sm:$0xff] }
 0x104   :  { %7607 = vmatprep.subr.bf16.mxu0 %v7606_v10  ;;  %v1067_v10 = vld [vmem:[#allocation13 + $0x6f0] sm:$0xff]  ;;  %v4248_v1 = vld [vmem:[#allocation13 + $0x508] sm:$0xff] }
 0x105   :  { %7499 = vmatmul.mubr.msk.f32.gmra.mrb[16].mxu1 %vm219_vm3, %v584_v53  ;;  %v7694_v53 = vpack.c.bf16 %v1052_v46, %v1048_v44  ;;  %v7704_v11 = vpack.c.bf16 %v1067_v10, %v1063_v9  ;;  %v1087_v46 = vld [vmem:[#allocation13 + $0x790] sm:$0xff] }
 0x106   :  { %7501 = vmatprep.mubr.msk.f32.mxu1 %vm9558_vm4, %v9555_v0  ;;  %7681 = vmatpush1.bf16.msra.mxu1 %v7680_v15  ;;  %v7626_v15 = vpack.c.bf16 %v1074_v13, %v1070_v12  ;;  %v1107_v9 = vld [vmem:[#allocation13 + $0x830] sm:$0xff]  ;;  %v1114_v12 = vld [vmem:[#allocation13 + $0x868] sm:$0xff]  ;;  %v1112_v13 = vld [vmem:[#allocation13 + $0x858] sm:$0xff] }
 0x107   :  { %7683 = vmatprep.subr.bf16.mxu1 %v7682_v16  ;;  %7609 = vmatpush1.bf16.msra.mxu0 %v7608_v21  ;;  %v1076_v16 = vld [vmem:[#allocation13 + $0x738] sm:$0xff]  ;;  %v1071_v21 = vld [vmem:[#allocation13 + $0x710] sm:$0xff] }
 0x108   :  { %7611 = vmatprep.subr.bf16.mxu0 %v7610_v23  ;;  %v7706_v17 = vpack.c.bf16 %v1076_v16, %v1072_v14  ;;  %v1075_v23 = vld [vmem:[#allocation13 + $0x730] sm:$0xff]  ;;  %v1109_v16 = vld [vmem:[#allocation13 + $0x840] sm:$0xff] }
 0x109   :  { %7502 = vmatmul.mubr.msk.f32.gmra.mrb[18].mxu1 %vm219_vm3, %v585_v2  ;;  %v1055_v2 = vld [vmem:[#allocation13 + $0x690] sm:$0xff]  ;;  %v7708_v24 = vpack.c.bf16 %v1075_v23, %v1071_v21 }
 0x10a   :  { %7685 = vmatpush1.bf16.msra.mxu1 %v7684_v28  ;;  %v7700_v7 = vpack.c.bf16 %v1059_v3, %v1055_v2  ;;  %v7630_v28 = vpack.c.bf16 %v1082_v26, %v1078_v25  ;;  %v1108_v3 = vld [vmem:[#allocation13 + $0x838] sm:$0xff]  ;;  %v1111_v21 = vld [vmem:[#allocation13 + $0x850] sm:$0xff]  ;;  %v1122_v25 = vld [vmem:[#allocation13 + $0x8a8] sm:$0xff] }
 0x10b   :  { %7687 = vmatprep.subr.bf16.mxu1 %v7686_v29  ;;  %7613 = vmatpush1.bf16.msra.mxu0 %v7612_v33  ;;  %v1084_v29 = vld [vmem:[#allocation13 + $0x778] sm:$0xff]  ;;  %v7632_v33 = vpack.c.bf16 %v1081_v31, %v1077_v30  ;;  %v1121_v30 = vld [vmem:[#allocation13 + $0x8a0] sm:$0xff] }
 0x10c   :  { %7615 = vmatprep.subr.bf16.mxu0 %v7614_v35  ;;  %v7710_v32 = vpack.c.bf16 %v1084_v29, %v1080_v27  ;;  %v1083_v35 = vld [vmem:[#allocation13 + $0x770] sm:$0xff]  ;;  %v1120_v26 = vld [vmem:[#allocation13 + $0x898] sm:$0xff]  ;;  %v1117_v29 = vld [vmem:[#allocation13 + $0x880] sm:$0xff] }
 0x10d   :  { %v7712_v36 = vpack.c.bf16 %v1083_v35, %v1079_v34  ;;  %v1123_v34 = vld [vmem:[#allocation13 + $0x8b0] sm:$0xff] }
 0x10e   :  { %7689 = vmatpush1.bf16.msra.mxu1 %v7688_v40  ;;  %v7634_v40 = vpack.c.bf16 %v1090_v38, %v1086_v37  ;;  %v1130_v37 = vld [vmem:[#allocation13 + $0x8e8] sm:$0xff]  ;;  %v1128_v38 = vld [vmem:[#allocation13 + $0x8d8] sm:$0xff] }
 0x10f   :  { %7691 = vmatprep.subr.bf16.mxu1 %v7690_v41  ;;  %7617 = vmatpush1.bf16.msra.mxu0 %v7616_v45  ;;  %v1092_v41 = vld [vmem:[#allocation13 + $0x7b8] sm:$0xff]  ;;  %v7636_v45 = vpack.c.bf16 %v1089_v43, %v1085_v42  ;;  %v1129_v42 = vld [vmem:[#allocation13 + $0x8e0] sm:$0xff] }
 0x110   :  { %7619 = vmatprep.subr.bf16.mxu0 %v7618_v47  ;;  %v7714_v44 = vpack.c.bf16 %v1092_v41, %v1088_v39  ;;  %v1091_v47 = vld [vmem:[#allocation13 + $0x7b0] sm:$0xff]  ;;  %v1125_v41 = vld [vmem:[#allocation13 + $0x8c0] sm:$0xff] }
 0x111   :  { %v7716_v48 = vpack.c.bf16 %v1091_v47, %v1087_v46  ;;  %v1131_v46 = vld [vmem:[#allocation13 + $0x8f0] sm:$0xff] }
 0x112   :  { %7693 = vmatpush1.bf16.msra.mxu1 %v7692_v52  ;;  %v7638_v52 = vpack.c.bf16 %v1098_v50, %v1094_v49  ;;  %v1138_v49 = vld [vmem:[#allocation13 + $0x928] sm:$0xff]  ;;  %v1136_v50 = vld [vmem:[#allocation13 + $0x918] sm:$0xff] }
 0x113   :  { %7695 = vmatprep.subr.bf16.mxu1 %v7694_v53  ;;  %7621 = vmatpush1.bf16.msra.mxu0 %v7620_v57  ;;  %v1100_v53 = vld [vmem:[#allocation13 + $0x7f8] sm:$0xff]  ;;  %v7640_v57 = vpack.c.bf16 %v1097_v55, %v1093_v54 }
 0x114   :  { %7623 = vmatprep.subr.bf16.mxu0 %v7622_v59  ;;  %v7718_v56 = vpack.c.bf16 %v1100_v53, %v1096_v51  ;;  %v1099_v59 = vld [vmem:[#allocation13 + $0x7f0] sm:$0xff] }
 0x115   :  { %v7720_v60 = vpack.c.bf16 %v1099_v59, %v1095_v58  ;;  %v785_v58 = vlaneseq }
 0x116   :  { %7697 = vmatpush1.bf16.msra.mxu1 %v7696_v62  ;;  %v1106_v62 = vld [vmem:[#allocation13 + $0x828] sm:$0xff] }
 0x117   :  { %7699 = vmatprep.subr.bf16.mxu1 %v7698_v63  ;;  %7625 = vmatpush1.bf16.msra.mxu0 %v7624_v4  ;;  %v1104_v63 = vld [vmem:[#allocation13 + $0x818] sm:$0xff]  ;;  %v7642_v2 = vpack.c.bf16 %v1106_v62, %v1102_v61  ;;  %v1101_v4 = vld [vmem:[#allocation13 + $0x800] sm:$0xff]  ;;  %v9903_v61 = vshrl.u32 %v785_v58, 7 }
 0x118   :  { %7627 = vmatprep.subr.bf16.mxu0 %v7626_v15  ;;  %v7722_v6 = vpack.c.bf16 %v1108_v3, %v1104_v63  ;;  %v1116_v15 = vld [vmem:[#allocation13 + $0x878] sm:$0xff] }
 0x119   :  { %v7726_v19 = vpack.c.bf16 %v1116_v15, %v1112_v13  ;;  %v783_v3 = vld [vmem:[#allocation11] sm:$0x7] }
 0x11a   :  { %7701 = vmatpush1.bf16.msra.mxu1 %v7700_v7  ;;  %v7644_v7 = vpack.c.bf16 %v1105_v5, %v1101_v4  ;;  %v9909_v4 = vsub.s32 1, %v9903_v61 }
 0x11b   :  { %7703 = vmatprep.subr.bf16.mxu1 %v7702_v8  ;;  %7629 = vmatpush1.bf16.msra.mxu0 %v7628_v22  ;;  %v1103_v8 = vld [vmem:[#allocation13 + $0x810] sm:$0xff] }
 0x11c   :  { %7631 = vmatprep.subr.bf16.mxu0 %v7630_v28  ;;  %v7724_v10 = vpack.c.bf16 %v1107_v9, %v1103_v8  ;;  %v1115_v22 = vld [vmem:[#allocation13 + $0x870] sm:$0xff]  ;;  %v1124_v28 = vld [vmem:[#allocation13 + $0x8b8] sm:$0xff]  ;;  %v792_v9 = vrot.slane %v783_v3, %v9909_v4 }
 0x11d   :  { %v7728_v23 = vpack.c.bf16 %v1115_v22, %v1111_v21  ;;  %v7730_v31 = vpack.c.bf16 %v1124_v28, %v1120_v26 }
 0x11e   :  { %7705 = vmatpush1.bf16.msra.mxu1 %v7704_v11  ;;  %v1110_v11 = vld [vmem:[#allocation13 + $0x848] sm:$0xff] }
 0x11f   :  { %7707 = vmatprep.subr.bf16.mxu1 %v7706_v17  ;;  %7633 = vmatpush1.bf16.msra.mxu0 %v7632_v33  ;;  %v7646_v14 = vpack.c.bf16 %v1114_v12, %v1110_v11  ;;  %v1113_v17 = vld [vmem:[#allocation13 + $0x860] sm:$0xff]  ;;  %v1119_v33 = vld [vmem:[#allocation13 + $0x890] sm:$0xff] }
 0x120   :  { %7635 = vmatprep.subr.bf16.mxu0 %v7634_v40  ;;  %v7648_v20 = vpack.c.bf16 %v1113_v17, %v1109_v16  ;;  %v7732_v35 = vpack.c.bf16 %v1123_v34, %v1119_v33  ;;  %v1132_v40 = vld [vmem:[#allocation13 + $0x8f8] sm:$0xff] }
 0x121   :  { %v7734_v43 = vpack.c.bf16 %v1132_v40, %v1128_v38  ;;  %v1133_v38 = vld [vmem:[#allocation13 + $0x900] sm:$0xff]  ;;  %v1135_v40 = vld [vmem:[#allocation13 + $0x910] sm:$0xff] }
 0x122   :  { %7709 = vmatpush1.bf16.msra.mxu1 %v7708_v24  ;;  %v1118_v24 = vld [vmem:[#allocation13 + $0x888] sm:$0xff] }
 0x123   :  { %7711 = vmatprep.subr.bf16.mxu1 %v7710_v32  ;;  %7637 = vmatpush1.bf16.msra.mxu0 %v7636_v45  ;;  %v7650_v27 = vpack.c.bf16 %v1122_v25, %v1118_v24  ;;  %v7652_v32 = vpack.c.bf16 %v1121_v30, %v1117_v29  ;;  %v1127_v45 = vld [vmem:[#allocation13 + $0x8d0] sm:$0xff] }
 0x124   :  { %7639 = vmatprep.subr.bf16.mxu0 %v7638_v52  ;;  %v7736_v47 = vpack.c.bf16 %v1131_v46, %v1127_v45  ;;  %v1140_v52 = vld [vmem:[#allocation13 + $0x938] sm:$0xff]  ;;  %v1146_v45 = vld [vmem:[#allocation13 + $0x968] sm:$0xff] }
 0x125   :  { %v7738_v53 = vpack.c.bf16 %v1140_v52, %v1136_v50  ;;  %v1148_v50 = vld [vmem:[#allocation13 + $0x978] sm:$0xff] }
 0x126   :  { %7713 = vmatpush1.bf16.msra.mxu1 %v7712_v36  ;;  %v1126_v36 = vld [vmem:[#allocation13 + $0x8c8] sm:$0xff] }
 0x127   :  { %7715 = vmatprep.subr.bf16.mxu1 %v7714_v44  ;;  %7641 = vmatpush1.bf16.msra.mxu0 %v7640_v57  ;;  %v7654_v39 = vpack.c.bf16 %v1130_v37, %v1126_v36  ;;  %v7656_v44 = vpack.c.bf16 %v1129_v42, %v1125_v41 }
 0x128   :  { %7643 = vmatprep.subr.bf16.mxu0 %v7642_v2  ;;  %v9906_v2 = vsub.s32 0, %v9903_v61 }
 0x12a   :  { %7717 = vmatpush1.bf16.msra.mxu1 %v7716_v48  ;;  %v1134_v48 = vld [vmem:[#allocation13 + $0x908] sm:$0xff]  ;;  %v788_v8 = vrot.slane %v783_v3, %v9906_v2 }
 0x12b   :  { %7719 = vmatprep.subr.bf16.mxu1 %v7718_v56  ;;  %7645 = vmatpush1.bf16.msra.mxu0 %v7644_v7  ;;  %v7658_v51 = vpack.c.bf16 %v1138_v49, %v1134_v48  ;;  %v1144_v49 = vld [vmem:[#allocation13 + $0x958] sm:$0xff] }
 0x12c   :  { %7647 = vmatprep.subr.bf16.mxu0 %v7646_v14 }
 0x12e   :  { %7721 = vmatpush1.bf16.msra.mxu1 %v7720_v60 }
 0x12f   :  { %7723 = vmatprep.subr.bf16.mxu1 %v7722_v6  ;;  %7649 = vmatpush1.bf16.msra.mxu0 %v7648_v20 }
 0x130   :  { %7651 = vmatprep.subr.bf16.mxu0 %v7650_v27 }
 0x132   :  { %7725 = vmatpush1.bf16.msra.mxu1 %v7724_v10 }
 0x133   :  { %7727 = vmatprep.subr.bf16.mxu1 %v7726_v19  ;;  %7653 = vmatpush1.bf16.msra.mxu0 %v7652_v32  ;;  %v9916_v19 = vsub.s32 2, %v9903_v61 }
 0x134   :  { %7655 = vmatprep.subr.bf16.mxu0 %v7654_v39  ;;  %v1137_v39 = vld [vmem:[#allocation13 + $0x920] sm:$0xff] }
 0x135   :  { %v9925_v29 = vrot.slane %v783_v3, %v9916_v19 }
 0x136   :  { %7729 = vmatpush1.bf16.msra.mxu1 %v7728_v23 }
 0x137   :  { %7731 = vmatprep.subr.bf16.mxu1 %v7730_v31  ;;  %7657 = vmatpush1.bf16.msra.mxu0 %v7656_v44  ;;  %v1142_v44 = vld [vmem:[#allocation13 + $0x948] sm:$0xff] }
 0x138   :  { %7659 = vmatprep.subr.bf16.mxu0 %v7658_v51 }
 0x13a   :  { %7733 = vmatpush1.bf16.msra.mxu1 %v7732_v35 }
 0x13b   :  { %7735 = vmatprep.subr.bf16.mxu1 %v7734_v43  ;;  %v1139_v43 = vld [vmem:[#allocation13 + $0x930] sm:$0xff] }
 0x13c   :  { %v7740_v3 = vpack.c.bf16 %v1139_v43, %v1135_v40  ;;  %v1158_v40 = vld [vmem:[#allocation13 + $0x9c8] sm:$0xff]  ;;  %v1160_v43 = vld [vmem:[#allocation13 + $0x9d8] sm:$0xff] }
 0x13e   :  { %7737 = vmatpush1.bf16.msra.mxu1 %v7736_v47 }
 0x13f   :  { %7739 = vmatprep.subr.bf16.mxu1 %v7738_v53 }
 0x1b8   :  { %v317_v54 = vpop.f32.mrb[0].mxu1 }
 0x1b9   :  { %v319_v55 = vpop.f32.mrb[1].mxu1 }
 0x1bc   :  { %v388_v56 = vpop.f32.mrb[2].mxu1 }
 0x1bd   :  { %v7471_v57 = vpop.f32.mrb[3].mxu1 }
 0x1c0   :  { %v393_v59 = vpop.f32.mrb[4].mxu1 }
 0x1c1   :  { %v7474_v60 = vpop.f32.mrb[5].mxu1 }
 0x1c4   :  { %v398_v62 = vpop.f32.mrb[6].mxu1 }
 0x1c5   :  { %v7477_v63 = vpop.f32.mrb[7].mxu1 }
 0x1c6   :  { %v7660_v63 = vpack.c.bf16 %v1137_v39, %v1133_v38  ;;  %v1155_v39 = vld [vmem:[#allocation13 + $0x9b0] sm:$0xff] }
 0x1c8   :  { %v569_v5 = vpop.f32.mrb[8].mxu1 }
 0x1c9   :  { %v570_v6 = vadd.f32 %v569_v5, %v388_v56  ;;  %v7484_v7 = vpop.f32.mrb[9].mxu1  ;;  %v1141_v5 = vld [vmem:[#allocation13 + $0x940] sm:$0xff] }
 0x1cc   :  { %v574_v10 = vpop.f32.mrb[10].mxu1  ;;  %v677_v11 = vpop.f32.mrb[0].mxu0 }
 0x1cd   :  { %v575_v12 = vadd.f32 %v574_v10, %v393_v59  ;;  %v800_v13 = vadd.f32 %v788_v8, %v677_v11  ;;  %v679_v14 = vpop.f32.mrb[1].mxu0  ;;  %v7487_v15 = vpop.f32.mrb[11].mxu1  ;;  %v7742_v10 = vpack.c.bf16 %v1148_v50, %v1144_v49  ;;  %v1143_v11 = vld [vmem:[#allocation13 + $0x950] sm:$0xff]  ;;  %v1161_v49 = vld [vmem:[#allocation13 + $0x9e0] sm:$0xff] }
 0x1ce   :  { %v801_v16 = vadd.f32 %v792_v9, %v679_v14 }
 0x1cf   :  { %v9913_v17 = vmax.f32 %v800_v13, 0.0  ;;  %v1150_v13 = vld [vmem:[#allocation13 + $0x988] sm:$0xff] }
 0x1d0   :  { %v9918_v20 = vmax.f32 %v801_v16, 0.0  ;;  %v579_v21 = vpop.f32.mrb[12].mxu1  ;;  %v683_v22 = vpop.f32.mrb[2].mxu0 }
 0x1d1   :  { %818 = vst [vmem:[#allocation2] sm:$0xff] %v9913_v17  ;;  %v580_v23 = vadd.f32 %v579_v21, %v398_v62  ;;  %v803_v24 = vadd.f32 %v788_v8, %v683_v22  ;;  %v685_v25 = vpop.f32.mrb[3].mxu0  ;;  %v7490_v26 = vpop.f32.mrb[13].mxu1  ;;  %v1154_v21 = vld [vmem:[#allocation13 + $0x9a8] sm:$0xff]  ;;  %v1152_v22 = vld [vmem:[#allocation13 + $0x998] sm:$0xff] }
 0x1d2   :  { %819 = vst [vmem:[#allocation2 + $0x8] sm:$0xff] %v9918_v20  ;;  %v804_v27 = vadd.f32 %v792_v9, %v685_v25 }
 0x1d3   :  { %v9922_v28 = vmax.f32 %v803_v24, 0.0  ;;  %v1156_v24 = vld [vmem:[#allocation13 + $0x9b8] sm:$0xff] }
 0x1d4   :  { %v9927_v30 = vmax.f32 %v804_v27, 0.0  ;;  %v689_v31 = vpop.f32.mrb[4].mxu0  ;;  %v760_v32 = vpop.f32.mrb[14].mxu1 }
 0x1d5   :  { %822 = vst [vmem:[#allocation2 + $0x18] sm:$0xff] %v9922_v28  ;;  %v9048_v33 = vadd.f32 %v689_v31, %v317_v54  ;;  %v776_v34 = vadd.f32 %v760_v32, %v570_v6  ;;  %v691_v35 = vpop.f32.mrb[5].mxu0  ;;  %v7497_v36 = vpop.f32.mrb[15].mxu1  ;;  %v1176_v62 = vrot.slane %v9922_v28, 1  ;;  %v1145_v6 = vld [vmem:[#allocation13 + $0x960] sm:$0xff]  ;;  %v7746_v32 = vpack.c.bf16 %v1156_v24, %v1152_v22 }
 0x1d6   :  { %823 = vst [vmem:[#allocation2 + $0x20] sm:$0xff] %v9927_v30  ;;  %v9049_v37 = vadd.f32 %v691_v35, %v319_v55  ;;  %v1179_v59 = vrot.slane %v9927_v30, 1  ;;  %v7664_v27 = vpack.c.bf16 %v1145_v6, %v1141_v5  ;;  %v1153_v36 = vld [vmem:[#allocation13 + $0x9a0] sm:$0xff] }
 0x1d7   :  { %v806_v41 = vadd.f32 %v9048_v33, %v788_v8  ;;  %v802_v42 = vadd.f32 %v9925_v29, %v776_v34  ;;  %v1149_v34 = vld [vmem:[#allocation13 + $0x980] sm:$0xff] }
 0x1d8   :  { %v807_v46 = vadd.f32 %v9049_v37, %v792_v9  ;;  %v765_v47 = vpop.f32.mrb[16].mxu1  ;;  %v998_v48 = vld [vmem:[#allocation2] sm:$0xfe]  ;;  %v7662_v9 = vpack.c.bf16 %v1146_v45, %v1142_v44  ;;  %v846_v24 = vld [vmem:[#allocation13 + $0x40] sm:$0xff] }
 0x1d9   :  { %v815_v51 = vmax.f32 %v806_v41, 0.0  ;;  %v811_v52 = vmax.f32 %v802_v42, 0.0  ;;  %v779_v53 = vadd.f32 %v765_v47, %v575_v12  ;;  %v7500_v54 = vpop.f32.mrb[17].mxu1  ;;  %v999_v55 = vld [vmem:[#allocation2 + $0x8] sm:$0xfe]  ;;  %v1175_v56 = vrot.slane %v998_v48, 1 }
 0x1da   :  { %v816_v57 = vmax.f32 %v807_v46, 0.0  ;;  %v1178_v58 = vrot.slane %v999_v55, 1  ;;  %v1147_v12 = vld [vmem:[#allocation13 + $0x970] sm:$0xff]  ;;  %v1162_v42 = vld [vmem:[#allocation13 + $0x9e8] sm:$0xff]  ;;  %v1164_v44 = vld [vmem:[#allocation13 + $0x9f8] sm:$0xff]  ;;  %v7668_v46 = vpack.c.bf16 %v1153_v36, %v1149_v34 }
 0x1db   :  { %825 = vst [vmem:[#allocation2 + $0x30] sm:$0x3f] %v815_v51  ;;  %821 = vst.msk [vmem:[#allocation2 + $0x10] sm:$0xff] %vm820_vm5, %v811_v52  ;;  %v805_v60 = vadd.f32 %v9925_v29, %v779_v53  ;;  %v1177_v16 = vsel %vm1174_vm6, %v1175_v56, %v1176_v62  ;;  %v7744_v31 = vpack.c.bf16 %v1147_v12, %v1143_v11  ;;  %v1151_v37 = vld [vmem:[#allocation13 + $0x990] sm:$0xff]  ;;  %v1157_v48 = vld [vmem:[#allocation13 + $0x9c0] sm:$0xff] }
 0x1dc   :  { %826 = vst [vmem:[#allocation2 + $0x38] sm:$0x3f] %v816_v57  ;;  %v770_v7 = vpop.f32.mrb[18].mxu1  ;;  %v1180_v8 = vsel %vm1174_vm6, %v1178_v58, %v1179_v59  ;;  %v7748_v47 = vpack.c.bf16 %v1155_v39, %v1151_v37  ;;  %v7670_v51 = vpack.c.bf16 %v1162_v42, %v1158_v40  ;;  %v7750_v52 = vpack.c.bf16 %v1164_v44, %v1160_v43  ;;  %v1159_v53 = vld [vmem:[#allocation13 + $0x9d0] sm:$0xff]  ;;  %v839_v55 = vld [vmem:[#allocation13 + $0x8] sm:$0xff]  ;;  %v841_v57 = vld [vmem:[#allocation13 + $0x18] sm:$0xff] }
 0x1dd   :  { %v814_v14 = vmax.f32 %v805_v60, 0.0  ;;  %v782_v15 = vadd.f32 %v770_v7, %v580_v23  ;;  %1266 = vmatprep.mubr.f32.mxu0 %v1180_v8  ;;  %1432 = vmatprep.mubr.f32.mxu1 %v1180_v8  ;;  %v7503_v25 = vpop.f32.mrb[19].mxu1  ;;  %v7666_v23 = vpack.c.bf16 %v1154_v21, %v1150_v13  ;;  %v1163_v54 = vld [vmem:[#allocation13 + $0x9f0] sm:$0xff]  ;;  %v843_v56 = vld [vmem:[#allocation13 + $0x28] sm:$0xff]  ;;  %v845_v58 = vld [vmem:[#allocation13 + $0x38] sm:$0xff]  ;;  %v7672_v60 = vpack.c.bf16 %v1161_v49, %v1157_v48 }
 0x1de   :  { %1267 = vmatmul.mubr.f32.vlgmr.msra.gmra.mrb[6].mxu0 %v1177_v16  ;;  %1433 = vmatmul.mubr.f32.vlgmr.msra.gmra.mrb[20].mxu1 %v1177_v16  ;;  %v7754_v6 = vpack.c.bf16 %v843_v56, %v839_v55  ;;  %v7834_v7 = vpack.c.bf16 %v845_v58, %v841_v57  ;;  %v840_v8 = vld [vmem:[#allocation13 + $0x10] sm:$0xff]  ;;  %v847_v11 = vld [vmem:[#allocation13 + $0x48] sm:$0xff]  ;;  %v850_v25 = vld [vmem:[#allocation13 + $0x60] sm:$0xff] }
 0x1df   :  { %824 = vst.msk [vmem:[#allocation2 + $0x28] sm:$0xff] %vm820_vm5, %v814_v14  ;;  %v808_v26 = vadd.f32 %v9925_v29, %v782_v15  ;;  %7661 = vmatpush1.bf16.msra.mxu0 %v7660_v63  ;;  %7741 = vmatpush1.bf16.msra.mxu1 %v7740_v3  ;;  %v7752_v63 = vpack.c.bf16 %v1163_v54, %v1159_v53  ;;  %v838_v3 = vld [vmem:[#allocation13] sm:$0xff]  ;;  %v851_v12 = vld [vmem:[#allocation13 + $0x68] sm:$0xff]  ;;  %v849_v14 = vld [vmem:[#allocation13 + $0x58] sm:$0xff] }
 0x1e0   :  { %7663 = vmatprep.subr.bf16.mxu0 %v7662_v9  ;;  %7743 = vmatprep.subr.bf16.mxu1 %v7742_v10  ;;  %v844_v9 = vld [vmem:[#allocation13 + $0x30] sm:$0xff]  ;;  %v853_v15 = vld [vmem:[#allocation13 + $0x78] sm:$0xff]  ;;  %v855_v34 = vld [vmem:[#allocation13 + $0x88] sm:$0xff] }
 0x1e1   :  { %v817_v33 = vmax.f32 %v808_v26, 0.0  ;;  %v7836_v22 = vpack.c.bf16 %v844_v9, %v840_v8  ;;  %v848_v26 = vld [vmem:[#allocation13 + $0x50] sm:$0xff]  ;;  %v857_v36 = vld [vmem:[#allocation13 + $0x98] sm:$0xff]  ;;  %v854_v39 = vld [vmem:[#allocation13 + $0x80] sm:$0xff] }
 0x1e2   :  { %v1001_v35 = vld [vmem:[#allocation2 + $0x30] sm:$0x1f]  ;;  %v861_v37 = vld [vmem:[#allocation13 + $0xb8] sm:$0xff]  ;;  %v856_v44 = vld [vmem:[#allocation13 + $0x90] sm:$0xff] }
 0x1e3   :  { %828 = vst.msk [vmem:[#allocation2 + $0x40] sm:$0x3f] %vm827_vm7, %v817_v33  ;;  %7665 = vmatpush1.bf16.msra.mxu0 %v7664_v27  ;;  %7745 = vmatpush1.bf16.msra.mxu1 %v7744_v31  ;;  %v1002_v38 = vld [vmem:[#allocation2 + $0x38] sm:$0x1f]  ;;  %v1184_v29 = vrot.slane %v1001_v35, 1  ;;  %v7838_v33 = vpack.c.bf16 %v853_v15, %v849_v14  ;;  %v858_v40 = vld [vmem:[#allocation13 + $0xa0] sm:$0xff]  ;;  %v7842_v43 = vpack.c.bf16 %v861_v37, %v857_v36 }
 0x1e4   :  { %v1186_v41 = vrot.slane %v1002_v38, 1  ;;  %7667 = vmatprep.subr.bf16.mxu0 %v7666_v23  ;;  %7747 = vmatprep.subr.bf16.mxu1 %v7746_v32  ;;  %v1000_v5 = vld [vmem:[#allocation2 + $0x10] sm:$0xfe]  ;;  %v852_v27 = vld [vmem:[#allocation13 + $0x70] sm:$0xff]  ;;  %v7758_v32 = vpack.c.bf16 %v851_v12, %v847_v11  ;;  %v7760_v38 = vpack.c.bf16 %v850_v25, %v846_v24  ;;  %v865_v48 = vld [vmem:[#allocation13 + $0xd8] sm:$0xff] }
 0x1e5   :  { %v1185_v50 = vsel %vm1174_vm6, %v1176_v62, %v1184_v29  ;;  %v842_v62 = vld [vmem:[#allocation13 + $0x20] sm:$0xff]  ;;  %v1181_v16 = vrot.slane %v1000_v5, 1  ;;  %v859_v35 = vld [vmem:[#allocation13 + $0xa8] sm:$0xff]  ;;  %v869_v49 = vld [vmem:[#allocation13 + $0xf8] sm:$0xff] }
 0x1e6   :  { %v1187_v45 = vsel %vm1174_vm6, %v1179_v59, %v1186_v41  ;;  %v9943_v59 = vld [vmem:[#allocation2 + $0x28] sm:$0xff]  ;;  %v7756_v21 = vpack.c.bf16 %v842_v62, %v838_v3  ;;  %v7762_v42 = vpack.c.bf16 %v859_v35, %v855_v34  ;;  %v864_v54 = vld [vmem:[#allocation13 + $0xd0] sm:$0xff]  ;;  %v7846_v56 = vpack.c.bf16 %v869_v49, %v865_v48  ;;  %v871_v58 = vld [vmem:[#allocation13 + $0x108] sm:$0xff] }
 0x1e7   :  { %1272 = vmatprep.mubr.f32.mxu0 %v1187_v45  ;;  %1438 = vmatprep.mubr.f32.mxu1 %v1187_v45  ;;  %v1182_v10 = vrot.slane %v9943_v59, 1  ;;  %v860_v45 = vld [vmem:[#allocation13 + $0xb0] sm:$0xff]  ;;  %v866_v53 = vld [vmem:[#allocation13 + $0xe0] sm:$0xff]  ;;  %v877_v3 = vld [vmem:[#allocation13 + $0x138] sm:$0xff] }
 0x1e8   :  { %1273 = vmatmul.mubr.f32.gmra.mrb[8].mxu0 %v1185_v50  ;;  %1439 = vmatmul.mubr.f32.gmra.mrb[22].mxu1 %v1185_v50  ;;  %v7764_v50 = vpack.c.bf16 %v858_v40, %v854_v39  ;;  %v868_v57 = vld [vmem:[#allocation13 + $0xf0] sm:$0xff]  ;;  %v874_v8 = vld [vmem:[#allocation13 + $0x120] sm:$0xff]  ;;  %v879_v12 = vld [vmem:[#allocation13 + $0x148] sm:$0xff] }
 0x1e9   :  { %1278 = vmatprep.mubr.f32.mxu0 %v1186_v41  ;;  %1444 = vmatprep.mubr.f32.mxu1 %v1186_v41  ;;  %v1183_v31 = vsel %vm1174_vm6, %v1181_v16, %v1182_v10  ;;  %v7848_v5 = vpack.c.bf16 %v868_v57, %v864_v54  ;;  %v872_v9 = vld [vmem:[#allocation13 + $0x110] sm:$0xff]  ;;  %v881_v14 = vld [vmem:[#allocation13 + $0x158] sm:$0xff]  ;;  %v882_v24 = vld [vmem:[#allocation13 + $0x160] sm:$0xff] }
 0x1ea   :  { %7669 = vmatpush1.bf16.msra.mxu0 %v7668_v46  ;;  %7749 = vmatpush1.bf16.msra.mxu1 %v7748_v47  ;;  %v1003_v13 = vld [vmem:[#allocation2 + $0x40] sm:$0x1f]  ;;  %v863_v46 = vld [vmem:[#allocation13 + $0xc8] sm:$0xff]  ;;  %v886_v37 = vld [vmem:[#allocation13 + $0x180] sm:$0xff] }
 0x1eb   :  { %7671 = vmatprep.subr.bf16.mxu0 %v7670_v51  ;;  %7751 = vmatprep.subr.bf16.mxu1 %v7750_v52  ;;  %v1188_v23 = vrot.slane %v1003_v13, 1  ;;  %v867_v47 = vld [vmem:[#allocation13 + $0xe8] sm:$0xff]  ;;  %v7844_v51 = vpack.c.bf16 %v860_v45, %v856_v44  ;;  %v862_v52 = vld [vmem:[#allocation13 + $0xc0] sm:$0xff]  ;;  %v876_v11 = vld [vmem:[#allocation13 + $0x130] sm:$0xff] }
 0x1ec   :  { %1279 = vmatmul.mubr.f32.gmra.mrb[10].mxu0 %v1184_v29  ;;  %1445 = vmatmul.mubr.f32.gmra.mrb[24].mxu1 %v1184_v29  ;;  %v7840_v29 = vpack.c.bf16 %v852_v27, %v848_v26  ;;  %v7766_v55 = vpack.c.bf16 %v867_v47, %v863_v46  ;;  %v7768_v62 = vpack.c.bf16 %v866_v53, %v862_v52  ;;  %v883_v13 = vld [vmem:[#allocation13 + $0x168] sm:$0xff]  ;;  %v885_v15 = vld [vmem:[#allocation13 + $0x178] sm:$0xff]  ;;  %v880_v25 = vld [vmem:[#allocation13 + $0x150] sm:$0xff] }
 0x1ed   :  { %1349 = vmatprep.mubr.f32.mxu0 %v9555_v0  ;;  %1515 = vmatprep.mubr.f32.mxu1 %v9555_v0  ;;  %v1189_v41 = vsel %vm1174_vm6, %v1182_v10, %v1188_v23  ;;  %v7854_v26 = vpack.c.bf16 %v885_v15, %v881_v14  ;;  %v884_v27 = vld [vmem:[#allocation13 + $0x170] sm:$0xff]  ;;  %v901_v44 = vld [vmem:[#allocation13 + $0x1f8] sm:$0xff]  ;;  %v894_v48 = vld [vmem:[#allocation13 + $0x1c0] sm:$0xff] }
 0x1ee   :  { %7673 = vmatpush1.bf16.msra.mxu0 %v7672_v60  ;;  %7753 = vmatpush1.bf16.msra.mxu1 %v7752_v63  ;;  %v875_v60 = vld [vmem:[#allocation13 + $0x128] sm:$0xff]  ;;  %v873_v63 = vld [vmem:[#allocation13 + $0x118] sm:$0xff]  ;;  %v7856_v35 = vpack.c.bf16 %v884_v27, %v880_v25  ;;  %v892_v40 = vld [vmem:[#allocation13 + $0x1b0] sm:$0xff] }
 0x1ef   :  { %7755 = vmatprep.subr.bf16.mxu0 %v7754_v6  ;;  %7835 = vmatprep.subr.bf16.mxu1 %v7834_v7  ;;  %v7770_v6 = vpack.c.bf16 %v875_v60, %v871_v58  ;;  %v870_v7 = vld [vmem:[#allocation13 + $0x100] sm:$0xff]  ;;  %v7850_v10 = vpack.c.bf16 %v877_v3, %v873_v63  ;;  %v900_v52 = vld [vmem:[#allocation13 + $0x1f0] sm:$0xff]  ;;  %v903_v53 = vld [vmem:[#allocation13 + $0x208] sm:$0xff] }
 0x1f0   :  { %v7772_v16 = vpack.c.bf16 %v874_v8, %v870_v7  ;;  %v898_v49 = vld [vmem:[#allocation13 + $0x1e0] sm:$0xff]  ;;  %v907_v54 = vld [vmem:[#allocation13 + $0x228] sm:$0xff]  ;;  %v921_v25 = vld [vmem:[#allocation13 + $0x298] sm:$0xff] }
 0x1f1   :  { %7053 = vmatmul.mubr.msk.f32.vlgmr.msra.gmra.mrb[6].mxu0 %vm820_vm5, %v1183_v31  ;;  %7056 = vmatmul.mubr.msk.f32.vlgmr.msra.gmra.mrb[20].mxu1 %vm820_vm5, %v1183_v31  ;;  %v887_v31 = vld [vmem:[#allocation13 + $0x188] sm:$0xff]  ;;  %v7784_v57 = vpack.c.bf16 %v898_v49, %v894_v48  ;;  %v7786_v60 = vpack.c.bf16 %v907_v54, %v903_v53  ;;  %v902_v63 = vld [vmem:[#allocation13 + $0x200] sm:$0xff] }
 0x1f2   :  { %7757 = vmatpush1.bf16.msra.mxu0 %v7756_v21  ;;  %7837 = vmatpush1.bf16.msra.mxu1 %v7836_v22  ;;  %v7852_v21 = vpack.c.bf16 %v876_v11, %v872_v9  ;;  %v7774_v22 = vpack.c.bf16 %v883_v13, %v879_v12  ;;  %v906_v3 = vld [vmem:[#allocation13 + $0x220] sm:$0xff]  ;;  %v911_v7 = vld [vmem:[#allocation13 + $0x248] sm:$0xff]  ;;  %v913_v9 = vld [vmem:[#allocation13 + $0x258] sm:$0xff] }
 0x1f3   :  { %1355 = vmatprep.mubr.f32.mxu0 %v9555_v0  ;;  %1521 = vmatprep.mubr.f32.mxu1 %v9555_v0  ;;  %v915_v8 = vld [vmem:[#allocation13 + $0x268] sm:$0xff]  ;;  %v7788_v11 = vpack.c.bf16 %v906_v3, %v902_v63  ;;  %v910_v14 = vld [vmem:[#allocation13 + $0x240] sm:$0xff] }
 0x1f4   :  { %7759 = vmatprep.subr.bf16.mxu0 %v7758_v32  ;;  %7839 = vmatprep.subr.bf16.mxu1 %v7838_v33  ;;  %v889_v32 = vld [vmem:[#allocation13 + $0x198] sm:$0xff]  ;;  %v7790_v13 = vpack.c.bf16 %v915_v8, %v911_v7  ;;  %v914_v15 = vld [vmem:[#allocation13 + $0x260] sm:$0xff]  ;;  %v935_v48 = vld [vmem:[#allocation13 + $0x308] sm:$0xff] }
 0x1f5   :  { %7054 = vmatmul.mubr.msk.f32.gmra.mrb[8].mxu0 %vm820_vm5, %v1189_v41  ;;  %7057 = vmatmul.mubr.msk.f32.gmra.mrb[22].mxu1 %vm820_vm5, %v1189_v41  ;;  %v893_v33 = vld [vmem:[#allocation13 + $0x1b8] sm:$0xff]  ;;  %v895_v41 = vld [vmem:[#allocation13 + $0x1c8] sm:$0xff]  ;;  %v7792_v27 = vpack.c.bf16 %v914_v15, %v910_v14 }
 0x1f6   :  { %7761 = vmatpush1.bf16.msra.mxu0 %v7760_v38  ;;  %7841 = vmatpush1.bf16.msra.mxu1 %v7840_v29  ;;  %v890_v38 = vld [vmem:[#allocation13 + $0x1a0] sm:$0xff]  ;;  %v888_v29 = vld [vmem:[#allocation13 + $0x190] sm:$0xff]  ;;  %v7858_v39 = vpack.c.bf16 %v893_v33, %v889_v32  ;;  %v939_v49 = vld [vmem:[#allocation13 + $0x328] sm:$0xff] }
 0x1f7   :  { %1361 = vmatprep.mubr.f32.mxu0 %v9555_v0  ;;  %1527 = vmatprep.mubr.f32.mxu1 %v9555_v0  ;;  %v7780_v45 = vpack.c.bf16 %v890_v38, %v886_v37  ;;  %v7860_v46 = vpack.c.bf16 %v892_v40, %v888_v29  ;;  %v918_v32 = vld [vmem:[#allocation13 + $0x280] sm:$0xff]  ;;  %v927_v37 = vld [vmem:[#allocation13 + $0x2c8] sm:$0xff]  ;;  %v929_v29 = vld [vmem:[#allocation13 + $0x2d8] sm:$0xff]  ;;  %v7802_v54 = vpack.c.bf16 %v939_v49, %v935_v48 }
 0x1f8   :  { %7763 = vmatprep.subr.bf16.mxu0 %v7762_v42  ;;  %7843 = vmatprep.subr.bf16.mxu1 %v7842_v43  ;;  %v899_v42 = vld [vmem:[#allocation13 + $0x1e8] sm:$0xff]  ;;  %v897_v43 = vld [vmem:[#allocation13 + $0x1d8] sm:$0xff]  ;;  %v922_v33 = vld [vmem:[#allocation13 + $0x2a0] sm:$0xff] }
 0x1f9   :  { %7055 = vmatmul.mubr.msk.f32.gmra.mrb[10].mxu0 %vm820_vm5, %v1188_v23  ;;  %7058 = vmatmul.mubr.msk.f32.gmra.mrb[24].mxu1 %vm820_vm5, %v1188_v23  ;;  %v891_v23 = vld [vmem:[#allocation13 + $0x1a8] sm:$0xff]  ;;  %v7782_v47 = vpack.c.bf16 %v899_v42, %v895_v41  ;;  %v7796_v40 = vpack.c.bf16 %v922_v33, %v918_v32 }
 0x1fa   :  { %7765 = vmatpush1.bf16.msra.mxu0 %v7764_v50  ;;  %1606 = vmatprep.mubr.f32.mxu0 %v9918_v20  ;;  %v7778_v36 = vpack.c.bf16 %v891_v23, %v887_v31  ;;  %v896_v50 = vld [vmem:[#allocation13 + $0x1d0] sm:$0xff]  ;;  %v931_v38 = vld [vmem:[#allocation13 + $0x2e8] sm:$0xff] }
 0x1fb   :  { %7845 = vmatpush1.bf16.msra.mxu1 %v7844_v51  ;;  %1772 = vmatprep.mubr.f32.mxu1 %v9918_v20  ;;  %v878_v20 = vld [vmem:[#allocation13 + $0x140] sm:$0xff]  ;;  %v7862_v51 = vpack.c.bf16 %v901_v44, %v897_v43  ;;  %v7864_v58 = vpack.c.bf16 %v900_v52, %v896_v50  ;;  %v7798_v42 = vpack.c.bf16 %v931_v38, %v927_v37  ;;  %v937_v50 = vld [vmem:[#allocation13 + $0x318] sm:$0xff]  ;;  %v943_v63 = vld [vmem:[#allocation13 + $0x348] sm:$0xff] }
 0x1fc   :  { %7767 = vmatprep.subr.bf16.mxu0 %v7766_v55  ;;  %7847 = vmatprep.subr.bf16.mxu1 %v7846_v56  ;;  %v7776_v34 = vpack.c.bf16 %v882_v24, %v878_v20  ;;  %v905_v55 = vld [vmem:[#allocation13 + $0x218] sm:$0xff]  ;;  %v919_v20 = vld [vmem:[#allocation13 + $0x288] sm:$0xff]  ;;  %v926_v43 = vld [vmem:[#allocation13 + $0x2c0] sm:$0xff] }
 0x1fd   :  { %v909_v56 = vld [vmem:[#allocation13 + $0x238] sm:$0xff]  ;;  %v923_v24 = vld [vmem:[#allocation13 + $0x2a8] sm:$0xff]  ;;  %v930_v44 = vld [vmem:[#allocation13 + $0x2e0] sm:$0xff] }
 0x1fe   :  { %7769 = vmatpush1.bf16.msra.mxu0 %v7768_v62  ;;  %v904_v62 = vld [vmem:[#allocation13 + $0x210] sm:$0xff]  ;;  %v7794_v23 = vpack.c.bf16 %v923_v24, %v919_v20  ;;  %v7800_v52 = vpack.c.bf16 %v930_v44, %v926_v43  ;;  %v947_v3 = vld [vmem:[#allocation13 + $0x368] sm:$0xff] }
 0x1ff   :  { %7849 = vmatpush1.bf16.msra.mxu1 %v7848_v5  ;;  %7771 = vmatprep.subr.bf16.mxu0 %v7770_v6  ;;  %v7866_v5 = vpack.c.bf16 %v909_v56, %v905_v55  ;;  %v908_v6 = vld [vmem:[#allocation13 + $0x230] sm:$0xff]  ;;  %v934_v55 = vld [vmem:[#allocation13 + $0x300] sm:$0xff]  ;;  %v7806_v8 = vpack.c.bf16 %v947_v3, %v943_v63  ;;  %v951_v14 = vld [vmem:[#allocation13 + $0x388] sm:$0xff] }
 0x200   :  { %7851 = vmatprep.subr.bf16.mxu1 %v7850_v10  ;;  %v917_v10 = vld [vmem:[#allocation13 + $0x278] sm:$0xff]  ;;  %v7868_v12 = vpack.c.bf16 %v908_v6, %v904_v62  ;;  %v938_v56 = vld [vmem:[#allocation13 + $0x320] sm:$0xff]  ;;  %v955_v15 = vld [vmem:[#allocation13 + $0x3a8] sm:$0xff] }
 0x201   :  { %v945_v62 = vld [vmem:[#allocation13 + $0x358] sm:$0xff]  ;;  %v7804_v6 = vpack.c.bf16 %v938_v56, %v934_v55  ;;  %v7810_v24 = vpack.c.bf16 %v955_v15, %v951_v14  ;;  %v959_v32 = vld [vmem:[#allocation13 + $0x3c8] sm:$0xff]  ;;  %v982_v14 = vld [vmem:[#allocation13 + $0x480] sm:$0xff] }
 0x202   :  { %7773 = vmatpush1.bf16.msra.mxu0 %v7772_v16  ;;  %v912_v16 = vld [vmem:[#allocation13 + $0x250] sm:$0xff]  ;;  %v963_v33 = vld [vmem:[#allocation13 + $0x3e8] sm:$0xff] }
 0x203   :  { %7853 = vmatpush1.bf16.msra.mxu1 %v7852_v21  ;;  %7775 = vmatprep.subr.bf16.mxu0 %v7774_v22  ;;  %v7870_v21 = vpack.c.bf16 %v917_v10, %v913_v9  ;;  %v916_v22 = vld [vmem:[#allocation13 + $0x270] sm:$0xff]  ;;  %v942_v9 = vld [vmem:[#allocation13 + $0x340] sm:$0xff]  ;;  %v7814_v38 = vpack.c.bf16 %v963_v33, %v959_v32  ;;  %v967_v43 = vld [vmem:[#allocation13 + $0x408] sm:$0xff] }
 0x204   :  { %7855 = vmatprep.subr.bf16.mxu1 %v7854_v26  ;;  %v925_v26 = vld [vmem:[#allocation13 + $0x2b8] sm:$0xff]  ;;  %v7872_v31 = vpack.c.bf16 %v916_v22, %v912_v16  ;;  %v946_v10 = vld [vmem:[#allocation13 + $0x360] sm:$0xff]  ;;  %v971_v44 = vld [vmem:[#allocation13 + $0x428] sm:$0xff] }
 0x205   :  { %v953_v16 = vld [vmem:[#allocation13 + $0x398] sm:$0xff]  ;;  %v7808_v22 = vpack.c.bf16 %v946_v10, %v942_v9  ;;  %v7818_v49 = vpack.c.bf16 %v971_v44, %v967_v43  ;;  %v975_v55 = vld [vmem:[#allocation13 + $0x448] sm:$0xff]  ;;  %v835_v32 = vld [vmem:[#allocation2 + $0x30] sm:$0xf] }
 0x206   :  { %7777 = vmatpush1.bf16.msra.mxu0 %v7776_v34  ;;  %v920_v34 = vld [vmem:[#allocation13 + $0x290] sm:$0xff]  ;;  %v979_v56 = vld [vmem:[#allocation13 + $0x468] sm:$0xff]  ;;  %v1881_v44 = vld [vmem:[#allocation13 + $0xa00] sm:$0xff] }
 0x207   :  { %7857 = vmatpush1.bf16.msra.mxu1 %v7856_v35  ;;  %7779 = vmatprep.subr.bf16.mxu0 %v7778_v36  ;;  %v7874_v35 = vpack.c.bf16 %v925_v26, %v921_v25  ;;  %v924_v36 = vld [vmem:[#allocation13 + $0x2b0] sm:$0xff]  ;;  %v950_v25 = vld [vmem:[#allocation13 + $0x380] sm:$0xff]  ;;  %v7822_v3 = vpack.c.bf16 %v979_v56, %v975_v55  ;;  %v983_v9 = vld [vmem:[#allocation13 + $0x488] sm:$0xff] }
 0x208   :  { %7859 = vmatprep.subr.bf16.mxu1 %v7858_v39  ;;  %v933_v39 = vld [vmem:[#allocation13 + $0x2f8] sm:$0xff]  ;;  %v7876_v41 = vpack.c.bf16 %v924_v36, %v920_v34  ;;  %v954_v26 = vld [vmem:[#allocation13 + $0x3a0] sm:$0xff]  ;;  %v987_v10 = vld [vmem:[#allocation13 + $0x4a8] sm:$0xff] }
 0x209   :  { %v961_v34 = vld [vmem:[#allocation13 + $0x3d8] sm:$0xff]  ;;  %v7812_v36 = vpack.c.bf16 %v954_v26, %v950_v25  ;;  %v991_v25 = vld [vmem:[#allocation13 + $0x4c8] sm:$0xff]  ;;  %v1889_v55 = vld [vmem:[#allocation13 + $0xa40] sm:$0xff] }
 0x20a   :  { %7781 = vmatpush1.bf16.msra.mxu0 %v7780_v45  ;;  %v928_v45 = vld [vmem:[#allocation13 + $0x2d0] sm:$0xff]  ;;  %v995_v26 = vld [vmem:[#allocation13 + $0x4e8] sm:$0xff]  ;;  %v1893_v56 = vld [vmem:[#allocation13 + $0xa60] sm:$0xff] }
 0x20b   :  { %7861 = vmatpush1.bf16.msra.mxu1 %v7860_v46  ;;  %7783 = vmatprep.subr.bf16.mxu0 %v7782_v47  ;;  %v7878_v46 = vpack.c.bf16 %v933_v39, %v929_v29  ;;  %v932_v47 = vld [vmem:[#allocation13 + $0x2f0] sm:$0xff]  ;;  %v958_v29 = vld [vmem:[#allocation13 + $0x3c0] sm:$0xff] }
 0x20c   :  { %7863 = vmatprep.subr.bf16.mxu1 %v7862_v51  ;;  %v941_v51 = vld [vmem:[#allocation13 + $0x338] sm:$0xff]  ;;  %v7880_v53 = vpack.c.bf16 %v932_v47, %v928_v45  ;;  %v962_v39 = vld [vmem:[#allocation13 + $0x3e0] sm:$0xff] }
 0x20d   :  { %v969_v45 = vld [vmem:[#allocation13 + $0x418] sm:$0xff]  ;;  %v7816_v47 = vpack.c.bf16 %v962_v39, %v958_v29  ;;  %v1882_v29 = vld [vmem:[#allocation13 + $0xa08] sm:$0xff] }
 0x20e   :  { %7785 = vmatpush1.bf16.msra.mxu0 %v7784_v57  ;;  %v936_v57 = vld [vmem:[#allocation13 + $0x310] sm:$0xff]  ;;  %v1884_v39 = vld [vmem:[#allocation13 + $0xa18] sm:$0xff] }
 0x20f   :  { %7865 = vmatpush1.bf16.msra.mxu1 %v7864_v58  ;;  %7787 = vmatprep.subr.bf16.mxu0 %v7786_v60  ;;  %v7882_v58 = vpack.c.bf16 %v941_v51, %v937_v50  ;;  %v940_v60 = vld [vmem:[#allocation13 + $0x330] sm:$0xff]  ;;  %v966_v51 = vld [vmem:[#allocation13 + $0x400] sm:$0xff] }
 0x210   :  { %7867 = vmatprep.subr.bf16.mxu1 %v7866_v5  ;;  %v949_v5 = vld [vmem:[#allocation13 + $0x378] sm:$0xff]  ;;  %v7884_v7 = vpack.c.bf16 %v940_v60, %v936_v57 }
 0x211   :  { %v977_v57 = vld [vmem:[#allocation13 + $0x458] sm:$0xff] }
 0x212   :  { %7789 = vmatpush1.bf16.msra.mxu0 %v7788_v11  ;;  %v944_v11 = vld [vmem:[#allocation13 + $0x350] sm:$0xff] }
 0x213   :  { %7869 = vmatpush1.bf16.msra.mxu1 %v7868_v12  ;;  %7791 = vmatprep.subr.bf16.mxu0 %v7790_v13  ;;  %v7886_v12 = vpack.c.bf16 %v949_v5, %v945_v62  ;;  %v948_v13 = vld [vmem:[#allocation13 + $0x370] sm:$0xff]  ;;  %v974_v62 = vld [vmem:[#allocation13 + $0x440] sm:$0xff] }
 0x214   :  { %7871 = vmatprep.subr.bf16.mxu1 %v7870_v21  ;;  %v957_v21 = vld [vmem:[#allocation13 + $0x3b8] sm:$0xff]  ;;  %v7888_v20 = vpack.c.bf16 %v948_v13, %v944_v11  ;;  %v978_v5 = vld [vmem:[#allocation13 + $0x460] sm:$0xff] }
 0x215   :  { %v985_v11 = vld [vmem:[#allocation13 + $0x498] sm:$0xff]  ;;  %v7824_v13 = vpack.c.bf16 %v978_v5, %v974_v62  ;;  %v1898_v62 = vld [vmem:[#allocation13 + $0xa88] sm:$0xff] }
 0x216   :  { %7793 = vmatpush1.bf16.msra.mxu0 %v7792_v27  ;;  %v952_v27 = vld [vmem:[#allocation13 + $0x390] sm:$0xff]  ;;  %v1902_v5 = vld [vmem:[#allocation13 + $0xaa8] sm:$0xff] }
 0x217   :  { %7873 = vmatpush1.bf16.msra.mxu1 %v7872_v31  ;;  %7795 = vmatprep.subr.bf16.mxu0 %v7794_v23  ;;  %v7890_v31 = vpack.c.bf16 %v957_v21, %v953_v16  ;;  %v956_v23 = vld [vmem:[#allocation13 + $0x3b0] sm:$0xff]  ;;  %v7826_v16 = vpack.c.bf16 %v987_v10, %v983_v9  ;;  %v986_v21 = vld [vmem:[#allocation13 + $0x4a0] sm:$0xff] }
 0x218   :  { %7875 = vmatprep.subr.bf16.mxu1 %v7874_v35  ;;  %v965_v35 = vld [vmem:[#allocation13 + $0x3f8] sm:$0xff]  ;;  %v7892_v37 = vpack.c.bf16 %v956_v23, %v952_v27  ;;  %v990_v23 = vld [vmem:[#allocation13 + $0x4c0] sm:$0xff] }
 0x219   :  { %v997_v27 = vld [vmem:[#allocation13 + $0x4f8] sm:$0xff]  ;;  %v1897_v10 = vld [vmem:[#allocation13 + $0xa80] sm:$0xff] }
 0x21a   :  { %7797 = vmatpush1.bf16.msra.mxu0 %v7796_v40  ;;  %v960_v40 = vld [vmem:[#allocation13 + $0x3d0] sm:$0xff] }
 0x21b   :  { %7877 = vmatpush1.bf16.msra.mxu1 %v7876_v41  ;;  %7799 = vmatprep.subr.bf16.mxu0 %v7798_v42  ;;  %v7894_v41 = vpack.c.bf16 %v965_v35, %v961_v34  ;;  %v964_v42 = vld [vmem:[#allocation13 + $0x3f0] sm:$0xff]  ;;  %v7830_v34 = vpack.c.bf16 %v995_v26, %v991_v25  ;;  %v994_v35 = vld [vmem:[#allocation13 + $0x4e0] sm:$0xff]  ;;  %v1912_v25 = vld [vmem:[#allocation13 + $0xaf8] sm:$0xff] }
 0x21c   :  { %7879 = vmatprep.subr.bf16.mxu1 %v7878_v46  ;;  %v973_v46 = vld [vmem:[#allocation13 + $0x438] sm:$0xff]  ;;  %v7896_v48 = vpack.c.bf16 %v964_v42, %v960_v40  ;;  %v1905_v26 = vld [vmem:[#allocation13 + $0xac0] sm:$0xff] }
 0x21d   :  { %v7898_v50 = vpack.c.bf16 %v973_v46, %v969_v45  ;;  %v1888_v40 = vld [vmem:[#allocation13 + $0xa38] sm:$0xff]  ;;  %v1885_v45 = vld [vmem:[#allocation13 + $0xa20] sm:$0xff] }
 0x21e   :  { %7801 = vmatpush1.bf16.msra.mxu0 %v7800_v52  ;;  %v970_v52 = vld [vmem:[#allocation13 + $0x420] sm:$0xff]  ;;  %v7994_v46 = vpack.c.bf16 %v1888_v40, %v1884_v39 }
 0x21f   :  { %7881 = vmatpush1.bf16.msra.mxu1 %v7880_v53  ;;  %7803 = vmatprep.subr.bf16.mxu0 %v7802_v54  ;;  %v968_v53 = vld [vmem:[#allocation13 + $0x410] sm:$0xff]  ;;  %v7820_v60 = vpack.c.bf16 %v970_v52, %v966_v51  ;;  %v7916_v51 = vpack.c.bf16 %v1885_v45, %v1881_v44  ;;  %v1892_v52 = vld [vmem:[#allocation13 + $0xa58] sm:$0xff] }
 0x220   :  { %7883 = vmatprep.subr.bf16.mxu1 %v7882_v58  ;;  %v972_v54 = vld [vmem:[#allocation13 + $0x430] sm:$0xff]  ;;  %v981_v58 = vld [vmem:[#allocation13 + $0x478] sm:$0xff] }
 0x221   :  { %v7900_v63 = vpack.c.bf16 %v972_v54, %v968_v53  ;;  %v1896_v53 = vld [vmem:[#allocation13 + $0xa78] sm:$0xff]  ;;  %v1915_v44 = vld [vmem:[#allocation13 + $0xb10] sm:$0xff] }
 0x222   :  { %7805 = vmatpush1.bf16.msra.mxu0 %v7804_v6  ;;  %v976_v6 = vld [vmem:[#allocation13 + $0x450] sm:$0xff] }
 0x223   :  { %7885 = vmatpush1.bf16.msra.mxu1 %v7884_v7  ;;  %7807 = vmatprep.subr.bf16.mxu0 %v7806_v8  ;;  %v7902_v7 = vpack.c.bf16 %v981_v58, %v977_v57  ;;  %v980_v8 = vld [vmem:[#allocation13 + $0x470] sm:$0xff]  ;;  %v831_v57 = vld [vmem:[#allocation2 + $0x10] sm:$0xff] }
 0x224   :  { %7887 = vmatprep.subr.bf16.mxu1 %v7886_v12  ;;  %v989_v12 = vld [vmem:[#allocation13 + $0x4b8] sm:$0xff]  ;;  %v7904_v15 = vpack.c.bf16 %v980_v8, %v976_v6  ;;  %v7920_v6 = vpack.c.bf16 %v1893_v56, %v1889_v55  ;;  %v1925_v55 = vld [vmem:[#allocation13 + $0xb60] sm:$0xff]  ;;  %v1923_v56 = vld [vmem:[#allocation13 + $0xb50] sm:$0xff] }
 0x225   :  { %v1904_v8 = vld [vmem:[#allocation13 + $0xab8] sm:$0xff] }
 0x226   :  { %7809 = vmatpush1.bf16.msra.mxu0 %v7808_v22  ;;  %v984_v22 = vld [vmem:[#allocation13 + $0x490] sm:$0xff] }
 0x227   :  { %7889 = vmatpush1.bf16.msra.mxu1 %v7888_v20  ;;  %7811 = vmatprep.subr.bf16.mxu0 %v7810_v24  ;;  %v988_v20 = vld [vmem:[#allocation13 + $0x4b0] sm:$0xff]  ;;  %v7906_v24 = vpack.c.bf16 %v989_v12, %v985_v11  ;;  %v1901_v11 = vld [vmem:[#allocation13 + $0xaa0] sm:$0xff] }
 0x228   :  { %7891 = vmatprep.subr.bf16.mxu1 %v7890_v31  ;;  %v7828_v31 = vpack.c.bf16 %v986_v21, %v982_v14  ;;  %v7908_v33 = vpack.c.bf16 %v988_v20, %v984_v22  ;;  %v1875_v12 = vld [vmem:[#allocation2 + $0x8] sm:$0xfc]  ;;  %v1899_v14 = vld [vmem:[#allocation13 + $0xa90] sm:$0xff]  ;;  %v1906_v21 = vld [vmem:[#allocation13 + $0xac8] sm:$0xff]  ;;  %v7924_v20 = vpack.c.bf16 %v1901_v11, %v1897_v10 }
 0x229   :  { %v1910_v22 = vld [vmem:[#allocation13 + $0xae8] sm:$0xff]  ;;  %v1931_v10 = vld [vmem:[#allocation13 + $0xb90] sm:$0xff] }
 0x22a   :  { %7813 = vmatpush1.bf16.msra.mxu0 %v7812_v36  ;;  %v992_v36 = vld [vmem:[#allocation13 + $0x4d0] sm:$0xff] }
 0x22b   :  { %7893 = vmatpush1.bf16.msra.mxu1 %v7892_v37  ;;  %7815 = vmatprep.subr.bf16.mxu0 %v7814_v38  ;;  %v996_v38 = vld [vmem:[#allocation13 + $0x4f0] sm:$0xff] }
 0x22c   :  { %7895 = vmatprep.subr.bf16.mxu1 %v7894_v41  ;;  %v7832_v41 = vpack.c.bf16 %v994_v35, %v990_v23  ;;  %v7912_v42 = vpack.c.bf16 %v996_v38, %v992_v36  ;;  %v1911_v23 = vld [vmem:[#allocation13 + $0xaf0] sm:$0xff]  ;;  %v1914_v35 = vld [vmem:[#allocation13 + $0xb08] sm:$0xff]  ;;  %v1916_v38 = vld [vmem:[#allocation13 + $0xb18] sm:$0xff] }
 0x22d   :  { %v1918_v36 = vld [vmem:[#allocation13 + $0xb28] sm:$0xff] }
 0x22e   :  { %7817 = vmatpush1.bf16.msra.mxu0 %v7816_v47  ;;  %v1883_v47 = vld [vmem:[#allocation13 + $0xa10] sm:$0xff] }
 0x22f   :  { %7897 = vmatpush1.bf16.msra.mxu1 %v7896_v48  ;;  %7819 = vmatprep.subr.bf16.mxu0 %v7818_v49  ;;  %v1887_v48 = vld [vmem:[#allocation13 + $0xa30] sm:$0xff]  ;;  %v1890_v49 = vld [vmem:[#allocation13 + $0xa48] sm:$0xff] }
 0x230   :  { %7899 = vmatprep.subr.bf16.mxu1 %v7898_v50  ;;  %v1894_v50 = vld [vmem:[#allocation13 + $0xa68] sm:$0xff]  ;;  %v7996_v54 = vpack.c.bf16 %v1887_v48, %v1883_v47 }
 0x231   :  { %1607 = vmatmul.mubr.f32.vlgmr.msra.gmra.mrb[6].mxu0 %v9913_v17  ;;  %v7918_v58 = vpack.c.bf16 %v1894_v50, %v1890_v49  ;;  %v1922_v47 = vld [vmem:[#allocation13 + $0xb48] sm:$0xff]  ;;  %v1924_v49 = vld [vmem:[#allocation13 + $0xb58] sm:$0xff] }
 0x232   :  { %1773 = vmatmul.mubr.f32.vlgmr.msra.gmra.mrb[20].mxu1 %v9913_v17  ;;  %1612 = vmatprep.mubr.f32.mxu0 %v9927_v30  ;;  %v836_v17 = vld [vmem:[#allocation2 + $0x38] sm:$0xf]  ;;  %v1928_v50 = vld [vmem:[#allocation13 + $0xb78] sm:$0xff] }
 0x233   :  { %7821 = vmatpush1.bf16.msra.mxu0 %v7820_v60  ;;  %1778 = vmatprep.mubr.f32.mxu1 %v9927_v30  ;;  %v993_v30 = vld [vmem:[#allocation13 + $0x4d8] sm:$0xff]  ;;  %v1891_v60 = vld [vmem:[#allocation13 + $0xa50] sm:$0xff]  ;;  %v1926_v48 = vld [vmem:[#allocation13 + $0xb68] sm:$0xff] }
 0x234   :  { %7901 = vmatpush1.bf16.msra.mxu1 %v7900_v63  ;;  %7823 = vmatprep.subr.bf16.mxu0 %v7822_v3  ;;  %v7910_v37 = vpack.c.bf16 %v997_v27, %v993_v30  ;;  %v1895_v63 = vld [vmem:[#allocation13 + $0xa70] sm:$0xff]  ;;  %v7998_v3 = vpack.c.bf16 %v1896_v53, %v1892_v52  ;;  %v1909_v27 = vld [vmem:[#allocation13 + $0xae0] sm:$0xff]  ;;  %v7934_v53 = vpack.c.bf16 %v1926_v48, %v1922_v47 }
 0x235   :  { %1613 = vmatmul.mubr.f32.gmra.mrb[8].mxu0 %v9922_v28  ;;  %7903 = vmatprep.subr.bf16.mxu1 %v7902_v7  ;;  %v1900_v7 = vld [vmem:[#allocation13 + $0xa98] sm:$0xff]  ;;  %v8000_v9 = vpack.c.bf16 %v1895_v63, %v1891_v60  ;;  %v7928_v39 = vpack.c.bf16 %v1909_v27, %v1905_v26  ;;  %v1930_v60 = vld [vmem:[#allocation13 + $0xb88] sm:$0xff]  ;;  %v1953_v47 = vld [vmem:[#allocation13 + $0xc40] sm:$0xff] }
 0x236   :  { %1779 = vmatmul.mubr.f32.gmra.mrb[22].mxu1 %v9922_v28  ;;  %1618 = vmatprep.mubr.f32.mxu0 %v836_v17  ;;  %v1886_v28 = vld [vmem:[#allocation13 + $0xa28] sm:$0xff]  ;;  %v1957_v48 = vld [vmem:[#allocation13 + $0xc60] sm:$0xff] }
 0x237   :  { %7825 = vmatpush1.bf16.msra.mxu0 %v7824_v13  ;;  %1784 = vmatprep.mubr.f32.mxu1 %v836_v17  ;;  %v7914_v43 = vpack.c.bf16 %v1886_v28, %v1882_v29  ;;  %v7922_v13 = vpack.c.bf16 %v1902_v5, %v1898_v62  ;;  %v2051_v17 = vrot.slane %v1875_v12, 2  ;;  %v1920_v29 = vld [vmem:[#allocation13 + $0xb38] sm:$0xff]  ;;  %v1934_v63 = vld [vmem:[#allocation13 + $0xba8] sm:$0xff]  ;;  %v1935_v12 = vld [vmem:[#allocation13 + $0xbb0] sm:$0xff] }
 0x238   :  { %7905 = vmatpush1.bf16.msra.mxu1 %v7904_v15  ;;  %7827 = vmatprep.subr.bf16.mxu0 %v7826_v16  ;;  %v1903_v15 = vld [vmem:[#allocation13 + $0xab0] sm:$0xff]  ;;  %v8002_v16 = vpack.c.bf16 %v1904_v8, %v1900_v7  ;;  %v8010_v45 = vpack.c.bf16 %v1920_v29, %v1916_v38  ;;  %v1936_v62 = vld [vmem:[#allocation13 + $0xbb8] sm:$0xff]  ;;  %v7938_v7 = vpack.c.bf16 %v1934_v63, %v1930_v60  ;;  %v1929_v8 = vld [vmem:[#allocation13 + $0xb80] sm:$0xff] }
 0x239   :  { %1619 = vmatmul.mubr.f32.gmra.mrb[10].mxu0 %v835_v32  ;;  %7907 = vmatprep.subr.bf16.mxu1 %v7906_v24  ;;  %v1908_v24 = vld [vmem:[#allocation13 + $0xad8] sm:$0xff]  ;;  %v8004_v30 = vpack.c.bf16 %v1903_v15, %v1899_v14  ;;  %v1942_v14 = vld [vmem:[#allocation13 + $0xbe8] sm:$0xff]  ;;  %v1949_v38 = vld [vmem:[#allocation13 + $0xc20] sm:$0xff] }
 0x23a   :  { %1785 = vmatmul.mubr.f32.gmra.mrb[24].mxu1 %v835_v32  ;;  %1689 = vmatprep.mubr.f32.mxu0 %v9555_v0  ;;  %v837_v32 = vld [vmem:[#allocation2 + $0x40] sm:$0xf]  ;;  %v1940_v15 = vld [vmem:[#allocation13 + $0xbd8] sm:$0xff]  ;;  %v1946_v27 = vld [vmem:[#allocation13 + $0xc08] sm:$0xff] }
 0x23b   :  { %7829 = vmatpush1.bf16.msra.mxu0 %v7828_v31  ;;  %1855 = vmatprep.mubr.f32.mxu1 %v9555_v0  ;;  %v1907_v31 = vld [vmem:[#allocation13 + $0xad0] sm:$0xff]  ;;  %v1961_v60 = vld [vmem:[#allocation13 + $0xc80] sm:$0xff] }
 0x23c   :  { %7909 = vmatpush1.bf16.msra.mxu1 %v7908_v33  ;;  %7831 = vmatprep.subr.bf16.mxu0 %v7830_v34  ;;  %v9980_v33 = vld [vmem:[#allocation2 + $0x20] sm:$0xff]  ;;  %v7926_v34 = vpack.c.bf16 %v1910_v22, %v1906_v21  ;;  %v8008_v40 = vpack.c.bf16 %v1911_v23, %v1907_v31  ;;  %v8020_v22 = vpack.c.bf16 %v1935_v12, %v1931_v10  ;;  %v1950_v31 = vld [vmem:[#allocation13 + $0xc28] sm:$0xff]  ;;  %v1965_v63 = vld [vmem:[#allocation13 + $0xca0] sm:$0xff] }
 0x23d   :  { %7911 = vmatprep.subr.bf16.mxu1 %v7910_v37  ;;  %v8006_v37 = vpack.c.bf16 %v1912_v25, %v1908_v24  ;;  %v1941_v24 = vld [vmem:[#allocation13 + $0xbe0] sm:$0xff]  ;;  %v1939_v25 = vld [vmem:[#allocation13 + $0xbd0] sm:$0xff]  ;;  %v1948_v23 = vld [vmem:[#allocation13 + $0xc18] sm:$0xff]  ;;  %v7956_v10 = vpack.c.bf16 %v1965_v63, %v1961_v60 }
 0x23e   :  { %v1947_v29 = vld [vmem:[#allocation13 + $0xc10] sm:$0xff]  ;;  %v2004_v60 = vld [vmem:[#allocation13 + $0xdd8] sm:$0xff] }
 0x23f   :  { %7833 = vmatpush1.bf16.msra.mxu0 %v7832_v41  ;;  %v7930_v41 = vpack.c.bf16 %v1918_v36, %v1914_v35  ;;  %v7946_v36 = vpack.c.bf16 %v1950_v31, %v1946_v27  ;;  %v1977_v27 = vld [vmem:[#allocation13 + $0xd00] sm:$0xff]  ;;  %v2008_v63 = vld [vmem:[#allocation13 + $0xdf8] sm:$0xff] }
 0x240   :  { %7913 = vmatpush1.bf16.msra.mxu1 %v7912_v42  ;;  %7915 = vmatprep.subr.bf16.mxu0 %v7914_v43  ;;  %v1913_v42 = vld [vmem:[#allocation13 + $0xb00] sm:$0xff] }
 0x241   :  { %7995 = vmatprep.subr.bf16.mxu1 %v7994_v46  ;;  %v1917_v43 = vld [vmem:[#allocation13 + $0xb20] sm:$0xff]  ;;  %v1919_v46 = vld [vmem:[#allocation13 + $0xb30] sm:$0xff] }
 0x242   :  { %7059 = vmatmul.mubr.msk.f32.vlgmr.msra.gmra.mrb[6].mxu0 %vm820_vm5, %v831_v57  ;;  %v8012_v52 = vpack.c.bf16 %v1919_v46, %v1915_v44  ;;  %v1981_v31 = vld [vmem:[#allocation13 + $0xd20] sm:$0xff] }
 0x243   :  { %7062 = vmatmul.mubr.msk.f32.vlgmr.msra.gmra.mrb[20].mxu1 %vm820_vm5, %v831_v57  ;;  %7917 = vmatpush1.bf16.msra.mxu0 %v7916_v51  ;;  %v7932_v51 = vpack.c.bf16 %v1917_v43, %v1913_v42  ;;  %v8014_v57 = vpack.c.bf16 %v1928_v50, %v1924_v49  ;;  %v1956_v42 = vld [vmem:[#allocation13 + $0xc58] sm:$0xff]  ;;  %v1955_v49 = vld [vmem:[#allocation13 + $0xc50] sm:$0xff] }
 0x244   :  { %7997 = vmatpush1.bf16.msra.mxu1 %v7996_v54  ;;  %1695 = vmatprep.mubr.f32.mxu0 %v9555_v0  ;;  %v1921_v54 = vld [vmem:[#allocation13 + $0xb40] sm:$0xff]  ;;  %v1960_v43 = vld [vmem:[#allocation13 + $0xc78] sm:$0xff] }
 0x245   :  { %1861 = vmatprep.mubr.f32.mxu1 %v9555_v0  ;;  %7919 = vmatprep.subr.bf16.mxu0 %v7918_v58  ;;  %v1927_v58 = vld [vmem:[#allocation13 + $0xb70] sm:$0xff]  ;;  %v7936_v5 = vpack.c.bf16 %v1925_v55, %v1921_v54  ;;  %v8030_v50 = vpack.c.bf16 %v1960_v43, %v1956_v42  ;;  %v1964_v54 = vld [vmem:[#allocation13 + $0xc98] sm:$0xff] }
 0x246   :  { %7060 = vmatmul.mubr.msk.f32.gmra.mrb[8].mxu0 %vm820_vm5, %v9943_v59  ;;  %7999 = vmatprep.subr.bf16.mxu1 %v7998_v3  ;;  %v1932_v3 = vld [vmem:[#allocation13 + $0xb98] sm:$0xff]  ;;  %v1987_v42 = vld [vmem:[#allocation13 + $0xd50] sm:$0xff] }
 0x247   :  { %7063 = vmatmul.mubr.msk.f32.gmra.mrb[22].mxu1 %vm820_vm5, %v9943_v59  ;;  %7921 = vmatpush1.bf16.msra.mxu0 %v7920_v6  ;;  %v2052_v59 = vrot.slane %v9980_v33, 2  ;;  %v8016_v6 = vpack.c.bf16 %v1927_v58, %v1923_v56  ;;  %v8018_v11 = vpack.c.bf16 %v1936_v62, %v1932_v3  ;;  %v1968_v55 = vld [vmem:[#allocation13 + $0xcb8] sm:$0xff]  ;;  %v7952_v56 = vpack.c.bf16 %v1957_v48, %v1953_v47  ;;  %v1963_v3 = vld [vmem:[#allocation13 + $0xc90] sm:$0xff]  ;;  %v2025_v33 = vld [vmem:[#allocation13 + $0xe80] sm:$0xff] }
 0x248   :  { %8001 = vmatpush1.bf16.msra.mxu1 %v8000_v9  ;;  %1701 = vmatprep.mubr.f32.mxu0 %v9555_v0  ;;  %v1933_v9 = vld [vmem:[#allocation13 + $0xba0] sm:$0xff]  ;;  %v8034_v62 = vpack.c.bf16 %v1968_v55, %v1964_v54  ;;  %v1996_v47 = vld [vmem:[#allocation13 + $0xd98] sm:$0xff]  ;;  %v1995_v54 = vld [vmem:[#allocation13 + $0xd90] sm:$0xff] }
 0x249   :  { %1867 = vmatprep.mubr.f32.mxu1 %v9555_v0  ;;  %7923 = vmatprep.subr.bf16.mxu0 %v7922_v13  ;;  %v2053_v28 = vsel %vm2047_vm8, %v2051_v17, %v2052_v59  ;;  %v1938_v13 = vld [vmem:[#allocation13 + $0xbc8] sm:$0xff]  ;;  %v7940_v21 = vpack.c.bf16 %v1933_v9, %v1929_v8  ;;  %v1937_v17 = vld [vmem:[#allocation13 + $0xbc0] sm:$0xff]  ;;  %v1972_v8 = vld [vmem:[#allocation13 + $0xcd8] sm:$0xff] }
 0x24a   :  { %7061 = vmatmul.mubr.msk.f32.gmra.mrb[10].mxu0 %vm820_vm5, %v837_v32  ;;  %8003 = vmatprep.subr.bf16.mxu1 %v8002_v16  ;;  %v1944_v16 = vld [vmem:[#allocation13 + $0xbf8] sm:$0xff] }
 0x24b   :  { %7064 = vmatmul.mubr.msk.f32.gmra.mrb[24].mxu1 %vm820_vm5, %v837_v32  ;;  %7925 = vmatpush1.bf16.msra.mxu0 %v7924_v20  ;;  %v7942_v20 = vpack.c.bf16 %v1942_v14, %v1938_v13  ;;  %v8022_v26 = vpack.c.bf16 %v1944_v16, %v1940_v15  ;;  %v1952_v32 = vld [vmem:[#allocation13 + $0xc38] sm:$0xff]  ;;  %v1969_v13 = vld [vmem:[#allocation13 + $0xcc0] sm:$0xff]  ;;  %v1971_v15 = vld [vmem:[#allocation13 + $0xcd0] sm:$0xff] }
 0x24c   :  { %2139 = vmatprep.mubr.f32.mxu0 %v2053_v28  ;;  %8005 = vmatpush1.bf16.msra.mxu1 %v8004_v30  ;;  %v1943_v30 = vld [vmem:[#allocation13 + $0xbf0] sm:$0xff]  ;;  %v1976_v9 = vld [vmem:[#allocation13 + $0xcf8] sm:$0xff]  ;;  %v1973_v14 = vld [vmem:[#allocation13 + $0xce0] sm:$0xff] }
 0x24d   :  { %2305 = vmatprep.mubr.f32.mxu1 %v2053_v28  ;;  %7927 = vmatprep.subr.bf16.mxu0 %v7926_v34  ;;  %v7944_v34 = vpack.c.bf16 %v1941_v24, %v1937_v17  ;;  %v8024_v35 = vpack.c.bf16 %v1943_v30, %v1939_v25  ;;  %v8026_v28 = vpack.c.bf16 %v1952_v32, %v1948_v23  ;;  %v1980_v17 = vld [vmem:[#allocation13 + $0xd18] sm:$0xff]  ;;  %v1979_v23 = vld [vmem:[#allocation13 + $0xd10] sm:$0xff] }
 0x24e   :  { %8007 = vmatprep.subr.bf16.mxu1 %v8006_v37  ;;  %v1945_v37 = vld [vmem:[#allocation13 + $0xc00] sm:$0xff]  ;;  %v8038_v16 = vpack.c.bf16 %v1976_v9, %v1972_v8  ;;  %v1984_v24 = vld [vmem:[#allocation13 + $0xd38] sm:$0xff]  ;;  %v7960_v25 = vpack.c.bf16 %v1973_v14, %v1969_v13  ;;  %v2003_v8 = vld [vmem:[#allocation13 + $0xdd0] sm:$0xff]  ;;  %v8054_v9 = vpack.c.bf16 %v2008_v63, %v2004_v60 }
 0x24f   :  { %7929 = vmatpush1.bf16.msra.mxu0 %v7928_v39  ;;  %v1951_v39 = vld [vmem:[#allocation13 + $0xc30] sm:$0xff]  ;;  %v7948_v44 = vpack.c.bf16 %v1949_v38, %v1945_v37  ;;  %v8042_v32 = vpack.c.bf16 %v1984_v24, %v1980_v17  ;;  %v1988_v37 = vld [vmem:[#allocation13 + $0xd58] sm:$0xff]  ;;  %v1877_v17 = vld [vmem:[#allocation2 + $0x30] sm:$0x3f] }
 0x250   :  { %8009 = vmatpush1.bf16.msra.mxu1 %v8008_v40  ;;  %7931 = vmatprep.subr.bf16.mxu0 %v7930_v41  ;;  %v1954_v40 = vld [vmem:[#allocation13 + $0xc48] sm:$0xff]  ;;  %v1992_v38 = vld [vmem:[#allocation13 + $0xd78] sm:$0xff] }
 0x251   :  { %8011 = vmatprep.subr.bf16.mxu1 %v8010_v45  ;;  %v1958_v41 = vld [vmem:[#allocation13 + $0xc68] sm:$0xff]  ;;  %v8028_v45 = vpack.c.bf16 %v1951_v39, %v1947_v29  ;;  %v7964_v29 = vpack.c.bf16 %v1981_v31, %v1977_v27  ;;  %v8046_v43 = vpack.c.bf16 %v1992_v38, %v1988_v37  ;;  %v2000_v48 = vld [vmem:[#allocation13 + $0xdb8] sm:$0xff]  ;;  %v2011_v27 = vld [vmem:[#allocation13 + $0xe10] sm:$0xff] }
 0x252   :  { %v7950_v46 = vpack.c.bf16 %v1958_v41, %v1954_v40  ;;  %v1985_v40 = vld [vmem:[#allocation13 + $0xd40] sm:$0xff]  ;;  %v8050_v55 = vpack.c.bf16 %v2000_v48, %v1996_v47  ;;  %v1874_v13 = vld [vmem:[#allocation2] sm:$0xfc]  ;;  %v2026_v48 = vld [vmem:[#allocation13 + $0xe88] sm:$0xff] }
 0x253   :  { %7933 = vmatpush1.bf16.msra.mxu0 %v7932_v51  ;;  %v1959_v51 = vld [vmem:[#allocation13 + $0xc70] sm:$0xff]  ;;  %v1989_v41 = vld [vmem:[#allocation13 + $0xd60] sm:$0xff]  ;;  %v2012_v14 = vld [vmem:[#allocation13 + $0xe18] sm:$0xff]  ;;  %v2048_v24 = vrot.slane %v1874_v13, 2 }
 0x254   :  { %8013 = vmatpush1.bf16.msra.mxu1 %v8012_v52  ;;  %7935 = vmatprep.subr.bf16.mxu0 %v7934_v53  ;;  %v1962_v52 = vld [vmem:[#allocation13 + $0xc88] sm:$0xff]  ;;  %v2020_v37 = vld [vmem:[#allocation13 + $0xe58] sm:$0xff]  ;;  %v2023_v47 = vld [vmem:[#allocation13 + $0xe70] sm:$0xff] }
 0x255   :  { %8015 = vmatprep.subr.bf16.mxu1 %v8014_v57  ;;  %v1966_v53 = vld [vmem:[#allocation13 + $0xca8] sm:$0xff]  ;;  %v8032_v57 = vpack.c.bf16 %v1959_v51, %v1955_v49  ;;  %v7968_v49 = vpack.c.bf16 %v1989_v41, %v1985_v40  ;;  %v2024_v38 = vld [vmem:[#allocation13 + $0xe78] sm:$0xff]  ;;  %v2057_v40 = vrot.slane %v1877_v17, 2 }
 0x256   :  { %v7954_v58 = vpack.c.bf16 %v1966_v53, %v1962_v52  ;;  %v1993_v52 = vld [vmem:[#allocation13 + $0xd80] sm:$0xff]  ;;  %v2034_v60 = vld [vmem:[#allocation13 + $0xec8] sm:$0xff] }
 0x257   :  { %7937 = vmatpush1.bf16.msra.mxu0 %v7936_v5  ;;  %v1967_v5 = vld [vmem:[#allocation13 + $0xcb0] sm:$0xff]  ;;  %v1997_v53 = vld [vmem:[#allocation13 + $0xda0] sm:$0xff]  ;;  %v2038_v63 = vld [vmem:[#allocation13 + $0xee8] sm:$0xff] }
 0x258   :  { %8017 = vmatpush1.bf16.msra.mxu1 %v8016_v6  ;;  %7939 = vmatprep.subr.bf16.mxu0 %v7938_v7  ;;  %v1970_v6 = vld [vmem:[#allocation13 + $0xcc8] sm:$0xff] }
 0x259   :  { %8019 = vmatprep.subr.bf16.mxu1 %v8018_v11  ;;  %v1974_v7 = vld [vmem:[#allocation13 + $0xce8] sm:$0xff]  ;;  %v8036_v11 = vpack.c.bf16 %v1967_v5, %v1963_v3  ;;  %v7972_v3 = vpack.c.bf16 %v1997_v53, %v1993_v52 }
 0x25a   :  { %v7958_v12 = vpack.c.bf16 %v1974_v7, %v1970_v6  ;;  %v2001_v6 = vld [vmem:[#allocation13 + $0xdc0] sm:$0xff] }
 0x25b   :  { %7941 = vmatpush1.bf16.msra.mxu0 %v7940_v21  ;;  %v1975_v21 = vld [vmem:[#allocation13 + $0xcf0] sm:$0xff]  ;;  %v2005_v7 = vld [vmem:[#allocation13 + $0xde0] sm:$0xff] }
 0x25c   :  { %8021 = vmatpush1.bf16.msra.mxu1 %v8020_v22  ;;  %7943 = vmatprep.subr.bf16.mxu0 %v7942_v20  ;;  %v1978_v22 = vld [vmem:[#allocation13 + $0xd08] sm:$0xff] }
 0x25d   :  { %8023 = vmatprep.subr.bf16.mxu1 %v8022_v26  ;;  %v1982_v20 = vld [vmem:[#allocation13 + $0xd28] sm:$0xff]  ;;  %v8040_v26 = vpack.c.bf16 %v1975_v21, %v1971_v15  ;;  %v2016_v15 = vld [vmem:[#allocation13 + $0xe38] sm:$0xff] }
 0x25e   :  { %v7962_v30 = vpack.c.bf16 %v1982_v20, %v1978_v22  ;;  %v1878_v21 = vld [vmem:[#allocation2 + $0x38] sm:$0x3f] }
 0x25f   :  { %7945 = vmatpush1.bf16.msra.mxu0 %v7944_v34  ;;  %v1983_v34 = vld [vmem:[#allocation13 + $0xd30] sm:$0xff]  ;;  %v2059_v31 = vrot.slane %v1878_v21, 2 }
 0x260   :  { %8025 = vmatpush1.bf16.msra.mxu1 %v8024_v35  ;;  %7947 = vmatprep.subr.bf16.mxu0 %v7946_v36  ;;  %v1986_v35 = vld [vmem:[#allocation13 + $0xd48] sm:$0xff] }
 0x261   :  { %8027 = vmatprep.subr.bf16.mxu1 %v8026_v28  ;;  %v1990_v36 = vld [vmem:[#allocation13 + $0xd68] sm:$0xff]  ;;  %v8044_v28 = vpack.c.bf16 %v1983_v34, %v1979_v23  ;;  %v2015_v23 = vld [vmem:[#allocation13 + $0xe30] sm:$0xff] }
 0x262   :  { %v7966_v39 = vpack.c.bf16 %v1990_v36, %v1986_v35  ;;  %v2022_v34 = vld [vmem:[#allocation13 + $0xe68] sm:$0xff] }
 0x263   :  { %7949 = vmatpush1.bf16.msra.mxu0 %v7948_v44  ;;  %v1991_v44 = vld [vmem:[#allocation13 + $0xd70] sm:$0xff] }
 0x264   :  { %8029 = vmatpush1.bf16.msra.mxu1 %v8028_v45  ;;  %7951 = vmatprep.subr.bf16.mxu0 %v7950_v46  ;;  %v1994_v45 = vld [vmem:[#allocation13 + $0xd88] sm:$0xff] }
 0x265   :  { %8031 = vmatprep.subr.bf16.mxu1 %v8030_v50  ;;  %v1998_v46 = vld [vmem:[#allocation13 + $0xda8] sm:$0xff]  ;;  %v8048_v50 = vpack.c.bf16 %v1991_v44, %v1987_v42  ;;  %v2017_v42 = vld [vmem:[#allocation13 + $0xe40] sm:$0xff]  ;;  %v2019_v44 = vld [vmem:[#allocation13 + $0xe50] sm:$0xff] }
 0x266   :  { %v7970_v51 = vpack.c.bf16 %v1998_v46, %v1994_v45  ;;  %v9228_v35 = vld [vmem:[#allocation2 + $0x18] sm:$0xff]  ;;  %v2060_v45 = vsel %vm2047_vm8, %v2052_v59, %v2059_v31  ;;  %v8062_v46 = vpack.c.bf16 %v2024_v38, %v2020_v37  ;;  %v2689_v37 = vld [vmem:[#allocation16 + $0x110] sm:$0xff]  ;;  %v2690_v38 = vld [vmem:[#allocation16 + $0x118] sm:$0xff] }
 0x267   :  { %7953 = vmatpush1.bf16.msra.mxu0 %v7952_v56  ;;  %v1999_v56 = vld [vmem:[#allocation13 + $0xdb0] sm:$0xff]  ;;  %v2049_v36 = vrot.slane %v9228_v35, 2  ;;  %v2706_v35 = vld [vmem:[#allocation16 + $0x198] sm:$0xff] }
 0x268   :  { %8033 = vmatpush1.bf16.msra.mxu1 %v8032_v57  ;;  %7955 = vmatprep.subr.bf16.mxu0 %v7954_v58  ;;  %v2002_v57 = vld [vmem:[#allocation13 + $0xdc8] sm:$0xff]  ;;  %v2027_v59 = vld [vmem:[#allocation13 + $0xe90] sm:$0xff] }
 0x269   :  { %8035 = vmatprep.subr.bf16.mxu1 %v8034_v62  ;;  %v2006_v58 = vld [vmem:[#allocation13 + $0xde8] sm:$0xff]  ;;  %v8052_v62 = vpack.c.bf16 %v1999_v56, %v1995_v54  ;;  %v2058_v53 = vsel %vm2047_vm8, %v2049_v36, %v2057_v40  ;;  %v8064_v54 = vpack.c.bf16 %v2023_v47, %v2019_v44  ;;  %v2029_v56 = vld [vmem:[#allocation13 + $0xea0] sm:$0xff]  ;;  %v2709_v44 = vld [vmem:[#allocation16 + $0x1b0] sm:$0xff] }
 0x26a   :  { %v7974_v5 = vpack.c.bf16 %v2006_v58, %v2002_v57  ;;  %v2031_v58 = vld [vmem:[#allocation13 + $0xeb0] sm:$0xff]  ;;  %v2419_v47 = vld [vmem:[#allocation14] sm:$0xf] }
 0x26b   :  { %7957 = vmatpush1.bf16.msra.mxu0 %v7956_v10  ;;  %v2007_v10 = vld [vmem:[#allocation13 + $0xdf0] sm:$0xff] }
 0x26c   :  { %8037 = vmatpush1.bf16.msra.mxu1 %v8036_v11  ;;  %7959 = vmatprep.subr.bf16.mxu0 %v7958_v12  ;;  %v2010_v11 = vld [vmem:[#allocation13 + $0xe08] sm:$0xff]  ;;  %v8056_v22 = vpack.c.bf16 %v2007_v10, %v2003_v8  ;;  %v2033_v8 = vld [vmem:[#allocation13 + $0xec0] sm:$0xff] }
 0x26d   :  { %8039 = vmatprep.subr.bf16.mxu1 %v8038_v16  ;;  %v2014_v12 = vld [vmem:[#allocation13 + $0xe28] sm:$0xff]  ;;  %v7976_v16 = vpack.c.bf16 %v2005_v7, %v2001_v6  ;;  %v8068_v6 = vpack.c.bf16 %v2031_v58, %v2027_v59  ;;  %v7990_v7 = vpack.c.bf16 %v2038_v63, %v2034_v60 }
 0x26e   :  { %v7978_v20 = vpack.c.bf16 %v2014_v12, %v2010_v11  ;;  %v2035_v11 = vld [vmem:[#allocation13 + $0xed0] sm:$0xff] }
 0x26f   :  { %7961 = vmatpush1.bf16.msra.mxu0 %v7960_v25  ;;  %v8058_v25 = vpack.c.bf16 %v2016_v15, %v2012_v14  ;;  %v2039_v12 = vld [vmem:[#allocation13 + $0xef0] sm:$0xff]  ;;  %v1876_v15 = vld [vmem:[#allocation2 + $0x10] sm:$0xfc] }
 0x270   :  { %8041 = vmatpush1.bf16.msra.mxu1 %v8040_v26  ;;  %7963 = vmatprep.subr.bf16.mxu0 %v7962_v30  ;;  %v2009_v26 = vld [vmem:[#allocation13 + $0xe00] sm:$0xff]  ;;  %v8072_v14 = vpack.c.bf16 %v2039_v12, %v2035_v11 }
 0x271   :  { %8043 = vmatprep.subr.bf16.mxu1 %v8042_v32  ;;  %v2013_v30 = vld [vmem:[#allocation13 + $0xe20] sm:$0xff]  ;;  %v2018_v32 = vld [vmem:[#allocation13 + $0xe48] sm:$0xff] }
 0x272   :  { %v7982_v41 = vpack.c.bf16 %v2022_v34, %v2018_v32  ;;  %v2705_v34 = vld [vmem:[#allocation16 + $0x190] sm:$0xff] }
 0x273   :  { %7965 = vmatpush1.bf16.msra.mxu0 %v7964_v29  ;;  %v7980_v29 = vpack.c.bf16 %v2013_v30, %v2009_v26  ;;  %v2703_v26 = vld [vmem:[#allocation16 + $0x180] sm:$0xff]  ;;  %v2704_v30 = vld [vmem:[#allocation16 + $0x188] sm:$0xff] }
 0x274   :  { %8045 = vmatpush1.bf16.msra.mxu1 %v8044_v28  ;;  %7967 = vmatprep.subr.bf16.mxu0 %v7966_v39  ;;  %v2050_v28 = vsel %vm2047_vm8, %v2048_v24, %v2049_v36  ;;  %v8060_v39 = vpack.c.bf16 %v2015_v23, %v2011_v27  ;;  %v2687_v27 = vld [vmem:[#allocation16 + $0x100] sm:$0xff]  ;;  %v8078_v23 = vpack.c.bf16 %v2704_v30, %v2703_v26 }
 0x275   :  { %8047 = vmatprep.subr.bf16.mxu1 %v8046_v43  ;;  %v2021_v43 = vld [vmem:[#allocation13 + $0xe60] sm:$0xff]  ;;  %v8082_v36 = vpack.c.bf16 %v2706_v35, %v2705_v34 }
 0x276   :  { %v7984_v52 = vpack.c.bf16 %v2021_v43, %v2017_v42  ;;  %v2692_v42 = vld [vmem:[#allocation16 + $0x128] sm:$0xff] }
 0x277   :  { %7969 = vmatpush1.bf16.msra.mxu0 %v7968_v49  ;;  %v2030_v49 = vld [vmem:[#allocation13 + $0xea8] sm:$0xff] }
 0x278   :  { %8049 = vmatpush1.bf16.msra.mxu1 %v8048_v50  ;;  %7971 = vmatprep.subr.bf16.mxu0 %v7970_v51  ;;  %v2028_v50 = vld [vmem:[#allocation13 + $0xe98] sm:$0xff] }
 0x279   :  { %8051 = vmatprep.subr.bf16.mxu1 %v8050_v55  ;;  %v2032_v51 = vld [vmem:[#allocation13 + $0xeb8] sm:$0xff]  ;;  %v7986_v55 = vpack.c.bf16 %v2030_v49, %v2026_v48  ;;  %v2435_v48 = vsub.s32 3, %v9903_v61  ;;  %v2424_v49 = vrot.slane %v2419_v47, %v9906_v2 }
 0x27a   :  { %v8066_v57 = vpack.c.bf16 %v2032_v51, %v2028_v50  ;;  %v2432_v50 = vrot.slane %v2419_v47, %v9916_v19  ;;  %v2428_v51 = vrot.slane %v2419_v47, %v9909_v4 }
 0x27b   :  { %7973 = vmatpush1.bf16.msra.mxu0 %v7972_v3  ;;  %v2036_v3 = vld [vmem:[#allocation13 + $0xed8] sm:$0xff] }
 0x27c   :  { %8053 = vmatpush1.bf16.msra.mxu1 %v8052_v62  ;;  %7975 = vmatprep.subr.bf16.mxu0 %v7974_v5  ;;  %v2040_v62 = vld [vmem:[#allocation13 + $0xef8] sm:$0xff]  ;;  %v7988_v5 = vpack.c.bf16 %v2029_v56, %v2025_v33 }
 0x27d   :  { %8055 = vmatprep.subr.bf16.mxu1 %v8054_v9  ;;  %v2037_v9 = vld [vmem:[#allocation13 + $0xee0] sm:$0xff]  ;;  %v8070_v10 = vpack.c.bf16 %v2040_v62, %v2036_v3 }
 0x27e   :  { %v7992_v13 = vpack.c.bf16 %v2037_v9, %v2033_v8 }
 0x27f   :  { %7977 = vmatpush1.bf16.msra.mxu0 %v7976_v16  ;;  %v9229_v16 = vld [vmem:[#allocation2 + $0x28] sm:$0xff] }
 0x280   :  { %8057 = vmatpush1.bf16.msra.mxu1 %v8056_v22  ;;  %7979 = vmatprep.subr.bf16.mxu0 %v7978_v20  ;;  %v2055_v21 = vrot.slane %v9229_v16, 2  ;;  %v1879_v22 = vld [vmem:[#allocation2 + $0x40] sm:$0x3f]  ;;  %v2054_v20 = vrot.slane %v1876_v15, 2 }
 0x281   :  { %8059 = vmatprep.subr.bf16.mxu1 %v8058_v25  ;;  %v2061_v24 = vrot.slane %v1879_v22, 2 }
 0x282   :  { %2140 = vmatmul.mubr.f32.vlgmr.msra.gmra.mrb[6].mxu0 %v2050_v28  ;;  %v2056_v17 = vsel %vm2047_vm8, %v2054_v20, %v2055_v21 }
 0x283   :  { %2306 = vmatmul.mubr.f32.vlgmr.msra.gmra.mrb[20].mxu1 %v2050_v28  ;;  %2145 = vmatprep.mubr.f32.mxu0 %v2060_v45  ;;  %v2062_v25 = vsel %vm2047_vm8, %v2055_v21, %v2061_v24  ;;  %v2707_v28 = vld [vmem:[#allocation16 + $0x1a0] sm:$0xff] }
 0x284   :  { %7981 = vmatpush1.bf16.msra.mxu0 %v7980_v29  ;;  %2311 = vmatprep.mubr.f32.mxu1 %v2060_v45  ;;  %v8084_v29 = vpack.c.bf16 %v2690_v38, %v2689_v37  ;;  %v2710_v45 = vld [vmem:[#allocation16 + $0x1b8] sm:$0xff] }
 0x285   :  { %8061 = vmatpush1.bf16.msra.mxu1 %v8060_v39  ;;  %7983 = vmatprep.subr.bf16.mxu0 %v7982_v41  ;;  %v2708_v39 = vld [vmem:[#allocation16 + $0x1a8] sm:$0xff] }
 0x286   :  { %2146 = vmatmul.mubr.f32.gmra.mrb[8].mxu0 %v2058_v53  ;;  %8063 = vmatprep.subr.bf16.mxu1 %v8062_v46  ;;  %v8086_v41 = vpack.c.bf16 %v2708_v39, %v2707_v28  ;;  %v8090_v46 = vpack.c.bf16 %v2710_v45, %v2709_v44 }
 0x287   :  { %2312 = vmatmul.mubr.f32.gmra.mrb[22].mxu1 %v2058_v53  ;;  %2151 = vmatprep.mubr.f32.mxu0 %v2059_v31 }
 0x288   :  { %7985 = vmatpush1.bf16.msra.mxu0 %v7984_v52  ;;  %2317 = vmatprep.mubr.f32.mxu1 %v2059_v31  ;;  %v2688_v31 = vld [vmem:[#allocation16 + $0x108] sm:$0xff]  ;;  %v2436_v52 = vrot.slane %v2419_v47, %v2435_v48 }
 0x289   :  { %8065 = vmatpush1.bf16.msra.mxu1 %v8064_v54  ;;  %7987 = vmatprep.subr.bf16.mxu0 %v7986_v55  ;;  %v8080_v32 = vpack.c.bf16 %v2688_v31, %v2687_v27 }
 0x28a   :  { %2152 = vmatmul.mubr.f32.gmra.mrb[10].mxu0 %v2057_v40  ;;  %8067 = vmatprep.subr.bf16.mxu1 %v8066_v57 }
 0x28b   :  { %2318 = vmatmul.mubr.f32.gmra.mrb[24].mxu1 %v2057_v40  ;;  %2222 = vmatprep.mubr.f32.mxu0 %v9555_v0  ;;  %v2691_v40 = vld [vmem:[#allocation16 + $0x120] sm:$0xff] }
 0x28c   :  { %7989 = vmatpush1.bf16.msra.mxu0 %v7988_v5  ;;  %2388 = vmatprep.mubr.f32.mxu1 %v9555_v0  ;;  %v8088_v43 = vpack.c.bf16 %v2692_v42, %v2691_v40 }
 0x28d   :  { %8069 = vmatpush1.bf16.msra.mxu1 %v8068_v6  ;;  %7991 = vmatprep.subr.bf16.mxu0 %v7990_v7 }
 0x28e   :  { %8071 = vmatprep.subr.bf16.mxu1 %v8070_v10 }
 0x290   :  { %7993 = vmatpush1.bf16.msra.mxu0 %v7992_v13 }
 0x291   :  { %8073 = vmatpush1.bf16.msra.mxu1 %v8072_v14 }
 0x292   :  { %8079 = vmatprep.subr.bf16.mxu1 %v8078_v23 }
 0x293   :  { %7065 = vmatmul.mubr.msk.f32.vlgmr.msra.gmra.mrb[6].mxu0 %vm820_vm5, %v2056_v17 }
 0x294   :  { %7068 = vmatmul.mubr.msk.f32.vlgmr.msra.gmra.mrb[20].mxu1 %vm820_vm5, %v2056_v17  ;;  %2228 = vmatprep.mubr.f32.mxu0 %v9555_v0 }
 0x295   :  { %2394 = vmatprep.mubr.f32.mxu1 %v9555_v0  ;;  %8081 = vmatpush3.bf16.msra.mxu1 %v8080_v32 }
 0x296   :  { %8083 = vmatprep.subr.bf16.mxu1 %v8082_v36 }
 0x297   :  { %7066 = vmatmul.mubr.msk.f32.gmra.mrb[8].mxu0 %vm820_vm5, %v2062_v25 }
 0x298   :  { %7069 = vmatmul.mubr.msk.f32.gmra.mrb[22].mxu1 %vm820_vm5, %v2062_v25  ;;  %2234 = vmatprep.mubr.f32.mxu0 %v9555_v0 }
 0x299   :  { %2400 = vmatprep.mubr.f32.mxu1 %v9555_v0  ;;  %8085 = vmatpush3.bf16.msra.mxu1 %v8084_v29 }
 0x29a   :  { %8087 = vmatprep.subr.bf16.mxu1 %v8086_v41 }
 0x29b   :  { %7067 = vmatmul.mubr.msk.f32.gmra.mrb[10].mxu0 %vm820_vm5, %v2061_v24 }
 0x29c   :  { %7070 = vmatmul.mubr.msk.f32.gmra.mrb[24].mxu1 %vm820_vm5, %v2061_v24  ;;  %2627 = vmatprep.mubr.f32.mxu0 %v9555_v0 }
 0x29d   :  { %8089 = vmatpush3.bf16.msra.mxu1 %v8088_v43 }
 0x29e   :  { %8091 = vmatprep.subr.bf16.mxu1 %v8090_v46 }
 0x366   :  { %v2224_v53 = vpop.f32.mrb[6].mxu0 }
 0x367   :  { %v2441_v54 = vadd.f32 %v2424_v49, %v2224_v53  ;;  %v2390_v55 = vpop.f32.mrb[20].mxu1  ;;  %v2226_v33 = vpop.f32.mrb[7].mxu0 }
 0x368   :  { %v2443_v56 = vadd.f32 %v2432_v50, %v2390_v55  ;;  %v2442_v59 = vadd.f32 %v2428_v51, %v2226_v33  ;;  %v2392_v57 = vpop.f32.mrb[21].mxu1 }
 0x369   :  { %2453 = vst [vmem:[#allocation3] sm:$0xff] %v2441_v54  ;;  %v2444_v58 = vadd.f32 %v2436_v52, %v2392_v57 }
 0x36a   :  { %2455 = vst [vmem:[#allocation3 + $0x10] sm:$0xff] %v2443_v56  ;;  %2454 = vst [vmem:[#allocation3 + $0x8] sm:$0xff] %v2442_v59  ;;  %v2230_v60 = vpop.f32.mrb[8].mxu0 }
 0x36b   :  { %2456 = vst [vmem:[#allocation3 + $0x18] sm:$0xff] %v2444_v58  ;;  %v2445_v63 = vadd.f32 %v2424_v49, %v2230_v60  ;;  %v2396_v3 = vpop.f32.mrb[22].mxu1  ;;  %v2232_v62 = vpop.f32.mrb[9].mxu0 }
 0x36c   :  { %v2447_v5 = vadd.f32 %v2432_v50, %v2396_v3  ;;  %v2446_v6 = vadd.f32 %v2428_v51, %v2232_v62  ;;  %v2398_v7 = vpop.f32.mrb[23].mxu1 }
 0x36d   :  { %v2448_v8 = vadd.f32 %v2436_v52, %v2398_v7  ;;  %v2498_v24 = vrot.slane %v2445_v63, 1 }
 0x36e   :  { %v2236_v9 = vpop.f32.mrb[10].mxu0  ;;  %v2501_v30 = vrot.slane %v2446_v6, 1  ;;  %v2504_v31 = vrot.slane %v2447_v5, 1 }
 0x36f   :  { %v2449_v10 = vadd.f32 %v2424_v49, %v2236_v9  ;;  %v2402_v11 = vpop.f32.mrb[24].mxu1  ;;  %v2238_v12 = vpop.f32.mrb[11].mxu0  ;;  %v2507_v32 = vrot.slane %v2448_v8, 1 }
 0x370   :  { %v2451_v13 = vadd.f32 %v2432_v50, %v2402_v11  ;;  %v2450_v14 = vadd.f32 %v2428_v51, %v2238_v12  ;;  %v2404_v15 = vpop.f32.mrb[25].mxu1  ;;  %v2477_v16 = vld [vmem:[#allocation3] sm:$0xfe] }
 0x371   :  { %2461 = vst [vmem:[#allocation3 + $0x40] sm:$0xf] %v2449_v10  ;;  %v2452_v21 = vadd.f32 %v2436_v52, %v2404_v15  ;;  %v2478_v22 = vld [vmem:[#allocation3 + $0x8] sm:$0xfe]  ;;  %v2479_v20 = vld [vmem:[#allocation3 + $0x10] sm:$0xfe] }
 0x372   :  { %v2497_v17 = vrot.slane %v2477_v16, 1  ;;  %2463 = vst [vmem:[#allocation3 + $0x50] sm:$0xf] %v2451_v13  ;;  %2462 = vst [vmem:[#allocation3 + $0x48] sm:$0xf] %v2450_v14  ;;  %v2500_v26 = vrot.slane %v2478_v22, 1 }
 0x373   :  { %v2480_v25 = vld [vmem:[#allocation3 + $0x18] sm:$0xfe]  ;;  %v2503_v27 = vrot.slane %v2479_v20, 1  ;;  %2464 = vst [vmem:[#allocation3 + $0x58] sm:$0xf] %v2452_v21  ;;  %v2666_v15 = vld [vmem:[#allocation16 + $0x80] sm:$0xff] }
 0x374   :  { %v2506_v23 = vrot.slane %v2480_v25, 1  ;;  %v2499_v34 = vsel %vm1174_vm6, %v2497_v17, %v2498_v24  ;;  %v2502_v35 = vsel %vm1174_vm6, %v2500_v26, %v2501_v30  ;;  %v2669_v21 = vld [vmem:[#allocation16 + $0x98] sm:$0xff]  ;;  %v2547_v17 = vld [vmem:[#allocation22] sm:$0xff]  ;;  %v2652_v26 = vld [vmem:[#allocation16 + $0x10] sm:$0xff] }
 0x375   :  { %v2505_v36 = vsel %vm1174_vm6, %v2503_v27, %v2504_v31  ;;  %v2529_v37 = vmax.f32 %v2441_v54, %v2499_v34  ;;  %v2530_v29 = vmax.f32 %v2442_v59, %v2502_v35  ;;  %v2670_v27 = vld [vmem:[#allocation16 + $0xa0] sm:$0xff] }
 0x376   :  { %v2508_v38 = vsel %vm1174_vm6, %v2506_v23, %v2507_v32  ;;  %v2531_v28 = vmax.f32 %v2443_v56, %v2505_v36  ;;  %v2548_v23 = vld [vmem:[#allocation22 + $0x8] sm:$0x3]  ;;  %v2654_v35 = vld [vmem:[#allocation16 + $0x20] sm:$0xff] }
 0x377   :  { %v2532_v39 = vmax.f32 %v2444_v58, %v2508_v38  ;;  %v2655_v36 = vld [vmem:[#allocation16 + $0x28] sm:$0xff]  ;;  %v2673_v38 = vld [vmem:[#allocation16 + $0xb8] sm:$0xff] }
 0x378   :  { %v2541_v40 = vmax.f32 %v2529_v37, %v2531_v28  ;;  %v2481_v42 = vld [vmem:[#allocation3 + $0x40] sm:$0xf]  ;;  %v2672_v37 = vld [vmem:[#allocation16 + $0xb0] sm:$0xff] }
 0x379   :  { %v2542_v41 = vmax.f32 %v2530_v29, %v2532_v39  ;;  %v2482_v43 = vld [vmem:[#allocation3 + $0x48] sm:$0xf]  ;;  %v2483_v44 = vld [vmem:[#allocation3 + $0x50] sm:$0xf]  ;;  %v2509_v45 = vrot.slane %v2481_v42, 1  ;;  %v8120_v29 = vpack.c.bf16 %v2655_v36, %v2654_v35  ;;  %v8122_v28 = vpack.c.bf16 %v2673_v38, %v2672_v37  ;;  %v2702_v37 = vld [vmem:[#allocation16 + $0x178] sm:$0xff] }
 0x37a   :  { %v2484_v46 = vld [vmem:[#allocation3 + $0x58] sm:$0xf]  ;;  %v2511_v47 = vrot.slane %v2482_v43, 1  ;;  %v2513_v49 = vrot.slane %v2483_v44, 1  ;;  %v2474_v58 = vld [vmem:[#allocation3 + $0x48] sm:$0x7] }
 0x37b   :  { %v2515_v50 = vrot.slane %v2484_v46, 1  ;;  %v2510_v51 = vsel %vm1174_vm6, %v2498_v24, %v2509_v45  ;;  %v2476_v60 = vld [vmem:[#allocation3 + $0x58] sm:$0x7]  ;;  %v2473_v11 = vld [vmem:[#allocation3 + $0x40] sm:$0x7]  ;;  %v2656_v39 = vld [vmem:[#allocation16 + $0x30] sm:$0xff] }
 0x37c   :  { %v2512_v52 = vsel %vm1174_vm6, %v2501_v30, %v2511_v47  ;;  %v2514_v53 = vsel %vm1174_vm6, %v2504_v31, %v2513_v49  ;;  %v2533_v54 = vmax.f32 %v2445_v63, %v2510_v51  ;;  %v2538_v62 = vmax.f32 %v2474_v58, %v2511_v47  ;;  %v2475_v12 = vld [vmem:[#allocation3 + $0x50] sm:$0x7]  ;;  %v2667_v63 = vld [vmem:[#allocation16 + $0x88] sm:$0xff]  ;;  %v2653_v30 = vld [vmem:[#allocation16 + $0x18] sm:$0xff] }
 0x37d   :  { %v2516_v55 = vsel %vm1174_vm6, %v2507_v32, %v2515_v50  ;;  %v2534_v33 = vmax.f32 %v2446_v6, %v2512_v52  ;;  %v2535_v56 = vmax.f32 %v2447_v5, %v2514_v53  ;;  %v2540_v7 = vmax.f32 %v2476_v60, %v2515_v50  ;;  %v2650_v6 = vld [vmem:[#allocation16] sm:$0xff]  ;;  %v2651_v5 = vld [vmem:[#allocation16 + $0x8] sm:$0xff]  ;;  %v2677_v50 = vld [vmem:[#allocation16 + $0xd8] sm:$0xff] }
 0x37e   :  { %v2536_v59 = vmax.f32 %v2448_v8, %v2516_v55  ;;  %v2537_v13 = vmax.f32 %v2473_v11, %v2509_v45  ;;  %v2539_v14 = vmax.f32 %v2475_v12, %v2513_v49  ;;  %v2668_v8 = vld [vmem:[#allocation16 + $0x90] sm:$0xff]  ;;  %v8110_v22 = vpack.c.bf16 %v2667_v63, %v2666_v15  ;;  %v2671_v31 = vld [vmem:[#allocation16 + $0xa8] sm:$0xff]  ;;  %v2658_v45 = vld [vmem:[#allocation16 + $0x40] sm:$0xff] }
 0x37f   :  { %v2543_v57 = vmax.f32 %v2533_v54, %v2535_v56  ;;  %v2546_v16 = vmax.f32 %v2538_v62, %v2540_v7  ;;  %v8112_v24 = vpack.c.bf16 %v2651_v5, %v2650_v6  ;;  %v8114_v25 = vpack.c.bf16 %v2669_v21, %v2668_v8  ;;  %v2675_v42 = vld [vmem:[#allocation16 + $0xc8] sm:$0xff]  ;;  %v2676_v49 = vld [vmem:[#allocation16 + $0xd0] sm:$0xff]  ;;  %v2661_v53 = vld [vmem:[#allocation16 + $0x58] sm:$0xff] }
 0x380   :  { %v2544_v3 = vmax.f32 %v2534_v33, %v2536_v59  ;;  %v2545_v20 = vmax.f32 %v2537_v13, %v2539_v14  ;;  %v8116_v32 = vpack.c.bf16 %v2653_v30, %v2652_v26  ;;  %v8118_v34 = vpack.c.bf16 %v2671_v31, %v2670_v27  ;;  %v2659_v46 = vld [vmem:[#allocation16 + $0x48] sm:$0xff]  ;;  %v2660_v52 = vld [vmem:[#allocation16 + $0x50] sm:$0xff]  ;;  %v2678_v55 = vld [vmem:[#allocation16 + $0xe0] sm:$0xff] }
 0x381   :  { %v8076_v9 = vpack.c.bf16 %v2543_v57, %v2541_v40  ;;  %v2657_v40 = vld [vmem:[#allocation16 + $0x38] sm:$0xff]  ;;  %v8128_v47 = vpack.c.bf16 %v2659_v46, %v2658_v45  ;;  %v8130_v51 = vpack.c.bf16 %v2677_v50, %v2676_v49  ;;  %v8132_v54 = vpack.c.bf16 %v2661_v53, %v2660_v52  ;;  %v2679_v33 = vld [vmem:[#allocation16 + $0xe8] sm:$0xff]  ;;  %v2662_v59 = vld [vmem:[#allocation16 + $0x60] sm:$0xff] }
 0x382   :  { %v8074_v10 = vpack.c.bf16 %v2544_v3, %v2542_v41  ;;  %v2674_v41 = vld [vmem:[#allocation16 + $0xc0] sm:$0xff]  ;;  %v8124_v43 = vpack.c.bf16 %v2657_v40, %v2656_v39  ;;  %v8134_v56 = vpack.c.bf16 %v2679_v33, %v2678_v55  ;;  %v2663_v57 = vld [vmem:[#allocation16 + $0x68] sm:$0xff]  ;;  %v2693_v58 = vld [vmem:[#allocation16 + $0x130] sm:$0xff] }
 0x383   :  { %v8126_v44 = vpack.c.bf16 %v2675_v42, %v2674_v41  ;;  %v2694_v60 = vld [vmem:[#allocation16 + $0x138] sm:$0xff]  ;;  %v8136_v3 = vpack.c.bf16 %v2663_v57, %v2662_v59  ;;  %v2711_v7 = vld [vmem:[#allocation16 + $0x1c0] sm:$0xff]  ;;  %v2680_v11 = vld [vmem:[#allocation16 + $0xf0] sm:$0xff] }
 0x384   :  { %8075 = vmatprep.subr.bf16.mxu0 %v8074_v10  ;;  %v8092_v62 = vpack.c.bf16 %v2694_v60, %v2693_v58  ;;  %v2681_v12 = vld [vmem:[#allocation16 + $0xf8] sm:$0xff]  ;;  %v2664_v14 = vld [vmem:[#allocation16 + $0x70] sm:$0xff]  ;;  %v2695_v63 = vld [vmem:[#allocation16 + $0x140] sm:$0xff] }
 0x385   :  { %8077 = vmatpush1.bf16.msra.mxu0 %v8076_v9  ;;  %v2712_v9 = vld [vmem:[#allocation16 + $0x1c8] sm:$0xff]  ;;  %v8138_v13 = vpack.c.bf16 %v2681_v12, %v2680_v11  ;;  %v2665_v15 = vld [vmem:[#allocation16 + $0x78] sm:$0xff]  ;;  %v2713_v8 = vld [vmem:[#allocation16 + $0x1d0] sm:$0xff] }
 0x386   :  { %7071 = vmatprep.subr.msk.mxu0 %vm2556_vm9, %v2546_v16  ;;  %v8094_v10 = vpack.c.bf16 %v2712_v9, %v2711_v7  ;;  %8093 = vmatpush3.bf16.msra.mxu1 %v8092_v62  ;;  %v2696_v16 = vld [vmem:[#allocation16 + $0x148] sm:$0xff]  ;;  %v8140_v6 = vpack.c.bf16 %v2665_v15, %v2664_v14  ;;  %v2714_v21 = vld [vmem:[#allocation16 + $0x1d8] sm:$0xff]  ;;  %v2699_v27 = vld [vmem:[#allocation16 + $0x160] sm:$0xff] }
 0x387   :  { %v8096_v5 = vpack.c.bf16 %v2696_v16, %v2695_v63  ;;  %v2700_v31 = vld [vmem:[#allocation16 + $0x168] sm:$0xff]  ;;  %v2701_v36 = vld [vmem:[#allocation16 + $0x170] sm:$0xff]  ;;  %v2876_v49 = vld [vmem:[#allocation16 + $0x200] sm:$0xff] }
 0x388   :  { %8095 = vmatprep.subr.bf16.mxu1 %v8094_v10  ;;  %v8108_v38 = vpack.c.bf16 %v2702_v37, %v2701_v36  ;;  %v2894_v52 = vld [vmem:[#allocation16 + $0x290] sm:$0xff]  ;;  %v2895_v57 = vld [vmem:[#allocation16 + $0x298] sm:$0xff]  ;;  %v2896_v15 = vld [vmem:[#allocation16 + $0x2a0] sm:$0xff] }
 0x389   :  { %7072 = vmatpush1.msk.msra.mxu0 %vm2556_vm9, %v2545_v20  ;;  %v8098_v20 = vpack.c.bf16 %v2714_v21, %v2713_v8  ;;  %v8146_v11 = vpack.c.bf16 %v2895_v57, %v2894_v52  ;;  %v2878_v12 = vld [vmem:[#allocation16 + $0x210] sm:$0xff]  ;;  %v2897_v63 = vld [vmem:[#allocation16 + $0x2a8] sm:$0xff]  ;;  %v2880_v8 = vld [vmem:[#allocation16 + $0x220] sm:$0xff] }
 0x38a   :  { %7073 = vmatmul.mubr.msk.f32.vlgmr.msra.gmra.mrb[12].mxu0 %vm2549_vm10, %v2547_v17  ;;  %8111 = vmatprep.subr.bf16.mxu0 %v8110_v22  ;;  %v2697_v22 = vld [vmem:[#allocation16 + $0x150] sm:$0xff]  ;;  %v2698_v17 = vld [vmem:[#allocation16 + $0x158] sm:$0xff]  ;;  %v2881_v21 = vld [vmem:[#allocation16 + $0x228] sm:$0xff] }
 0x38b   :  { %2633 = vmatprep.mubr.f32.mxu0 %v9555_v0  ;;  %8113 = vmatpush3.bf16.msra.mxu0 %v8112_v24  ;;  %v2715_v24 = vld [vmem:[#allocation16 + $0x1e0] sm:$0xff]  ;;  %v8100_v26 = vpack.c.bf16 %v2698_v17, %v2697_v22  ;;  %v2898_v22 = vld [vmem:[#allocation16 + $0x2b0] sm:$0xff]  ;;  %v8152_v17 = vpack.c.bf16 %v2881_v21, %v2880_v8  ;;  %v2903_v36 = vld [vmem:[#allocation16 + $0x2d8] sm:$0xff] }
 0x38c   :  { %8115 = vmatprep.subr.bf16.mxu0 %v8114_v25  ;;  %v2716_v25 = vld [vmem:[#allocation16 + $0x1e8] sm:$0xff]  ;;  %8097 = vmatpush3.bf16.msra.mxu1 %v8096_v5  ;;  %v8150_v5 = vpack.c.bf16 %v2897_v63, %v2896_v15  ;;  %v3041_v57 = vld [vmem:[#allocation19 + $0x118] sm:$0xff] }
 0x38d   :  { %8099 = vmatprep.subr.bf16.mxu1 %v8098_v20  ;;  %v8102_v30 = vpack.c.bf16 %v2716_v25, %v2715_v24  ;;  %v2899_v20 = vld [vmem:[#allocation16 + $0x2b8] sm:$0xff]  ;;  %v2882_v25 = vld [vmem:[#allocation16 + $0x230] sm:$0xff] }
 0x38e   :  { %7074 = vmatmul.mubr.msk.f32.gmra.mrb[14].mxu0 %vm2549_vm10, %v2548_v23  ;;  %v2717_v23 = vld [vmem:[#allocation16 + $0x1f0] sm:$0xff]  ;;  %v8154_v24 = vpack.c.bf16 %v2899_v20, %v2898_v22  ;;  %v3053_v8 = vld [vmem:[#allocation19 + $0x178] sm:$0xff]  ;;  %v3050_v20 = vld [vmem:[#allocation19 + $0x160] sm:$0xff] }
 0x38f   :  { %8117 = vmatpush3.bf16.msra.mxu0 %v8116_v32  ;;  %v2718_v32 = vld [vmem:[#allocation16 + $0x1f8] sm:$0xff] }
 0x390   :  { %8119 = vmatprep.subr.bf16.mxu0 %v8118_v34  ;;  %8101 = vmatpush3.bf16.msra.mxu1 %v8100_v26  ;;  %v8104_v34 = vpack.c.bf16 %v2700_v31, %v2699_v27  ;;  %v8106_v35 = vpack.c.bf16 %v2718_v32, %v2717_v23  ;;  %v2883_v26 = vld [vmem:[#allocation16 + $0x238] sm:$0xff]  ;;  %v2901_v27 = vld [vmem:[#allocation16 + $0x2c8] sm:$0xff]  ;;  %v2884_v32 = vld [vmem:[#allocation16 + $0x240] sm:$0xff] }
 0x391   :  { %8103 = vmatprep.subr.bf16.mxu1 %v8102_v30  ;;  %v2900_v30 = vld [vmem:[#allocation16 + $0x2c0] sm:$0xff]  ;;  %v8156_v31 = vpack.c.bf16 %v2883_v26, %v2882_v25  ;;  %v3055_v25 = vld [vmem:[#allocation19 + $0x188] sm:$0xff] }
 0x392   :  { %v8158_v23 = vpack.c.bf16 %v2901_v27, %v2900_v30  ;;  %v3057_v26 = vld [vmem:[#allocation19 + $0x198] sm:$0xff]  ;;  %v3054_v27 = vld [vmem:[#allocation19 + $0x180] sm:$0xff] }
 0x393   :  { %8121 = vmatpush3.bf16.msra.mxu0 %v8120_v29  ;;  %v2892_v29 = vld [vmem:[#allocation16 + $0x280] sm:$0xff]  ;;  %v8190_v30 = vpack.c.bf16 %v3057_v26, %v3055_v25 }
 0x394   :  { %8123 = vmatprep.subr.bf16.mxu0 %v8122_v28  ;;  %8105 = vmatpush3.bf16.msra.mxu1 %v8104_v34  ;;  %v2893_v28 = vld [vmem:[#allocation16 + $0x288] sm:$0xff]  ;;  %v3019_v25 = vld [vmem:[#allocation19 + $0x78] sm:$0xff] }
 0x395   :  { %8107 = vmatprep.subr.bf16.mxu1 %v8106_v35  ;;  %v8142_v39 = vpack.c.bf16 %v2893_v28, %v2892_v29  ;;  %v2885_v34 = vld [vmem:[#allocation16 + $0x248] sm:$0xff]  ;;  %v2902_v35 = vld [vmem:[#allocation16 + $0x2d0] sm:$0xff]  ;;  %v2887_v28 = vld [vmem:[#allocation16 + $0x258] sm:$0xff] }
 0x396   :  { %v8160_v37 = vpack.c.bf16 %v2885_v34, %v2884_v32  ;;  %v2886_v29 = vld [vmem:[#allocation16 + $0x250] sm:$0xff]  ;;  %v3061_v34 = vld [vmem:[#allocation19 + $0x1b8] sm:$0xff] }
 0x397   :  { %8125 = vmatpush3.bf16.msra.mxu0 %v8124_v43  ;;  %v3059_v32 = vld [vmem:[#allocation19 + $0x1a8] sm:$0xff] }
 0x398   :  { %8127 = vmatprep.subr.bf16.mxu0 %v8126_v44  ;;  %8109 = vmatpush3.bf16.msra.mxu1 %v8108_v38  ;;  %v8162_v38 = vpack.c.bf16 %v2903_v36, %v2902_v35  ;;  %v8194_v35 = vpack.c.bf16 %v3061_v34, %v3059_v32  ;;  %v3058_v36 = vld [vmem:[#allocation19 + $0x1a0] sm:$0xff]  ;;  %v3023_v32 = vld [vmem:[#allocation19 + $0x98] sm:$0xff] }
 0x399   :  { %8143 = vmatprep.subr.bf16.mxu1 %v8142_v39  ;;  %v2904_v39 = vld [vmem:[#allocation16 + $0x2e0] sm:$0xff] }
 0x39b   :  { %8129 = vmatpush3.bf16.msra.mxu0 %v8128_v47 }
 0x39c   :  { %8131 = vmatprep.subr.bf16.mxu0 %v8130_v51  ;;  %v2877_v51 = vld [vmem:[#allocation16 + $0x208] sm:$0xff] }
 0x39d   :  { %v8144_v7 = vpack.c.bf16 %v2877_v51, %v2876_v49  ;;  %v2891_v51 = vld [vmem:[#allocation16 + $0x278] sm:$0xff] }
 0x39f   :  { %8133 = vmatpush3.bf16.msra.mxu0 %v8132_v54 }
 0x3a0   :  { %8135 = vmatprep.subr.bf16.mxu0 %v8134_v56 }
 0x3a3   :  { %8137 = vmatpush3.bf16.msra.mxu0 %v8136_v3 }
 0x3a4   :  { %8139 = vmatprep.subr.bf16.mxu0 %v8138_v13  ;;  %v2879_v13 = vld [vmem:[#allocation16 + $0x218] sm:$0xff] }
 0x3a7   :  { %8141 = vmatpush3.bf16.msra.mxu0 %v8140_v6  ;;  %v8148_v6 = vpack.c.bf16 %v2879_v13, %v2878_v12  ;;  %v3044_v12 = vld [vmem:[#allocation19 + $0x130] sm:$0xff]  ;;  %v3047_v13 = vld [vmem:[#allocation19 + $0x148] sm:$0xff] }
 0x45d   :  { %v2629_v40 = vpop.f32.mrb[12].mxu0 }
 0x45e   :  { %v2640_v41 = vmax.f32 %v2629_v40, 0.0  ;;  %v2631_v42 = vpop.f32.mrb[13].mxu0  ;;  %v2905_v40 = vld [vmem:[#allocation16 + $0x2e8] sm:$0xff] }
 0x45f   :  { %v2641_v43 = vmax.f32 %v2631_v42, 0.0  ;;  %v8166_v42 = vpack.c.bf16 %v2905_v40, %v2904_v39  ;;  %v3062_v40 = vld [vmem:[#allocation19 + $0x1c0] sm:$0xff] }
 0x460   :  { %2644 = vst [vmem:[#allocation4] sm:$0xff] %v2640_v41 }
 0x461   :  { %2645 = vst [vmem:[#allocation4 + $0x8] sm:$0xff] %v2641_v43  ;;  %v2635_v44 = vpop.f32.mrb[14].mxu0  ;;  %2865 = vmatprep.mubr.f32.mxu0 %v2641_v43  ;;  %v2888_v43 = vld [vmem:[#allocation16 + $0x260] sm:$0xff] }
 0x462   :  { %v2642_v45 = vmax.f32 %v2635_v44, 0.0  ;;  %v2637_v46 = vpop.f32.mrb[15].mxu0  ;;  %2866 = vmatmul.mubr.f32.vlgmr.msra.gmra.mrb[16].mxu0 %v2640_v41  ;;  %v8164_v41 = vpack.c.bf16 %v2887_v28, %v2886_v29  ;;  %v2889_v44 = vld [vmem:[#allocation16 + $0x268] sm:$0xff]  ;;  %v3065_v28 = vld [vmem:[#allocation19 + $0x1d8] sm:$0xff] }
 0x463   :  { %v2643_v47 = vmax.f32 %v2637_v46, 0.0  ;;  %3134 = vmatprep.mubr.f32.mxu0 %v9555_v0  ;;  %v2907_v46 = vld [vmem:[#allocation16 + $0x2f8] sm:$0xff]  ;;  %v3063_v29 = vld [vmem:[#allocation19 + $0x1c8] sm:$0xff] }
 0x464   :  { %2646 = vst [vmem:[#allocation4 + $0x10] sm:$0x3] %v2642_v45  ;;  %v2906_v45 = vld [vmem:[#allocation16 + $0x2f0] sm:$0xff]  ;;  %v8198_v39 = vpack.c.bf16 %v3065_v28, %v3063_v29  ;;  %v3027_v29 = vld [vmem:[#allocation19 + $0xb8] sm:$0xff] }
 0x465   :  { %2647 = vst [vmem:[#allocation4 + $0x18] sm:$0x3] %v2643_v47  ;;  %v8168_v47 = vpack.c.bf16 %v2889_v44, %v2888_v43  ;;  %v8170_v49 = vpack.c.bf16 %v2907_v46, %v2906_v45  ;;  %v3067_v43 = vld [vmem:[#allocation19 + $0x1e8] sm:$0xff]  ;;  %v3069_v44 = vld [vmem:[#allocation19 + $0x1f8] sm:$0xff]  ;;  %v3066_v46 = vld [vmem:[#allocation19 + $0x1e0] sm:$0xff] }
 0x466   :  { %v8202_v45 = vpack.c.bf16 %v3069_v44, %v3067_v43  ;;  %v3031_v43 = vld [vmem:[#allocation19 + $0xd8] sm:$0xff] }
 0x467   :  { %v2682_v53 = vld [vmem:[#allocation4] sm:$0xfe] }
 0x468   :  { %v2683_v50 = vld [vmem:[#allocation4 + $0x8] sm:$0xfe]  ;;  %v2723_v62 = vrot.slane %v2682_v53, 1 }
 0x469   :  { %v2872_v55 = vld [vmem:[#allocation4 + $0x8] sm:$0xfc]  ;;  %v2726_v58 = vrot.slane %v2683_v50, 1  ;;  %v2890_v50 = vld [vmem:[#allocation16 + $0x270] sm:$0xff] }
 0x46a   :  { %v2915_v10 = vrot.slane %v2872_v55, 2  ;;  %v8172_v53 = vpack.c.bf16 %v2891_v51, %v2890_v50  ;;  %v3005_v50 = vld [vmem:[#allocation19 + $0x8] sm:$0xff]  ;;  %v3007_v51 = vld [vmem:[#allocation19 + $0x18] sm:$0xff] }
 0x46b   :  { %v2684_v54 = vld [vmem:[#allocation4 + $0x10] sm:$0x1] }
 0x46c   :  { %v2685_v33 = vld [vmem:[#allocation4 + $0x18] sm:$0x1]  ;;  %v2724_v56 = vrot.slane %v2684_v54, 1  ;;  %v2873_v52 = vld [vmem:[#allocation4 + $0x10] sm:$0x3] }
 0x46d   :  { %v2874_v59 = vld [vmem:[#allocation4 + $0x18] sm:$0x3]  ;;  %v2727_v60 = vrot.slane %v2685_v33, 1  ;;  %v2871_v54 = vld [vmem:[#allocation4] sm:$0xfc]  ;;  %v2913_v55 = vrot.slane %v2873_v52, 2  ;;  %v8206_v52 = vpack.c.bf16 %v3007_v51, %v3005_v50 }
 0x46e   :  { %v2916_v3 = vrot.slane %v2874_v59, 2  ;;  %v2725_v14 = vsel %vm1174_vm6, %v2723_v62, %v2724_v56  ;;  %v2912_v33 = vrot.slane %v2871_v54, 2  ;;  %v3039_v59 = vld [vmem:[#allocation19 + $0x108] sm:$0xff]  ;;  %v3035_v50 = vld [vmem:[#allocation19 + $0xf8] sm:$0xff] }
 0x46f   :  { %v2728_v9 = vsel %vm1174_vm6, %v2726_v58, %v2727_v60  ;;  %v3038_v58 = vld [vmem:[#allocation19 + $0x100] sm:$0xff]  ;;  %v8174_v60 = vpack.c.bf16 %v3041_v57, %v3039_v59  ;;  %v3043_v62 = vld [vmem:[#allocation19 + $0x128] sm:$0xff] }
 0x470   :  { %2795 = vmatprep.mubr.f32.mxu1 %v2728_v9  ;;  %v2917_v16 = vsel %vm2047_vm8, %v2915_v10, %v2916_v3  ;;  %v2914_v56 = vsel %vm2047_vm8, %v2912_v33, %v2913_v55  ;;  %v3040_v3 = vld [vmem:[#allocation19 + $0x110] sm:$0xff] }
 0x471   :  { %2796 = vmatmul.mubr.f32.vlgmr.msra.gmra.mrb[26].mxu1 %v2725_v14  ;;  %v8176_v9 = vpack.c.bf16 %v3040_v3, %v3038_v58  ;;  %8175 = vmatprep.subr.bf16.mxu0 %v8174_v60  ;;  %v3049_v14 = vld [vmem:[#allocation19 + $0x158] sm:$0xff] }
 0x472   :  { %8145 = vmatpush3.bf16.msra.mxu1 %v8144_v7  ;;  %2984 = vmatprep.mubr.f32.mxu1 %v2917_v16  ;;  %v3045_v7 = vld [vmem:[#allocation19 + $0x138] sm:$0xff]  ;;  %v8182_v63 = vpack.c.bf16 %v3049_v14, %v3047_v13  ;;  %v3046_v16 = vld [vmem:[#allocation19 + $0x140] sm:$0xff] }
 0x473   :  { %8147 = vmatprep.subr.bf16.mxu1 %v8146_v11  ;;  %v8178_v10 = vpack.c.bf16 %v3045_v7, %v3043_v62  ;;  %v3042_v11 = vld [vmem:[#allocation19 + $0x120] sm:$0xff]  ;;  %8177 = vmatpush1.bf16.msra.mxu0 %v8176_v9  ;;  %v7075_v62 = vld [vmem:[#allocation17] ss:$0 sm:$0xff] }
 0x474   :  { %v8180_v15 = vpack.c.bf16 %v3044_v12, %v3042_v11  ;;  %v3004_v9 = vld [vmem:[#allocation19] sm:$0xff]  ;;  %v3009_v11 = vld [vmem:[#allocation19 + $0x28] sm:$0xff]  ;;  %v3011_v12 = vld [vmem:[#allocation19 + $0x38] sm:$0xff] }
 0x475   :  { %8179 = vmatprep.subr.bf16.mxu0 %v8178_v10  ;;  %v3006_v10 = vld [vmem:[#allocation19 + $0x10] sm:$0xff] }
 0x476   :  { %8149 = vmatpush3.bf16.msra.mxu1 %v8148_v6  ;;  %v3048_v6 = vld [vmem:[#allocation19 + $0x150] sm:$0xff]  ;;  %v8208_v14 = vpack.c.bf16 %v3006_v10, %v3004_v9  ;;  %v3218_v9 = vld [vmem:[#allocation19 + $0x220] sm:$0xff] }
 0x477   :  { %8151 = vmatprep.subr.bf16.mxu1 %v8150_v5  ;;  %v3051_v5 = vld [vmem:[#allocation19 + $0x168] sm:$0xff]  ;;  %8181 = vmatpush1.bf16.msra.mxu0 %v8180_v15  ;;  %v8184_v21 = vpack.c.bf16 %v3048_v6, %v3046_v16  ;;  %v3008_v16 = vld [vmem:[#allocation19 + $0x20] sm:$0xff]  ;;  %v3010_v6 = vld [vmem:[#allocation19 + $0x30] sm:$0xff] }
 0x478   :  { %8183 = vmatprep.subr.bf16.mxu0 %v8182_v63  ;;  %v8186_v22 = vpack.c.bf16 %v3053_v8, %v3051_v5  ;;  %v8210_v63 = vpack.c.bf16 %v3011_v12, %v3009_v11  ;;  %v3013_v5 = vld [vmem:[#allocation19 + $0x48] sm:$0xff]  ;;  %v3015_v8 = vld [vmem:[#allocation19 + $0x58] sm:$0xff]  ;;  %v3220_v10 = vld [vmem:[#allocation19 + $0x230] sm:$0xff] }
 0x479   :  { %v3223_v12 = vld [vmem:[#allocation19 + $0x248] sm:$0xff] }
 0x47a   :  { %8153 = vmatpush3.bf16.msra.mxu1 %v8152_v17  ;;  %v3052_v17 = vld [vmem:[#allocation19 + $0x170] sm:$0xff] }
 0x47b   :  { %8155 = vmatprep.subr.bf16.mxu1 %v8154_v24  ;;  %8185 = vmatpush1.bf16.msra.mxu0 %v8184_v21  ;;  %v8188_v24 = vpack.c.bf16 %v3052_v17, %v3050_v20  ;;  %v8212_v21 = vpack.c.bf16 %v3010_v6, %v3008_v16  ;;  %v3012_v20 = vld [vmem:[#allocation19 + $0x40] sm:$0xff]  ;;  %v3014_v17 = vld [vmem:[#allocation19 + $0x50] sm:$0xff]  ;;  %v3227_v6 = vld [vmem:[#allocation19 + $0x268] sm:$0xff] }
 0x47c   :  { %8187 = vmatprep.subr.bf16.mxu0 %v8186_v22  ;;  %v8214_v22 = vpack.c.bf16 %v3015_v8, %v3013_v5  ;;  %v8216_v26 = vpack.c.bf16 %v3014_v17, %v3012_v20  ;;  %v3224_v16 = vld [vmem:[#allocation19 + $0x250] sm:$0xff]  ;;  %v3229_v5 = vld [vmem:[#allocation19 + $0x278] sm:$0xff]  ;;  %v3231_v17 = vld [vmem:[#allocation19 + $0x288] sm:$0xff] }
 0x47d   :  { %v3228_v20 = vld [vmem:[#allocation19 + $0x270] sm:$0xff] }
 0x47e   :  { %8157 = vmatpush3.bf16.msra.mxu1 %v8156_v31  ;;  %v3056_v31 = vld [vmem:[#allocation19 + $0x190] sm:$0xff] }
 0x47f   :  { %8159 = vmatprep.subr.bf16.mxu1 %v8158_v23  ;;  %8189 = vmatpush1.bf16.msra.mxu0 %v8188_v24  ;;  %v8192_v23 = vpack.c.bf16 %v3056_v31, %v3054_v27  ;;  %v3017_v24 = vld [vmem:[#allocation19 + $0x68] sm:$0xff]  ;;  %v3016_v27 = vld [vmem:[#allocation19 + $0x60] sm:$0xff]  ;;  %v3018_v31 = vld [vmem:[#allocation19 + $0x70] sm:$0xff] }
 0x480   :  { %8191 = vmatprep.subr.bf16.mxu0 %v8190_v30  ;;  %v8218_v30 = vpack.c.bf16 %v3019_v25, %v3017_v24  ;;  %v8220_v34 = vpack.c.bf16 %v3018_v31, %v3016_v27  ;;  %v3233_v24 = vld [vmem:[#allocation19 + $0x298] sm:$0xff]  ;;  %v3232_v27 = vld [vmem:[#allocation19 + $0x290] sm:$0xff]  ;;  %v3235_v31 = vld [vmem:[#allocation19 + $0x2a8] sm:$0xff] }
 0x482   :  { %8161 = vmatpush3.bf16.msra.mxu1 %v8160_v37  ;;  %v3060_v37 = vld [vmem:[#allocation19 + $0x1b0] sm:$0xff] }
 0x483   :  { %8163 = vmatprep.subr.bf16.mxu1 %v8162_v38  ;;  %8193 = vmatpush1.bf16.msra.mxu0 %v8192_v23  ;;  %v8196_v38 = vpack.c.bf16 %v3060_v37, %v3058_v36  ;;  %v3021_v23 = vld [vmem:[#allocation19 + $0x88] sm:$0xff]  ;;  %v3020_v36 = vld [vmem:[#allocation19 + $0x80] sm:$0xff]  ;;  %v3022_v37 = vld [vmem:[#allocation19 + $0x90] sm:$0xff] }
 0x484   :  { %8195 = vmatprep.subr.bf16.mxu0 %v8194_v35  ;;  %v8222_v35 = vpack.c.bf16 %v3023_v32, %v3021_v23  ;;  %v8224_v28 = vpack.c.bf16 %v3022_v37, %v3020_v36  ;;  %v3237_v23 = vld [vmem:[#allocation19 + $0x2b8] sm:$0xff]  ;;  %v3236_v36 = vld [vmem:[#allocation19 + $0x2b0] sm:$0xff]  ;;  %v3239_v37 = vld [vmem:[#allocation19 + $0x2c8] sm:$0xff] }
 0x486   :  { %8165 = vmatpush3.bf16.msra.mxu1 %v8164_v41  ;;  %v3064_v41 = vld [vmem:[#allocation19 + $0x1d0] sm:$0xff] }
 0x487   :  { %8167 = vmatprep.subr.bf16.mxu1 %v8166_v42  ;;  %8197 = vmatpush1.bf16.msra.mxu0 %v8196_v38  ;;  %v8200_v42 = vpack.c.bf16 %v3064_v41, %v3062_v40  ;;  %v3025_v38 = vld [vmem:[#allocation19 + $0xa8] sm:$0xff]  ;;  %v3024_v40 = vld [vmem:[#allocation19 + $0xa0] sm:$0xff]  ;;  %v3026_v41 = vld [vmem:[#allocation19 + $0xb0] sm:$0xff] }
 0x488   :  { %8199 = vmatprep.subr.bf16.mxu0 %v8198_v39  ;;  %v8226_v39 = vpack.c.bf16 %v3027_v29, %v3025_v38  ;;  %v8228_v44 = vpack.c.bf16 %v3026_v41, %v3024_v40  ;;  %v3241_v38 = vld [vmem:[#allocation19 + $0x2d8] sm:$0xff]  ;;  %v3240_v40 = vld [vmem:[#allocation19 + $0x2d0] sm:$0xff]  ;;  %v3243_v41 = vld [vmem:[#allocation19 + $0x2e8] sm:$0xff] }
 0x48a   :  { %8169 = vmatpush3.bf16.msra.mxu1 %v8168_v47  ;;  %v3068_v47 = vld [vmem:[#allocation19 + $0x1f0] sm:$0xff] }
 0x48b   :  { %8171 = vmatprep.subr.bf16.mxu1 %v8170_v49  ;;  %8201 = vmatpush1.bf16.msra.mxu0 %v8200_v42  ;;  %v8204_v49 = vpack.c.bf16 %v3068_v47, %v3066_v46  ;;  %v3029_v42 = vld [vmem:[#allocation19 + $0xc8] sm:$0xff]  ;;  %v3028_v46 = vld [vmem:[#allocation19 + $0xc0] sm:$0xff]  ;;  %v3030_v47 = vld [vmem:[#allocation19 + $0xd0] sm:$0xff] }
 0x48c   :  { %8203 = vmatprep.subr.bf16.mxu0 %v8202_v45  ;;  %v8230_v45 = vpack.c.bf16 %v3031_v43, %v3029_v42  ;;  %v8232_v51 = vpack.c.bf16 %v3030_v47, %v3028_v46  ;;  %v3245_v42 = vld [vmem:[#allocation19 + $0x2f8] sm:$0xff]  ;;  %v3244_v46 = vld [vmem:[#allocation19 + $0x2f0] sm:$0xff] }
 0x48e   :  { %8173 = vmatpush3.bf16.msra.mxu1 %v8172_v53 }
 0x48f   :  { %7504 = vmatprep.subr.mxu1 %v9555_v0  ;;  %8205 = vmatpush1.bf16.msra.mxu0 %v8204_v49  ;;  %v3033_v49 = vld [vmem:[#allocation19 + $0xe8] sm:$0xff] }
 0x490   :  { %8207 = vmatprep.subr.bf16.mxu0 %v8206_v52  ;;  %v8234_v52 = vpack.c.bf16 %v3035_v50, %v3033_v49  ;;  %v3319_v50 = vld [vmem:[#allocation20] sm:$0x3] }
 0x491   :  { %2985 = vmatmul.mubr.f32.vlgmr.msra.gmra.mrb[28].mxu1 %v2914_v56 }
 0x492   :  { %7506 = vmatprep.mubr.msk.f32.mxu1 %vm9558_vm4, %v9555_v0 }
 0x535   :  { %v7228_v53 = vpop.f32.mrb[16].mxu0 }
 0x536   :  { %v7229_v54 = vpop.f32.mrb[17].mxu0 }
 0x537   :  { %v7230_v55 = vadd.f32 %v7229_v54, %v7228_v53  ;;  %v3032_v53 = vld [vmem:[#allocation19 + $0xe0] sm:$0xff]  ;;  %v3034_v54 = vld [vmem:[#allocation19 + $0xf0] sm:$0xff] }
 0x544   :  { %v7193_v33 = vpop.f32.mrb[26].mxu1 }
 0x545   :  { %v7194_v56 = vpop.f32.mrb[27].mxu1 }
 0x546   :  { %v7195_v59 = vadd.f32 %v7194_v56, %v7193_v33  ;;  %v3217_v33 = vld [vmem:[#allocation19 + $0x218] sm:$0xff]  ;;  %v8236_v56 = vpack.c.bf16 %v3034_v54, %v3032_v53 }
 0x548   :  { %v2868_v57 = vadd.f32 %v7230_v55, %v7195_v59  ;;  %v3215_v55 = vld [vmem:[#allocation19 + $0x208] sm:$0xff] }
 0x549   :  { %v8238_v59 = vpack.c.bf16 %v3217_v33, %v3215_v55 }
 0x564   :  { %v7263_v58 = vpop.f32.mrb[28].mxu1 }
 0x565   :  { %v7264_v60 = vpop.f32.mrb[29].mxu1 }
 0x566   :  { %v7265_v3 = vadd.f32 %v7264_v60, %v7263_v58  ;;  %v3216_v58 = vld [vmem:[#allocation19 + $0x210] sm:$0xff]  ;;  %v3219_v60 = vld [vmem:[#allocation19 + $0x228] sm:$0xff] }
 0x568   :  { %v2990_v7 = vadd.f32 %v7265_v3, %v2868_v57  ;;  %v3214_v57 = vld [vmem:[#allocation19 + $0x200] sm:$0xff]  ;;  %v3221_v3 = vld [vmem:[#allocation19 + $0x238] sm:$0xff] }
 0x56a   :  { %v2998_v13 = vadd.f32 %v7075_v62, %v2990_v7  ;;  %v8240_v62 = vpack.c.bf16 %v3216_v58, %v3214_v57  ;;  %v8242_v7 = vpack.c.bf16 %v3221_v3, %v3219_v60  ;;  %v3461_v3 = vld [vmem:[#allocation8 + $0x38] sm:$0xff] }
 0x56c   :  { %v3001_v15 = vmax.f32 %v2998_v13, 0.0  ;;  %v3225_v13 = vld [vmem:[#allocation19 + $0x258] sm:$0xff] }
 0x56e   :  { %3002 = vst [vmem:[#allocation5 + $0x1] sm:$0xff] %v3001_v15  ;;  %3135 = vmatmul.mubr.f32.vlgmr.msra.gmra.mrb[18].mxu0 %v3001_v15  ;;  %v8246_v15 = vpack.c.bf16 %v3225_v13, %v3223_v12 }
 0x56f   :  { %8209 = vmatpush1.bf16.msra.mxu0 %v8208_v14  ;;  %3205 = vmatprep.mubr.f32.mxu0 %v9555_v0  ;;  %v8244_v14 = vpack.c.bf16 %v3220_v10, %v3218_v9  ;;  %v3460_v10 = vld [vmem:[#allocation8 + $0x30] sm:$0xff] }
 0x570   :  { %8211 = vmatprep.subr.bf16.mxu0 %v8210_v63  ;;  %v3222_v63 = vld [vmem:[#allocation19 + $0x240] sm:$0xff] }
 0x571   :  { %v8248_v8 = vpack.c.bf16 %v3224_v16, %v3222_v63  ;;  %v3462_v16 = vld [vmem:[#allocation8 + $0x40] sm:$0xff] }
 0x573   :  { %8213 = vmatpush1.bf16.msra.mxu0 %v8212_v21  ;;  %v8250_v21 = vpack.c.bf16 %v3229_v5, %v3227_v6  ;;  %v3465_v6 = vld [vmem:[#allocation8 + $0x58] sm:$0xf]  ;;  %v3452_v5 = vld [vmem:[#allocation8 + $0x8] sm:$0xff] }
 0x574   :  { %8215 = vmatprep.subr.bf16.mxu0 %v8214_v22  ;;  %v3226_v22 = vld [vmem:[#allocation19 + $0x260] sm:$0xff] }
 0x575   :  { %v3003_v11 = vld [vmem:[#allocation5] sm:$0xff]  ;;  %v8252_v25 = vpack.c.bf16 %v3228_v20, %v3226_v22  ;;  %v8277_v22 = vpack.c.bf16 %v3465_v6, %v3462_v16  ;;  %v4270_v6 = vld [vmem:[#allocation13 + $0x5b8] sm:$0xff] }
 0x576   :  { %v3212_v49 = vld [vmem:[#allocation5 + $0x2] sm:$0xff] }
 0x577   :  { %8217 = vmatpush1.bf16.msra.mxu0 %v8216_v26  ;;  %v8254_v26 = vpack.c.bf16 %v3233_v24, %v3231_v17  ;;  %v7084_v17 = vld [vmem:[%s10497_s0 + $0x21] sm:$0xff]  ;;  %v7085_v24 = vld [vmem:[%s10497_s0 + $0x29] sm:$0x3f] }
 0x578   :  { %8219 = vmatprep.subr.bf16.mxu0 %v8218_v30  ;;  %v3230_v30 = vld [vmem:[#allocation19 + $0x280] sm:$0xff] }
 0x579   :  { %v8256_v32 = vpack.c.bf16 %v3232_v27, %v3230_v30  ;;  %v3453_v27 = vld [vmem:[#allocation8 + $0x10] sm:$0xff] }
 0x57b   :  { %8221 = vmatpush1.bf16.msra.mxu0 %v8220_v34  ;;  %v8258_v34 = vpack.c.bf16 %v3237_v23, %v3235_v31  ;;  %v3456_v31 = vld [vmem:[#allocation8 + $0x28] sm:$0xf] }
 0x57c   :  { %8223 = vmatprep.subr.bf16.mxu0 %v8222_v35  ;;  %v3234_v35 = vld [vmem:[#allocation19 + $0x2a0] sm:$0xff]  ;;  %v3832_v23 = vld [vmem:[#allocation8 + $0x68] sm:$0xff] }
 0x57d   :  { %v8260_v29 = vpack.c.bf16 %v3236_v36, %v3234_v35  ;;  %v8287_v35 = vpack.c.bf16 %v3456_v31, %v3453_v27  ;;  %v4278_v31 = vld [vmem:[#allocation13 + $0x5f8] sm:$0xff] }
 0x57f   :  { %8225 = vmatpush1.bf16.msra.mxu0 %v8224_v28  ;;  %v8262_v28 = vpack.c.bf16 %v3241_v38, %v3239_v37  ;;  %v7081_v37 = vld [vmem:[%s10497_s0 + $0x20] sm:$0xff]  ;;  %v7082_v38 = vld [vmem:[%s10497_s0 + $0x28] sm:$0x3f] }
 0x580   :  { %8227 = vmatprep.subr.bf16.mxu0 %v8226_v39  ;;  %v3238_v39 = vld [vmem:[#allocation19 + $0x2c0] sm:$0xff] }
 0x581   :  { %v8264_v43 = vpack.c.bf16 %v3240_v40, %v3238_v39  ;;  %v3833_v40 = vld [vmem:[#allocation8 + $0x70] sm:$0xff] }
 0x583   :  { %8229 = vmatpush1.bf16.msra.mxu0 %v8228_v44  ;;  %v8266_v44 = vpack.c.bf16 %v3245_v42, %v3243_v41  ;;  %v3836_v41 = vld [vmem:[#allocation8 + $0x88] sm:$0xf] }
 0x584   :  { %8231 = vmatprep.subr.bf16.mxu0 %v8230_v45  ;;  %v3242_v45 = vld [vmem:[#allocation19 + $0x2e0] sm:$0xff]  ;;  %v7104_v42 = vld [vmem:[%s10497_s0 + $0x1a] sm:$0xff] }
 0x585   :  { %v8268_v47 = vpack.c.bf16 %v3244_v46, %v3242_v45  ;;  %v7106_v45 = vld [vmem:[%s10497_s0 + $0x2a] sm:$0x3f]  ;;  %v4252_v46 = vld [vmem:[#allocation13 + $0x528] sm:$0xff] }
 0x587   :  { %8233 = vmatpush1.bf16.msra.mxu0 %v8232_v51  ;;  %v3324_v51 = vrot.slane %v3319_v50, %v9906_v2 }
 0x588   :  { %8235 = vmatprep.subr.bf16.mxu0 %v8234_v52  ;;  %v3328_v52 = vrot.slane %v3319_v50, %v9909_v4  ;;  %v4254_v50 = vld [vmem:[#allocation13 + $0x538] sm:$0xff] }
 0x58b   :  { %8237 = vmatpush1.bf16.msra.mxu0 %v8236_v56 }
 0x58c   :  { %8239 = vmatprep.subr.bf16.mxu0 %v8238_v59 }
 0x58e   :  { %3206 = vmatmul.mubr.f32.vlgmr.msra.gmra.mrb[18].mxu0 %v3003_v11  ;;  %v3463_v11 = vld [vmem:[#allocation8 + $0x48] sm:$0xf] }
 0x58f   :  { %8241 = vmatpush1.bf16.msra.mxu0 %v8240_v62  ;;  %3310 = vmatprep.mubr.f32.mxu0 %v9555_v0  ;;  %v3464_v62 = vld [vmem:[#allocation8 + $0x50] sm:$0xf]  ;;  %v8273_v63 = vpack.c.bf16 %v3463_v11, %v3460_v10  ;;  %v4257_v10 = vld [vmem:[#allocation13 + $0x550] sm:$0xff] }
 0x590   :  { %8243 = vmatprep.subr.bf16.mxu0 %v8242_v7  ;;  %v8270_v13 = vpack.c.bf16 %v3464_v62, %v3461_v3 }
 0x593   :  { %8245 = vmatpush1.bf16.msra.mxu0 %v8244_v14 }
 0x594   :  { %8247 = vmatprep.subr.bf16.mxu0 %v8246_v15  ;;  %v3348_v15 = vld [vmem:[#allocation23] sm:$0xf] }
 0x597   :  { %8249 = vmatpush1.bf16.msra.mxu0 %v8248_v8  ;;  %v3455_v8 = vld [vmem:[#allocation8 + $0x20] sm:$0xf] }
 0x598   :  { %8251 = vmatprep.subr.bf16.mxu0 %v8250_v21  ;;  %v7083_v21 = vld [vmem:[%s10497_s0 + $0x19] sm:$0xff]  ;;  %v8280_v20 = vpack.c.bf16 %v3455_v8, %v3452_v5  ;;  %v4263_v5 = vld [vmem:[#allocation13 + $0x580] sm:$0xff] }
 0x599   :  { %v4267_v8 = vld [vmem:[#allocation13 + $0x5a0] sm:$0xff] }
 0x59b   :  { %8253 = vmatpush1.bf16.msra.mxu0 %v8252_v25  ;;  %v3451_v25 = vld [vmem:[#allocation8] sm:$0xff] }
 0x59c   :  { %8255 = vmatprep.subr.bf16.mxu0 %v8254_v26  ;;  %v3454_v26 = vld [vmem:[#allocation8 + $0x18] sm:$0xf] }
 0x59d   :  { %v8283_v30 = vpack.c.bf16 %v3454_v26, %v3451_v25  ;;  %v4272_v25 = vld [vmem:[#allocation13 + $0x5c8] sm:$0xff] }
 0x59e   :  { %v4276_v26 = vld [vmem:[#allocation13 + $0x5e8] sm:$0xff] }
 0x59f   :  { %8257 = vmatpush1.bf16.msra.mxu0 %v8256_v32  ;;  %v3835_v32 = vld [vmem:[#allocation8 + $0x80] sm:$0xf]  ;;  %v8312_v27 = vpack.c.bf16 %v4276_v26, %v4272_v25  ;;  %v4309_v25 = vld [vmem:[#allocation13 + $0x6f0] sm:$0xff] }
 0x5a0   :  { %8259 = vmatprep.subr.bf16.mxu0 %v8258_v34  ;;  %v7080_v34 = vld [vmem:[%s10497_s0 + $0x18] sm:$0xff]  ;;  %v8290_v36 = vpack.c.bf16 %v3835_v32, %v3832_v23  ;;  %v4271_v23 = vld [vmem:[#allocation13 + $0x5c0] sm:$0xff] }
 0x5a1   :  { %v4275_v32 = vld [vmem:[#allocation13 + $0x5e0] sm:$0xff] }
 0x5a3   :  { %8261 = vmatpush1.bf16.msra.mxu0 %v8260_v29  ;;  %v3831_v29 = vld [vmem:[#allocation8 + $0x60] sm:$0xff] }
 0x5a4   :  { %8263 = vmatprep.subr.bf16.mxu0 %v8262_v28  ;;  %v3834_v28 = vld [vmem:[#allocation8 + $0x78] sm:$0xf] }
 0x5a5   :  { %v8293_v39 = vpack.c.bf16 %v3834_v28, %v3831_v29  ;;  %v4280_v29 = vld [vmem:[#allocation13 + $0x608] sm:$0xff] }
 0x5a6   :  { %v4284_v28 = vld [vmem:[#allocation13 + $0x628] sm:$0xff] }
 0x5a7   :  { %8265 = vmatpush1.bf16.msra.mxu0 %v8264_v43  ;;  %v8297_v43 = vpack.c.bf16 %v3836_v41, %v3833_v40  ;;  %v8316_v40 = vpack.c.bf16 %v4284_v28, %v4280_v29  ;;  %v4286_v41 = vld [vmem:[#allocation13 + $0x638] sm:$0xff]  ;;  %v4313_v29 = vld [vmem:[#allocation13 + $0x710] sm:$0xff] }
 0x5a8   :  { %8267 = vmatprep.subr.bf16.mxu0 %v8266_v44  ;;  %v7105_v44 = vld [vmem:[%s10497_s0 + $0x22] sm:$0xff] }
 0x5a9   :  { %v4317_v28 = vld [vmem:[#allocation13 + $0x730] sm:$0xff] }
 0x5ab   :  { %8269 = vmatpush1.bf16.msra.mxu0 %v8268_v47  ;;  %v4250_v47 = vld [vmem:[#allocation13 + $0x518] sm:$0xff] }
 0x5ae   :  { %3311 = vmatmul.mubr.f32.vlgmr.msra.gmra.mrb[18].mxu0 %v3212_v49  ;;  %v8300_v49 = vpack.c.bf16 %v4252_v46, %v4248_v1  ;;  %v4281_v1 = vld [vmem:[#allocation13 + $0x610] sm:$0xff] }
 0x5af   :  { %v4285_v46 = vld [vmem:[#allocation13 + $0x630] sm:$0xff] }
 0x681   :  { %v3312_v53 = vpop.f32.mrb[18].mxu0 }
 0x682   :  { %v3331_v54 = vadd.f32 %v3324_v51, %v3312_v53  ;;  %v3314_v55 = vpop.f32.mrb[19].mxu0  ;;  %v4247_v51 = vld [vmem:[#allocation13 + $0x500] sm:$0xff]  ;;  %v8380_v53 = vpack.c.bf16 %v4254_v50, %v4250_v47  ;;  %v4288_v47 = vld [vmem:[#allocation13 + $0x648] sm:$0xff] }
 0x683   :  { %v3332_v33 = vadd.f32 %v3328_v52, %v3314_v55  ;;  %v4251_v52 = vld [vmem:[#allocation13 + $0x520] sm:$0xff]  ;;  %v4249_v55 = vld [vmem:[#allocation13 + $0x510] sm:$0xff]  ;;  %v4292_v50 = vld [vmem:[#allocation13 + $0x668] sm:$0xff] }
 0x684   :  { %3333 = vst [vmem:[#allocation6] sm:$0xff] %v3331_v54  ;;  %v8302_v54 = vpack.c.bf16 %v4251_v52, %v4247_v51  ;;  %8381 = vmatprep.subr.bf16.mxu0 %v8380_v53  ;;  %v4290_v51 = vld [vmem:[#allocation13 + $0x658] sm:$0xff]  ;;  %v8320_v53 = vpack.c.bf16 %v4292_v50, %v4288_v47  ;;  %v4325_v50 = vld [vmem:[#allocation13 + $0x770] sm:$0xff] }
 0x685   :  { %3334 = vst [vmem:[#allocation6 + $0x8] sm:$0xff] %v3332_v33  ;;  %v4253_v33 = vld [vmem:[#allocation13 + $0x530] sm:$0xff]  ;;  %v4294_v52 = vld [vmem:[#allocation13 + $0x678] sm:$0xff] }
 0x68b   :  { %v3337_v56 = vld [vmem:[#allocation6] sm:$0xfe] }
 0x68c   :  { %v3338_v59 = vld [vmem:[#allocation6 + $0x8] sm:$0xfe]  ;;  %v3341_v57 = vrot.slane %v3337_v56, 1  ;;  %v3335_v58 = vld [vmem:[#allocation6] sm:$0x7f] }
 0x68d   :  { %v3342_v60 = vrot.slane %v3338_v59, 1  ;;  %v3336_v7 = vld [vmem:[#allocation6 + $0x8] sm:$0x7f]  ;;  %v8382_v59 = vpack.c.bf16 %v4253_v33, %v4249_v55  ;;  %v4287_v55 = vld [vmem:[#allocation13 + $0x640] sm:$0xff] }
 0x68e   :  { %v3345_v9 = vmax.f32 %v3335_v58, %v3341_v57  ;;  %v4256_v56 = vld [vmem:[#allocation13 + $0x548] sm:$0xff]  ;;  %v4258_v58 = vld [vmem:[#allocation13 + $0x558] sm:$0xff]  ;;  %v4291_v33 = vld [vmem:[#allocation13 + $0x660] sm:$0xff] }
 0x68f   :  { %v3346_v12 = vmax.f32 %v3336_v7, %v3342_v60  ;;  %v4260_v57 = vld [vmem:[#allocation13 + $0x568] sm:$0xff]  ;;  %v4262_v60 = vld [vmem:[#allocation13 + $0x578] sm:$0xff]  ;;  %v4255_v7 = vld [vmem:[#allocation13 + $0x540] sm:$0xff]  ;;  %8383 = vmatpush1.bf16.msra.mxu0 %v8382_v59  ;;  %v8322_v59 = vpack.c.bf16 %v4291_v33, %v4287_v55 }
 0x690   :  { %v8304_v3 = vpack.c.bf16 %v4260_v57, %v4256_v56  ;;  %v8384_v62 = vpack.c.bf16 %v4262_v60, %v4258_v58  ;;  %v4289_v56 = vld [vmem:[#allocation13 + $0x650] sm:$0xff]  ;;  %v4296_v58 = vld [vmem:[#allocation13 + $0x688] sm:$0xff]  ;;  %v4334_v33 = vld [vmem:[#allocation13 + $0x7b8] sm:$0xff] }
 0x691   :  { %v3347_v14 = vmax.f32 %v3345_v9, %v3346_v12  ;;  %v4259_v9 = vld [vmem:[#allocation13 + $0x560] sm:$0xff]  ;;  %v4261_v12 = vld [vmem:[#allocation13 + $0x570] sm:$0xff]  ;;  %v4300_v60 = vld [vmem:[#allocation13 + $0x6a8] sm:$0xff] }
 0x692   :  { %v8306_v11 = vpack.c.bf16 %v4259_v9, %v4255_v7  ;;  %8385 = vmatprep.subr.bf16.mxu0 %v8384_v62  ;;  %v4293_v57 = vld [vmem:[#allocation13 + $0x670] sm:$0xff]  ;;  %v8324_v62 = vpack.c.bf16 %v4300_v60, %v4296_v58  ;;  %v4298_v7 = vld [vmem:[#allocation13 + $0x698] sm:$0xff] }
 0x693   :  { %7505 = vmatpush3.msk.msra.mxu1 %vm1174_vm6, %v3347_v14  ;;  %v4264_v14 = vld [vmem:[#allocation13 + $0x588] sm:$0xff]  ;;  %v4302_v9 = vld [vmem:[#allocation13 + $0x6b8] sm:$0xff]  ;;  %v4329_v60 = vld [vmem:[#allocation13 + $0x790] sm:$0xff] }
 0x694   :  { %7507 = vmatmul.mubr.msk.f32.vlgmr.msra.gmra.mrb[30].mxu1 %vm3349_vm11, %v3348_v15  ;;  %8272 = vmatprep.subr.msk.bf16.mxu1 %vm9804_vm2, %v8270_v13  ;;  %v8386_v13 = vpack.c.bf16 %v4261_v12, %v4257_v10  ;;  %v4268_v15 = vld [vmem:[#allocation13 + $0x5a8] sm:$0xff]  ;;  %v4295_v10 = vld [vmem:[#allocation13 + $0x680] sm:$0xff] }
 0x695   :  { %8275 = vmatpush1.bf16.msk.msra.mxu1 %vm9804_vm2, %v8273_v63  ;;  %3548 = vmatprep.mubr.f32.mxu1 %v9555_v0  ;;  %v4266_v63 = vld [vmem:[#allocation13 + $0x598] sm:$0xff]  ;;  %v8308_v16 = vpack.c.bf16 %v4268_v15, %v4264_v14  ;;  %v4299_v12 = vld [vmem:[#allocation13 + $0x6a0] sm:$0xff]  ;;  %v4301_v14 = vld [vmem:[#allocation13 + $0x6b0] sm:$0xff] }
 0x696   :  { %8276 = vmatprep.subr.bf16.mxu1 %v9557_v18  ;;  %8387 = vmatpush1.bf16.msra.mxu0 %v8386_v13  ;;  %v4297_v13 = vld [vmem:[#allocation13 + $0x690] sm:$0xff]  ;;  %v8326_v15 = vpack.c.bf16 %v4299_v12, %v4295_v10  ;;  %v4338_v10 = vld [vmem:[#allocation13 + $0x7d8] sm:$0xff] }
 0x697   :  { %v4342_v12 = vld [vmem:[#allocation13 + $0x7f8] sm:$0xff] }
 0x698   :  { %7088 = vmatmul.mubr.msk.f32.vlgmr.msra.gmra.mrb[32].mxu1 %vm219_vm3, %v7083_v21 }
 0x699   :  { %3554 = vmatprep.mubr.f32.mxu1 %v9555_v0  ;;  %8279 = vmatpush3.bf16.msk.msra.mxu1 %vm9804_vm2, %v8277_v22  ;;  %v8310_v22 = vpack.c.bf16 %v4267_v8, %v4263_v5  ;;  %v8406_v5 = vpack.c.bf16 %v4301_v14, %v4297_v13  ;;  %v4335_v13 = vld [vmem:[#allocation13 + $0x7c0] sm:$0xff]  ;;  %v8424_v14 = vpack.c.bf16 %v4342_v12, %v4338_v10  ;;  %v4380_v12 = vld [vmem:[#allocation13 + $0x928] sm:$0xff] }
 0x69a   :  { %8282 = vmatprep.subr.msk.bf16.mxu1 %vm9804_vm2, %v8280_v20  ;;  %v4265_v20 = vld [vmem:[#allocation13 + $0x590] sm:$0xff] }
 0x69c   :  { %7089 = vmatmul.mubr.msk.f32.gmra.mrb[34].mxu1 %vm219_vm3, %v7084_v17 }
 0x69d   :  { %3560 = vmatprep.mubr.f32.mxu1 %v9555_v0 }
 0x6a0   :  { %7090 = vmatmul.mubr.msk.f32.gmra.mrb[36].mxu1 %vm219_vm3, %v7085_v24 }
 0x6a1   :  { %7513 = vmatprep.mubr.msk.f32.mxu1 %vm9558_vm4, %v9555_v0 }
 0x6a4   :  { %7514 = vmatmul.mubr.msk.f32.vlgmr.msra.gmra.mrb[38].mxu1 %vm219_vm3, %v7083_v21  ;;  %v8388_v21 = vpack.c.bf16 %v4270_v6, %v4266_v63  ;;  %v4304_v63 = vld [vmem:[#allocation13 + $0x6c8] sm:$0xff]  ;;  %v4306_v6 = vld [vmem:[#allocation13 + $0x6d8] sm:$0xff] }
 0x6a5   :  { %7516 = vmatprep.mubr.msk.f32.mxu1 %vm9558_vm4, %v9555_v0  ;;  %8285 = vmatpush1.bf16.msk.msra.mxu1 %vm9804_vm2, %v8283_v30  ;;  %v4274_v30 = vld [vmem:[#allocation13 + $0x5d8] sm:$0xff] }
 0x6a6   :  { %8286 = vmatprep.subr.bf16.mxu1 %v9557_v18  ;;  %8389 = vmatprep.subr.bf16.mxu0 %v8388_v21  ;;  %v4310_v21 = vld [vmem:[#allocation13 + $0x6f8] sm:$0xff] }
 0x6a8   :  { %7517 = vmatmul.mubr.msk.f32.gmra.mrb[40].mxu1 %vm219_vm3, %v7084_v17  ;;  %v4269_v17 = vld [vmem:[#allocation13 + $0x5b0] sm:$0xff] }
 0x6a9   :  { %7519 = vmatprep.mubr.msk.f32.mxu1 %vm9558_vm4, %v9555_v0 }
 0x6ac   :  { %7520 = vmatmul.mubr.msk.f32.gmra.mrb[42].mxu1 %vm219_vm3, %v7085_v24  ;;  %v8390_v24 = vpack.c.bf16 %v4269_v17, %v4265_v20  ;;  %v4307_v20 = vld [vmem:[#allocation13 + $0x6e0] sm:$0xff]  ;;  %v8408_v17 = vpack.c.bf16 %v4310_v21, %v4306_v6  ;;  %v4348_v21 = vld [vmem:[#allocation13 + $0x828] sm:$0xff] }
 0x6ad   :  { %3729 = vmatprep.mubr.f32.mxu1 %v9555_v0 }
 0x6ae   :  { %8391 = vmatpush1.bf16.msra.mxu0 %v8390_v24  ;;  %v4305_v24 = vld [vmem:[#allocation13 + $0x6d0] sm:$0xff] }
 0x6b0   :  { %7097 = vmatmul.mubr.msk.f32.vlgmr.msra.gmra.mrb[32].mxu1 %vm219_vm3, %v7080_v34 }
 0x6b1   :  { %3735 = vmatprep.mubr.f32.mxu1 %v9555_v0  ;;  %8289 = vmatpush3.bf16.msk.msra.mxu1 %vm9804_vm2, %v8287_v35  ;;  %v8314_v35 = vpack.c.bf16 %v4275_v32, %v4271_v23  ;;  %v4314_v23 = vld [vmem:[#allocation13 + $0x718] sm:$0xff] }
 0x6b2   :  { %8292 = vmatprep.subr.msk.bf16.mxu1 %vm9804_vm2, %v8290_v36  ;;  %v4273_v36 = vld [vmem:[#allocation13 + $0x5d0] sm:$0xff] }
 0x6b4   :  { %7098 = vmatmul.mubr.msk.f32.gmra.mrb[34].mxu1 %vm219_vm3, %v7081_v37 }
 0x6b5   :  { %3741 = vmatprep.mubr.f32.mxu1 %v9555_v0 }
 0x6b8   :  { %7099 = vmatmul.mubr.msk.f32.gmra.mrb[36].mxu1 %vm219_vm3, %v7082_v38 }
 0x6b9   :  { %7526 = vmatprep.mubr.msk.f32.mxu1 %vm9558_vm4, %v9555_v0 }
 0x6bc   :  { %7527 = vmatmul.mubr.msk.f32.vlgmr.msra.gmra.mrb[44].mxu1 %vm219_vm3, %v7080_v34  ;;  %v8392_v34 = vpack.c.bf16 %v4278_v31, %v4274_v30  ;;  %v8410_v30 = vpack.c.bf16 %v4309_v25, %v4305_v24  ;;  %v4316_v31 = vld [vmem:[#allocation13 + $0x728] sm:$0xff]  ;;  %v4343_v24 = vld [vmem:[#allocation13 + $0x800] sm:$0xff] }
 0x6bd   :  { %7529 = vmatprep.mubr.msk.f32.mxu1 %vm9558_vm4, %v9555_v0  ;;  %8295 = vmatpush1.bf16.msk.msra.mxu1 %vm9804_vm2, %v8293_v39  ;;  %v4282_v39 = vld [vmem:[#allocation13 + $0x618] sm:$0xff]  ;;  %v4347_v25 = vld [vmem:[#allocation13 + $0x820] sm:$0xff] }
 0x6be   :  { %8296 = vmatprep.subr.bf16.mxu1 %v9557_v18  ;;  %8393 = vmatprep.subr.bf16.mxu0 %v8392_v34  ;;  %v4318_v34 = vld [vmem:[#allocation13 + $0x738] sm:$0xff] }
 0x6c0   :  { %7530 = vmatmul.mubr.msk.f32.gmra.mrb[46].mxu1 %vm219_vm3, %v7081_v37  ;;  %v4277_v37 = vld [vmem:[#allocation13 + $0x5f0] sm:$0xff] }
 0x6c1   :  { %7532 = vmatprep.mubr.msk.f32.mxu1 %vm9558_vm4, %v9555_v0 }
 0x6c4   :  { %7533 = vmatmul.mubr.msk.f32.gmra.mrb[48].mxu1 %vm219_vm3, %v7082_v38  ;;  %v8394_v38 = vpack.c.bf16 %v4277_v37, %v4273_v36  ;;  %v4315_v36 = vld [vmem:[#allocation13 + $0x720] sm:$0xff]  ;;  %v8412_v37 = vpack.c.bf16 %v4318_v34, %v4314_v23  ;;  %v4356_v34 = vld [vmem:[#allocation13 + $0x868] sm:$0xff] }
 0x6c5   :  { %3919 = vmatprep.mubr.f32.mxu1 %v9555_v0 }
 0x6c6   :  { %8395 = vmatpush1.bf16.msra.mxu0 %v8394_v38 }
 0x6c8   :  { %7109 = vmatmul.mubr.msk.f32.vlgmr.msra.gmra.mrb[32].mxu1 %vm219_vm3, %v7104_v42 }
 0x6c9   :  { %3925 = vmatprep.mubr.f32.mxu1 %v9555_v0  ;;  %8299 = vmatpush3.bf16.msk.msra.mxu1 %vm9804_vm2, %v8297_v43  ;;  %v4283_v43 = vld [vmem:[#allocation13 + $0x620] sm:$0xff] }
 0x6ca   :  { %8301 = vmatprep.subr.bf16.mxu1 %v8300_v49  ;;  %v8398_v49 = vpack.c.bf16 %v4285_v46, %v4281_v1  ;;  %v4323_v1 = vld [vmem:[#allocation13 + $0x760] sm:$0xff] }
 0x6cc   :  { %7110 = vmatmul.mubr.msk.f32.gmra.mrb[34].mxu1 %vm219_vm3, %v7105_v44 }
 0x6cd   :  { %3931 = vmatprep.mubr.f32.mxu1 %v9555_v0 }
 0x6d0   :  { %7111 = vmatmul.mubr.msk.f32.gmra.mrb[36].mxu1 %vm219_vm3, %v7106_v45 }
 0x6d1   :  { %7539 = vmatprep.mubr.msk.f32.mxu1 %vm9558_vm4, %v9555_v0 }
 0x6d4   :  { %7540 = vmatmul.mubr.msk.f32.vlgmr.msra.gmra.mrb[50].mxu1 %vm219_vm3, %v7104_v42  ;;  %v4279_v42 = vld [vmem:[#allocation13 + $0x600] sm:$0xff] }
 0x6d5   :  { %7542 = vmatprep.mubr.msk.f32.mxu1 %vm9558_vm4, %v9555_v0  ;;  %8303 = vmatpush1.bf16.msra.mxu1 %v8302_v54  ;;  %v8400_v54 = vpack.c.bf16 %v4294_v52, %v4290_v51  ;;  %v4328_v52 = vld [vmem:[#allocation13 + $0x788] sm:$0xff] }
 0x6d6   :  { %8305 = vmatprep.subr.bf16.mxu1 %v8304_v3  ;;  %v8402_v3 = vpack.c.bf16 %v4293_v57, %v4289_v56  ;;  %v4327_v56 = vld [vmem:[#allocation13 + $0x780] sm:$0xff] }
 0x6d8   :  { %7543 = vmatmul.mubr.msk.f32.gmra.mrb[52].mxu1 %vm219_vm3, %v7105_v44  ;;  %v8396_v44 = vpack.c.bf16 %v4286_v41, %v4282_v39  ;;  %v8414_v39 = vpack.c.bf16 %v4317_v28, %v4313_v29  ;;  %v4324_v41 = vld [vmem:[#allocation13 + $0x768] sm:$0xff]  ;;  %v4355_v29 = vld [vmem:[#allocation13 + $0x860] sm:$0xff] }
 0x6d9   :  { %7545 = vmatprep.mubr.msk.f32.mxu1 %vm9558_vm4, %v9555_v0  ;;  %8307 = vmatpush1.bf16.msra.mxu1 %v8306_v11  ;;  %v8404_v11 = vpack.c.bf16 %v4302_v9, %v4298_v7  ;;  %v4336_v7 = vld [vmem:[#allocation13 + $0x7c8] sm:$0xff] }
 0x6da   :  { %8309 = vmatprep.subr.bf16.mxu1 %v8308_v16  ;;  %8397 = vmatprep.subr.bf16.mxu0 %v8396_v44  ;;  %v4308_v16 = vld [vmem:[#allocation13 + $0x6e8] sm:$0xff]  ;;  %v4326_v44 = vld [vmem:[#allocation13 + $0x778] sm:$0xff] }
 0x6db   :  { %8399 = vmatpush1.bf16.msra.mxu0 %v8398_v49  ;;  %v8328_v8 = vpack.c.bf16 %v4308_v16, %v4304_v63  ;;  %v4321_v49 = vld [vmem:[#allocation13 + $0x750] sm:$0xff]  ;;  %v4340_v9 = vld [vmem:[#allocation13 + $0x7e8] sm:$0xff] }
 0x6dc   :  { %7546 = vmatmul.mubr.msk.f32.gmra.mrb[54].mxu1 %vm219_vm3, %v7106_v45  ;;  %v8318_v45 = vpack.c.bf16 %v4283_v43, %v4279_v42  ;;  %8401 = vmatprep.subr.bf16.mxu0 %v8400_v54  ;;  %v4322_v42 = vld [vmem:[#allocation13 + $0x758] sm:$0xff]  ;;  %v8418_v51 = vpack.c.bf16 %v4325_v50, %v4321_v49  ;;  %v4337_v63 = vld [vmem:[#allocation13 + $0x7d0] sm:$0xff]  ;;  %v4363_v49 = vld [vmem:[#allocation13 + $0x8a0] sm:$0xff] }
 0x6dd   :  { %8311 = vmatpush1.bf16.msra.mxu1 %v8310_v22  ;;  %v4303_v22 = vld [vmem:[#allocation13 + $0x6c0] sm:$0xff]  ;;  %v8416_v46 = vpack.c.bf16 %v4326_v44, %v4322_v42  ;;  %v4330_v54 = vld [vmem:[#allocation13 + $0x798] sm:$0xff]  ;;  %v4341_v16 = vld [vmem:[#allocation13 + $0x7f0] sm:$0xff] }
 0x6de   :  { %8313 = vmatprep.subr.bf16.mxu1 %v8312_v27  ;;  %v8330_v26 = vpack.c.bf16 %v4307_v20, %v4303_v22  ;;  %v4312_v27 = vld [vmem:[#allocation13 + $0x708] sm:$0xff]  ;;  %v8420_v57 = vpack.c.bf16 %v4334_v33, %v4330_v54  ;;  %v4346_v22 = vld [vmem:[#allocation13 + $0x818] sm:$0xff] }
 0x6df   :  { %8403 = vmatpush1.bf16.msra.mxu0 %v8402_v3  ;;  %v8332_v32 = vpack.c.bf16 %v4316_v31, %v4312_v27  ;;  %v4333_v3 = vld [vmem:[#allocation13 + $0x7b0] sm:$0xff]  ;;  %v4364_v44 = vld [vmem:[#allocation13 + $0x8a8] sm:$0xff] }
 0x6e0   :  { %8405 = vmatprep.subr.bf16.mxu0 %v8404_v11  ;;  %v8344_v11 = vpack.c.bf16 %v4340_v9, %v4336_v7  ;;  %v4345_v27 = vld [vmem:[#allocation13 + $0x810] sm:$0xff]  ;;  %v4372_v33 = vld [vmem:[#allocation13 + $0x8e8] sm:$0xff] }
 0x6e1   :  { %8315 = vmatpush1.bf16.msra.mxu1 %v8314_v35  ;;  %v4311_v35 = vld [vmem:[#allocation13 + $0x700] sm:$0xff]  ;;  %v4349_v31 = vld [vmem:[#allocation13 + $0x830] sm:$0xff] }
 0x6e2   :  { %8317 = vmatprep.subr.bf16.mxu1 %v8316_v40  ;;  %v8334_v38 = vpack.c.bf16 %v4315_v36, %v4311_v35  ;;  %v4320_v40 = vld [vmem:[#allocation13 + $0x748] sm:$0xff]  ;;  %v8430_v23 = vpack.c.bf16 %v4349_v31, %v4345_v27  ;;  %v4354_v35 = vld [vmem:[#allocation13 + $0x858] sm:$0xff]  ;;  %v4369_v7 = vld [vmem:[#allocation13 + $0x8d0] sm:$0xff] }
 0x6e3   :  { %8407 = vmatpush1.bf16.msra.mxu0 %v8406_v5  ;;  %v8336_v43 = vpack.c.bf16 %v4324_v41, %v4320_v40  ;;  %v8426_v5 = vpack.c.bf16 %v4341_v16, %v4337_v63  ;;  %v4353_v40 = vld [vmem:[#allocation13 + $0x850] sm:$0xff]  ;;  %v9559_v16 = vmov 1983009808  }
 0x6e4   :  { %8409 = vmatprep.subr.bf16.mxu0 %v8408_v17  ;;  %v4350_v17 = vld [vmem:[#allocation13 + $0x838] sm:$0xff]  ;;  %v4357_v41 = vld [vmem:[#allocation13 + $0x870] sm:$0xff] }
 0x6e5   :  { %8319 = vmatpush1.bf16.msra.mxu1 %v8318_v45  ;;  %v4319_v45 = vld [vmem:[#allocation13 + $0x740] sm:$0xff]  ;;  %v8434_v42 = vpack.c.bf16 %v4357_v41, %v4353_v40  ;;  %v4373_v9 = vld [vmem:[#allocation13 + $0x8f0] sm:$0xff] }
 0x6e6   :  { %8321 = vmatprep.subr.bf16.mxu1 %v8320_v53  ;;  %v8338_v47 = vpack.c.bf16 %v4323_v1, %v4319_v45  ;;  %v4332_v53 = vld [vmem:[#allocation13 + $0x7a8] sm:$0xff]  ;;  %v4362_v45 = vld [vmem:[#allocation13 + $0x898] sm:$0xff]  ;;  %v8442_v10 = vpack.c.bf16 %v4373_v9, %v4369_v7  ;;  %v4379_v7 = vld [vmem:[#allocation13 + $0x920] sm:$0xff] }
 0x6e7   :  { %8411 = vmatpush1.bf16.msra.mxu0 %v8410_v30  ;;  %v8340_v55 = vpack.c.bf16 %v4332_v53, %v4328_v52  ;;  %v8350_v30 = vpack.c.bf16 %v4347_v25, %v4343_v24  ;;  %v4361_v52 = vld [vmem:[#allocation13 + $0x890] sm:$0xff] }
 0x6e8   :  { %8413 = vmatprep.subr.bf16.mxu0 %v8412_v37  ;;  %v4358_v37 = vld [vmem:[#allocation13 + $0x878] sm:$0xff]  ;;  %v4365_v53 = vld [vmem:[#allocation13 + $0x8b0] sm:$0xff] }
 0x6e9   :  { %8323 = vmatpush1.bf16.msra.mxu1 %v8322_v59  ;;  %v4331_v59 = vld [vmem:[#allocation13 + $0x7a0] sm:$0xff]  ;;  %v8432_v28 = vpack.c.bf16 %v4358_v37, %v4354_v35  ;;  %v8438_v54 = vpack.c.bf16 %v4365_v53, %v4361_v52  ;;  %v4377_v9 = vld [vmem:[#allocation13 + $0x910] sm:$0xff] }
 0x6ea   :  { %8325 = vmatprep.subr.bf16.mxu1 %v8324_v62  ;;  %v8342_v58 = vpack.c.bf16 %v4331_v59, %v4327_v56  ;;  %v8422_v62 = vpack.c.bf16 %v4333_v3, %v4329_v60  ;;  %v4370_v56 = vld [vmem:[#allocation13 + $0x8d8] sm:$0xff]  ;;  %v4371_v60 = vld [vmem:[#allocation13 + $0x8e0] sm:$0xff] }
 0x6eb   :  { %8415 = vmatpush1.bf16.msra.mxu0 %v8414_v39 }
 0x6ec   :  { %8417 = vmatprep.subr.bf16.mxu0 %v8416_v46  ;;  %v4366_v46 = vld [vmem:[#allocation13 + $0x8b8] sm:$0xff] }
 0x6ed   :  { %8327 = vmatpush1.bf16.msra.mxu1 %v8326_v15  ;;  %v4339_v15 = vld [vmem:[#allocation13 + $0x7e0] sm:$0xff]  ;;  %v8436_v50 = vpack.c.bf16 %v4366_v46, %v4362_v45 }
 0x6ee   :  { %8329 = vmatprep.subr.bf16.mxu1 %v8328_v8  ;;  %v8346_v6 = vpack.c.bf16 %v4339_v15, %v4335_v13  ;;  %v4344_v8 = vld [vmem:[#allocation13 + $0x808] sm:$0xff]  ;;  %v4378_v13 = vld [vmem:[#allocation13 + $0x918] sm:$0xff] }
 0x6ef   :  { %8419 = vmatpush1.bf16.msra.mxu0 %v8418_v51  ;;  %v8348_v20 = vpack.c.bf16 %v4348_v21, %v4344_v8  ;;  %v4382_v15 = vld [vmem:[#allocation13 + $0x938] sm:$0xff] }
 0x6f0   :  { %8421 = vmatprep.subr.bf16.mxu0 %v8420_v57  ;;  %v4374_v57 = vld [vmem:[#allocation13 + $0x8f8] sm:$0xff]  ;;  %v8444_v63 = vpack.c.bf16 %v4382_v15, %v4378_v13  ;;  %v4388_v15 = vld [vmem:[#allocation13 + $0x968] sm:$0xff] }
 0x6f1   :  { %8331 = vmatpush1.bf16.msra.mxu1 %v8330_v26  ;;  %v8428_v26 = vpack.c.bf16 %v4350_v17, %v4346_v22  ;;  %v8440_v3 = vpack.c.bf16 %v4374_v57, %v4370_v56 }
 0x6f2   :  { %8333 = vmatprep.subr.bf16.mxu1 %v8332_v32  ;;  %v4352_v32 = vld [vmem:[#allocation13 + $0x848] sm:$0xff] }
 0x6f3   :  { %8423 = vmatpush1.bf16.msra.mxu0 %v8422_v62  ;;  %v8352_v36 = vpack.c.bf16 %v4356_v34, %v4352_v32 }
 0x6f4   :  { %8425 = vmatprep.subr.bf16.mxu0 %v8424_v14 }
 0x6f5   :  { %8335 = vmatpush1.bf16.msra.mxu1 %v8334_v38  ;;  %v4351_v38 = vld [vmem:[#allocation13 + $0x840] sm:$0xff] }
 0x6f6   :  { %8337 = vmatprep.subr.bf16.mxu1 %v8336_v43  ;;  %v8354_v39 = vpack.c.bf16 %v4355_v29, %v4351_v38  ;;  %v4360_v43 = vld [vmem:[#allocation13 + $0x888] sm:$0xff] }
 0x6f7   :  { %8427 = vmatpush1.bf16.msra.mxu0 %v8426_v5  ;;  %v8356_v1 = vpack.c.bf16 %v4364_v44, %v4360_v43 }
 0x6f8   :  { %8429 = vmatprep.subr.bf16.mxu0 %v8428_v26 }
 0x6f9   :  { %8339 = vmatpush1.bf16.msra.mxu1 %v8338_v47  ;;  %v4359_v47 = vld [vmem:[#allocation13 + $0x880] sm:$0xff] }
 0x6fa   :  { %8341 = vmatprep.subr.bf16.mxu1 %v8340_v55  ;;  %v8358_v51 = vpack.c.bf16 %v4363_v49, %v4359_v47  ;;  %v4368_v55 = vld [vmem:[#allocation13 + $0x8c8] sm:$0xff] }
 0x6fb   :  { %8431 = vmatpush1.bf16.msra.mxu0 %v8430_v23  ;;  %v8360_v59 = vpack.c.bf16 %v4372_v33, %v4368_v55 }
 0x6fc   :  { %8433 = vmatprep.subr.bf16.mxu0 %v8432_v28 }
 0x6fd   :  { %8343 = vmatpush1.bf16.msra.mxu1 %v8342_v58  ;;  %v4367_v58 = vld [vmem:[#allocation13 + $0x8c0] sm:$0xff] }
 0x6fe   :  { %8345 = vmatprep.subr.bf16.mxu1 %v8344_v11  ;;  %v8362_v62 = vpack.c.bf16 %v4371_v60, %v4367_v58  ;;  %v4376_v11 = vld [vmem:[#allocation13 + $0x908] sm:$0xff]  ;;  %v4375_v60 = vld [vmem:[#allocation13 + $0x900] sm:$0xff] }
 0x6ff   :  { %8435 = vmatpush1.bf16.msra.mxu0 %v8434_v42  ;;  %v8364_v14 = vpack.c.bf16 %v4380_v12, %v4376_v11 }
 0x700   :  { %8437 = vmatprep.subr.bf16.mxu0 %v8436_v50 }
 0x701   :  { %8347 = vmatpush1.bf16.msra.mxu1 %v8346_v6  ;;  %v3430_v6 = vunpack.c.l.s4 %v9559_v16 }
 0x702   :  { %8349 = vmatprep.subr.bf16.mxu1 %v8348_v20 }
 0x703   :  { %8439 = vmatpush1.bf16.msra.mxu0 %v8438_v54  ;;  %v3431_v5 = vunpack.c.0.s8 %v3430_v6 }
 0x704   :  { %8441 = vmatprep.subr.bf16.mxu0 %v8440_v3 }
 0x705   :  { %8351 = vmatpush1.bf16.msra.mxu1 %v8350_v30  ;;  %v10135_v8 = vsub.s32 %v3431_v5, %v9903_v61 }
 0x706   :  { %8353 = vmatprep.subr.bf16.mxu1 %v8352_v36 }
 0x707   :  { %8443 = vmatpush1.bf16.msra.mxu0 %v8442_v10  ;;  %v4381_v10 = vld [vmem:[#allocation13 + $0x930] sm:$0xff] }
 0x708   :  { %8445 = vmatprep.subr.bf16.mxu0 %v8444_v63 }
 0x709   :  { %8355 = vmatpush1.bf16.msra.mxu1 %v8354_v39  ;;  %v4027_v39 = vld [vmem:[#allocation11] sm:$0x7] }
 0x70a   :  { %8357 = vmatprep.subr.bf16.mxu1 %v8356_v1  ;;  %v4032_v43 = vrot.slane %v4027_v39, %v9906_v2  ;;  %v4036_v44 = vrot.slane %v4027_v39, %v9909_v4 }
 0x70d   :  { %8359 = vmatpush1.bf16.msra.mxu1 %v8358_v51 }
 0x70e   :  { %8361 = vmatprep.subr.bf16.mxu1 %v8360_v59 }
 0x711   :  { %8363 = vmatpush1.bf16.msra.mxu1 %v8362_v62  ;;  %v10157_v62 = vrot.slane %v4027_v39, %v9916_v19 }
 0x712   :  { %8365 = vmatprep.subr.bf16.mxu1 %v8364_v14  ;;  %v4384_v14 = vld [vmem:[#allocation13 + $0x948] sm:$0xff] }
 0x767   :  { %v3422_v21 = vpop.f32.mrb[30].mxu1 }
 0x768   :  { %v3426_v22 = vmax.f32 %v3422_v21, 0.0  ;;  %v7508_v20 = vpop.f32.mrb[31].mxu1  ;;  %v4386_v21 = vld [vmem:[#allocation13 + $0x958] sm:$0xff] }
 0x76a   :  { %3427 = vst [vmem:[#allocation7] sm:$0x1] %v3426_v22  ;;  %v3435_v17 = vrot.slane %v3426_v22, %v10135_v8  ;;  %v4390_v22 = vld [vmem:[#allocation13 + $0x978] sm:$0xff] }
 0x76c   :  { %v7078_v24 = vrot.slane %v3435_v17, 9  ;;  %v3440_v25 = vcombine.high %v3435_v17, %v3435_v17 }
 0x76e   :  { %3439 = vst [vmem:[#allocation7 + $0x2] sm:$0x1] %v7078_v24  ;;  %3442 = vst [vmem:[#allocation7 + $0x4] sm:$0x1] %v3440_v25  ;;  %v7079_v26 = vrot.slane %v3440_v25, 9 }
 0x770   :  { %3446 = vst [vmem:[#allocation7 + $0x6] sm:$0x1] %v7079_v26  ;;  %v8366_v26 = vpack.c.bf16 %v4379_v7, %v4375_v60 }
 0x777   :  { %v3633_v30 = vpop.f32.mrb[38].mxu1 }
 0x778   :  { %v7515_v27 = vpop.f32.mrb[39].mxu1 }
 0x779   :  { %v4383_v27 = vld [vmem:[#allocation13 + $0x940] sm:$0xff] }
 0x77b   :  { %v3638_v31 = vpop.f32.mrb[40].mxu1 }
 0x77c   :  { %v7518_v23 = vpop.f32.mrb[41].mxu1 }
 0x77f   :  { %v3643_v32 = vpop.f32.mrb[42].mxu1 }
 0x780   :  { %v7521_v34 = vpop.f32.mrb[43].mxu1 }
 0x781   :  { %v8368_v34 = vpack.c.bf16 %v4388_v15, %v4384_v14  ;;  %v4406_v14 = vld [vmem:[#allocation13 + $0x9f8] sm:$0xff] }
 0x78f   :  { %v3814_v35 = vpop.f32.mrb[44].mxu1 }
 0x790   :  { %v3815_v36 = vadd.f32 %v3814_v35, %v3633_v30  ;;  %v7528_v37 = vpop.f32.mrb[45].mxu1  ;;  %v8446_v30 = vpack.c.bf16 %v4381_v10, %v4377_v9  ;;  %v8448_v35 = vpack.c.bf16 %v4390_v22, %v4386_v21  ;;  %v4400_v9 = vld [vmem:[#allocation13 + $0x9c8] sm:$0xff] }
 0x791   :  { %v4389_v37 = vld [vmem:[#allocation13 + $0x970] sm:$0xff] }
 0x793   :  { %v3819_v38 = vpop.f32.mrb[46].mxu1 }
 0x794   :  { %v10138_v29 = vadd.f32 %v3819_v38, %v3638_v31  ;;  %v7531_v28 = vpop.f32.mrb[47].mxu1  ;;  %v4387_v31 = vld [vmem:[#allocation13 + $0x960] sm:$0xff]  ;;  %v4392_v38 = vld [vmem:[#allocation13 + $0x988] sm:$0xff] }
 0x797   :  { %v3824_v40 = vpop.f32.mrb[48].mxu1 }
 0x798   :  { %v10140_v41 = vadd.f32 %v3824_v40, %v3643_v32  ;;  %v7534_v42 = vpop.f32.mrb[49].mxu1 }
 0x79b   :  { %v3921_v45 = vpop.f32.mrb[32].mxu1 }
 0x79c   :  { %v4044_v1 = vadd.f32 %v4032_v43, %v3921_v45  ;;  %v3923_v46 = vpop.f32.mrb[33].mxu1  ;;  %v4398_v45 = vld [vmem:[#allocation13 + $0x9b8] sm:$0xff] }
 0x79d   :  { %v4045_v47 = vadd.f32 %v4036_v44, %v3923_v46  ;;  %v8370_v46 = vpack.c.bf16 %v4387_v31, %v4383_v27  ;;  %v4084_v27 = vld [vmem:[#allocation13 + $0x18] sm:$0xff] }
 0x79e   :  { %v10144_v49 = vmax.f32 %v4044_v1, 0.0  ;;  %v4088_v31 = vld [vmem:[#allocation13 + $0x38] sm:$0xff] }
 0x79f   :  { %v10146_v50 = vmax.f32 %v4045_v47, 0.0  ;;  %v3927_v51 = vpop.f32.mrb[34].mxu1  ;;  %v4391_v47 = vld [vmem:[#allocation13 + $0x980] sm:$0xff] }
 0x7a0   :  { %4063 = vst [vmem:[#allocation2 + $0x48] sm:$0xff] %v10144_v49  ;;  %v4047_v52 = vadd.f32 %v4032_v43, %v3927_v51  ;;  %v3929_v53 = vpop.f32.mrb[35].mxu1  ;;  %v4395_v51 = vld [vmem:[#allocation13 + $0x9a0] sm:$0xff] }
 0x7a1   :  { %4064 = vst [vmem:[#allocation2 + $0x50] sm:$0xff] %v10146_v50  ;;  %v4048_v54 = vadd.f32 %v4036_v44, %v3929_v53 }
 0x7a2   :  { %v10150_v55 = vmax.f32 %v4047_v52, 0.0 }
 0x7a3   :  { %v10152_v33 = vmax.f32 %v4048_v54, 0.0  ;;  %v3933_v56 = vpop.f32.mrb[36].mxu1 }
 0x7a4   :  { %4066 = vst [vmem:[#allocation2 + $0x60] sm:$0xff] %v10150_v55  ;;  %v4050_v59 = vadd.f32 %v4032_v43, %v3933_v56  ;;  %v3935_v57 = vpop.f32.mrb[37].mxu1  ;;  %v4417_v25 = vrot.slane %v10150_v55, 1  ;;  %v4396_v43 = vld [vmem:[#allocation13 + $0x9a8] sm:$0xff] }
 0x7a5   :  { %4067 = vst [vmem:[#allocation2 + $0x68] sm:$0xff] %v10152_v33  ;;  %v4051_v58 = vadd.f32 %v4036_v44, %v3935_v57  ;;  %v4420_v17 = vrot.slane %v10152_v33, 1  ;;  %v4394_v44 = vld [vmem:[#allocation13 + $0x998] sm:$0xff]  ;;  %v8372_v54 = vpack.c.bf16 %v4396_v43, %v4392_v38  ;;  %v4397_v57 = vld [vmem:[#allocation13 + $0x9b0] sm:$0xff] }
 0x7a6   :  { %v4059_v3 = vmax.f32 %v4050_v59, 0.0  ;;  %v8452_v56 = vpack.c.bf16 %v4398_v45, %v4394_v44  ;;  %v4393_v59 = vld [vmem:[#allocation13 + $0x990] sm:$0xff]  ;;  %v4094_v44 = vld [vmem:[#allocation13 + $0x68] sm:$0xff]  ;;  %v4092_v45 = vld [vmem:[#allocation13 + $0x58] sm:$0xff] }
 0x7a7   :  { %v4060_v11 = vmax.f32 %v4051_v58, 0.0  ;;  %v4004_v12 = vpop.f32.mrb[50].mxu1  ;;  %v4241_v13 = vld [vmem:[#allocation2 + $0x48] sm:$0xfe]  ;;  %v4083_v38 = vld [vmem:[#allocation13 + $0x10] sm:$0xff] }
 0x7a8   :  { %4069 = vst [vmem:[#allocation2 + $0x78] sm:$0x3f] %v4059_v3  ;;  %v4020_v63 = vadd.f32 %v4004_v12, %v3815_v36  ;;  %v7541_v16 = vpop.f32.mrb[51].mxu1  ;;  %v4242_v6 = vld [vmem:[#allocation2 + $0x50] sm:$0xfe]  ;;  %v4416_v5 = vrot.slane %v4241_v13, 1 }
 0x7a9   :  { %4070 = vst [vmem:[#allocation2 + $0x80] sm:$0x3f] %v4060_v11  ;;  %v4419_v20 = vrot.slane %v4242_v6, 1  ;;  %v4385_v36 = vld [vmem:[#allocation13 + $0x950] sm:$0xff]  ;;  %v4404_v12 = vld [vmem:[#allocation13 + $0x9e8] sm:$0xff]  ;;  %v4402_v13 = vld [vmem:[#allocation13 + $0x9d8] sm:$0xff]  ;;  %v8374_v16 = vpack.c.bf16 %v4395_v51, %v4391_v47 }
 0x7aa   :  { %v4046_v24 = vadd.f32 %v10157_v62, %v4020_v63  ;;  %v4418_v42 = vsel %vm1174_vm6, %v4416_v5, %v4417_v25  ;;  %v4399_v6 = vld [vmem:[#allocation13 + $0x9c0] sm:$0xff] }
 0x7ab   :  { %v4009_v23 = vpop.f32.mrb[52].mxu1  ;;  %v4421_v32 = vsel %vm1174_vm6, %v4419_v20, %v4420_v17  ;;  %v4403_v5 = vld [vmem:[#allocation13 + $0x9e0] sm:$0xff]  ;;  %v8376_v20 = vpack.c.bf16 %v4404_v12, %v4400_v9  ;;  %v4104_v9 = vld [vmem:[#allocation13 + $0xb8] sm:$0xff] }
 0x7ac   :  { %v4055_v28 = vmax.f32 %v4046_v24, 0.0  ;;  %v4023_v39 = vadd.f32 %v4009_v23, %v10138_v29  ;;  %v7544_v40 = vpop.f32.mrb[53].mxu1  ;;  %4507 = vmatprep.mubr.f32.mxu1 %v4421_v32  ;;  %4673 = vmatprep.mubr.f32.mxu0 %v4421_v32  ;;  %v8450_v29 = vpack.c.bf16 %v4389_v37, %v4385_v36  ;;  %v8456_v24 = vpack.c.bf16 %v4406_v14, %v4402_v13  ;;  %v4085_v37 = vld [vmem:[#allocation13 + $0x20] sm:$0xff] }
 0x7ad   :  { %4508 = vmatmul.mubr.f32.vlgmr.msra.gmra.mrb[56].mxu1 %v4418_v42  ;;  %4674 = vmatmul.mubr.f32.vlgmr.msra.gmra.mrb[20].mxu0 %v4418_v42  ;;  %v8378_v23 = vpack.c.bf16 %v4403_v5, %v4399_v6  ;;  %v8540_v36 = vpack.c.bf16 %v4088_v31, %v4084_v27  ;;  %v4090_v40 = vld [vmem:[#allocation13 + $0x48] sm:$0xff]  ;;  %v4089_v47 = vld [vmem:[#allocation13 + $0x40] sm:$0xff]  ;;  %v4111_v31 = vld [vmem:[#allocation13 + $0xf0] sm:$0xff] }
 0x7ae   :  { %4065 = vst.msk [vmem:[#allocation2 + $0x58] sm:$0xff] %vm820_vm5, %v4055_v28  ;;  %v4049_v1 = vadd.f32 %v10157_v62, %v4023_v39  ;;  %8367 = vmatpush1.bf16.msra.mxu1 %v8366_v26  ;;  %8447 = vmatpush1.bf16.msra.mxu0 %v8446_v30  ;;  %v4405_v26 = vld [vmem:[#allocation13 + $0x9f0] sm:$0xff]  ;;  %v4082_v30 = vld [vmem:[#allocation13 + $0x8] sm:$0xff]  ;;  %v4097_v13 = vld [vmem:[#allocation13 + $0x80] sm:$0xff] }
 0x7af   :  { %v4014_v52 = vpop.f32.mrb[54].mxu1  ;;  %8369 = vmatprep.subr.bf16.mxu1 %v8368_v34  ;;  %8449 = vmatprep.subr.bf16.mxu0 %v8448_v35  ;;  %v4244_v53 = vld [vmem:[#allocation2 + $0x78] sm:$0x1f]  ;;  %v4101_v14 = vld [vmem:[#allocation13 + $0xa0] sm:$0xff] }
 0x7b0   :  { %v4058_v58 = vmax.f32 %v4049_v1, 0.0  ;;  %v4026_v60 = vadd.f32 %v4014_v52, %v10140_v41  ;;  %v4245_v3 = vld [vmem:[#allocation2 + $0x80] sm:$0x1f]  ;;  %v4425_v7 = vrot.slane %v4244_v53, 1  ;;  %v7547_v10 = vpop.f32.mrb[55].mxu1  ;;  %v8454_v41 = vpack.c.bf16 %v4397_v57, %v4393_v59  ;;  %v4093_v52 = vld [vmem:[#allocation13 + $0x60] sm:$0xff] }
 0x7b1   :  { %v4427_v11 = vrot.slane %v4245_v3, 1  ;;  %v4087_v28 = vld [vmem:[#allocation13 + $0x30] sm:$0xff]  ;;  %v4096_v1 = vld [vmem:[#allocation13 + $0x78] sm:$0xff]  ;;  %v8464_v59 = vpack.c.bf16 %v4094_v44, %v4090_v40  ;;  %v4102_v3 = vld [vmem:[#allocation13 + $0xa8] sm:$0xff]  ;;  %v8466_v10 = vpack.c.bf16 %v4093_v52, %v4089_v47 }
 0x7b2   :  { %4068 = vst.msk [vmem:[#allocation2 + $0x70] sm:$0xff] %vm820_vm5, %v4058_v58  ;;  %v4052_v15 = vadd.f32 %v10157_v62, %v4026_v60  ;;  %8371 = vmatpush1.bf16.msra.mxu1 %v8370_v46  ;;  %8451 = vmatpush1.bf16.msra.mxu0 %v8450_v29  ;;  %v4426_v22 = vsel %vm1174_vm6, %v4417_v25, %v4425_v7  ;;  %v4401_v62 = vld [vmem:[#allocation13 + $0x9d0] sm:$0xff]  ;;  %v4081_v25 = vld [vmem:[#allocation13] sm:$0xff]  ;;  %v4098_v58 = vld [vmem:[#allocation13 + $0x88] sm:$0xff] }
 0x7b3   :  { %v4428_v63 = vsel %vm1174_vm6, %v4420_v17, %v4427_v11  ;;  %8373 = vmatprep.subr.bf16.mxu1 %v8372_v54  ;;  %8453 = vmatprep.subr.bf16.mxu0 %v8452_v56  ;;  %v4086_v17 = vld [vmem:[#allocation13 + $0x28] sm:$0xff]  ;;  %v8458_v32 = vpack.c.bf16 %v4405_v26, %v4401_v62  ;;  %v8462_v46 = vpack.c.bf16 %v4085_v37, %v4081_v25  ;;  %v4091_v53 = vld [vmem:[#allocation13 + $0x50] sm:$0xff]  ;;  %v4105_v62 = vld [vmem:[#allocation13 + $0xc0] sm:$0xff] }
 0x7b4   :  { %v4061_v21 = vmax.f32 %v4052_v15, 0.0  ;;  %4513 = vmatprep.mubr.f32.mxu1 %v4428_v63  ;;  %4679 = vmatprep.mubr.f32.mxu0 %v4428_v63  ;;  %v8460_v35 = vpack.c.bf16 %v4086_v17, %v4082_v30  ;;  %v8542_v29 = vpack.c.bf16 %v4087_v28, %v4083_v38  ;;  %v4095_v54 = vld [vmem:[#allocation13 + $0x70] sm:$0xff]  ;;  %v8544_v57 = vpack.c.bf16 %v4096_v1, %v4092_v45  ;;  %v4106_v6 = vld [vmem:[#allocation13 + $0xc8] sm:$0xff]  ;;  %v4109_v26 = vld [vmem:[#allocation13 + $0xe0] sm:$0xff] }
 0x7b5   :  { %4514 = vmatmul.mubr.f32.gmra.mrb[58].mxu1 %v4426_v22  ;;  %4680 = vmatmul.mubr.f32.gmra.mrb[22].mxu0 %v4426_v22  ;;  %v4243_v34 = vld [vmem:[#allocation2 + $0x58] sm:$0xfe]  ;;  %v8468_v15 = vpack.c.bf16 %v4102_v3, %v4098_v58  ;;  %v4112_v22 = vld [vmem:[#allocation13 + $0xf8] sm:$0xff]  ;;  %v4113_v38 = vld [vmem:[#allocation13 + $0x100] sm:$0xff] }
 0x7b6   :  { %4071 = vst.msk [vmem:[#allocation2 + $0x88] sm:$0x3f] %vm827_vm7, %v4061_v21  ;;  %4519 = vmatprep.mubr.f32.mxu1 %v4427_v11  ;;  %4685 = vmatprep.mubr.f32.mxu0 %v4427_v11  ;;  %v4422_v42 = vrot.slane %v4243_v34, 1  ;;  %v8546_v11 = vpack.c.bf16 %v4095_v54, %v4091_v53  ;;  %v4110_v5 = vld [vmem:[#allocation13 + $0xe8] sm:$0xff]  ;;  %v4108_v21 = vld [vmem:[#allocation13 + $0xd8] sm:$0xff]  ;;  %v4107_v30 = vld [vmem:[#allocation13 + $0xd0] sm:$0xff] }
 0x7b7   :  { %8375 = vmatpush1.bf16.msra.mxu1 %v8374_v16  ;;  %8455 = vmatpush1.bf16.msra.mxu0 %v8454_v41  ;;  %v4099_v16 = vld [vmem:[#allocation13 + $0x90] sm:$0xff]  ;;  %v8472_v17 = vpack.c.bf16 %v4110_v5, %v4106_v6  ;;  %v8552_v27 = vpack.c.bf16 %v4112_v22, %v4108_v21  ;;  %v4116_v34 = vld [vmem:[#allocation13 + $0x118] sm:$0xff]  ;;  %v4117_v28 = vld [vmem:[#allocation13 + $0x120] sm:$0xff] }
 0x7b8   :  { %8377 = vmatprep.subr.bf16.mxu1 %v8376_v20  ;;  %8457 = vmatprep.subr.bf16.mxu0 %v8456_v24  ;;  %v4103_v41 = vld [vmem:[#allocation13 + $0xb0] sm:$0xff]  ;;  %v8470_v20 = vpack.c.bf16 %v4101_v14, %v4097_v13  ;;  %v4120_v25 = vld [vmem:[#allocation13 + $0x138] sm:$0xff]  ;;  %v4122_v44 = vld [vmem:[#allocation13 + $0x148] sm:$0xff] }
 0x7b9   :  { %4520 = vmatmul.mubr.f32.gmra.mrb[60].mxu1 %v4425_v7  ;;  %4686 = vmatmul.mubr.f32.gmra.mrb[24].mxu0 %v4425_v7  ;;  %v10177_v39 = vld [vmem:[#allocation2 + $0x70] sm:$0xff]  ;;  %v4100_v7 = vld [vmem:[#allocation13 + $0x98] sm:$0xff]  ;;  %v8550_v24 = vpack.c.bf16 %v4103_v41, %v4099_v16  ;;  %v4115_v40 = vld [vmem:[#allocation13 + $0x110] sm:$0xff] }
 0x7ba   :  { %4590 = vmatprep.mubr.f32.mxu1 %v9555_v0  ;;  %4756 = vmatprep.mubr.f32.mxu0 %v9555_v0  ;;  %v4423_v43 = vrot.slane %v10177_v39, 1  ;;  %v8548_v63 = vpack.c.bf16 %v4104_v9, %v4100_v7  ;;  %v4126_v45 = vld [vmem:[#allocation13 + $0x168] sm:$0xff]  ;;  %v4124_v1 = vld [vmem:[#allocation13 + $0x158] sm:$0xff]  ;;  %v4125_v52 = vld [vmem:[#allocation13 + $0x160] sm:$0xff] }
 0x7bb   :  { %8379 = vmatpush1.bf16.msra.mxu1 %v8378_v23  ;;  %8459 = vmatpush1.bf16.msra.mxu0 %v8458_v32  ;;  %v4114_v23 = vld [vmem:[#allocation13 + $0x108] sm:$0xff]  ;;  %v4123_v53 = vld [vmem:[#allocation13 + $0x150] sm:$0xff]  ;;  %v4132_v58 = vld [vmem:[#allocation13 + $0x198] sm:$0xff] }
 0x7bc   :  { %v4424_v51 = vsel %vm1174_vm6, %v4422_v42, %v4423_v43  ;;  %8461 = vmatprep.subr.bf16.mxu1 %v8460_v35  ;;  %8541 = vmatprep.subr.bf16.mxu0 %v8540_v36  ;;  %v4118_v32 = vld [vmem:[#allocation13 + $0x128] sm:$0xff]  ;;  %v8474_v35 = vpack.c.bf16 %v4109_v26, %v4105_v62  ;;  %v8554_v36 = vpack.c.bf16 %v4111_v31, %v4107_v30  ;;  %v4135_v14 = vld [vmem:[#allocation13 + $0x1b0] sm:$0xff]  ;;  %v4140_v16 = vld [vmem:[#allocation13 + $0x1d8] sm:$0xff] }
 0x7bd   :  { %v4246_v56 = vld [vmem:[#allocation2 + $0x88] sm:$0x1f]  ;;  %v8476_v37 = vpack.c.bf16 %v4118_v32, %v4114_v23  ;;  %v8556_v42 = vpack.c.bf16 %v4120_v25, %v4116_v34  ;;  %v4143_v26 = vld [vmem:[#allocation13 + $0x1f0] sm:$0xff]  ;;  %v4146_v30 = vld [vmem:[#allocation13 + $0x208] sm:$0xff] }
 0x7be   :  { %7116 = vmatmul.mubr.msk.f32.vlgmr.msra.gmra.mrb[56].mxu1 %vm820_vm5, %v4424_v51  ;;  %7119 = vmatmul.mubr.msk.f32.vlgmr.msra.gmra.mrb[20].mxu0 %vm820_vm5, %v4424_v51  ;;  %v4429_v60 = vrot.slane %v4246_v56, 1  ;;  %v8480_v51 = vpack.c.bf16 %v4126_v45, %v4122_v44  ;;  %v4127_v56 = vld [vmem:[#allocation13 + $0x170] sm:$0xff]  ;;  %v4144_v41 = vld [vmem:[#allocation13 + $0x1f8] sm:$0xff]  ;;  %v4137_v22 = vld [vmem:[#allocation13 + $0x1c0] sm:$0xff] }
 0x7bf   :  { %8463 = vmatpush1.bf16.msra.mxu1 %v8462_v46  ;;  %8543 = vmatpush1.bf16.msra.mxu0 %v8542_v29  ;;  %v4128_v46 = vld [vmem:[#allocation13 + $0x178] sm:$0xff]  ;;  %v8478_v29 = vpack.c.bf16 %v4117_v28, %v4113_v38  ;;  %v8562_v7 = vpack.c.bf16 %v4127_v56, %v4123_v53  ;;  %v8568_v62 = vpack.c.bf16 %v4144_v41, %v4140_v16  ;;  %v4145_v25 = vld [vmem:[#allocation13 + $0x200] sm:$0xff]  ;;  %v4151_v38 = vld [vmem:[#allocation13 + $0x230] sm:$0xff] }
 0x7c0   :  { %4596 = vmatprep.mubr.f32.mxu1 %v9555_v0  ;;  %4762 = vmatprep.mubr.f32.mxu0 %v9555_v0  ;;  %v4430_v12 = vsel %vm1174_vm6, %v4423_v43, %v4429_v60  ;;  %v4119_v43 = vld [vmem:[#allocation13 + $0x130] sm:$0xff]  ;;  %v8560_v54 = vpack.c.bf16 %v4128_v46, %v4124_v1  ;;  %v4152_v31 = vld [vmem:[#allocation13 + $0x238] sm:$0xff]  ;;  %v4154_v28 = vld [vmem:[#allocation13 + $0x248] sm:$0xff] }
 0x7c1   :  { %8465 = vmatprep.subr.bf16.mxu1 %v8464_v59  ;;  %8545 = vmatprep.subr.bf16.mxu0 %v8544_v57  ;;  %v8558_v47 = vpack.c.bf16 %v4119_v43, %v4115_v40  ;;  %v4130_v59 = vld [vmem:[#allocation13 + $0x188] sm:$0xff]  ;;  %v4160_v43 = vld [vmem:[#allocation13 + $0x278] sm:$0xff]  ;;  %v4153_v46 = vld [vmem:[#allocation13 + $0x240] sm:$0xff] }
 0x7c2   :  { %7117 = vmatmul.mubr.msk.f32.gmra.mrb[58].mxu1 %vm820_vm5, %v4430_v12  ;;  %7120 = vmatmul.mubr.msk.f32.gmra.mrb[22].mxu0 %vm820_vm5, %v4430_v12  ;;  %v4134_v57 = vld [vmem:[#allocation13 + $0x1a8] sm:$0xff]  ;;  %v4131_v12 = vld [vmem:[#allocation13 + $0x190] sm:$0xff]  ;;  %v4168_v56 = vld [vmem:[#allocation13 + $0x2b8] sm:$0xff] }
 0x7c3   :  { %8467 = vmatpush1.bf16.msra.mxu1 %v8466_v10  ;;  %8547 = vmatpush1.bf16.msra.mxu0 %v8546_v11  ;;  %v8484_v9 = vpack.c.bf16 %v4134_v57, %v4130_v59  ;;  %v4129_v10 = vld [vmem:[#allocation13 + $0x180] sm:$0xff]  ;;  %v8566_v5 = vpack.c.bf16 %v4135_v14, %v4131_v12  ;;  %v4158_v40 = vld [vmem:[#allocation13 + $0x268] sm:$0xff]  ;;  %v4176_v14 = vld [vmem:[#allocation13 + $0x2f8] sm:$0xff] }
 0x7c4   :  { %4602 = vmatprep.mubr.f32.mxu1 %v9555_v0  ;;  %4768 = vmatprep.mubr.f32.mxu0 %v9555_v0  ;;  %v4133_v11 = vld [vmem:[#allocation13 + $0x1a0] sm:$0xff]  ;;  %v8496_v1 = vpack.c.bf16 %v4158_v40, %v4154_v28  ;;  %v4166_v53 = vld [vmem:[#allocation13 + $0x2a8] sm:$0xff] }
 0x7c5   :  { %8469 = vmatprep.subr.bf16.mxu1 %v8468_v15  ;;  %8549 = vmatprep.subr.bf16.mxu0 %v8548_v63  ;;  %v4138_v15 = vld [vmem:[#allocation13 + $0x1c8] sm:$0xff]  ;;  %v8486_v6 = vpack.c.bf16 %v4133_v11, %v4129_v10  ;;  %v4167_v10 = vld [vmem:[#allocation13 + $0x2b0] sm:$0xff]  ;;  %v4169_v41 = vld [vmem:[#allocation13 + $0x2c0] sm:$0xff] }
 0x7c6   :  { %7118 = vmatmul.mubr.msk.f32.gmra.mrb[60].mxu1 %vm820_vm5, %v4429_v60  ;;  %7121 = vmatmul.mubr.msk.f32.gmra.mrb[24].mxu0 %vm820_vm5, %v4429_v60  ;;  %v4136_v60 = vld [vmem:[#allocation13 + $0x1b8] sm:$0xff]  ;;  %v4142_v63 = vld [vmem:[#allocation13 + $0x1e8] sm:$0xff] }
 0x7c7   :  { %8471 = vmatpush1.bf16.msra.mxu1 %v8470_v20  ;;  %4847 = vmatprep.mubr.f32.mxu1 %v10146_v50  ;;  %v8564_v13 = vpack.c.bf16 %v4136_v60, %v4132_v58  ;;  %v8488_v21 = vpack.c.bf16 %v4142_v63, %v4138_v15  ;;  %v4141_v20 = vld [vmem:[#allocation13 + $0x1e0] sm:$0xff]  ;;  %v4170_v11 = vld [vmem:[#allocation13 + $0x2c8] sm:$0xff] }
 0x7c8   :  { %8551 = vmatpush1.bf16.msra.mxu0 %v8550_v24  ;;  %5013 = vmatprep.mubr.f32.mxu0 %v10146_v50  ;;  %v4121_v50 = vld [vmem:[#allocation13 + $0x140] sm:$0xff]  ;;  %v4139_v24 = vld [vmem:[#allocation13 + $0x1d0] sm:$0xff]  ;;  %v8490_v23 = vpack.c.bf16 %v4141_v20, %v4137_v22  ;;  %v4174_v12 = vld [vmem:[#allocation13 + $0x2e8] sm:$0xff] }
 0x7c9   :  { %8473 = vmatprep.subr.bf16.mxu1 %v8472_v17  ;;  %8553 = vmatprep.subr.bf16.mxu0 %v8552_v27  ;;  %v8482_v3 = vpack.c.bf16 %v4125_v52, %v4121_v50  ;;  %v4150_v17 = vld [vmem:[#allocation13 + $0x228] sm:$0xff]  ;;  %v4148_v27 = vld [vmem:[#allocation13 + $0x218] sm:$0xff]  ;;  %v8570_v32 = vpack.c.bf16 %v4143_v26, %v4139_v24  ;;  %v4159_v50 = vld [vmem:[#allocation13 + $0x270] sm:$0xff]  ;;  %v8504_v16 = vpack.c.bf16 %v4174_v12, %v4170_v11 }
 0x7ca   :  { %v8492_v34 = vpack.c.bf16 %v4150_v17, %v4146_v30  ;;  %v4162_v52 = vld [vmem:[#allocation13 + $0x288] sm:$0xff]  ;;  %v4161_v60 = vld [vmem:[#allocation13 + $0x280] sm:$0xff]  ;;  %v4175_v22 = vld [vmem:[#allocation13 + $0x2f0] sm:$0xff] }
 0x7cb   :  { %8475 = vmatpush1.bf16.msra.mxu1 %v8474_v35  ;;  %v4149_v35 = vld [vmem:[#allocation13 + $0x220] sm:$0xff]  ;;  %v8500_v58 = vpack.c.bf16 %v4166_v53, %v4162_v52  ;;  %v4178_v20 = vld [vmem:[#allocation13 + $0x308] sm:$0xff]  ;;  %v4184_v26 = vld [vmem:[#allocation13 + $0x338] sm:$0xff] }
 0x7cc   :  { %8555 = vmatpush1.bf16.msra.mxu0 %v8554_v36  ;;  %8477 = vmatprep.subr.bf16.mxu1 %v8476_v37  ;;  %v4147_v36 = vld [vmem:[#allocation13 + $0x210] sm:$0xff]  ;;  %v8572_v37 = vpack.c.bf16 %v4152_v31, %v4148_v27  ;;  %v8494_v44 = vpack.c.bf16 %v4149_v35, %v4145_v25  ;;  %v4182_v24 = vld [vmem:[#allocation13 + $0x328] sm:$0xff]  ;;  %v4177_v31 = vld [vmem:[#allocation13 + $0x300] sm:$0xff] }
 0x7cd   :  { %8557 = vmatprep.subr.bf16.mxu0 %v8556_v42  ;;  %v4156_v42 = vld [vmem:[#allocation13 + $0x258] sm:$0xff]  ;;  %v8574_v45 = vpack.c.bf16 %v4151_v38, %v4147_v36  ;;  %v8508_v27 = vpack.c.bf16 %v4182_v24, %v4178_v20  ;;  %v4183_v25 = vld [vmem:[#allocation13 + $0x330] sm:$0xff]  ;;  %v4186_v35 = vld [vmem:[#allocation13 + $0x348] sm:$0xff] }
 0x7ce   :  { %v4190_v36 = vld [vmem:[#allocation13 + $0x368] sm:$0xff]  ;;  %v4192_v38 = vld [vmem:[#allocation13 + $0x378] sm:$0xff] }
 0x7cf   :  { %8479 = vmatpush1.bf16.msra.mxu1 %v8478_v29  ;;  %v4157_v29 = vld [vmem:[#allocation13 + $0x260] sm:$0xff] }
 0x7d0   :  { %8559 = vmatpush1.bf16.msra.mxu0 %v8558_v47  ;;  %8481 = vmatprep.subr.bf16.mxu1 %v8480_v51  ;;  %v4155_v47 = vld [vmem:[#allocation13 + $0x250] sm:$0xff]  ;;  %v8576_v51 = vpack.c.bf16 %v4160_v43, %v4156_v42  ;;  %v8498_v59 = vpack.c.bf16 %v4157_v29, %v4153_v46  ;;  %v8512_v42 = vpack.c.bf16 %v4190_v36, %v4186_v35  ;;  %v4185_v43 = vld [vmem:[#allocation13 + $0x340] sm:$0xff]  ;;  %v4194_v29 = vld [vmem:[#allocation13 + $0x388] sm:$0xff] }
 0x7d1   :  { %8561 = vmatprep.subr.bf16.mxu0 %v8560_v54  ;;  %v4164_v54 = vld [vmem:[#allocation13 + $0x298] sm:$0xff]  ;;  %v8578_v57 = vpack.c.bf16 %v4159_v50, %v4155_v47  ;;  %v4191_v46 = vld [vmem:[#allocation13 + $0x370] sm:$0xff]  ;;  %v4198_v47 = vld [vmem:[#allocation13 + $0x3a8] sm:$0xff] }
 0x7d2   :  { %v4200_v50 = vld [vmem:[#allocation13 + $0x3b8] sm:$0xff] }
 0x7d3   :  { %8483 = vmatpush1.bf16.msra.mxu1 %v8482_v3  ;;  %v4165_v3 = vld [vmem:[#allocation13 + $0x2a0] sm:$0xff] }
 0x7d4   :  { %8563 = vmatpush1.bf16.msra.mxu0 %v8562_v7  ;;  %8485 = vmatprep.subr.bf16.mxu1 %v8484_v9  ;;  %v4163_v7 = vld [vmem:[#allocation13 + $0x290] sm:$0xff]  ;;  %v8580_v9 = vpack.c.bf16 %v4168_v56, %v4164_v54  ;;  %v8502_v15 = vpack.c.bf16 %v4165_v3, %v4161_v60  ;;  %v8516_v54 = vpack.c.bf16 %v4198_v47, %v4194_v29  ;;  %v4193_v56 = vld [vmem:[#allocation13 + $0x380] sm:$0xff]  ;;  %v4202_v3 = vld [vmem:[#allocation13 + $0x3c8] sm:$0xff] }
 0x7d5   :  { %8565 = vmatprep.subr.bf16.mxu0 %v8564_v13  ;;  %v4172_v13 = vld [vmem:[#allocation13 + $0x2d8] sm:$0xff]  ;;  %v8582_v63 = vpack.c.bf16 %v4167_v10, %v4163_v7  ;;  %v4199_v60 = vld [vmem:[#allocation13 + $0x3b0] sm:$0xff]  ;;  %v4206_v7 = vld [vmem:[#allocation13 + $0x3e8] sm:$0xff] }
 0x7d6   :  { %v4208_v10 = vld [vmem:[#allocation13 + $0x3f8] sm:$0xff]  ;;  %v4225_v47 = vld [vmem:[#allocation13 + $0x480] sm:$0xff] }
 0x7d7   :  { %8487 = vmatpush1.bf16.msra.mxu1 %v8486_v6  ;;  %v4173_v6 = vld [vmem:[#allocation13 + $0x2e0] sm:$0xff] }
 0x7d8   :  { %8567 = vmatpush1.bf16.msra.mxu0 %v8566_v5  ;;  %8489 = vmatprep.subr.bf16.mxu1 %v8488_v21  ;;  %v4171_v5 = vld [vmem:[#allocation13 + $0x2d0] sm:$0xff]  ;;  %v8584_v21 = vpack.c.bf16 %v4176_v14, %v4172_v13  ;;  %v8506_v30 = vpack.c.bf16 %v4173_v6, %v4169_v41  ;;  %v8520_v13 = vpack.c.bf16 %v4206_v7, %v4202_v3  ;;  %v4201_v14 = vld [vmem:[#allocation13 + $0x3c0] sm:$0xff]  ;;  %v4210_v6 = vld [vmem:[#allocation13 + $0x408] sm:$0xff] }
 0x7d9   :  { %8569 = vmatprep.subr.bf16.mxu0 %v8568_v62  ;;  %v4180_v62 = vld [vmem:[#allocation13 + $0x318] sm:$0xff]  ;;  %v8586_v17 = vpack.c.bf16 %v4175_v22, %v4171_v5  ;;  %v4207_v41 = vld [vmem:[#allocation13 + $0x3f0] sm:$0xff]  ;;  %v4214_v5 = vld [vmem:[#allocation13 + $0x428] sm:$0xff] }
 0x7da   :  { %v4216_v22 = vld [vmem:[#allocation13 + $0x438] sm:$0xff]  ;;  %v4233_v3 = vld [vmem:[#allocation13 + $0x4c0] sm:$0xff]  ;;  %v4078_v7 = vld [vmem:[#allocation2 + $0x78] sm:$0xf] }
 0x7db   :  { %8491 = vmatpush1.bf16.msra.mxu1 %v8490_v23  ;;  %v4181_v23 = vld [vmem:[#allocation13 + $0x320] sm:$0xff] }
 0x7dc   :  { %8571 = vmatpush1.bf16.msra.mxu0 %v8570_v32  ;;  %8493 = vmatprep.subr.bf16.mxu1 %v8492_v34  ;;  %v4179_v32 = vld [vmem:[#allocation13 + $0x310] sm:$0xff]  ;;  %v8588_v34 = vpack.c.bf16 %v4184_v26, %v4180_v62  ;;  %v8510_v28 = vpack.c.bf16 %v4181_v23, %v4177_v31  ;;  %v8524_v62 = vpack.c.bf16 %v4214_v5, %v4210_v6  ;;  %v4218_v23 = vld [vmem:[#allocation13 + $0x448] sm:$0xff] }
 0x7dd   :  { %8573 = vmatprep.subr.bf16.mxu0 %v8572_v37  ;;  %v4188_v37 = vld [vmem:[#allocation13 + $0x358] sm:$0xff]  ;;  %v8590_v40 = vpack.c.bf16 %v4183_v25, %v4179_v32  ;;  %v4215_v31 = vld [vmem:[#allocation13 + $0x430] sm:$0xff]  ;;  %v4222_v32 = vld [vmem:[#allocation13 + $0x468] sm:$0xff] }
 0x7de   :  { %v4224_v25 = vld [vmem:[#allocation13 + $0x478] sm:$0xff] }
 0x7df   :  { %8495 = vmatpush1.bf16.msra.mxu1 %v8494_v44  ;;  %v4189_v44 = vld [vmem:[#allocation13 + $0x360] sm:$0xff] }
 0x7e0   :  { %8575 = vmatpush1.bf16.msra.mxu0 %v8574_v45  ;;  %8497 = vmatprep.subr.bf16.mxu1 %v8496_v1  ;;  %v4187_v45 = vld [vmem:[#allocation13 + $0x350] sm:$0xff]  ;;  %v8592_v1 = vpack.c.bf16 %v4192_v38, %v4188_v37  ;;  %v8514_v52 = vpack.c.bf16 %v4189_v44, %v4185_v43  ;;  %v8528_v37 = vpack.c.bf16 %v4222_v32, %v4218_v23  ;;  %v4217_v38 = vld [vmem:[#allocation13 + $0x440] sm:$0xff]  ;;  %v4226_v44 = vld [vmem:[#allocation13 + $0x488] sm:$0xff] }
 0x7e1   :  { %8577 = vmatprep.subr.bf16.mxu0 %v8576_v51  ;;  %v4196_v51 = vld [vmem:[#allocation13 + $0x398] sm:$0xff]  ;;  %v8594_v53 = vpack.c.bf16 %v4191_v46, %v4187_v45  ;;  %v4223_v43 = vld [vmem:[#allocation13 + $0x470] sm:$0xff]  ;;  %v4230_v45 = vld [vmem:[#allocation13 + $0x4a8] sm:$0xff] }
 0x7e2   :  { %v4232_v46 = vld [vmem:[#allocation13 + $0x4b8] sm:$0xff]  ;;  %v5129_v32 = vld [vmem:[#allocation13 + $0xa40] sm:$0xff] }
 0x7e3   :  { %8499 = vmatpush1.bf16.msra.mxu1 %v8498_v59  ;;  %v4197_v59 = vld [vmem:[#allocation13 + $0x3a0] sm:$0xff] }
 0x7e4   :  { %8579 = vmatpush1.bf16.msra.mxu0 %v8578_v57  ;;  %8501 = vmatprep.subr.bf16.mxu1 %v8500_v58  ;;  %v4195_v57 = vld [vmem:[#allocation13 + $0x390] sm:$0xff]  ;;  %v8596_v58 = vpack.c.bf16 %v4200_v50, %v4196_v51  ;;  %v8518_v11 = vpack.c.bf16 %v4197_v59, %v4193_v56  ;;  %v8532_v50 = vpack.c.bf16 %v4230_v45, %v4226_v44  ;;  %v4234_v59 = vld [vmem:[#allocation13 + $0x4c8] sm:$0xff]  ;;  %v5144_v44 = vld [vmem:[#allocation13 + $0xab8] sm:$0xff] }
 0x7e5   :  { %8581 = vmatprep.subr.bf16.mxu0 %v8580_v9  ;;  %v4204_v9 = vld [vmem:[#allocation13 + $0x3d8] sm:$0xff]  ;;  %v8598_v12 = vpack.c.bf16 %v4199_v60, %v4195_v57  ;;  %v4238_v57 = vld [vmem:[#allocation13 + $0x4e8] sm:$0xff] }
 0x7e7   :  { %8503 = vmatpush1.bf16.msra.mxu1 %v8502_v15  ;;  %v4205_v15 = vld [vmem:[#allocation13 + $0x3e0] sm:$0xff] }
 0x7e8   :  { %8583 = vmatpush1.bf16.msra.mxu0 %v8582_v63  ;;  %8505 = vmatprep.subr.bf16.mxu1 %v8504_v16  ;;  %v4203_v63 = vld [vmem:[#allocation13 + $0x3d0] sm:$0xff]  ;;  %v8600_v16 = vpack.c.bf16 %v4208_v10, %v4204_v9  ;;  %v8522_v20 = vpack.c.bf16 %v4205_v15, %v4201_v14  ;;  %v8536_v10 = vpack.c.bf16 %v4238_v57, %v4234_v59  ;;  %v5122_v15 = vld [vmem:[#allocation13 + $0xa08] sm:$0xff]  ;;  %v5148_v59 = vld [vmem:[#allocation13 + $0xad8] sm:$0xff] }
 0x7e9   :  { %8585 = vmatprep.subr.bf16.mxu0 %v8584_v21  ;;  %v4212_v21 = vld [vmem:[#allocation13 + $0x418] sm:$0xff]  ;;  %v8602_v24 = vpack.c.bf16 %v4207_v41, %v4203_v63  ;;  %v4239_v14 = vld [vmem:[#allocation13 + $0x4f0] sm:$0xff] }
 0x7ea   :  { %v8604_v26 = vpack.c.bf16 %v4216_v22, %v4212_v21  ;;  %v5124_v63 = vld [vmem:[#allocation13 + $0xa18] sm:$0xff]  ;;  %v5121_v21 = vld [vmem:[#allocation13 + $0xa00] sm:$0xff] }
 0x7eb   :  { %8507 = vmatpush1.bf16.msra.mxu1 %v8506_v30  ;;  %v4209_v30 = vld [vmem:[#allocation13 + $0x400] sm:$0xff]  ;;  %v5152_v57 = vld [vmem:[#allocation13 + $0xaf8] sm:$0xff] }
 0x7ec   :  { %8587 = vmatpush1.bf16.msra.mxu0 %v8586_v17  ;;  %8509 = vmatprep.subr.bf16.mxu1 %v8508_v27  ;;  %v4213_v17 = vld [vmem:[#allocation13 + $0x420] sm:$0xff]  ;;  %v4211_v27 = vld [vmem:[#allocation13 + $0x410] sm:$0xff] }
 0x7ed   :  { %8589 = vmatprep.subr.bf16.mxu0 %v8588_v34  ;;  %v4220_v34 = vld [vmem:[#allocation13 + $0x458] sm:$0xff]  ;;  %v8526_v35 = vpack.c.bf16 %v4213_v17, %v4209_v30  ;;  %v8606_v36 = vpack.c.bf16 %v4215_v31, %v4211_v27  ;;  %v5125_v22 = vld [vmem:[#allocation13 + $0xa20] sm:$0xff]  ;;  %v5134_v30 = vld [vmem:[#allocation13 + $0xa68] sm:$0xff] }
 0x7ee   :  { %v8622_v17 = vpack.c.bf16 %v5125_v22, %v5121_v21  ;;  %v5132_v27 = vld [vmem:[#allocation13 + $0xa58] sm:$0xff]  ;;  %v5157_v21 = vld [vmem:[#allocation13 + $0xb20] sm:$0xff]  ;;  %v5155_v22 = vld [vmem:[#allocation13 + $0xb10] sm:$0xff] }
 0x7ef   :  { %8511 = vmatpush1.bf16.msra.mxu1 %v8510_v28  ;;  %v4221_v28 = vld [vmem:[#allocation13 + $0x460] sm:$0xff]  ;;  %v5136_v31 = vld [vmem:[#allocation13 + $0xa78] sm:$0xff] }
 0x7f0   :  { %8591 = vmatpush1.bf16.msra.mxu0 %v8590_v40  ;;  %8513 = vmatprep.subr.bf16.mxu1 %v8512_v42  ;;  %v4219_v40 = vld [vmem:[#allocation13 + $0x450] sm:$0xff]  ;;  %v8608_v42 = vpack.c.bf16 %v4224_v25, %v4220_v34  ;;  %v8530_v29 = vpack.c.bf16 %v4221_v28, %v4217_v38  ;;  %v5133_v34 = vld [vmem:[#allocation13 + $0xa60] sm:$0xff]  ;;  %v8704_v38 = vpack.c.bf16 %v5136_v31, %v5132_v27  ;;  %v5138_v28 = vld [vmem:[#allocation13 + $0xa88] sm:$0xff] }
 0x7f1   :  { %8593 = vmatprep.subr.bf16.mxu0 %v8592_v1  ;;  %v4228_v1 = vld [vmem:[#allocation13 + $0x498] sm:$0xff]  ;;  %v8610_v51 = vpack.c.bf16 %v4223_v43, %v4219_v40  ;;  %v4074_v25 = vld [vmem:[#allocation2 + $0x58] sm:$0xff] }
 0x7f2   :  { %v8612_v56 = vpack.c.bf16 %v4232_v46, %v4228_v1  ;;  %v5142_v40 = vld [vmem:[#allocation13 + $0xaa8] sm:$0xff]  ;;  %v5140_v43 = vld [vmem:[#allocation13 + $0xa98] sm:$0xff]  ;;  %v5137_v1 = vld [vmem:[#allocation13 + $0xa80] sm:$0xff] }
 0x7f3   :  { %8515 = vmatpush1.bf16.msra.mxu1 %v8514_v52  ;;  %v4229_v52 = vld [vmem:[#allocation13 + $0x4a0] sm:$0xff] }
 0x7f4   :  { %8595 = vmatpush1.bf16.msra.mxu0 %v8594_v53  ;;  %8517 = vmatprep.subr.bf16.mxu1 %v8516_v54  ;;  %v4227_v53 = vld [vmem:[#allocation13 + $0x490] sm:$0xff]  ;;  %v8534_v60 = vpack.c.bf16 %v4229_v52, %v4225_v47  ;;  %v5141_v46 = vld [vmem:[#allocation13 + $0xaa0] sm:$0xff]  ;;  %v8628_v47 = vpack.c.bf16 %v5142_v40, %v5138_v28  ;;  %v8708_v52 = vpack.c.bf16 %v5144_v44, %v5140_v43  ;;  %v5172_v28 = vld [vmem:[#allocation13 + $0xb98] sm:$0xff] }
 0x7f5   :  { %8597 = vmatprep.subr.bf16.mxu0 %v8596_v58  ;;  %v4231_v54 = vld [vmem:[#allocation13 + $0x4b0] sm:$0xff]  ;;  %v4240_v58 = vld [vmem:[#allocation13 + $0x4f8] sm:$0xff] }
 0x7f6   :  { %v8614_v9 = vpack.c.bf16 %v4231_v54, %v4227_v53  ;;  %v5146_v53 = vld [vmem:[#allocation13 + $0xac8] sm:$0xff]  ;;  %v5176_v40 = vld [vmem:[#allocation13 + $0xbb8] sm:$0xff] }
 0x7f7   :  { %8519 = vmatpush1.bf16.msra.mxu1 %v8518_v11  ;;  %v4237_v11 = vld [vmem:[#allocation13 + $0x4e0] sm:$0xff]  ;;  %v5150_v54 = vld [vmem:[#allocation13 + $0xae8] sm:$0xff] }
 0x7f8   :  { %8599 = vmatpush1.bf16.msra.mxu0 %v8598_v12  ;;  %8521 = vmatprep.subr.bf16.mxu1 %v8520_v13  ;;  %v4235_v12 = vld [vmem:[#allocation13 + $0x4d0] sm:$0xff]  ;;  %v8538_v41 = vpack.c.bf16 %v4237_v11, %v4233_v3  ;;  %v8632_v11 = vpack.c.bf16 %v5150_v54, %v5146_v53  ;;  %v5184_v53 = vld [vmem:[#allocation13 + $0xbf8] sm:$0xff] }
 0x7f9   :  { %8601 = vmatprep.subr.bf16.mxu0 %v8600_v16  ;;  %v5128_v16 = vld [vmem:[#allocation13 + $0xa38] sm:$0xff]  ;;  %v8618_v6 = vpack.c.bf16 %v4239_v14, %v4235_v12  ;;  %v5147_v3 = vld [vmem:[#allocation13 + $0xad0] sm:$0xff]  ;;  %v5154_v12 = vld [vmem:[#allocation13 + $0xb08] sm:$0xff]  ;;  %v8712_v14 = vpack.c.bf16 %v5152_v57, %v5148_v59 }
 0x7fa   :  { %v5177_v59 = vld [vmem:[#allocation13 + $0xbc0] sm:$0xff] }
 0x7fb   :  { %8523 = vmatpush1.bf16.msra.mxu1 %v8522_v20  ;;  %v8700_v20 = vpack.c.bf16 %v5128_v16, %v5124_v63  ;;  %v5181_v57 = vld [vmem:[#allocation13 + $0xbe0] sm:$0xff] }
 0x7fc   :  { %8603 = vmatpush1.bf16.msra.mxu0 %v8602_v24  ;;  %8525 = vmatprep.subr.bf16.mxu1 %v8524_v62  ;;  %v5123_v24 = vld [vmem:[#allocation13 + $0xa10] sm:$0xff] }
 0x7fd   :  { %8605 = vmatprep.subr.bf16.mxu0 %v8604_v26  ;;  %v5127_v62 = vld [vmem:[#allocation13 + $0xa30] sm:$0xff]  ;;  %v5130_v26 = vld [vmem:[#allocation13 + $0xa48] sm:$0xff] }
 0x7fe   :  { %4848 = vmatmul.mubr.f32.vlgmr.msra.gmra.mrb[56].mxu1 %v10144_v49  ;;  %v8702_v23 = vpack.c.bf16 %v5127_v62, %v5123_v24  ;;  %v5159_v24 = vld [vmem:[#allocation13 + $0xb30] sm:$0xff]  ;;  %v5162_v62 = vld [vmem:[#allocation13 + $0xb48] sm:$0xff] }
 0x7ff   :  { %5014 = vmatmul.mubr.f32.vlgmr.msra.gmra.mrb[20].mxu0 %v10144_v49  ;;  %4853 = vmatprep.mubr.f32.mxu1 %v10152_v33  ;;  %v4079_v49 = vld [vmem:[#allocation2 + $0x80] sm:$0xf]  ;;  %v8718_v31 = vpack.c.bf16 %v5159_v24, %v5155_v22  ;;  %v5200_v22 = vld [vmem:[#allocation13 + $0xc78] sm:$0xff] }
 0x800   :  { %8527 = vmatpush1.bf16.msra.mxu1 %v8526_v35  ;;  %5019 = vmatprep.mubr.f32.mxu0 %v10152_v33  ;;  %v4236_v33 = vld [vmem:[#allocation13 + $0x4d8] sm:$0xff]  ;;  %v8624_v35 = vpack.c.bf16 %v5134_v30, %v5130_v26  ;;  %v5166_v26 = vld [vmem:[#allocation13 + $0xb68] sm:$0xff] }
 0x801   :  { %8607 = vmatpush1.bf16.msra.mxu0 %v8606_v36  ;;  %8529 = vmatprep.subr.bf16.mxu1 %v8528_v37  ;;  %v8616_v13 = vpack.c.bf16 %v4240_v58, %v4236_v33  ;;  %v5131_v36 = vld [vmem:[#allocation13 + $0xa50] sm:$0xff]  ;;  %v5145_v33 = vld [vmem:[#allocation13 + $0xac0] sm:$0xff]  ;;  %v5164_v30 = vld [vmem:[#allocation13 + $0xb58] sm:$0xff] }
 0x802   :  { %4854 = vmatmul.mubr.f32.gmra.mrb[58].mxu1 %v10150_v55  ;;  %8609 = vmatprep.subr.bf16.mxu0 %v8608_v42  ;;  %v5135_v37 = vld [vmem:[#allocation13 + $0xa70] sm:$0xff]  ;;  %v8626_v42 = vpack.c.bf16 %v5133_v34, %v5129_v32  ;;  %v5161_v32 = vld [vmem:[#allocation13 + $0xb40] sm:$0xff] }
 0x803   :  { %5020 = vmatmul.mubr.f32.gmra.mrb[22].mxu0 %v10150_v55  ;;  %4859 = vmatprep.mubr.f32.mxu1 %v4079_v49  ;;  %v5126_v55 = vld [vmem:[#allocation13 + $0xa28] sm:$0xff]  ;;  %v8706_v45 = vpack.c.bf16 %v5135_v37, %v5131_v36  ;;  %v5165_v34 = vld [vmem:[#allocation13 + $0xb60] sm:$0xff]  ;;  %v5167_v36 = vld [vmem:[#allocation13 + $0xb70] sm:$0xff] }
 0x804   :  { %8531 = vmatpush1.bf16.msra.mxu1 %v8530_v29  ;;  %5025 = vmatprep.mubr.f32.mxu0 %v4079_v49  ;;  %v8620_v5 = vpack.c.bf16 %v5126_v55, %v5122_v15  ;;  %v5116_v29 = vld [vmem:[#allocation2 + $0x50] sm:$0xfc]  ;;  %v8630_v49 = vpack.c.bf16 %v5141_v46, %v5137_v1  ;;  %v5156_v15 = vld [vmem:[#allocation13 + $0xb18] sm:$0xff]  ;;  %v5171_v46 = vld [vmem:[#allocation13 + $0xb90] sm:$0xff] }
 0x805   :  { %8611 = vmatpush1.bf16.msra.mxu0 %v8610_v51  ;;  %8533 = vmatprep.subr.bf16.mxu1 %v8532_v50  ;;  %v5139_v51 = vld [vmem:[#allocation13 + $0xa90] sm:$0xff]  ;;  %v5160_v55 = vld [vmem:[#allocation13 + $0xb38] sm:$0xff]  ;;  %v5170_v37 = vld [vmem:[#allocation13 + $0xb88] sm:$0xff] }
 0x806   :  { %4860 = vmatmul.mubr.f32.gmra.mrb[60].mxu1 %v4078_v7  ;;  %8613 = vmatprep.subr.bf16.mxu0 %v8612_v56  ;;  %v5143_v50 = vld [vmem:[#allocation13 + $0xab0] sm:$0xff]  ;;  %v5290_v56 = vrot.slane %v5116_v29, 2  ;;  %v5173_v1 = vld [vmem:[#allocation13 + $0xba0] sm:$0xff]  ;;  %v8724_v29 = vpack.c.bf16 %v5176_v40, %v5172_v28 }
 0x807   :  { %5026 = vmatmul.mubr.f32.gmra.mrb[24].mxu0 %v4078_v7  ;;  %4930 = vmatprep.mubr.f32.mxu1 %v9555_v0  ;;  %v8710_v58 = vpack.c.bf16 %v5143_v50, %v5139_v51  ;;  %v5151_v7 = vld [vmem:[#allocation13 + $0xaf0] sm:$0xff]  ;;  %v5178_v51 = vld [vmem:[#allocation13 + $0xbc8] sm:$0xff]  ;;  %v5205_v28 = vld [vmem:[#allocation13 + $0xca0] sm:$0xff] }
 0x808   :  { %8535 = vmatpush1.bf16.msra.mxu1 %v8534_v60  ;;  %5096 = vmatprep.mubr.f32.mxu0 %v9555_v0  ;;  %v5149_v60 = vld [vmem:[#allocation13 + $0xae0] sm:$0xff]  ;;  %v5182_v50 = vld [vmem:[#allocation13 + $0xbe8] sm:$0xff]  ;;  %v5203_v40 = vld [vmem:[#allocation13 + $0xc90] sm:$0xff] }
 0x809   :  { %8615 = vmatpush1.bf16.msra.mxu0 %v8614_v9  ;;  %8537 = vmatprep.subr.bf16.mxu1 %v8536_v10  ;;  %v4080_v9 = vld [vmem:[#allocation2 + $0x88] sm:$0xf]  ;;  %v8634_v16 = vpack.c.bf16 %v5149_v60, %v5145_v33  ;;  %v5179_v33 = vld [vmem:[#allocation13 + $0xbd0] sm:$0xff] }
 0x80a   :  { %8617 = vmatprep.subr.bf16.mxu0 %v8616_v13  ;;  %v10214_v10 = vld [vmem:[#allocation2 + $0x68] sm:$0xff]  ;;  %v5158_v13 = vld [vmem:[#allocation13 + $0xb28] sm:$0xff]  ;;  %v5183_v60 = vld [vmem:[#allocation13 + $0xbf0] sm:$0xff] }
 0x80c   :  { %8539 = vmatpush1.bf16.msra.mxu1 %v8538_v41  ;;  %v8714_v41 = vpack.c.bf16 %v5151_v7, %v5147_v3  ;;  %v5186_v3 = vld [vmem:[#allocation13 + $0xc08] sm:$0xff] }
 0x80d   :  { %8619 = vmatpush1.bf16.msra.mxu0 %v8618_v6  ;;  %8621 = vmatprep.subr.bf16.mxu1 %v8620_v5  ;;  %v8636_v6 = vpack.c.bf16 %v5158_v13, %v5154_v12  ;;  %v5153_v5 = vld [vmem:[#allocation13 + $0xb00] sm:$0xff]  ;;  %v5190_v7 = vld [vmem:[#allocation13 + $0xc28] sm:$0xff]  ;;  %v8650_v12 = vpack.c.bf16 %v5181_v57, %v5177_v59  ;;  %v8730_v13 = vpack.c.bf16 %v5183_v60, %v5179_v33  ;;  %v5220_v57 = vld [vmem:[#allocation13 + $0xd18] sm:$0xff] }
 0x80e   :  { %8701 = vmatprep.subr.bf16.mxu0 %v8700_v20  ;;  %v8716_v20 = vpack.c.bf16 %v5160_v55, %v5156_v15  ;;  %v8638_v27 = vpack.c.bf16 %v5157_v21, %v5153_v5  ;;  %v5185_v15 = vld [vmem:[#allocation13 + $0xc00] sm:$0xff]  ;;  %v5198_v5 = vld [vmem:[#allocation13 + $0xc68] sm:$0xff]  ;;  %v5196_v21 = vld [vmem:[#allocation13 + $0xc58] sm:$0xff] }
 0x80f   :  { %7122 = vmatmul.mubr.msk.f32.vlgmr.msra.gmra.mrb[56].mxu1 %vm820_vm5, %v4074_v25  ;;  %v5189_v55 = vld [vmem:[#allocation13 + $0xc20] sm:$0xff]  ;;  %v5222_v59 = vld [vmem:[#allocation13 + $0xd28] sm:$0xff]  ;;  %v5224_v33 = vld [vmem:[#allocation13 + $0xd38] sm:$0xff] }
 0x810   :  { %7125 = vmatmul.mubr.msk.f32.vlgmr.msra.gmra.mrb[20].mxu0 %vm820_vm5, %v4074_v25  ;;  %8623 = vmatpush1.bf16.msra.mxu1 %v8622_v17  ;;  %v5168_v17 = vld [vmem:[#allocation13 + $0xb78] sm:$0xff]  ;;  %v5163_v25 = vld [vmem:[#allocation13 + $0xb50] sm:$0xff] }
 0x811   :  { %8703 = vmatpush1.bf16.msra.mxu0 %v8702_v23  ;;  %4936 = vmatprep.mubr.f32.mxu1 %v9555_v0  ;;  %v8640_v23 = vpack.c.bf16 %v5166_v26, %v5162_v62  ;;  %v8722_v43 = vpack.c.bf16 %v5167_v36, %v5163_v25  ;;  %v5193_v26 = vld [vmem:[#allocation13 + $0xc40] sm:$0xff]  ;;  %v5208_v25 = vld [vmem:[#allocation13 + $0xcb8] sm:$0xff] }
 0x812   :  { %5102 = vmatprep.mubr.f32.mxu0 %v9555_v0  ;;  %8625 = vmatprep.subr.bf16.mxu1 %v8624_v35  ;;  %v8720_v35 = vpack.c.bf16 %v5168_v17, %v5164_v30  ;;  %v5197_v30 = vld [vmem:[#allocation13 + $0xc60] sm:$0xff]  ;;  %v5195_v17 = vld [vmem:[#allocation13 + $0xc50] sm:$0xff] }
 0x813   :  { %7123 = vmatmul.mubr.msk.f32.gmra.mrb[58].mxu1 %vm820_vm5, %v10177_v39  ;;  %8705 = vmatprep.subr.bf16.mxu0 %v8704_v38  ;;  %v5174_v38 = vld [vmem:[#allocation13 + $0xba8] sm:$0xff] }
 0x814   :  { %7126 = vmatmul.mubr.msk.f32.gmra.mrb[22].mxu0 %vm820_vm5, %v10177_v39  ;;  %8627 = vmatpush1.bf16.msra.mxu1 %v8626_v42  ;;  %v5291_v39 = vrot.slane %v10214_v10, 2  ;;  %v8642_v42 = vpack.c.bf16 %v5165_v34, %v5161_v32  ;;  %v8644_v44 = vpack.c.bf16 %v5174_v38, %v5170_v37  ;;  %v5206_v32 = vld [vmem:[#allocation13 + $0xca8] sm:$0xff]  ;;  %v5204_v34 = vld [vmem:[#allocation13 + $0xc98] sm:$0xff]  ;;  %v5201_v38 = vld [vmem:[#allocation13 + $0xc80] sm:$0xff] }
 0x815   :  { %8707 = vmatpush1.bf16.msra.mxu0 %v8706_v45  ;;  %4942 = vmatprep.mubr.f32.mxu1 %v9555_v0  ;;  %v5169_v45 = vld [vmem:[#allocation13 + $0xb80] sm:$0xff] }
 0x816   :  { %5108 = vmatprep.mubr.f32.mxu0 %v9555_v0  ;;  %8629 = vmatprep.subr.bf16.mxu1 %v8628_v47  ;;  %v5292_v63 = vsel %vm2047_vm8, %v5290_v56, %v5291_v39  ;;  %v5175_v47 = vld [vmem:[#allocation13 + $0xbb0] sm:$0xff]  ;;  %v8646_v54 = vpack.c.bf16 %v5173_v1, %v5169_v45  ;;  %v8648_v56 = vpack.c.bf16 %v5182_v50, %v5178_v51  ;;  %v5214_v45 = vld [vmem:[#allocation13 + $0xce8] sm:$0xff]  ;;  %v5212_v1 = vld [vmem:[#allocation13 + $0xcd8] sm:$0xff] }
 0x817   :  { %7124 = vmatmul.mubr.msk.f32.gmra.mrb[60].mxu1 %vm820_vm5, %v4080_v9  ;;  %8709 = vmatprep.subr.bf16.mxu0 %v8708_v52  ;;  %v5180_v52 = vld [vmem:[#allocation13 + $0xbd8] sm:$0xff]  ;;  %v5209_v50 = vld [vmem:[#allocation13 + $0xcc0] sm:$0xff] }
 0x818   :  { %7127 = vmatmul.mubr.msk.f32.gmra.mrb[24].mxu0 %vm820_vm5, %v4080_v9  ;;  %8631 = vmatpush1.bf16.msra.mxu1 %v8630_v49  ;;  %v8726_v49 = vpack.c.bf16 %v5175_v47, %v5171_v46  ;;  %v5188_v9 = vld [vmem:[#allocation13 + $0xc18] sm:$0xff]  ;;  %v5265_v10 = vld [vmem:[#allocation13 + $0xe80] sm:$0xff] }
 0x819   :  { %5378 = vmatprep.mubr.f32.mxu1 %v5292_v63  ;;  %8711 = vmatpush1.bf16.msra.mxu0 %v8710_v58  ;;  %v8728_v58 = vpack.c.bf16 %v5184_v53, %v5180_v52  ;;  %v5216_v46 = vld [vmem:[#allocation13 + $0xcf8] sm:$0xff]  ;;  %v5213_v52 = vld [vmem:[#allocation13 + $0xce0] sm:$0xff]  ;;  %v5211_v53 = vld [vmem:[#allocation13 + $0xcd0] sm:$0xff] }
 0x81a   :  { %5544 = vmatprep.mubr.f32.mxu0 %v5292_v63  ;;  %8633 = vmatprep.subr.bf16.mxu1 %v8632_v11  ;;  %v5192_v11 = vld [vmem:[#allocation13 + $0xc38] sm:$0xff]  ;;  %v5187_v63 = vld [vmem:[#allocation13 + $0xc10] sm:$0xff] }
 0x81b   :  { %8713 = vmatprep.subr.bf16.mxu0 %v8712_v14  ;;  %v8652_v14 = vpack.c.bf16 %v5190_v7, %v5186_v3  ;;  %v5217_v7 = vld [vmem:[#allocation13 + $0xd00] sm:$0xff] }
 0x81c   :  { %8635 = vmatpush1.bf16.msra.mxu1 %v8634_v16  ;;  %v8732_v16 = vpack.c.bf16 %v5192_v11, %v5188_v9  ;;  %v5221_v9 = vld [vmem:[#allocation13 + $0xd20] sm:$0xff]  ;;  %v5219_v11 = vld [vmem:[#allocation13 + $0xd10] sm:$0xff] }
 0x81d   :  { %8715 = vmatpush1.bf16.msra.mxu0 %v8714_v41  ;;  %8637 = vmatprep.subr.bf16.mxu1 %v8636_v6  ;;  %v5191_v41 = vld [vmem:[#allocation13 + $0xc30] sm:$0xff]  ;;  %v5194_v6 = vld [vmem:[#allocation13 + $0xc48] sm:$0xff] }
 0x81e   :  { %8717 = vmatprep.subr.bf16.mxu0 %v8716_v20  ;;  %v8654_v20 = vpack.c.bf16 %v5189_v55, %v5185_v15  ;;  %v8734_v24 = vpack.c.bf16 %v5191_v41, %v5187_v63  ;;  %v8656_v62 = vpack.c.bf16 %v5198_v5, %v5194_v6  ;;  %v5230_v15 = vld [vmem:[#allocation13 + $0xd68] sm:$0xff]  ;;  %v5228_v55 = vld [vmem:[#allocation13 + $0xd58] sm:$0xff]  ;;  %v5225_v5 = vld [vmem:[#allocation13 + $0xd40] sm:$0xff] }
 0x81f   :  { %v5232_v63 = vld [vmem:[#allocation13 + $0xd78] sm:$0xff] }
 0x820   :  { %8639 = vmatpush1.bf16.msra.mxu1 %v8638_v27  ;;  %v8736_v27 = vpack.c.bf16 %v5200_v22, %v5196_v21  ;;  %v5229_v21 = vld [vmem:[#allocation13 + $0xd60] sm:$0xff]  ;;  %v5227_v22 = vld [vmem:[#allocation13 + $0xd50] sm:$0xff] }
 0x821   :  { %8719 = vmatpush1.bf16.msra.mxu0 %v8718_v31  ;;  %8641 = vmatprep.subr.bf16.mxu1 %v8640_v23  ;;  %v5199_v31 = vld [vmem:[#allocation13 + $0xc70] sm:$0xff]  ;;  %v5202_v23 = vld [vmem:[#allocation13 + $0xc88] sm:$0xff] }
 0x822   :  { %8721 = vmatprep.subr.bf16.mxu0 %v8720_v35  ;;  %v8658_v35 = vpack.c.bf16 %v5197_v30, %v5193_v26  ;;  %v8738_v36 = vpack.c.bf16 %v5199_v31, %v5195_v17  ;;  %v8660_v37 = vpack.c.bf16 %v5206_v32, %v5202_v23  ;;  %v5238_v26 = vld [vmem:[#allocation13 + $0xda8] sm:$0xff]  ;;  %v5236_v30 = vld [vmem:[#allocation13 + $0xd98] sm:$0xff]  ;;  %v5233_v32 = vld [vmem:[#allocation13 + $0xd80] sm:$0xff] }
 0x823   :  { %v5240_v17 = vld [vmem:[#allocation13 + $0xdb8] sm:$0xff] }
 0x824   :  { %8643 = vmatpush1.bf16.msra.mxu1 %v8642_v42  ;;  %v8740_v42 = vpack.c.bf16 %v5208_v25, %v5204_v34  ;;  %v5237_v34 = vld [vmem:[#allocation13 + $0xda0] sm:$0xff]  ;;  %v5235_v25 = vld [vmem:[#allocation13 + $0xd90] sm:$0xff] }
 0x825   :  { %8723 = vmatpush1.bf16.msra.mxu0 %v8722_v43  ;;  %8645 = vmatprep.subr.bf16.mxu1 %v8644_v44  ;;  %v5207_v43 = vld [vmem:[#allocation13 + $0xcb0] sm:$0xff]  ;;  %v5210_v44 = vld [vmem:[#allocation13 + $0xcc8] sm:$0xff] }
 0x826   :  { %8725 = vmatprep.subr.bf16.mxu0 %v8724_v29  ;;  %v8662_v29 = vpack.c.bf16 %v5205_v28, %v5201_v38  ;;  %v8742_v47 = vpack.c.bf16 %v5207_v43, %v5203_v40  ;;  %v8664_v51 = vpack.c.bf16 %v5214_v45, %v5210_v44  ;;  %v5246_v38 = vld [vmem:[#allocation13 + $0xde8] sm:$0xff]  ;;  %v5244_v28 = vld [vmem:[#allocation13 + $0xdd8] sm:$0xff]  ;;  %v5241_v45 = vld [vmem:[#allocation13 + $0xdc0] sm:$0xff] }
 0x827   :  { %v5248_v40 = vld [vmem:[#allocation13 + $0xdf8] sm:$0xff] }
 0x828   :  { %8647 = vmatpush1.bf16.msra.mxu1 %v8646_v54  ;;  %v8744_v54 = vpack.c.bf16 %v5216_v46, %v5212_v1  ;;  %v5245_v1 = vld [vmem:[#allocation13 + $0xde0] sm:$0xff]  ;;  %v5243_v46 = vld [vmem:[#allocation13 + $0xdd0] sm:$0xff] }
 0x829   :  { %8727 = vmatpush1.bf16.msra.mxu0 %v8726_v49  ;;  %8649 = vmatprep.subr.bf16.mxu1 %v8648_v56  ;;  %v5215_v49 = vld [vmem:[#allocation13 + $0xcf0] sm:$0xff]  ;;  %v5218_v56 = vld [vmem:[#allocation13 + $0xd08] sm:$0xff] }
 0x82a   :  { %8729 = vmatprep.subr.bf16.mxu0 %v8728_v58  ;;  %v8666_v58 = vpack.c.bf16 %v5213_v52, %v5209_v50  ;;  %v8746_v60 = vpack.c.bf16 %v5215_v49, %v5211_v53  ;;  %v8668_v3 = vpack.c.bf16 %v5222_v59, %v5218_v56  ;;  %v5254_v50 = vld [vmem:[#allocation13 + $0xe28] sm:$0xff]  ;;  %v5115_v52 = vld [vmem:[#allocation2 + $0x48] sm:$0xfc]  ;;  %v8682_v49 = vpack.c.bf16 %v5245_v1, %v5241_v45  ;;  %v5119_v56 = vld [vmem:[#allocation2 + $0x80] sm:$0x3f] }
 0x82b   :  { %v5252_v53 = vld [vmem:[#allocation13 + $0xe18] sm:$0xff] }
 0x82c   :  { %8651 = vmatpush1.bf16.msra.mxu1 %v8650_v12  ;;  %v8748_v12 = vpack.c.bf16 %v5224_v33, %v5220_v57  ;;  %v5118_v33 = vld [vmem:[#allocation2 + $0x78] sm:$0x3f] }
 0x82d   :  { %8731 = vmatpush1.bf16.msra.mxu0 %v8730_v13  ;;  %8653 = vmatprep.subr.bf16.mxu1 %v8652_v14  ;;  %v5223_v13 = vld [vmem:[#allocation13 + $0xd30] sm:$0xff]  ;;  %v5226_v14 = vld [vmem:[#allocation13 + $0xd48] sm:$0xff] }
 0x82e   :  { %8733 = vmatprep.subr.bf16.mxu0 %v8732_v16  ;;  %v8670_v16 = vpack.c.bf16 %v5221_v9, %v5217_v7  ;;  %v8750_v41 = vpack.c.bf16 %v5223_v13, %v5219_v11  ;;  %v8672_v6 = vpack.c.bf16 %v5230_v15, %v5226_v14  ;;  %v5253_v7 = vld [vmem:[#allocation13 + $0xe20] sm:$0xff]  ;;  %v5251_v9 = vld [vmem:[#allocation13 + $0xe10] sm:$0xff]  ;;  %v5298_v11 = vrot.slane %v5119_v56, 2  ;;  %v5258_v13 = vld [vmem:[#allocation13 + $0xe48] sm:$0xff] }
 0x82f   :  { %v5262_v14 = vld [vmem:[#allocation13 + $0xe68] sm:$0xff]  ;;  %v9231_v15 = vld [vmem:[#allocation2 + $0x60] sm:$0xff] }
 0x830   :  { %8655 = vmatpush1.bf16.msra.mxu1 %v8654_v20  ;;  %v8752_v20 = vpack.c.bf16 %v5232_v63, %v5228_v55  ;;  %v5288_v55 = vrot.slane %v9231_v15, 2  ;;  %v5260_v63 = vld [vmem:[#allocation13 + $0xe58] sm:$0xff]  ;;  %v9232_v56 = vld [vmem:[#allocation2 + $0x70] sm:$0xff] }
 0x831   :  { %8735 = vmatpush1.bf16.msra.mxu0 %v8734_v24  ;;  %8657 = vmatprep.subr.bf16.mxu1 %v8656_v62  ;;  %v5231_v24 = vld [vmem:[#allocation13 + $0xd70] sm:$0xff]  ;;  %v5234_v62 = vld [vmem:[#allocation13 + $0xd88] sm:$0xff] }
 0x832   :  { %8737 = vmatprep.subr.bf16.mxu0 %v8736_v27  ;;  %v8674_v27 = vpack.c.bf16 %v5229_v21, %v5225_v5  ;;  %v8754_v31 = vpack.c.bf16 %v5231_v24, %v5227_v22  ;;  %v8676_v23 = vpack.c.bf16 %v5238_v26, %v5234_v62  ;;  %v5296_v21 = vrot.slane %v5118_v33, 2  ;;  %v5261_v24 = vld [vmem:[#allocation13 + $0xe60] sm:$0xff]  ;;  %v5259_v62 = vld [vmem:[#allocation13 + $0xe50] sm:$0xff] }
 0x833   :  { %v8688_v22 = vpack.c.bf16 %v5262_v14, %v5258_v13  ;;  %v5299_v26 = vsel %vm2047_vm8, %v5291_v39, %v5298_v11  ;;  %v5267_v39 = vld [vmem:[#allocation13 + $0xe90] sm:$0xff] }
 0x834   :  { %8659 = vmatpush1.bf16.msra.mxu1 %v8658_v35  ;;  %v8756_v35 = vpack.c.bf16 %v5240_v17, %v5236_v30  ;;  %v5263_v17 = vld [vmem:[#allocation13 + $0xe70] sm:$0xff] }
 0x835   :  { %8739 = vmatpush1.bf16.msra.mxu0 %v8738_v36  ;;  %8661 = vmatprep.subr.bf16.mxu1 %v8660_v37  ;;  %v5239_v36 = vld [vmem:[#allocation13 + $0xdb0] sm:$0xff]  ;;  %v5242_v37 = vld [vmem:[#allocation13 + $0xdc8] sm:$0xff] }
 0x836   :  { %8741 = vmatprep.subr.bf16.mxu0 %v8740_v42  ;;  %v8678_v42 = vpack.c.bf16 %v5237_v34, %v5233_v32  ;;  %v8758_v43 = vpack.c.bf16 %v5239_v36, %v5235_v25  ;;  %v8680_v44 = vpack.c.bf16 %v5246_v38, %v5242_v37  ;;  %v5272_v32 = vld [vmem:[#allocation13 + $0xeb8] sm:$0xff]  ;;  %v5297_v25 = vsel %vm2047_vm8, %v5288_v55, %v5296_v21  ;;  %v5269_v37 = vld [vmem:[#allocation13 + $0xea0] sm:$0xff]  ;;  %v5926_v13 = vld [vmem:[#allocation16 + $0x108] sm:$0xff] }
 0x837   :  { %v8694_v45 = vpack.c.bf16 %v5269_v37, %v5265_v10  ;;  %v5943_v15 = vld [vmem:[#allocation16 + $0x190] sm:$0xff] }
 0x838   :  { %8663 = vmatpush1.bf16.msra.mxu1 %v8662_v29  ;;  %v8760_v29 = vpack.c.bf16 %v5248_v40, %v5244_v28  ;;  %v5271_v28 = vld [vmem:[#allocation13 + $0xeb0] sm:$0xff]  ;;  %v5274_v40 = vld [vmem:[#allocation13 + $0xec8] sm:$0xff] }
 0x839   :  { %8743 = vmatpush1.bf16.msra.mxu0 %v8742_v47  ;;  %8665 = vmatprep.subr.bf16.mxu1 %v8664_v51  ;;  %v5247_v47 = vld [vmem:[#allocation13 + $0xdf0] sm:$0xff]  ;;  %v5250_v51 = vld [vmem:[#allocation13 + $0xe08] sm:$0xff]  ;;  %v8774_v1 = vpack.c.bf16 %v5271_v28, %v5267_v39 }
 0x83a   :  { %8745 = vmatprep.subr.bf16.mxu0 %v8744_v54  ;;  %v5256_v54 = vld [vmem:[#allocation13 + $0xe38] sm:$0xff]  ;;  %v8762_v59 = vpack.c.bf16 %v5247_v47, %v5243_v46  ;;  %v8684_v57 = vpack.c.bf16 %v5254_v50, %v5250_v51  ;;  %v5277_v47 = vld [vmem:[#allocation13 + $0xee0] sm:$0xff]  ;;  %v5275_v50 = vld [vmem:[#allocation13 + $0xed0] sm:$0xff] }
 0x83c   :  { %8667 = vmatpush1.bf16.msra.mxu1 %v8666_v58  ;;  %v5287_v58 = vrot.slane %v5115_v52, 2  ;;  %v5279_v52 = vld [vmem:[#allocation13 + $0xef0] sm:$0xff] }
 0x83d   :  { %8747 = vmatpush1.bf16.msra.mxu0 %v8746_v60  ;;  %8669 = vmatprep.subr.bf16.mxu1 %v8668_v3  ;;  %v8764_v60 = vpack.c.bf16 %v5256_v54, %v5252_v53  ;;  %v5249_v3 = vld [vmem:[#allocation13 + $0xe00] sm:$0xff]  ;;  %v8778_v54 = vpack.c.bf16 %v5279_v52, %v5275_v50 }
 0x83e   :  { %8749 = vmatprep.subr.bf16.mxu0 %v8748_v12  ;;  %v5255_v12 = vld [vmem:[#allocation13 + $0xe30] sm:$0xff] }
 0x83f   :  { %v8766_v5 = vpack.c.bf16 %v5255_v12, %v5251_v9  ;;  %v5942_v9 = vld [vmem:[#allocation16 + $0x188] sm:$0xff]  ;;  %v5925_v12 = vld [vmem:[#allocation16 + $0x100] sm:$0xff] }
 0x840   :  { %8671 = vmatpush1.bf16.msra.mxu1 %v8670_v16  ;;  %v5264_v16 = vld [vmem:[#allocation13 + $0xe78] sm:$0xff]  ;;  %v8786_v14 = vpack.c.bf16 %v5926_v13, %v5925_v12 }
 0x841   :  { %8751 = vmatpush1.bf16.msra.mxu0 %v8750_v41  ;;  %8673 = vmatprep.subr.bf16.mxu1 %v8672_v6  ;;  %v8686_v41 = vpack.c.bf16 %v5253_v7, %v5249_v3  ;;  %v5289_v6 = vsel %vm2047_vm8, %v5287_v58, %v5288_v55  ;;  %v8768_v30 = vpack.c.bf16 %v5264_v16, %v5260_v63  ;;  %v5941_v7 = vld [vmem:[#allocation16 + $0x180] sm:$0xff]  ;;  %v5944_v55 = vld [vmem:[#allocation16 + $0x198] sm:$0xff]  ;;  %v5927_v16 = vld [vmem:[#allocation16 + $0x110] sm:$0xff] }
 0x842   :  { %8753 = vmatprep.subr.bf16.mxu0 %v8752_v20  ;;  %v5257_v20 = vld [vmem:[#allocation13 + $0xe40] sm:$0xff]  ;;  %v8788_v63 = vpack.c.bf16 %v5944_v55, %v5943_v15 }
 0x843   :  { %v8690_v34 = vpack.c.bf16 %v5261_v24, %v5257_v20  ;;  %v5929_v20 = vld [vmem:[#allocation16 + $0x120] sm:$0xff]  ;;  %v5930_v24 = vld [vmem:[#allocation16 + $0x128] sm:$0xff] }
 0x844   :  { %8675 = vmatpush1.bf16.msra.mxu1 %v8674_v27  ;;  %v5266_v27 = vld [vmem:[#allocation13 + $0xe88] sm:$0xff] }
 0x845   :  { %8755 = vmatpush1.bf16.msra.mxu0 %v8754_v31  ;;  %8677 = vmatprep.subr.bf16.mxu1 %v8676_v23  ;;  %v5270_v31 = vld [vmem:[#allocation13 + $0xea8] sm:$0xff]  ;;  %v5268_v23 = vld [vmem:[#allocation13 + $0xe98] sm:$0xff] }
 0x846   :  { %8757 = vmatprep.subr.bf16.mxu0 %v8756_v35  ;;  %v8770_v35 = vpack.c.bf16 %v5263_v17, %v5259_v62  ;;  %v8692_v36 = vpack.c.bf16 %v5270_v31, %v5266_v27  ;;  %v8772_v38 = vpack.c.bf16 %v5272_v32, %v5268_v23  ;;  %v8794_v62 = vpack.c.bf16 %v5930_v24, %v5929_v20  ;;  %v5931_v27 = vld [vmem:[#allocation16 + $0x130] sm:$0xff]  ;;  %v5932_v31 = vld [vmem:[#allocation16 + $0x138] sm:$0xff] }
 0x847   :  { %v8798_v23 = vpack.c.bf16 %v5932_v31, %v5931_v27  ;;  %v5658_v32 = vld [vmem:[#allocation14] sm:$0xf] }
 0x848   :  { %8679 = vmatpush1.bf16.msra.mxu1 %v8678_v42  ;;  %v5278_v42 = vld [vmem:[#allocation13 + $0xee8] sm:$0xff] }
 0x849   :  { %8759 = vmatpush1.bf16.msra.mxu0 %v8758_v43  ;;  %8681 = vmatprep.subr.bf16.mxu1 %v8680_v44  ;;  %v5276_v43 = vld [vmem:[#allocation13 + $0xed8] sm:$0xff]  ;;  %v8696_v46 = vpack.c.bf16 %v5278_v42, %v5274_v40 }
 0x84a   :  { %8761 = vmatprep.subr.bf16.mxu0 %v8760_v29  ;;  %v5280_v44 = vld [vmem:[#allocation13 + $0xef8] sm:$0xff]  ;;  %v5273_v29 = vld [vmem:[#allocation13 + $0xec0] sm:$0xff] }
 0x84b   :  { %v8776_v51 = vpack.c.bf16 %v5280_v44, %v5276_v43  ;;  %v8698_v53 = vpack.c.bf16 %v5277_v47, %v5273_v29 }
 0x84c   :  { %8683 = vmatpush1.bf16.msra.mxu1 %v8682_v49  ;;  %v5117_v49 = vld [vmem:[#allocation2 + $0x58] sm:$0xfc] }
 0x84d   :  { %8763 = vmatpush1.bf16.msra.mxu0 %v8762_v59  ;;  %8685 = vmatprep.subr.bf16.mxu1 %v8684_v57  ;;  %v5294_v59 = vrot.slane %v9232_v56, 2  ;;  %v5120_v57 = vld [vmem:[#allocation2 + $0x88] sm:$0x3f]  ;;  %v5293_v33 = vrot.slane %v5117_v49, 2 }
 0x84e   :  { %8765 = vmatprep.subr.bf16.mxu0 %v8764_v60  ;;  %v5300_v60 = vrot.slane %v5120_v57, 2 }
 0x84f   :  { %5379 = vmatmul.mubr.f32.vlgmr.msra.gmra.mrb[56].mxu1 %v5289_v6  ;;  %v5295_v58 = vsel %vm2047_vm8, %v5293_v33, %v5294_v59 }
 0x850   :  { %5545 = vmatmul.mubr.f32.vlgmr.msra.gmra.mrb[20].mxu0 %v5289_v6  ;;  %5384 = vmatprep.mubr.f32.mxu1 %v5299_v26  ;;  %v5301_v3 = vsel %vm2047_vm8, %v5294_v59, %v5300_v60 }
 0x851   :  { %8687 = vmatpush1.bf16.msra.mxu1 %v8686_v41  ;;  %5550 = vmatprep.mubr.f32.mxu0 %v5299_v26  ;;  %v5928_v41 = vld [vmem:[#allocation16 + $0x118] sm:$0xff]  ;;  %v5947_v26 = vld [vmem:[#allocation16 + $0x1b0] sm:$0xff] }
 0x852   :  { %8767 = vmatpush1.bf16.msra.mxu0 %v8766_v5  ;;  %8689 = vmatprep.subr.bf16.mxu1 %v8688_v22  ;;  %v8790_v6 = vpack.c.bf16 %v5928_v41, %v5927_v16  ;;  %v5945_v5 = vld [vmem:[#allocation16 + $0x1a0] sm:$0xff] }
 0x853   :  { %5385 = vmatmul.mubr.f32.gmra.mrb[58].mxu1 %v5297_v25  ;;  %8769 = vmatprep.subr.bf16.mxu0 %v8768_v30  ;;  %v5948_v30 = vld [vmem:[#allocation16 + $0x1b8] sm:$0xff] }
 0x854   :  { %5551 = vmatmul.mubr.f32.gmra.mrb[22].mxu0 %v5297_v25  ;;  %5390 = vmatprep.mubr.f32.mxu1 %v5298_v11  ;;  %v8796_v17 = vpack.c.bf16 %v5948_v30, %v5947_v26  ;;  %v5671_v25 = vrot.slane %v5658_v32, %v9916_v19 }
 0x855   :  { %8691 = vmatpush1.bf16.msra.mxu1 %v8690_v34  ;;  %5556 = vmatprep.mubr.f32.mxu0 %v5298_v11  ;;  %v8784_v11 = vpack.c.bf16 %v5942_v9, %v5941_v7  ;;  %v5663_v34 = vrot.slane %v5658_v32, %v9906_v2 }
 0x856   :  { %8771 = vmatpush1.bf16.msra.mxu0 %v8770_v35  ;;  %8693 = vmatprep.subr.bf16.mxu1 %v8692_v36  ;;  %v5667_v35 = vrot.slane %v5658_v32, %v9909_v4  ;;  %v5675_v36 = vrot.slane %v5658_v32, %v2435_v48 }
 0x857   :  { %5391 = vmatmul.mubr.f32.gmra.mrb[60].mxu1 %v5296_v21  ;;  %8773 = vmatprep.subr.bf16.mxu0 %v8772_v38 }
 0x858   :  { %5557 = vmatmul.mubr.f32.gmra.mrb[24].mxu0 %v5296_v21  ;;  %5461 = vmatprep.mubr.f32.mxu1 %v9555_v0  ;;  %v5946_v21 = vld [vmem:[#allocation16 + $0x1a8] sm:$0xff] }
 0x859   :  { %8695 = vmatpush1.bf16.msra.mxu1 %v8694_v45  ;;  %5627 = vmatprep.mubr.f32.mxu0 %v9555_v0  ;;  %v8792_v22 = vpack.c.bf16 %v5946_v21, %v5945_v5 }
 0x85a   :  { %8775 = vmatpush1.bf16.msra.mxu0 %v8774_v1  ;;  %8697 = vmatprep.subr.bf16.mxu1 %v8696_v46 }
 0x85b   :  { %8777 = vmatprep.subr.bf16.mxu0 %v8776_v51 }
 0x85d   :  { %8699 = vmatpush1.bf16.msra.mxu1 %v8698_v53 }
 0x85e   :  { %8779 = vmatpush1.bf16.msra.mxu0 %v8778_v54 }
 0x85f   :  { %8785 = vmatprep.subr.bf16.mxu0 %v8784_v11 }
 0x860   :  { %7128 = vmatmul.mubr.msk.f32.vlgmr.msra.gmra.mrb[56].mxu1 %vm820_vm5, %v5295_v58 }
 0x861   :  { %7131 = vmatmul.mubr.msk.f32.vlgmr.msra.gmra.mrb[20].mxu0 %vm820_vm5, %v5295_v58  ;;  %5467 = vmatprep.mubr.f32.mxu1 %v9555_v0 }
 0x862   :  { %5633 = vmatprep.mubr.f32.mxu0 %v9555_v0  ;;  %8787 = vmatpush3.bf16.msra.mxu0 %v8786_v14 }
 0x863   :  { %8789 = vmatprep.subr.bf16.mxu0 %v8788_v63 }
 0x864   :  { %7129 = vmatmul.mubr.msk.f32.gmra.mrb[58].mxu1 %vm820_vm5, %v5301_v3 }
 0x865   :  { %7132 = vmatmul.mubr.msk.f32.gmra.mrb[22].mxu0 %vm820_vm5, %v5301_v3  ;;  %5473 = vmatprep.mubr.f32.mxu1 %v9555_v0 }
 0x866   :  { %5639 = vmatprep.mubr.f32.mxu0 %v9555_v0  ;;  %8791 = vmatpush3.bf16.msra.mxu0 %v8790_v6 }
 0x867   :  { %8793 = vmatprep.subr.bf16.mxu0 %v8792_v22 }
 0x868   :  { %7130 = vmatmul.mubr.msk.f32.gmra.mrb[60].mxu1 %vm820_vm5, %v5300_v60 }
 0x869   :  { %7133 = vmatmul.mubr.msk.f32.gmra.mrb[24].mxu0 %vm820_vm5, %v5300_v60  ;;  %5865 = vmatprep.mubr.f32.mxu1 %v9555_v0 }
 0x86a   :  { %8795 = vmatpush3.bf16.msra.mxu0 %v8794_v62 }
 0x86b   :  { %8797 = vmatprep.subr.bf16.mxu0 %v8796_v17 }
 0x86e   :  { %8799 = vmatpush3.bf16.msra.mxu0 %v8798_v23 }
 0x933   :  { %v5463_v10 = vpop.f32.mrb[56].mxu1 }
 0x934   :  { %v5680_v37 = vadd.f32 %v5663_v34, %v5463_v10  ;;  %v5629_v39 = vpop.f32.mrb[20].mxu0  ;;  %v5465_v38 = vpop.f32.mrb[57].mxu1 }
 0x935   :  { %v5682_v28 = vadd.f32 %v5671_v25, %v5629_v39  ;;  %v5681_v40 = vadd.f32 %v5667_v35, %v5465_v38  ;;  %v5631_v42 = vpop.f32.mrb[21].mxu0 }
 0x936   :  { %5693 = vst [vmem:[#allocation3 + $0x60] sm:$0xff] %v5680_v37  ;;  %v5683_v43 = vadd.f32 %v5675_v36, %v5631_v42 }
 0x937   :  { %5695 = vst [vmem:[#allocation3 + $0x70] sm:$0xff] %v5682_v28  ;;  %5694 = vst [vmem:[#allocation3 + $0x68] sm:$0xff] %v5681_v40  ;;  %v5469_v44 = vpop.f32.mrb[58].mxu1 }
 0x938   :  { %5696 = vst [vmem:[#allocation3 + $0x78] sm:$0xff] %v5683_v43  ;;  %v5684_v45 = vadd.f32 %v5663_v34, %v5469_v44  ;;  %v5635_v19 = vpop.f32.mrb[22].mxu0  ;;  %v5471_v1 = vpop.f32.mrb[59].mxu1 }
 0x939   :  { %v5686_v46 = vadd.f32 %v5671_v25, %v5635_v19  ;;  %v5685_v29 = vadd.f32 %v5667_v35, %v5471_v1  ;;  %v5637_v61 = vpop.f32.mrb[23].mxu0 }
 0x93a   :  { %v5687_v48 = vadd.f32 %v5675_v36, %v5637_v61  ;;  %v5738_v60 = vrot.slane %v5684_v45, 1 }
 0x93b   :  { %v5475_v47 = vpop.f32.mrb[60].mxu1  ;;  %v5741_v9 = vrot.slane %v5685_v29, 1  ;;  %v5744_v12 = vrot.slane %v5686_v46, 1 }
 0x93c   :  { %v5688_v51 = vadd.f32 %v5663_v34, %v5475_v47  ;;  %v5641_v50 = vpop.f32.mrb[24].mxu0  ;;  %v5477_v52 = vpop.f32.mrb[61].mxu1  ;;  %v5747_v14 = vrot.slane %v5687_v48, 1 }
 0x93d   :  { %v5690_v53 = vadd.f32 %v5671_v25, %v5641_v50  ;;  %v5689_v54 = vadd.f32 %v5667_v35, %v5477_v52  ;;  %v5643_v49 = vpop.f32.mrb[25].mxu0  ;;  %v5717_v56 = vld [vmem:[#allocation3 + $0x60] sm:$0xfe] }
 0x93e   :  { %5701 = vst [vmem:[#allocation3 + $0xa0] sm:$0xf] %v5688_v51  ;;  %v5691_v59 = vadd.f32 %v5675_v36, %v5643_v49  ;;  %v5718_v57 = vld [vmem:[#allocation3 + $0x68] sm:$0xfe]  ;;  %v5719_v33 = vld [vmem:[#allocation3 + $0x70] sm:$0xfe] }
 0x93f   :  { %v5737_v58 = vrot.slane %v5717_v56, 1  ;;  %5703 = vst [vmem:[#allocation3 + $0xb0] sm:$0xf] %v5690_v53  ;;  %5702 = vst [vmem:[#allocation3 + $0xa8] sm:$0xf] %v5689_v54  ;;  %v5740_v7 = vrot.slane %v5718_v57, 1 }
 0x940   :  { %v5720_v3 = vld [vmem:[#allocation3 + $0x78] sm:$0xfe]  ;;  %v5743_v11 = vrot.slane %v5719_v33, 1  ;;  %5704 = vst [vmem:[#allocation3 + $0xb8] sm:$0xf] %v5691_v59  ;;  %v5905_v52 = vld [vmem:[#allocation16 + $0x80] sm:$0xff] }
 0x941   :  { %v5746_v13 = vrot.slane %v5720_v3, 1  ;;  %v5739_v15 = vsel %vm1174_vm6, %v5737_v58, %v5738_v60  ;;  %v5742_v55 = vsel %vm1174_vm6, %v5740_v7, %v5741_v9  ;;  %v5906_v53 = vld [vmem:[#allocation16 + $0x88] sm:$0xff]  ;;  %v5889_v54 = vld [vmem:[#allocation16] sm:$0xff]  ;;  %v5891_v58 = vld [vmem:[#allocation16 + $0x10] sm:$0xff] }
 0x942   :  { %v5745_v63 = vsel %vm1174_vm6, %v5743_v11, %v5744_v12  ;;  %v5769_v16 = vmax.f32 %v5680_v37, %v5739_v15  ;;  %v5770_v6 = vmax.f32 %v5681_v40, %v5742_v55  ;;  %v8816_v49 = vpack.c.bf16 %v5906_v53, %v5905_v52  ;;  %v5787_v59 = vld [vmem:[#allocation22] sm:$0xff]  ;;  %v5911_v15 = vld [vmem:[#allocation16 + $0xb0] sm:$0xff]  ;;  %v5912_v55 = vld [vmem:[#allocation16 + $0xb8] sm:$0xff] }
 0x943   :  { %v5748_v41 = vsel %vm1174_vm6, %v5746_v13, %v5747_v14  ;;  %v5771_v5 = vmax.f32 %v5682_v28, %v5745_v63  ;;  %v5909_v3 = vld [vmem:[#allocation16 + $0xa0] sm:$0xff]  ;;  %v5910_v7 = vld [vmem:[#allocation16 + $0xa8] sm:$0xff]  ;;  %v5952_v52 = vld [vmem:[#allocation16 + $0x1d8] sm:$0xff] }
 0x944   :  { %v5772_v21 = vmax.f32 %v5683_v43, %v5748_v41  ;;  %v5893_v13 = vld [vmem:[#allocation16 + $0x20] sm:$0xff]  ;;  %v5895_v41 = vld [vmem:[#allocation16 + $0x30] sm:$0xff] }
 0x945   :  { %v5781_v22 = vmax.f32 %v5769_v16, %v5771_v5  ;;  %v5721_v24 = vld [vmem:[#allocation3 + $0xa0] sm:$0xf]  ;;  %v8828_v16 = vpack.c.bf16 %v5912_v55, %v5911_v15 }
 0x946   :  { %v5782_v20 = vmax.f32 %v5770_v6, %v5772_v21  ;;  %v5722_v62 = vld [vmem:[#allocation3 + $0xa8] sm:$0xf]  ;;  %v5723_v26 = vld [vmem:[#allocation3 + $0xb0] sm:$0xf]  ;;  %v5749_v30 = vrot.slane %v5721_v24, 1  ;;  %v5896_v6 = vld [vmem:[#allocation16 + $0x38] sm:$0xff] }
 0x947   :  { %v5724_v17 = vld [vmem:[#allocation3 + $0xb8] sm:$0xf]  ;;  %v5751_v27 = vrot.slane %v5722_v62, 1  ;;  %v5753_v31 = vrot.slane %v5723_v26, 1  ;;  %v5714_v28 = vld [vmem:[#allocation3 + $0xa8] sm:$0x7] }
 0x948   :  { %v5755_v23 = vrot.slane %v5724_v17, 1  ;;  %v5750_v32 = vsel %vm1174_vm6, %v5738_v60, %v5749_v30  ;;  %v5716_v40 = vld [vmem:[#allocation3 + $0xb8] sm:$0x7]  ;;  %v5713_v61 = vld [vmem:[#allocation3 + $0xa0] sm:$0x7]  ;;  %v5914_v21 = vld [vmem:[#allocation16 + $0xc8] sm:$0xff] }
 0x949   :  { %v5752_v34 = vsel %vm1174_vm6, %v5741_v9, %v5751_v27  ;;  %v5754_v25 = vsel %vm1174_vm6, %v5744_v12, %v5753_v31  ;;  %v5773_v35 = vmax.f32 %v5684_v45, %v5750_v32  ;;  %v5778_v43 = vmax.f32 %v5714_v28, %v5751_v27  ;;  %v5715_v47 = vld [vmem:[#allocation3 + $0xb0] sm:$0x7]  ;;  %v5892_v60 = vld [vmem:[#allocation16 + $0x18] sm:$0xff]  ;;  %v5788_v9 = vld [vmem:[#allocation22 + $0x8] sm:$0x3] }
 0x94a   :  { %v5756_v36 = vsel %vm1174_vm6, %v5747_v14, %v5755_v23  ;;  %v5774_v10 = vmax.f32 %v5685_v29, %v5752_v34  ;;  %v5775_v37 = vmax.f32 %v5686_v46, %v5754_v25  ;;  %v5780_v44 = vmax.f32 %v5716_v40, %v5755_v23  ;;  %v5890_v29 = vld [vmem:[#allocation16 + $0x8] sm:$0xff]  ;;  %v5907_v46 = vld [vmem:[#allocation16 + $0x90] sm:$0xff]  ;;  %v5913_v5 = vld [vmem:[#allocation16 + $0xc0] sm:$0xff] }
 0x94b   :  { %v5776_v39 = vmax.f32 %v5687_v48, %v5756_v36  ;;  %v5777_v51 = vmax.f32 %v5713_v61, %v5749_v30  ;;  %v5779_v50 = vmax.f32 %v5715_v47, %v5753_v31  ;;  %v5908_v48 = vld [vmem:[#allocation16 + $0x98] sm:$0xff]  ;;  %v8818_v57 = vpack.c.bf16 %v5890_v29, %v5889_v54  ;;  %v5894_v14 = vld [vmem:[#allocation16 + $0x28] sm:$0xff]  ;;  %v5897_v24 = vld [vmem:[#allocation16 + $0x40] sm:$0xff] }
 0x94c   :  { %v5783_v38 = vmax.f32 %v5773_v35, %v5775_v37  ;;  %v5786_v45 = vmax.f32 %v5778_v43, %v5780_v44  ;;  %v8820_v33 = vpack.c.bf16 %v5908_v48, %v5907_v46  ;;  %v8822_v11 = vpack.c.bf16 %v5892_v60, %v5891_v58  ;;  %v5898_v62 = vld [vmem:[#allocation16 + $0x48] sm:$0xff]  ;;  %v5915_v30 = vld [vmem:[#allocation16 + $0xd0] sm:$0xff]  ;;  %v5916_v17 = vld [vmem:[#allocation16 + $0xd8] sm:$0xff] }
 0x94d   :  { %v5784_v42 = vmax.f32 %v5774_v10, %v5776_v39  ;;  %v5785_v56 = vmax.f32 %v5777_v51, %v5779_v50  ;;  %v8824_v12 = vpack.c.bf16 %v5910_v7, %v5909_v3  ;;  %v8826_v63 = vpack.c.bf16 %v5894_v14, %v5893_v13  ;;  %v5899_v31 = vld [vmem:[#allocation16 + $0x50] sm:$0xff]  ;;  %v5900_v23 = vld [vmem:[#allocation16 + $0x58] sm:$0xff]  ;;  %v5917_v34 = vld [vmem:[#allocation16 + $0xe0] sm:$0xff] }
 0x94e   :  { %v8782_v19 = vpack.c.bf16 %v5783_v38, %v5781_v22  ;;  %v8830_v22 = vpack.c.bf16 %v5896_v6, %v5895_v41  ;;  %v8834_v26 = vpack.c.bf16 %v5898_v62, %v5897_v24  ;;  %v8836_v27 = vpack.c.bf16 %v5916_v17, %v5915_v30  ;;  %v5918_v25 = vld [vmem:[#allocation16 + $0xe8] sm:$0xff]  ;;  %v5901_v36 = vld [vmem:[#allocation16 + $0x60] sm:$0xff]  ;;  %v5919_v39 = vld [vmem:[#allocation16 + $0xf0] sm:$0xff] }
 0x94f   :  { %v8780_v1 = vpack.c.bf16 %v5784_v42, %v5782_v20  ;;  %v8832_v20 = vpack.c.bf16 %v5914_v21, %v5913_v5  ;;  %v8838_v32 = vpack.c.bf16 %v5900_v23, %v5899_v31  ;;  %v8840_v35 = vpack.c.bf16 %v5918_v25, %v5917_v34  ;;  %v5902_v10 = vld [vmem:[#allocation16 + $0x68] sm:$0xff]  ;;  %v5920_v38 = vld [vmem:[#allocation16 + $0xf8] sm:$0xff]  ;;  %v5903_v40 = vld [vmem:[#allocation16 + $0x70] sm:$0xff] }
 0x950   :  { %v8842_v37 = vpack.c.bf16 %v5902_v10, %v5901_v36  ;;  %v8844_v28 = vpack.c.bf16 %v5920_v38, %v5919_v39  ;;  %v5904_v42 = vld [vmem:[#allocation16 + $0x78] sm:$0xff]  ;;  %v5949_v43 = vld [vmem:[#allocation16 + $0x1c0] sm:$0xff]  ;;  %v5950_v44 = vld [vmem:[#allocation16 + $0x1c8] sm:$0xff] }
 0x951   :  { %8781 = vmatprep.subr.bf16.mxu1 %v8780_v1  ;;  %v8800_v1 = vpack.c.bf16 %v5950_v44, %v5949_v43  ;;  %v5933_v61 = vld [vmem:[#allocation16 + $0x140] sm:$0xff]  ;;  %v5934_v47 = vld [vmem:[#allocation16 + $0x148] sm:$0xff]  ;;  %v5951_v50 = vld [vmem:[#allocation16 + $0x1d0] sm:$0xff] }
 0x952   :  { %8783 = vmatpush1.bf16.msra.mxu1 %v8782_v19  ;;  %v8846_v19 = vpack.c.bf16 %v5904_v42, %v5903_v40  ;;  %v8802_v51 = vpack.c.bf16 %v5934_v47, %v5933_v61  ;;  %v8804_v53 = vpack.c.bf16 %v5952_v52, %v5951_v50  ;;  %v5936_v54 = vld [vmem:[#allocation16 + $0x158] sm:$0xff]  ;;  %v5953_v46 = vld [vmem:[#allocation16 + $0x1e0] sm:$0xff]  ;;  %v5954_v48 = vld [vmem:[#allocation16 + $0x1e8] sm:$0xff] }
 0x953   :  { %7134 = vmatprep.subr.msk.mxu1 %vm2556_vm9, %v5786_v45  ;;  %8801 = vmatprep.subr.bf16.mxu0 %v8800_v1  ;;  %v5935_v45 = vld [vmem:[#allocation16 + $0x150] sm:$0xff]  ;;  %v5940_v7 = vld [vmem:[#allocation16 + $0x178] sm:$0xff]  ;;  %v6113_v21 = vld [vmem:[#allocation16 + $0x200] sm:$0xff] }
 0x954   :  { %8803 = vmatpush3.bf16.msra.mxu0 %v8802_v51  ;;  %v8806_v29 = vpack.c.bf16 %v5936_v54, %v5935_v45  ;;  %v5939_v3 = vld [vmem:[#allocation16 + $0x170] sm:$0xff]  ;;  %v6132_v23 = vld [vmem:[#allocation16 + $0x298] sm:$0xff]  ;;  %v6133_v42 = vld [vmem:[#allocation16 + $0x2a0] sm:$0xff] }
 0x955   :  { %8805 = vmatprep.subr.bf16.mxu0 %v8804_v53  ;;  %v6131_v24 = vld [vmem:[#allocation16 + $0x290] sm:$0xff]  ;;  %v6134_v43 = vld [vmem:[#allocation16 + $0x2a8] sm:$0xff]  ;;  %v6117_v61 = vld [vmem:[#allocation16 + $0x220] sm:$0xff] }
 0x956   :  { %7135 = vmatpush1.msk.msra.mxu1 %vm2556_vm9, %v5785_v56  ;;  %v8808_v56 = vpack.c.bf16 %v5954_v48, %v5953_v46  ;;  %v8852_v39 = vpack.c.bf16 %v6132_v23, %v6131_v24  ;;  %v6115_v38 = vld [vmem:[#allocation16 + $0x210] sm:$0xff]  ;;  %v8856_v1 = vpack.c.bf16 %v6134_v43, %v6133_v42  ;;  %v6118_v47 = vld [vmem:[#allocation16 + $0x228] sm:$0xff]  ;;  %v6136_v50 = vld [vmem:[#allocation16 + $0x2b8] sm:$0xff] }
 0x957   :  { %7136 = vmatmul.mubr.msk.f32.vlgmr.msra.gmra.mrb[62].mxu1 %vm2549_vm10, %v5787_v59  ;;  %8817 = vmatprep.subr.bf16.mxu1 %v8816_v49  ;;  %v5937_v49 = vld [vmem:[#allocation16 + $0x160] sm:$0xff]  ;;  %v5938_v59 = vld [vmem:[#allocation16 + $0x168] sm:$0xff]  ;;  %v6135_v51 = vld [vmem:[#allocation16 + $0x2b0] sm:$0xff]  ;;  %v8858_v52 = vpack.c.bf16 %v6118_v47, %v6117_v61 }
 0x958   :  { %5871 = vmatprep.mubr.f32.mxu1 %v9555_v0  ;;  %8819 = vmatpush3.bf16.msra.mxu1 %v8818_v57  ;;  %v5955_v57 = vld [vmem:[#allocation16 + $0x1f0] sm:$0xff]  ;;  %v8810_v58 = vpack.c.bf16 %v5938_v59, %v5937_v49  ;;  %v8860_v53 = vpack.c.bf16 %v6136_v50, %v6135_v51  ;;  %v6120_v54 = vld [vmem:[#allocation16 + $0x238] sm:$0xff]  ;;  %v6138_v46 = vld [vmem:[#allocation16 + $0x2c8] sm:$0xff] }
 0x959   :  { %8821 = vmatprep.subr.bf16.mxu1 %v8820_v33  ;;  %v5956_v33 = vld [vmem:[#allocation16 + $0x1f8] sm:$0xff]  ;;  %8807 = vmatpush3.bf16.msra.mxu0 %v8806_v29  ;;  %v6119_v45 = vld [vmem:[#allocation16 + $0x230] sm:$0xff]  ;;  %v6137_v29 = vld [vmem:[#allocation16 + $0x2c0] sm:$0xff] }
 0x95a   :  { %8809 = vmatprep.subr.bf16.mxu0 %v8808_v56  ;;  %v8812_v60 = vpack.c.bf16 %v5956_v33, %v5955_v57  ;;  %v8862_v48 = vpack.c.bf16 %v6120_v54, %v6119_v45  ;;  %v8864_v49 = vpack.c.bf16 %v6138_v46, %v6137_v29  ;;  %v6121_v56 = vld [vmem:[#allocation16 + $0x240] sm:$0xff]  ;;  %v6122_v59 = vld [vmem:[#allocation16 + $0x248] sm:$0xff]  ;;  %v6139_v57 = vld [vmem:[#allocation16 + $0x2d0] sm:$0xff] }
 0x95b   :  { %7137 = vmatmul.mubr.msk.f32.gmra.mrb[64].mxu1 %vm2549_vm10, %v5788_v9  ;;  %v8814_v9 = vpack.c.bf16 %v5940_v7, %v5939_v3  ;;  %v6140_v33 = vld [vmem:[#allocation16 + $0x2d8] sm:$0xff]  ;;  %v6123_v3 = vld [vmem:[#allocation16 + $0x250] sm:$0xff]  ;;  %v6287_v61 = vld [vmem:[#allocation19 + $0x160] sm:$0xff] }
 0x95c   :  { %8823 = vmatpush3.bf16.msra.mxu1 %v8822_v11  ;;  %v6129_v11 = vld [vmem:[#allocation16 + $0x280] sm:$0xff]  ;;  %v6124_v7 = vld [vmem:[#allocation16 + $0x258] sm:$0xff]  ;;  %v6288_v43 = vld [vmem:[#allocation19 + $0x168] sm:$0xff] }
 0x95d   :  { %8825 = vmatprep.subr.bf16.mxu1 %v8824_v12  ;;  %8811 = vmatpush3.bf16.msra.mxu0 %v8810_v58  ;;  %v6130_v12 = vld [vmem:[#allocation16 + $0x288] sm:$0xff]  ;;  %v8866_v58 = vpack.c.bf16 %v6122_v59, %v6121_v56  ;;  %v6277_v23 = vld [vmem:[#allocation19 + $0x110] sm:$0xff] }
 0x95e   :  { %8813 = vmatprep.subr.bf16.mxu0 %v8812_v60  ;;  %v8848_v13 = vpack.c.bf16 %v6130_v12, %v6129_v11  ;;  %v8868_v60 = vpack.c.bf16 %v6140_v33, %v6139_v57  ;;  %v6142_v11 = vld [vmem:[#allocation16 + $0x2e8] sm:$0xff]  ;;  %v8870_v12 = vpack.c.bf16 %v6124_v7, %v6123_v3  ;;  %v6285_v42 = vld [vmem:[#allocation19 + $0x150] sm:$0xff] }
 0x95f   :  { %v6289_v47 = vld [vmem:[#allocation19 + $0x170] sm:$0xff]  ;;  %v6292_v50 = vld [vmem:[#allocation19 + $0x188] sm:$0xff]  ;;  %v6291_v45 = vld [vmem:[#allocation19 + $0x180] sm:$0xff] }
 0x960   :  { %8827 = vmatpush3.bf16.msra.mxu1 %v8826_v63  ;;  %v8894_v51 = vpack.c.bf16 %v6289_v47, %v6287_v61  ;;  %v6293_v54 = vld [vmem:[#allocation19 + $0x190] sm:$0xff]  ;;  %v6296_v46 = vld [vmem:[#allocation19 + $0x1a8] sm:$0xff]  ;;  %v6295_v56 = vld [vmem:[#allocation19 + $0x1a0] sm:$0xff] }
 0x961   :  { %8829 = vmatprep.subr.bf16.mxu1 %v8828_v16  ;;  %8815 = vmatpush3.bf16.msra.mxu0 %v8814_v9  ;;  %v6141_v9 = vld [vmem:[#allocation16 + $0x2e0] sm:$0xff]  ;;  %v8898_v29 = vpack.c.bf16 %v6293_v54, %v6291_v45  ;;  %v6297_v59 = vld [vmem:[#allocation19 + $0x1b0] sm:$0xff]  ;;  %v6300_v33 = vld [vmem:[#allocation19 + $0x1c8] sm:$0xff] }
 0x962   :  { %8849 = vmatprep.subr.bf16.mxu0 %v8848_v13  ;;  %v8872_v13 = vpack.c.bf16 %v6142_v11, %v6141_v9  ;;  %v8902_v57 = vpack.c.bf16 %v6297_v59, %v6295_v56  ;;  %v6299_v3 = vld [vmem:[#allocation19 + $0x1c0] sm:$0xff]  ;;  %v6301_v7 = vld [vmem:[#allocation19 + $0x1d0] sm:$0xff]  ;;  %v6304_v11 = vld [vmem:[#allocation19 + $0x1e8] sm:$0xff] }
 0x963   :  { %v8906_v9 = vpack.c.bf16 %v6301_v7, %v6299_v3  ;;  %v6257_v61 = vld [vmem:[#allocation19 + $0x78] sm:$0xff] }
 0x964   :  { %8831 = vmatpush3.bf16.msra.mxu1 %v8830_v22  ;;  %v6261_v45 = vld [vmem:[#allocation19 + $0x98] sm:$0xff] }
 0x965   :  { %8833 = vmatprep.subr.bf16.mxu1 %v8832_v20  ;;  %v6114_v20 = vld [vmem:[#allocation16 + $0x208] sm:$0xff]  ;;  %v6265_v56 = vld [vmem:[#allocation19 + $0xb8] sm:$0xff] }
 0x966   :  { %v8850_v36 = vpack.c.bf16 %v6114_v20, %v6113_v21  ;;  %v6269_v3 = vld [vmem:[#allocation19 + $0xd8] sm:$0xff] }
 0x968   :  { %8835 = vmatpush3.bf16.msra.mxu1 %v8834_v26 }
 0x969   :  { %8837 = vmatprep.subr.bf16.mxu1 %v8836_v27 }
 0x96c   :  { %8839 = vmatpush3.bf16.msra.mxu1 %v8838_v32 }
 0x96d   :  { %8841 = vmatprep.subr.bf16.mxu1 %v8840_v35 }
 0x970   :  { %8843 = vmatpush3.bf16.msra.mxu1 %v8842_v37 }
 0x971   :  { %8845 = vmatprep.subr.bf16.mxu1 %v8844_v28  ;;  %v6116_v28 = vld [vmem:[#allocation16 + $0x218] sm:$0xff] }
 0x974   :  { %8847 = vmatpush3.bf16.msra.mxu1 %v8846_v19  ;;  %v8854_v19 = vpack.c.bf16 %v6116_v28, %v6115_v38 }
 0xa2a   :  { %v5867_v14 = vpop.f32.mrb[62].mxu1 }
 0xa2b   :  { %v5878_v15 = vmax.f32 %v5867_v14, 0.0  ;;  %v5869_v55 = vpop.f32.mrb[63].mxu1  ;;  %v6125_v14 = vld [vmem:[#allocation16 + $0x260] sm:$0xff] }
 0xa2c   :  { %v5879_v63 = vmax.f32 %v5869_v55, 0.0  ;;  %v6143_v55 = vld [vmem:[#allocation16 + $0x2f0] sm:$0xff] }
 0xa2d   :  { %5883 = vst [vmem:[#allocation4 + $0x20] sm:$0xff] %v5878_v15 }
 0xa2e   :  { %5884 = vst [vmem:[#allocation4 + $0x28] sm:$0xff] %v5879_v63  ;;  %v5873_v16 = vpop.f32.mrb[64].mxu1  ;;  %6103 = vmatprep.mubr.f32.mxu1 %v5879_v63  ;;  %v6144_v63 = vld [vmem:[#allocation16 + $0x2f8] sm:$0xff] }
 0xa2f   :  { %v5880_v41 = vmax.f32 %v5873_v16, 0.0  ;;  %v5875_v6 = vpop.f32.mrb[65].mxu1  ;;  %6104 = vmatmul.mubr.f32.vlgmr.msra.gmra.mrb[66].mxu1 %v5878_v15  ;;  %v6126_v15 = vld [vmem:[#allocation16 + $0x268] sm:$0xff] }
 0xa30   :  { %v5881_v5 = vmax.f32 %v5875_v6, 0.0  ;;  %6371 = vmatprep.mubr.f32.mxu1 %v9555_v0  ;;  %v8874_v16 = vpack.c.bf16 %v6126_v15, %v6125_v14  ;;  %v6127_v6 = vld [vmem:[#allocation16 + $0x270] sm:$0xff]  ;;  %v6303_v14 = vld [vmem:[#allocation19 + $0x1e0] sm:$0xff] }
 0xa31   :  { %5885 = vst [vmem:[#allocation4 + $0x30] sm:$0x3] %v5880_v41  ;;  %v8876_v41 = vpack.c.bf16 %v6144_v63, %v6143_v55  ;;  %v6305_v15 = vld [vmem:[#allocation19 + $0x1f0] sm:$0xff]  ;;  %v6243_v63 = vld [vmem:[#allocation19 + $0x8] sm:$0xff] }
 0xa32   :  { %5886 = vst [vmem:[#allocation4 + $0x38] sm:$0x3] %v5881_v5  ;;  %v6128_v5 = vld [vmem:[#allocation16 + $0x278] sm:$0xff]  ;;  %v8910_v55 = vpack.c.bf16 %v6305_v15, %v6303_v14 }
 0xa33   :  { %v6273_v14 = vld [vmem:[#allocation19 + $0xf8] sm:$0xff] }
 0xa34   :  { %v5921_v62 = vld [vmem:[#allocation4 + $0x20] sm:$0xfe] }
 0xa35   :  { %v5922_v22 = vld [vmem:[#allocation4 + $0x28] sm:$0xfe]  ;;  %v5961_v35 = vrot.slane %v5921_v62, 1  ;;  %v6109_v20 = vld [vmem:[#allocation4 + $0x20] sm:$0xfc] }
 0xa36   :  { %v6110_v30 = vld [vmem:[#allocation4 + $0x28] sm:$0xfc]  ;;  %v5964_v32 = vrot.slane %v5922_v22, 1  ;;  %v8878_v22 = vpack.c.bf16 %v6128_v5, %v6127_v6  ;;  %v6149_v62 = vrot.slane %v6109_v20, 2 }
 0xa37   :  { %v6152_v37 = vrot.slane %v6110_v30, 2  ;;  %v6276_v30 = vld [vmem:[#allocation19 + $0x108] sm:$0xff] }
 0xa38   :  { %v5923_v26 = vld [vmem:[#allocation4 + $0x30] sm:$0x1] }
 0xa39   :  { %v5924_v17 = vld [vmem:[#allocation4 + $0x38] sm:$0x1]  ;;  %v5962_v27 = vrot.slane %v5923_v26, 1  ;;  %v6111_v21 = vld [vmem:[#allocation4 + $0x30] sm:$0x3] }
 0xa3a   :  { %v6112_v31 = vld [vmem:[#allocation4 + $0x38] sm:$0x3]  ;;  %v5965_v34 = vrot.slane %v5924_v17, 1  ;;  %v6150_v24 = vrot.slane %v6111_v21, 2  ;;  %v6278_v17 = vld [vmem:[#allocation19 + $0x118] sm:$0xff] }
 0xa3b   :  { %v6153_v25 = vrot.slane %v6112_v31, 2  ;;  %v5963_v40 = vsel %vm1174_vm6, %v5961_v35, %v5962_v27  ;;  %v6275_v27 = vld [vmem:[#allocation19 + $0x100] sm:$0xff]  ;;  %v8880_v31 = vpack.c.bf16 %v6278_v17, %v6276_v30 }
 0xa3c   :  { %v5966_v10 = vsel %vm1174_vm6, %v5964_v32, %v5965_v34  ;;  %v6151_v26 = vsel %vm2047_vm8, %v6149_v62, %v6150_v24  ;;  %v6280_v32 = vld [vmem:[#allocation19 + $0x128] sm:$0xff]  ;;  %v6282_v34 = vld [vmem:[#allocation19 + $0x138] sm:$0xff] }
 0xa3d   :  { %6033 = vmatprep.mubr.f32.mxu0 %v5966_v10  ;;  %v6154_v44 = vsel %vm2047_vm8, %v6152_v37, %v6153_v25  ;;  %v8882_v25 = vpack.c.bf16 %v6277_v23, %v6275_v27  ;;  %v8884_v35 = vpack.c.bf16 %v6282_v34, %v6280_v32  ;;  %v6281_v10 = vld [vmem:[#allocation19 + $0x130] sm:$0xff]  ;;  %v6284_v37 = vld [vmem:[#allocation19 + $0x148] sm:$0xff]  ;;  %8881 = vmatprep.subr.bf16.mxu1 %v8880_v31  ;;  %v7138_v27 = vld [vmem:[#allocation17] ss:$0 sm:$0xff] }
 0xa3e   :  { %6034 = vmatmul.mubr.f32.vlgmr.msra.gmra.mrb[26].mxu0 %v5963_v40  ;;  %v6283_v40 = vld [vmem:[#allocation19 + $0x140] sm:$0xff]  ;;  %v6244_v32 = vld [vmem:[#allocation19 + $0x10] sm:$0xff]  ;;  %v6247_v34 = vld [vmem:[#allocation19 + $0x28] sm:$0xff] }
 0xa3f   :  { %8851 = vmatpush3.bf16.msra.mxu0 %v8850_v36  ;;  %6221 = vmatprep.mubr.f32.mxu0 %v6154_v44  ;;  %v6279_v36 = vld [vmem:[#allocation19 + $0x120] sm:$0xff]  ;;  %v6290_v44 = vld [vmem:[#allocation19 + $0x178] sm:$0xff] }
 0xa40   :  { %8853 = vmatprep.subr.bf16.mxu0 %v8852_v39  ;;  %v6286_v39 = vld [vmem:[#allocation19 + $0x158] sm:$0xff]  ;;  %8883 = vmatpush1.bf16.msra.mxu1 %v8882_v25  ;;  %v8886_v38 = vpack.c.bf16 %v6281_v10, %v6279_v36  ;;  %v6242_v23 = vld [vmem:[#allocation19] sm:$0xff] }
 0xa41   :  { %8885 = vmatprep.subr.bf16.mxu1 %v8884_v35  ;;  %v8888_v28 = vpack.c.bf16 %v6286_v39, %v6284_v37  ;;  %v6249_v25 = vld [vmem:[#allocation19 + $0x38] sm:$0xff]  ;;  %v8914_v36 = vpack.c.bf16 %v6244_v32, %v6242_v23  ;;  %v6246_v39 = vld [vmem:[#allocation19 + $0x20] sm:$0xff]  ;;  %v6459_v23 = vld [vmem:[#allocation19 + $0x248] sm:$0xff] }
 0xa42   :  { %v8916_v37 = vpack.c.bf16 %v6249_v25, %v6247_v34  ;;  %v6461_v32 = vld [vmem:[#allocation19 + $0x258] sm:$0xff] }
 0xa43   :  { %8855 = vmatpush3.bf16.msra.mxu0 %v8854_v19  ;;  %v8890_v19 = vpack.c.bf16 %v6285_v42, %v6283_v40  ;;  %v6253_v40 = vld [vmem:[#allocation19 + $0x58] sm:$0xff]  ;;  %v8952_v25 = vpack.c.bf16 %v6461_v32, %v6459_v23  ;;  %v6585_v23 = vld [vmem:[#allocation23] sm:$0xf] }
 0xa44   :  { %8857 = vmatprep.subr.bf16.mxu0 %v8856_v1  ;;  %8887 = vmatpush1.bf16.msra.mxu1 %v8886_v38  ;;  %v8892_v1 = vpack.c.bf16 %v6290_v44, %v6288_v43  ;;  %v6248_v38 = vld [vmem:[#allocation19 + $0x30] sm:$0xff]  ;;  %v6250_v44 = vld [vmem:[#allocation19 + $0x40] sm:$0xff] }
 0xa45   :  { %8889 = vmatprep.subr.bf16.mxu1 %v8888_v28  ;;  %v6251_v28 = vld [vmem:[#allocation19 + $0x48] sm:$0xff]  ;;  %v8918_v42 = vpack.c.bf16 %v6248_v38, %v6246_v39 }
 0xa46   :  { %v8920_v43 = vpack.c.bf16 %v6253_v40, %v6251_v28  ;;  %v6462_v28 = vld [vmem:[#allocation19 + $0x260] sm:$0xff]  ;;  %v6464_v40 = vld [vmem:[#allocation19 + $0x270] sm:$0xff] }
 0xa47   :  { %8859 = vmatpush3.bf16.msra.mxu0 %v8858_v52  ;;  %v6294_v52 = vld [vmem:[#allocation19 + $0x198] sm:$0xff] }
 0xa48   :  { %8861 = vmatprep.subr.bf16.mxu0 %v8860_v53  ;;  %8891 = vmatpush1.bf16.msra.mxu1 %v8890_v19  ;;  %v8896_v53 = vpack.c.bf16 %v6294_v52, %v6292_v50  ;;  %v6252_v19 = vld [vmem:[#allocation19 + $0x50] sm:$0xff]  ;;  %v6254_v50 = vld [vmem:[#allocation19 + $0x60] sm:$0xff] }
 0xa49   :  { %8893 = vmatprep.subr.bf16.mxu1 %v8892_v1  ;;  %v6255_v1 = vld [vmem:[#allocation19 + $0x68] sm:$0xff]  ;;  %v8922_v47 = vpack.c.bf16 %v6252_v19, %v6250_v44  ;;  %v6256_v52 = vld [vmem:[#allocation19 + $0x70] sm:$0xff]  ;;  %v8958_v44 = vpack.c.bf16 %v6464_v40, %v6462_v28 }
 0xa4a   :  { %v8926_v54 = vpack.c.bf16 %v6256_v52, %v6254_v50  ;;  %v6689_v28 = vld [vmem:[%s10508_s11 + $0x28] sm:$0xff] }
 0xa4b   :  { %8863 = vmatpush3.bf16.msra.mxu0 %v8862_v48  ;;  %v6298_v48 = vld [vmem:[#allocation19 + $0x1b8] sm:$0xff] }
 0xa4c   :  { %8865 = vmatprep.subr.bf16.mxu0 %v8864_v49  ;;  %8895 = vmatpush1.bf16.msra.mxu1 %v8894_v51  ;;  %v8900_v49 = vpack.c.bf16 %v6298_v48, %v6296_v46  ;;  %v8924_v51 = vpack.c.bf16 %v6257_v61, %v6255_v1  ;;  %v6258_v46 = vld [vmem:[#allocation19 + $0x80] sm:$0xff]  ;;  %v6260_v48 = vld [vmem:[#allocation19 + $0x90] sm:$0xff] }
 0xa4d   :  { %8897 = vmatprep.subr.bf16.mxu1 %v8896_v53  ;;  %v6259_v53 = vld [vmem:[#allocation19 + $0x88] sm:$0xff]  ;;  %v8930_v59 = vpack.c.bf16 %v6260_v48, %v6258_v46  ;;  %v6466_v1 = vld [vmem:[#allocation19 + $0x280] sm:$0xff]  ;;  %v6468_v61 = vld [vmem:[#allocation19 + $0x290] sm:$0xff] }
 0xa4e   :  { %v8962_v50 = vpack.c.bf16 %v6468_v61, %v6466_v1  ;;  %v6691_v1 = vld [vmem:[%s10508_s11 + $0x38] sm:$0xff] }
 0xa4f   :  { %8867 = vmatpush3.bf16.msra.mxu0 %v8866_v58  ;;  %v6302_v58 = vld [vmem:[#allocation19 + $0x1d8] sm:$0xff] }
 0xa50   :  { %8869 = vmatprep.subr.bf16.mxu0 %v8868_v60  ;;  %8899 = vmatpush1.bf16.msra.mxu1 %v8898_v29  ;;  %v8904_v60 = vpack.c.bf16 %v6302_v58, %v6300_v33  ;;  %v8928_v29 = vpack.c.bf16 %v6261_v45, %v6259_v53  ;;  %v6262_v33 = vld [vmem:[#allocation19 + $0xa0] sm:$0xff]  ;;  %v6264_v58 = vld [vmem:[#allocation19 + $0xb0] sm:$0xff] }
 0xa51   :  { %8901 = vmatprep.subr.bf16.mxu1 %v8900_v49  ;;  %v6263_v49 = vld [vmem:[#allocation19 + $0xa8] sm:$0xff]  ;;  %v8934_v7 = vpack.c.bf16 %v6264_v58, %v6262_v33  ;;  %v6470_v53 = vld [vmem:[#allocation19 + $0x2a0] sm:$0xff]  ;;  %v6472_v45 = vld [vmem:[#allocation19 + $0x2b0] sm:$0xff] }
 0xa52   :  { %v8966_v46 = vpack.c.bf16 %v6472_v45, %v6470_v53  ;;  %v6693_v53 = vld [vmem:[%s10508_s11 + $0x48] sm:$0xff] }
 0xa53   :  { %8871 = vmatpush3.bf16.msra.mxu0 %v8870_v12  ;;  %v6306_v12 = vld [vmem:[#allocation19 + $0x1f8] sm:$0xff] }
 0xa54   :  { %8873 = vmatprep.subr.bf16.mxu0 %v8872_v13  ;;  %8903 = vmatpush1.bf16.msra.mxu1 %v8902_v57  ;;  %v8908_v13 = vpack.c.bf16 %v6306_v12, %v6304_v11  ;;  %v8932_v57 = vpack.c.bf16 %v6265_v56, %v6263_v49  ;;  %v6266_v11 = vld [vmem:[#allocation19 + $0xc0] sm:$0xff]  ;;  %v6268_v12 = vld [vmem:[#allocation19 + $0xd0] sm:$0xff] }
 0xa55   :  { %8905 = vmatprep.subr.bf16.mxu1 %v8904_v60  ;;  %v6267_v60 = vld [vmem:[#allocation19 + $0xc8] sm:$0xff]  ;;  %v8938_v15 = vpack.c.bf16 %v6268_v12, %v6266_v11  ;;  %v6474_v49 = vld [vmem:[#allocation19 + $0x2c0] sm:$0xff]  ;;  %v6476_v56 = vld [vmem:[#allocation19 + $0x2d0] sm:$0xff] }
 0xa56   :  { %v8970_v33 = vpack.c.bf16 %v6476_v56, %v6474_v49  ;;  %v6555_v11 = vld [vmem:[#allocation20] sm:$0x3]  ;;  %v6695_v49 = vld [vmem:[%s10508_s11 + $0x58] sm:$0xff] }
 0xa57   :  { %8875 = vmatpush3.bf16.msra.mxu0 %v8874_v16  ;;  %v6245_v16 = vld [vmem:[#allocation19 + $0x18] sm:$0xff]  ;;  %v6560_v12 = vrot.slane %v6555_v11, %v9906_v2 }
 0xa58   :  { %8877 = vmatprep.subr.bf16.mxu0 %v8876_v41  ;;  %8907 = vmatpush1.bf16.msra.mxu1 %v8906_v9  ;;  %v8912_v41 = vpack.c.bf16 %v6245_v16, %v6243_v63  ;;  %v8936_v9 = vpack.c.bf16 %v6269_v3, %v6267_v60  ;;  %v6270_v63 = vld [vmem:[#allocation19 + $0xe0] sm:$0xff]  ;;  %v6272_v16 = vld [vmem:[#allocation19 + $0xf0] sm:$0xff] }
 0xa59   :  { %8909 = vmatprep.subr.bf16.mxu1 %v8908_v13  ;;  %v6271_v13 = vld [vmem:[#allocation19 + $0xe8] sm:$0xff]  ;;  %v6478_v60 = vld [vmem:[#allocation19 + $0x2e0] sm:$0xff]  ;;  %v6480_v3 = vld [vmem:[#allocation19 + $0x2f0] sm:$0xff] }
 0xa5a   :  { %v6701_v2 = vld [vmem:[%s10508_s11 + $0x88] sm:$0xff] }
 0xa5b   :  { %8879 = vmatpush3.bf16.msra.mxu0 %v8878_v22 }
 0xa5c   :  { %7548 = vmatprep.subr.mxu0 %v9555_v0  ;;  %8911 = vmatpush1.bf16.msra.mxu1 %v8910_v55  ;;  %v8940_v55 = vpack.c.bf16 %v6273_v14, %v6271_v13  ;;  %v6564_v13 = vrot.slane %v6555_v11, %v9909_v4 }
 0xa5d   :  { %8913 = vmatprep.subr.bf16.mxu1 %v8912_v41  ;;  %v6451_v41 = vld [vmem:[#allocation19 + $0x208] sm:$0xff] }
 0xa5e   :  { %6222 = vmatmul.mubr.f32.vlgmr.msra.gmra.mrb[28].mxu0 %v6151_v26 }
 0xa5f   :  { %7550 = vmatprep.mubr.msk.f32.mxu0 %vm9558_vm4, %v9555_v0 }
 0xb02   :  { %v7350_v6 = vpop.f32.mrb[66].mxu1 }
 0xb03   :  { %v7351_v5 = vpop.f32.mrb[67].mxu1 }
 0xb04   :  { %v7352_v21 = vadd.f32 %v7351_v5, %v7350_v6  ;;  %v6453_v6 = vld [vmem:[#allocation19 + $0x218] sm:$0xff]  ;;  %v8942_v5 = vpack.c.bf16 %v6272_v16, %v6270_v63 }
 0xb11   :  { %v7315_v22 = vpop.f32.mrb[26].mxu0 }
 0xb12   :  { %v7316_v20 = vpop.f32.mrb[27].mxu0 }
 0xb13   :  { %v7317_v24 = vadd.f32 %v7316_v20, %v7315_v22  ;;  %v6450_v22 = vld [vmem:[#allocation19 + $0x200] sm:$0xff]  ;;  %v6452_v20 = vld [vmem:[#allocation19 + $0x210] sm:$0xff] }
 0xb15   :  { %v6106_v62 = vadd.f32 %v7352_v21, %v7317_v24  ;;  %v8944_v21 = vpack.c.bf16 %v6453_v6, %v6451_v41  ;;  %v6455_v24 = vld [vmem:[#allocation19 + $0x228] sm:$0xff] }
 0xb31   :  { %v7385_v26 = vpop.f32.mrb[28].mxu0 }
 0xb32   :  { %v7386_v30 = vpop.f32.mrb[29].mxu0 }
 0xb33   :  { %v7387_v17 = vadd.f32 %v7386_v30, %v7385_v26  ;;  %v8946_v26 = vpack.c.bf16 %v6452_v20, %v6450_v22  ;;  %v6700_v22 = vld [vmem:[%s10508_s11 + $0x80] sm:$0xff] }
 0xb35   :  { %v6227_v31 = vadd.f32 %v7387_v17, %v6106_v62  ;;  %v6457_v62 = vld [vmem:[#allocation19 + $0x238] sm:$0xff]  ;;  %v6454_v17 = vld [vmem:[#allocation19 + $0x220] sm:$0xff] }
 0xb36   :  { %v8948_v30 = vpack.c.bf16 %v6457_v62, %v6455_v24  ;;  %v6684_v24 = vld [vmem:[%s10508_s11] sm:$0xff]  ;;  %v6685_v62 = vld [vmem:[%s10508_s11 + $0x8] sm:$0xff] }
 0xb37   :  { %v6235_v35 = vadd.f32 %v7138_v27, %v6227_v31  ;;  %v6456_v27 = vld [vmem:[#allocation19 + $0x230] sm:$0xff]  ;;  %v8978_v32 = vpack.c.bf16 %v6685_v62, %v6684_v24 }
 0xb38   :  { %v8950_v34 = vpack.c.bf16 %v6456_v27, %v6454_v17  ;;  %v6703_v17 = vld [vmem:[%s10508_s11 + $0x98] sm:$0xff]  ;;  %v8976_v27 = vpack.c.bf16 %v6701_v2, %v6700_v22  ;;  %v6717_v24 = vld [vmem:[%s10508_s11 + $0x108] sm:$0xff] }
 0xb39   :  { %v6239_v10 = vmax.f32 %v6235_v35, 0.0  ;;  %v6458_v35 = vld [vmem:[#allocation19 + $0x240] sm:$0xff] }
 0xb3b   :  { %6240 = vst [vmem:[#allocation5 + $0x11] sm:$0xff] %v6239_v10  ;;  %6372 = vmatmul.mubr.f32.vlgmr.msra.gmra.mrb[68].mxu1 %v6239_v10  ;;  %v6463_v10 = vld [vmem:[#allocation19 + $0x268] sm:$0xff] }
 0xb3c   :  { %8915 = vmatpush1.bf16.msra.mxu1 %v8914_v36  ;;  %6442 = vmatprep.mubr.f32.mxu1 %v9555_v0  ;;  %v6460_v36 = vld [vmem:[#allocation19 + $0x250] sm:$0xff] }
 0xb3d   :  { %8917 = vmatprep.subr.bf16.mxu1 %v8916_v37  ;;  %v6465_v37 = vld [vmem:[#allocation19 + $0x278] sm:$0xff]  ;;  %v8954_v39 = vpack.c.bf16 %v6460_v36, %v6458_v35  ;;  %v6687_v35 = vld [vmem:[%s10508_s11 + $0x18] sm:$0xff]  ;;  %v6704_v36 = vld [vmem:[%s10508_s11 + $0xa0] sm:$0xff] }
 0xb3e   :  { %v8956_v38 = vpack.c.bf16 %v6465_v37, %v6463_v10  ;;  %v6705_v10 = vld [vmem:[%s10508_s11 + $0xa8] sm:$0xff] }
 0xb40   :  { %8919 = vmatpush1.bf16.msra.mxu1 %v8918_v42  ;;  %v6467_v42 = vld [vmem:[#allocation19 + $0x288] sm:$0xff] }
 0xb41   :  { %8921 = vmatprep.subr.bf16.mxu1 %v8920_v43  ;;  %v6469_v43 = vld [vmem:[#allocation19 + $0x298] sm:$0xff] }
 0xb42   :  { %v6241_v31 = vld [vmem:[#allocation5 + $0x10] sm:$0xff]  ;;  %v8960_v19 = vpack.c.bf16 %v6469_v43, %v6467_v42  ;;  %v6706_v42 = vld [vmem:[%s10508_s11 + $0xb0] sm:$0xff]  ;;  %v6707_v43 = vld [vmem:[%s10508_s11 + $0xb8] sm:$0xff] }
 0xb44   :  { %8923 = vmatpush1.bf16.msra.mxu1 %v8922_v47  ;;  %v6471_v47 = vld [vmem:[#allocation19 + $0x2a8] sm:$0xff] }
 0xb45   :  { %8925 = vmatprep.subr.bf16.mxu1 %v8924_v51  ;;  %v6473_v51 = vld [vmem:[#allocation19 + $0x2b8] sm:$0xff] }
 0xb46   :  { %v8964_v52 = vpack.c.bf16 %v6473_v51, %v6471_v47  ;;  %v6708_v47 = vld [vmem:[%s10508_s11 + $0xc0] sm:$0xff]  ;;  %v6709_v51 = vld [vmem:[%s10508_s11 + $0xc8] sm:$0xff] }
 0xb48   :  { %8927 = vmatpush1.bf16.msra.mxu1 %v8926_v54  ;;  %v6475_v54 = vld [vmem:[#allocation19 + $0x2c8] sm:$0xff] }
 0xb49   :  { %8929 = vmatprep.subr.bf16.mxu1 %v8928_v29  ;;  %v6477_v29 = vld [vmem:[#allocation19 + $0x2d8] sm:$0xff] }
 0xb4a   :  { %v8968_v48 = vpack.c.bf16 %v6477_v29, %v6475_v54  ;;  %v6710_v54 = vld [vmem:[%s10508_s11 + $0xd0] sm:$0xff]  ;;  %v6711_v29 = vld [vmem:[%s10508_s11 + $0xd8] sm:$0xff] }
 0xb4c   :  { %8931 = vmatpush1.bf16.msra.mxu1 %v8930_v59  ;;  %v6479_v59 = vld [vmem:[#allocation19 + $0x2e8] sm:$0xff] }
 0xb4d   :  { %8933 = vmatprep.subr.bf16.mxu1 %v8932_v57  ;;  %v6481_v57 = vld [vmem:[#allocation19 + $0x2f8] sm:$0xff] }
 0xb4e   :  { %v8972_v58 = vpack.c.bf16 %v6481_v57, %v6479_v59  ;;  %v6712_v59 = vld [vmem:[%s10508_s11 + $0xe0] sm:$0xff]  ;;  %v6713_v57 = vld [vmem:[%s10508_s11 + $0xe8] sm:$0xff] }
 0xb50   :  { %8935 = vmatpush1.bf16.msra.mxu1 %v8934_v7  ;;  %v8974_v7 = vpack.c.bf16 %v6480_v3, %v6478_v60  ;;  %v6697_v60 = vld [vmem:[%s10508_s11 + $0x68] sm:$0xff]  ;;  %v6714_v3 = vld [vmem:[%s10508_s11 + $0xf0] sm:$0xff] }
 0xb51   :  { %8937 = vmatprep.subr.bf16.mxu1 %v8936_v9  ;;  %v6449_v9 = vld [vmem:[#allocation5 + $0x12] sm:$0xff] }
 0xb54   :  { %8939 = vmatpush1.bf16.msra.mxu1 %v8938_v15 }
 0xb55   :  { %8941 = vmatprep.subr.bf16.mxu1 %v8940_v55 }
 0xb58   :  { %8943 = vmatpush1.bf16.msra.mxu1 %v8942_v5 }
 0xb59   :  { %8945 = vmatprep.subr.bf16.mxu1 %v8944_v21 }
 0xb5b   :  { %6443 = vmatmul.mubr.f32.vlgmr.msra.gmra.mrb[68].mxu1 %v6241_v31 }
 0xb5c   :  { %8947 = vmatpush1.bf16.msra.mxu1 %v8946_v26  ;;  %6546 = vmatprep.mubr.f32.mxu1 %v9555_v0 }
 0xb5d   :  { %8949 = vmatprep.subr.bf16.mxu1 %v8948_v30  ;;  %v6702_v30 = vld [vmem:[%s10508_s11 + $0x90] sm:$0xff] }
 0xb60   :  { %8951 = vmatpush1.bf16.msra.mxu1 %v8950_v34  ;;  %v8980_v34 = vpack.c.bf16 %v6703_v17, %v6702_v30  ;;  %v6734_v30 = vld [vmem:[%s10508_s11 + $0x190] sm:$0xff]  ;;  %v6735_v17 = vld [vmem:[%s10508_s11 + $0x198] sm:$0xff] }
 0xb61   :  { %8953 = vmatprep.subr.bf16.mxu1 %v8952_v25  ;;  %v6686_v25 = vld [vmem:[%s10508_s11 + $0x10] sm:$0xff] }
 0xb62   :  { %v8982_v37 = vpack.c.bf16 %v6687_v35, %v6686_v25  ;;  %v6719_v25 = vld [vmem:[%s10508_s11 + $0x118] sm:$0xff] }
 0xb64   :  { %8955 = vmatpush1.bf16.msra.mxu1 %v8954_v39  ;;  %v8984_v39 = vpack.c.bf16 %v6705_v10, %v6704_v36  ;;  %v6736_v36 = vld [vmem:[%s10508_s11 + $0x1a0] sm:$0xff]  ;;  %v6737_v10 = vld [vmem:[%s10508_s11 + $0x1a8] sm:$0xff] }
 0xb65   :  { %8957 = vmatprep.subr.bf16.mxu1 %v8956_v38  ;;  %v6688_v38 = vld [vmem:[%s10508_s11 + $0x20] sm:$0xff] }
 0xb66   :  { %v8986_v40 = vpack.c.bf16 %v6689_v28, %v6688_v38  ;;  %v6721_v38 = vld [vmem:[%s10508_s11 + $0x128] sm:$0xff]  ;;  %v6738_v28 = vld [vmem:[%s10508_s11 + $0x1b0] sm:$0xff] }
 0xb68   :  { %8959 = vmatpush1.bf16.msra.mxu1 %v8958_v44  ;;  %v8988_v44 = vpack.c.bf16 %v6707_v43, %v6706_v42 }
 0xb69   :  { %8961 = vmatprep.subr.bf16.mxu1 %v8960_v19  ;;  %v6690_v19 = vld [vmem:[%s10508_s11 + $0x30] sm:$0xff] }
 0xb6a   :  { %v8990_v61 = vpack.c.bf16 %v6691_v1, %v6690_v19  ;;  %v6723_v19 = vld [vmem:[%s10508_s11 + $0x138] sm:$0xff]  ;;  %v6740_v1 = vld [vmem:[%s10508_s11 + $0x1c0] sm:$0xff] }
 0xb6c   :  { %8963 = vmatpush1.bf16.msra.mxu1 %v8962_v50  ;;  %v8992_v50 = vpack.c.bf16 %v6709_v51, %v6708_v47 }
 0xb6d   :  { %8965 = vmatprep.subr.bf16.mxu1 %v8964_v52  ;;  %v6692_v52 = vld [vmem:[%s10508_s11 + $0x40] sm:$0xff] }
 0xb6e   :  { %v8994_v45 = vpack.c.bf16 %v6693_v53, %v6692_v52  ;;  %v6725_v52 = vld [vmem:[%s10508_s11 + $0x148] sm:$0xff]  ;;  %v6742_v53 = vld [vmem:[%s10508_s11 + $0x1d0] sm:$0xff] }
 0xb70   :  { %8967 = vmatpush1.bf16.msra.mxu1 %v8966_v46  ;;  %v8996_v46 = vpack.c.bf16 %v6711_v29, %v6710_v54 }
 0xb71   :  { %8969 = vmatprep.subr.bf16.mxu1 %v8968_v48  ;;  %v6694_v48 = vld [vmem:[%s10508_s11 + $0x50] sm:$0xff] }
 0xb72   :  { %v8998_v56 = vpack.c.bf16 %v6695_v49, %v6694_v48  ;;  %v6727_v48 = vld [vmem:[%s10508_s11 + $0x158] sm:$0xff]  ;;  %v6744_v49 = vld [vmem:[%s10508_s11 + $0x1e0] sm:$0xff] }
 0xb74   :  { %8971 = vmatpush1.bf16.msra.mxu1 %v8970_v33  ;;  %v6696_v33 = vld [vmem:[%s10508_s11 + $0x60] sm:$0xff] }
 0xb75   :  { %8973 = vmatprep.subr.bf16.mxu1 %v8972_v58  ;;  %v9000_v58 = vpack.c.bf16 %v6713_v57, %v6712_v59 }
 0xb78   :  { %8975 = vmatpush1.bf16.msra.mxu1 %v8974_v7  ;;  %v6715_v7 = vld [vmem:[%s10508_s11 + $0xf8] sm:$0xff] }
 0xb79   :  { %v9004_v11 = vpack.c.bf16 %v6715_v7, %v6714_v3  ;;  %v6747_v3 = vld [vmem:[%s10508_s11 + $0x1f8] sm:$0xff] }
 0xb7b   :  { %6547 = vmatmul.mubr.f32.vlgmr.msra.gmra.mrb[68].mxu1 %v6449_v9  ;;  %v9002_v9 = vpack.c.bf16 %v6697_v60, %v6696_v33  ;;  %v6728_v33 = vld [vmem:[%s10508_s11 + $0x160] sm:$0xff]  ;;  %v6746_v60 = vld [vmem:[%s10508_s11 + $0x1f0] sm:$0xff] }
 0xc4e   :  { %v6548_v14 = vpop.f32.mrb[68].mxu1 }
 0xc4f   :  { %v6567_v15 = vadd.f32 %v6560_v12, %v6548_v14  ;;  %v6550_v55 = vpop.f32.mrb[69].mxu1  ;;  %v6698_v12 = vld [vmem:[%s10508_s11 + $0x70] sm:$0xff] }
 0xc50   :  { %v6568_v63 = vadd.f32 %v6564_v13, %v6550_v55  ;;  %v6699_v13 = vld [vmem:[%s10508_s11 + $0x78] sm:$0xff]  ;;  %v6733_v55 = vld [vmem:[%s10508_s11 + $0x188] sm:$0xff] }
 0xc51   :  { %6570 = vst [vmem:[#allocation6 + $0x10] sm:$0xff] %v6567_v15  ;;  %v9006_v14 = vpack.c.bf16 %v6699_v13, %v6698_v12  ;;  %v6732_v15 = vld [vmem:[%s10508_s11 + $0x180] sm:$0xff]  ;;  %v6731_v12 = vld [vmem:[%s10508_s11 + $0x178] sm:$0xff] }
 0xc52   :  { %6571 = vst [vmem:[#allocation6 + $0x18] sm:$0xff] %v6568_v63  ;;  %v9008_v63 = vpack.c.bf16 %v6733_v55, %v6732_v15  ;;  %v6919_v15 = vld [vmem:[%s10510_s13 + $0x8] sm:$0xff] }
 0xc58   :  { %v6574_v16 = vld [vmem:[#allocation6 + $0x10] sm:$0xfe] }
 0xc59   :  { %v6575_v41 = vld [vmem:[#allocation6 + $0x18] sm:$0xfe]  ;;  %v6578_v6 = vrot.slane %v6574_v16, 1  ;;  %v6572_v5 = vld [vmem:[#allocation6 + $0x10] sm:$0x7f] }
 0xc5a   :  { %v6579_v21 = vrot.slane %v6575_v41, 1  ;;  %v6573_v4 = vld [vmem:[#allocation6 + $0x18] sm:$0x7f] }
 0xc5b   :  { %v6582_v20 = vmax.f32 %v6572_v5, %v6578_v6 }
 0xc5c   :  { %v6583_v26 = vmax.f32 %v6573_v4, %v6579_v21 }
 0xc5e   :  { %v6584_v31 = vmax.f32 %v6582_v20, %v6583_v26  ;;  %v6716_v20 = vld [vmem:[%s10508_s11 + $0x100] sm:$0xff] }
 0xc60   :  { %7549 = vmatpush3.msk.msra.mxu0 %vm1174_vm6, %v6584_v31  ;;  %v9010_v31 = vpack.c.bf16 %v6717_v24, %v6716_v20 }
 0xc61   :  { %7551 = vmatmul.mubr.msk.f32.vlgmr.msra.gmra.mrb[30].mxu0 %vm3349_vm11, %v6585_v23  ;;  %8977 = vmatprep.subr.bf16.mxu0 %v8976_v27 }
 0xc62   :  { %8979 = vmatpush3.bf16.msra.mxu0 %v8978_v32  ;;  %v9012_v32 = vpack.c.bf16 %v6735_v17, %v6734_v30 }
 0xc63   :  { %8981 = vmatprep.subr.bf16.mxu0 %v8980_v34  ;;  %v6718_v34 = vld [vmem:[%s10508_s11 + $0x110] sm:$0xff] }
 0xc66   :  { %8983 = vmatpush3.bf16.msra.mxu0 %v8982_v37  ;;  %v9016_v37 = vpack.c.bf16 %v6737_v10, %v6736_v36 }
 0xc67   :  { %8985 = vmatprep.subr.bf16.mxu0 %v8984_v39  ;;  %v6720_v39 = vld [vmem:[%s10508_s11 + $0x120] sm:$0xff] }
 0xc68   :  { %v9018_v42 = vpack.c.bf16 %v6721_v38, %v6720_v39 }
 0xc6a   :  { %8987 = vmatpush3.bf16.msra.mxu0 %v8986_v40  ;;  %v6739_v40 = vld [vmem:[%s10508_s11 + $0x1b8] sm:$0xff] }
 0xc6b   :  { %8989 = vmatprep.subr.bf16.mxu0 %v8988_v44  ;;  %v9020_v43 = vpack.c.bf16 %v6739_v40, %v6738_v28  ;;  %v6722_v44 = vld [vmem:[%s10508_s11 + $0x130] sm:$0xff] }
 0xc6c   :  { %v9022_v47 = vpack.c.bf16 %v6723_v19, %v6722_v44 }
 0xc6e   :  { %8991 = vmatpush3.bf16.msra.mxu0 %v8990_v61  ;;  %v6741_v61 = vld [vmem:[%s10508_s11 + $0x1c8] sm:$0xff] }
 0xc6f   :  { %8993 = vmatprep.subr.bf16.mxu0 %v8992_v50  ;;  %v9024_v51 = vpack.c.bf16 %v6741_v61, %v6740_v1  ;;  %v6724_v50 = vld [vmem:[%s10508_s11 + $0x140] sm:$0xff] }
 0xc70   :  { %v9026_v54 = vpack.c.bf16 %v6725_v52, %v6724_v50 }
 0xc72   :  { %8995 = vmatpush3.bf16.msra.mxu0 %v8994_v45  ;;  %v6743_v45 = vld [vmem:[%s10508_s11 + $0x1d8] sm:$0xff] }
 0xc73   :  { %8997 = vmatprep.subr.bf16.mxu0 %v8996_v46  ;;  %v9028_v29 = vpack.c.bf16 %v6743_v45, %v6742_v53  ;;  %v6726_v46 = vld [vmem:[%s10508_s11 + $0x150] sm:$0xff] }
 0xc74   :  { %v9030_v59 = vpack.c.bf16 %v6727_v48, %v6726_v46 }
 0xc76   :  { %8999 = vmatpush3.bf16.msra.mxu0 %v8998_v56  ;;  %v6745_v56 = vld [vmem:[%s10508_s11 + $0x1e8] sm:$0xff] }
 0xc77   :  { %9001 = vmatprep.subr.bf16.mxu0 %v9000_v58  ;;  %v9032_v57 = vpack.c.bf16 %v6745_v56, %v6744_v49  ;;  %v6729_v58 = vld [vmem:[%s10508_s11 + $0x168] sm:$0xff] }
 0xc78   :  { %v9034_v7 = vpack.c.bf16 %v6729_v58, %v6728_v33 }
 0xc7a   :  { %9003 = vmatpush3.bf16.msra.mxu0 %v9002_v9  ;;  %v9036_v9 = vpack.c.bf16 %v6747_v3, %v6746_v60 }
 0xc7b   :  { %9005 = vmatprep.subr.bf16.mxu0 %v9004_v11  ;;  %v6730_v11 = vld [vmem:[%s10508_s11 + $0x170] sm:$0xff] }
 0xc7c   :  { %v9038_v13 = vpack.c.bf16 %v6731_v12, %v6730_v11 }
 0xc7e   :  { %9007 = vmatpush3.bf16.msra.mxu0 %v9006_v14  ;;  %v6918_v14 = vld [vmem:[%s10510_s13] sm:$0xff] }
 0xc7f   :  { %9009 = vmatprep.subr.bf16.mxu0 %v9008_v63  ;;  %v9041_v55 = vpack.c.bf16 %v6919_v15, %v6918_v14  ;;  %v6920_v63 = vld [vmem:[%s10510_s13 + $0x10] sm:$0xff] }
 0xd34   :  { %v6658_v16 = vpop.f32.mrb[30].mxu0 }
 0xd35   :  { %v6662_v41 = vmax.f32 %v6658_v16, 0.0  ;;  %v7552_v6 = vpop.f32.mrb[31].mxu0 }
 0xd37   :  { %6663 = vst [vmem:[#allocation7 + $0x1] sm:$0x1] %v6662_v41  ;;  %v6671_v5 = vrot.slane %v6662_v41, %v10135_v8 }
 0xd39   :  { %v7141_v21 = vrot.slane %v6671_v5, 9  ;;  %v6676_v22 = vcombine.high %v6671_v5, %v6671_v5 }
 0xd3b   :  { %6675 = vst [vmem:[#allocation7 + $0x3] sm:$0x1] %v7141_v21  ;;  %6678 = vst [vmem:[#allocation7 + $0x5] sm:$0x1] %v6676_v22  ;;  %v7142_v2 = vrot.slane %v6676_v22, 9 }
 0xd3c   :  { %v7143_v21 = vld [vmem:[#allocation25] ss:$0 sm:$0xff] }
 0xd3d   :  { %6682 = vst [vmem:[#allocation7 + $0x7] sm:$0x1] %v7142_v2 }
 0xd44   :  { %v6683_v4 = vld [vmem:[#allocation7] sm:$0xff] }
 0xd45   :  { %v6763_v62 = vrot.slane %v6683_v4, %v10135_v8  ;;  %v6756_v26 = vcombine.high %v6683_v4, %v6683_v4 }
 0xd47   :  { %v6771_v27 = vcombine.high %v6763_v62, %v6763_v62  ;;  %v6770_v23 = vrot.slane %v6756_v26, %v10135_v8  ;;  %v9014_v8 = vpack.c.bf16 %v6719_v25, %v6718_v34 }
 0xd49   :  { %6841 = vmatprep.mubr.f32.mxu0 %v6771_v27  ;;  %v6772_v35 = vcombine.high %v6770_v23, %v6770_v23 }
 0xd4a   :  { %6842 = vmatmul.mubr.f32.vlgmr.msra.gmra.mrb[32].mxu0 %v6763_v62  ;;  %v7144_v62 = vld [vmem:[#allocation26] ss:$0 sm:$0xff] }
 0xd4b   :  { %9011 = vmatpush3.bf16.msra.mxu0 %v9010_v31  ;;  %6911 = vmatprep.mubr.f32.mxu0 %v6772_v35 }
 0xd4c   :  { %9013 = vmatprep.subr.bf16.mxu0 %v9012_v32 }
 0xd4f   :  { %9015 = vmatpush3.bf16.msra.mxu0 %v9014_v8 }
 0xd50   :  { %9017 = vmatprep.subr.bf16.mxu0 %v9016_v37 }
 0xd53   :  { %9019 = vmatpush3.bf16.msra.mxu0 %v9018_v42 }
 0xd54   :  { %9021 = vmatprep.subr.bf16.mxu0 %v9020_v43 }
 0xd57   :  { %9023 = vmatpush3.bf16.msra.mxu0 %v9022_v47 }
 0xd58   :  { %9025 = vmatprep.subr.bf16.mxu0 %v9024_v51 }
 0xd5b   :  { %9027 = vmatpush3.bf16.msra.mxu0 %v9026_v54 }
 0xd5c   :  { %9029 = vmatprep.subr.bf16.mxu0 %v9028_v29 }
 0xd5f   :  { %9031 = vmatpush3.bf16.msra.mxu0 %v9030_v59 }
 0xd60   :  { %9033 = vmatprep.subr.bf16.mxu0 %v9032_v57 }
 0xd63   :  { %9035 = vmatpush3.bf16.msra.mxu0 %v9034_v7 }
 0xd64   :  { %9037 = vmatprep.subr.bf16.mxu0 %v9036_v9 }
 0xd67   :  { %9039 = vmatpush3.bf16.msra.mxu0 %v9038_v13 }
 0xd68   :  { %9040 = vmatprep.subr.bf16.mxu0 %v9557_v18 }
 0xd6a   :  { %6912 = vmatmul.mubr.f32.vlgmr.msra.gmra.mrb[34].mxu0 %v6770_v23 }
 0xd6b   :  { %7561 = vmatprep.mubr.msk.f32.mxu0 %vm9558_vm4, %v9555_v0  ;;  %9042 = vmatpush3.bf16.msra.mxu0 %v9041_v55  ;;  %v6921_v0 = vld [vmem:[%s10510_s13 + $0x18] sm:$0xff]  ;;  %s9497_s13 = scalar_lea.vmem %s7012_s23, 32 }
 0xd6c   :  { %9043 = vmatprep.subr.bf16.mxu0 %v9557_v18  ;;  %v9044_v16 = vpack.c.bf16 %v6921_v0, %v6920_v63  ;;  %p9498_p12 = scmp.ne.s32.totalorder %s7012_s23, %s9497_s13  ;;  %p9503_p0 = scmp.lt.s32.totalorder %s9497_s13, %s9497_s13 }
 0xd6e   :  { %p9504_p1 = por %p9503_p0, %p9502_p13 }
 0xd6f   :  { %9045 = vmatpush3.bf16.msra.mxu0 %v9044_v16 }
 0xd70   :  { %p9505_p2 = pnand %p9504_p1, %p9498_p12 }
 0xe1d   :  { %v7422_v41 = vpop.f32.mrb[32].mxu0 }
 0xe1e   :  { %v7423_v6 = vpop.f32.mrb[33].mxu0 }
 0xe1f   :  { %v7424_v5 = vadd.f32 %v7423_v6, %v7422_v41 }
 0xe21   :  { %v6844_v4 = vadd.f32 %v7424_v5, %v7143_v21 }
 0xe3d   :  { %v7457_v22 = vpop.f32.mrb[34].mxu0 }
 0xe3e   :  { %v7458_v2 = vpop.f32.mrb[35].mxu0 }
 0xe3f   :  { %v7459_v20 = vadd.f32 %v7458_v2, %v7457_v22 }
 0xe41   :  { %v6914_v24 = vadd.f32 %v7459_v20, %v6844_v4 }
 0xe43   :  { %v6917_v18 = vmax.f32 %v6914_v24, 0.0 }
 0xe45   :  { %7562 = vmatmul.mubr.msk.f32.vlgmr.msra.gmra.mrb[36].mxu0 %vm6929_vm12, %v6917_v18 }
 0xf18   :  { %v6999_v26 = vpop.f32.mrb[36].mxu0 }
 0xf19   :  { %v7000_v30 = vadd.f32 %v7144_v62, %v6999_v26  ;;  %v7563_v17 = vpop.f32.mrb[37].mxu0 }
 0xf1b   :  { %7004 = vst.msk [vmem:[#allocation28] sm:$0x3] %vm7003_vm13, %v7000_v30 }
 0xf1c   :  { %9508 = shalt.err (!%p9505_p2)
}
 0xf1d   :  { %s9509_s25 = scalar_lea.hbm %s10512_s15, 32 }
 0xf1e   :  { %p9510_p3 = scmp.ne.s32.totalorder %s10512_s15, %s9509_s25  ;;  %p9513_p4 = scmp.lt.u32.totalorder %s9509_s25, %s10512_s15 }
 0xf20   :  { %p9515_p5 = pnand %p9513_p4, %p9510_p3 }
 0xf22   :  { %9518 = shalt.err (!%p9515_p5)
}
 0xf23   :  { %7014 = dma.vmem_to_hbm [thread:$0]  %s7012_s23, 32, %s10512_s15, [#allocation10]  }
 0xf24   :  { %9533 = dma.done.wait [#allocation10], 32  }
 0xf25   :  { %9534 = vsyncadd [#allocation10], 4294967264 }
 0xf26   :  { %7018 = vsyncpa [#allocation9], 1 }
 0xf27   :  { %7019 = vsyncpa [#allocation12], 1 }
 0xf28   :  { %7020 = vsyncpa [#allocation15], 1 }
 0xf29   :  { %7021 = vsyncpa [#allocation18], 1 }
 0xf2a   :  { %7022 = vsyncpa [#allocation21], 1 }
 0xf2b   :  { %7023 = vsyncpa [#allocation24], 1 }
 0xf2c   :  { %7024 = vsyncpa [#allocation27], 1 }
 0xf2d   :  { %7025 = vsyncpa [#allocation10], 1 }

</bundles_post_ra>
